<compile_context>
chip_gen: v7x
topology: tpu7x:2x2x1
jax: 0.10.0
libtpu: 0.0.40
codegen_flags: <defaults>
</compile_context>

<pallas_src>
import functools

import numpy as np

import jax
import jax.numpy as jnp
from jax.experimental import pallas as pl
from jax.experimental.pallas import tpu as pltpu


CLIP_MEAN = (0.48145466, 0.4578275, 0.40821073)
CLIP_STD = (0.26862954, 0.26130258, 0.27577711)
CLIP_RES = 224  # CLIP input resolution (hard-coded in the PyTorch module)


# ----------------------------------------------------------------------------
# Host-side: separable bicubic interpolation matrix (align_corners=True, a=-0.75)
# ----------------------------------------------------------------------------
def _cubic_weight(t, a=-0.75):
    t = abs(float(t))
    if t <= 1.0:
        return (a + 2.0) * t ** 3 - (a + 3.0) * t ** 2 + 1.0
    if t < 2.0:
        return a * t ** 3 - 5.0 * a * t ** 2 + 8.0 * a * t - 4.0 * a
    return 0.0


def _bicubic_matrix(in_size, out_size):
    """(out_size, in_size) bicubic interpolation matrix (replicate padding)."""
    m = np.zeros((out_size, in_size), dtype=np.float32)
    scale = 0.0 if out_size == 1 else (in_size - 1) / (out_size - 1)
    for o in range(out_size):
        src = o * scale
        i0 = int(np.floor(src))
        t = src - i0
        for k in range(-1, 3):
            idx = min(max(i0 + k, 0), in_size - 1)
            m[o, idx] += _cubic_weight(t - k)
    return m


# ----------------------------------------------------------------------------
# Small helpers
# ----------------------------------------------------------------------------
def _vmem_full():
    return pl.BlockSpec(memory_space=pltpu.MemorySpace.VMEM)


def _smem_full():
    return pl.BlockSpec(memory_space=pltpu.MemorySpace.SMEM)


def _parallel(n=1):
    return pltpu.CompilerParams(dimension_semantics=("parallel",) * n)


def _pick_tm(m):
    """Largest row tile that divides m and gives >= 2 grid steps (else whole m)."""
    for tm in (256, 128, 64, 32, 16, 8):
        if m % tm == 0 and m // tm >= 2:
            return tm
    return m


# ----------------------------------------------------------------------------
# Kernel 1: bicubic resize (two bf16 MXU matmuls) + (x+1)/2 + CLIP normalize
#   grid over the (b*3) slice axis, scale/bias scalars read from SMEM.
# ----------------------------------------------------------------------------
def _resize_kernel(x_ref, wh_ref, wwt_ref, scale_ref, bias_ref, o_ref):
    i = pl.program_id(0)
    img = x_ref[...].astype(jnp.bfloat16)                               # (H, W)
    tmp = jnp.dot(wh_ref[...], img, preferred_element_type=jnp.float32)  # (224, W)
    res = jnp.dot(tmp.astype(jnp.bfloat16), wwt_ref[...],
                  preferred_element_type=jnp.float32)                    # (224, 224)
    o_ref[...] = (res * scale_ref[i] + bias_ref[i]).astype(o_ref.dtype)


def _pallas_preprocess(x):
    b, c, h, w = x.shape
    assert c == 3, "CLIP preprocessing expects 3-channel input"
    n = b * 3
    wh = jnp.asarray(_bicubic_matrix(h, CLIP_RES), jnp.bfloat16)       # (224, H)
    wwt = jnp.asarray(_bicubic_matrix(w, CLIP_RES).T, jnp.bfloat16)    # (W, 224)
    # (x+1)/2 then (v - mean)/std  ==  v * (0.5/std) + (0.5 - mean)/std
    scales = jnp.asarray([0.5 / CLIP_STD[j % 3] for j in range(n)], jnp.float32)
    biases = jnp.asarray([(0.5 - CLIP_MEAN[j % 3]) / CLIP_STD[j % 3] for j in range(n)],
                         jnp.float32)
    x_flat = x.reshape(n, h, w).astype(jnp.float32)
    out = pl.pallas_call(
        _resize_kernel,
        grid=(n,),
        out_shape=jax.ShapeDtypeStruct((n, CLIP_RES, CLIP_RES), jnp.bfloat16),
        in_specs=[pl.BlockSpec((None, h, w), lambda i: (i, 0, 0)),
                  _vmem_full(), _vmem_full(),
                  _smem_full(), _smem_full()],
        out_specs=pl.BlockSpec((None, CLIP_RES, CLIP_RES), lambda i: (i, 0, 0)),
        compiler_params=_parallel(1),
    )(x_flat, wh, wwt, scales, biases)
    return out.reshape(b, 3, CLIP_RES, CLIP_RES)


# ----------------------------------------------------------------------------
# Kernel 2: fused [LayerNorm] -> dense (bf16 MXU) -> [QuickGELU] -> [+ residual]
#   grid over row tiles ("parallel"); weights/bias/LN params whole-operand in VMEM.
# ----------------------------------------------------------------------------
def _make_dense_kernel(has_ln, activation, has_residual):
    def kernel(*refs):
        idx = 0
        x_ref = refs[idx]; idx += 1
        if has_ln:
            g_ref, bln_ref = refs[idx], refs[idx + 1]; idx += 2
        w_ref, bias_ref = refs[idx], refs[idx + 1]; idx += 2
        if has_residual:
            res_ref = refs[idx]; idx += 1
        o_ref = refs[idx]

        x = x_ref[...].astype(jnp.float32)
        if has_ln:
            mean = jnp.mean(x, axis=-1, keepdims=True)
            xc = x - mean
            var = jnp.mean(xc * xc, axis=-1, keepdims=True)
            x = xc * jax.lax.rsqrt(var + 1e-5) * g_ref[...] + bln_ref[...]
        y = jnp.dot(x.astype(jnp.bfloat16), w_ref[...].astype(jnp.bfloat16),
                    preferred_element_type=jnp.float32)
        y = y + bias_ref[...]
        if activation == "quick_gelu":        # CLIP's QuickGELU: y * sigmoid(1.702 y)
            y = y * pl.reciprocal(1.0 + jnp.exp(-1.702 * y), approx=True)
        if has_residual:
            y = y + res_ref[...]
        o_ref[...] = y
    return kernel


def _pallas_dense(x, w, b, *, ln=None, activation="none", residual=None):
    m, k = x.shape
    n = w.shape[1]
    tm = _pick_tm(m)
    operands = [x]
    in_specs = [pl.BlockSpec((tm, k), lambda i: (i, 0))]
    if ln is not None:
        g, beta = ln
        operands += [g.reshape(1, k), beta.reshape(1, k)]
        in_specs += [_vmem_full(), _vmem_full()]
    operands += [w, b.reshape(1, n)]
    in_specs += [_vmem_full(), _vmem_full()]
    if residual is not None:
        operands.append(residual)
        in_specs.append(pl.BlockSpec((tm, n), lambda i: (i, 0)))
    return pl.pallas_call(
        _make_dense_kernel(ln is not None, activation, residual is not None),
        grid=(m // tm,),
        out_shape=jax.ShapeDtypeStruct((m, n), jnp.float32),
        in_specs=in_specs,
        out_specs=pl.BlockSpec((tm, n), lambda i: (i, 0)),
        compiler_params=_parallel(1),
    )(*operands)


# ----------------------------------------------------------------------------
# Kernel 3: LayerNorm over last dim (standalone; used only for ln_pre)
# ----------------------------------------------------------------------------
def _layernorm_kernel(x_ref, g_ref, b_ref, o_ref):
    x = x_ref[...]
    mean = jnp.mean(x, axis=-1, keepdims=True)
    xc = x - mean
    var = jnp.mean(xc * xc, axis=-1, keepdims=True)
    o_ref[...] = xc * jax.lax.rsqrt(var + 1e-5) * g_ref[...] + b_ref[...]


def _pallas_layernorm(x, g, b):
    m, d = x.shape
    tm = _pick_tm(m)
    return pl.pallas_call(
        _layernorm_kernel,
        grid=(m // tm,),
        out_shape=jax.ShapeDtypeStruct((m, d), jnp.float32),
        in_specs=[pl.BlockSpec((tm, d), lambda i: (i, 0)), _vmem_full(), _vmem_full()],
        out_specs=pl.BlockSpec((tm, d), lambda i: (i, 0)),
        compiler_params=_parallel(1),
    )(x, g.reshape(1, d), b.reshape(1, d))


# ----------------------------------------------------------------------------
# Kernel 4: attention — grid over batch, heads split/merged inside via lane slices
#   of the (t_pad, 3*width) QKV slab; padded key columns masked out.
# ----------------------------------------------------------------------------
def _make_attention_kernel(heads, dh, t_pad, t_real, scale):
    width = heads * dh

    def kernel(qkv_ref, o_ref):
        key_mask = None
        if t_real < t_pad:
            col = jax.lax.broadcasted_iota(jnp.int32, (t_pad, t_pad), 1)
            key_mask = col < t_real
        for h in range(heads):
            q = qkv_ref[:, h * dh:(h + 1) * dh].astype(jnp.bfloat16)                  # (t, dh)
            k = qkv_ref[:, width + h * dh:width + (h + 1) * dh].astype(jnp.bfloat16)  # (t, dh)
            v = qkv_ref[:, 2 * width + h * dh:2 * width + (h + 1) * dh].astype(jnp.bfloat16)
            s = jax.lax.dot_general(q, k, (((1,), (1,)), ((), ())),
                                    preferred_element_type=jnp.float32) * scale       # (t, t)
            if key_mask is not None:
                s = jnp.where(key_mask, s, -1e30)
            s = s - jnp.max(s, axis=-1, keepdims=True)
            p = jnp.exp(s)
            p = p * pl.reciprocal(jnp.sum(p, axis=-1, keepdims=True), approx=True)
            o = jnp.dot(p.astype(jnp.bfloat16), v, preferred_element_type=jnp.float32)
            o_ref[:, h * dh:(h + 1) * dh] = o
    return kernel


def _pallas_attention(qkv, heads, dh, t_real, scale):
    b, t_pad, three_w = qkv.shape
    width = heads * dh
    return pl.pallas_call(
        _make_attention_kernel(heads, dh, t_pad, t_real, scale),
        grid=(b,),
        out_shape=jax.ShapeDtypeStruct((b, t_pad, width), jnp.float32),
        in_specs=[pl.BlockSpec((None, t_pad, three_w), lambda i: (i, 0, 0))],
        out_specs=pl.BlockSpec((None, t_pad, width), lambda i: (i, 0, 0)),
        compiler_params=_parallel(1),
    )(qkv)


# ----------------------------------------------------------------------------
# Model parameters (random-initialised small CLIP-ViT); matmul weights stored bf16
# ----------------------------------------------------------------------------
def _init_clip_vit_params(key, cfg):
    width, layers, patch = cfg["width"], cfg["layers"], cfg["patch"]
    out_dim = cfg["output_dim"]
    gp = CLIP_RES // patch
    t = gp * gp + 1
    keys = iter(jax.random.split(key, 4 + 4 * layers))
    s = width ** -0.5
    bf = jnp.bfloat16
    params = {
        "conv1_w": (jax.random.normal(next(keys), (3 * patch * patch, width), jnp.float32)
                    * (3 * patch * patch) ** -0.5).astype(bf),
        "conv1_b": jnp.zeros((width,), jnp.float32),
        "class_emb": jax.random.normal(next(keys), (width,), jnp.float32) * s,
        "pos_emb": jax.random.normal(next(keys), (t, width), jnp.float32) * s,
        "ln_pre_g": jnp.ones((width,), jnp.float32),
        "ln_pre_b": jnp.zeros((width,), jnp.float32),
        "ln_post_g": jnp.ones((width,), jnp.float32),
        "ln_post_b": jnp.zeros((width,), jnp.float32),
        "head_w": (jax.random.normal(next(keys), (width, out_dim), jnp.float32) * s).astype(bf),
        "head_b": jnp.zeros((out_dim,), jnp.float32),
        "blocks": [],
    }
    for _ in range(layers):
        params["blocks"].append({
            "ln1_g": jnp.ones((width,), jnp.float32),
            "ln1_b": jnp.zeros((width,), jnp.float32),
            "qkv_w": (jax.random.normal(next(keys), (width, 3 * width), jnp.float32) * s).astype(bf),
            "qkv_b": jnp.zeros((3 * width,), jnp.float32),
            "out_w": (jax.random.normal(next(keys), (width, width), jnp.float32) * s).astype(bf),
            "out_b": jnp.zeros((width,), jnp.float32),
            "ln2_g": jnp.ones((width,), jnp.float32),
            "ln2_b": jnp.zeros((width,), jnp.float32),
            "fc_w": (jax.random.normal(next(keys), (width, 4 * width), jnp.float32) * s).astype(bf),
            "fc_b": jnp.zeros((4 * width,), jnp.float32),
            "proj_w": (jax.random.normal(next(keys), (4 * width, width), jnp.float32)
                       * (4 * width) ** -0.5).astype(bf),
            "proj_b": jnp.zeros((width,), jnp.float32),
        })
    return params


# ----------------------------------------------------------------------------
# Pallas forward pass
# ----------------------------------------------------------------------------
def _pallas_forward(params, x, cfg):
    b = x.shape[0]
    patch, width, heads = cfg["patch"], cfg["width"], cfg["heads"]
    gp = CLIP_RES // patch
    t_real = gp * gp + 1
    t_pad = max(64, ((t_real + 7) // 8) * 8)       # sublane-friendly token count
    dh = width // heads

    # preprocess (bicubic resize + normalize), bf16 output
    x224 = _pallas_preprocess(x)                                    # (b,3,224,224) bf16

    # conv1 (stride == kernel == patch, no bias) == patch-flatten + matmul.
    # TODO(synk): patch-flatten layout could be emitted by the resize kernel directly.
    xp = x224.reshape(b, 3, gp, patch, gp, patch).transpose(0, 2, 4, 1, 3, 5)
    xp = xp.reshape(b * gp * gp, 3 * patch * patch)
    tok = _pallas_dense(xp, params["conv1_w"], params["conv1_b"])   # (b*gp*gp, width)
    tok = tok.reshape(b, gp * gp, width)

    cls = jnp.broadcast_to(params["class_emb"][None, None, :], (b, 1, width))
    seq = jnp.concatenate([cls, tok], axis=1) + params["pos_emb"][None]   # (b, t_real, W)
    seq = jnp.pad(seq, ((0, 0), (0, t_pad - t_real), (0, 0)))             # pad tokens
    xf = seq.reshape(b * t_pad, width)
    xf = _pallas_layernorm(xf, params["ln_pre_g"], params["ln_pre_b"])

    scale = dh ** -0.5
    for blk in params["blocks"]:
        # x = x + out_proj(attn(ln_1(x)))       (LN fused into QKV, residual into out-proj)
        qkv = _pallas_dense(xf, blk["qkv_w"], blk["qkv_b"],
                            ln=(blk["ln1_g"], blk["ln1_b"]))              # (b*t, 3W)
        attn = _pallas_attention(qkv.reshape(b, t_pad, 3 * width),
                                 heads, dh, t_real, scale)                # (b, t, W)
        xf = _pallas_dense(attn.reshape(b * t_pad, width),
                           blk["out_w"], blk["out_b"], residual=xf)
        # x = x + mlp(ln_2(x))                  (LN fused into fc, residual into proj)
        h2 = _pallas_dense(xf, blk["fc_w"], blk["fc_b"],
                           ln=(blk["ln2_g"], blk["ln2_b"]), activation="quick_gelu")
        xf = _pallas_dense(h2, blk["proj_w"], blk["proj_b"], residual=xf)

    cls_out = xf.reshape(b, t_pad, width)[:, 0, :]                        # (b, width)
    return _pallas_dense(cls_out, params["head_w"], params["head_b"],
                         ln=(params["ln_post_g"], params["ln_post_b"]))   # (b, out_dim)


# ----------------------------------------------------------------------------
# Pure-JAX reference (same math & bf16 dot-operand casts, no padding)
# ----------------------------------------------------------------------------
def _ref_forward(params, x, cfg):
    b, c, h, w = x.shape
    patch, width, heads = cfg["patch"], cfg["width"], cfg["heads"]
    gp = CLIP_RES // patch
    t = gp * gp + 1
    dh = width // heads
    bf = jnp.bfloat16

    wh = jnp.asarray(_bicubic_matrix(h, CLIP_RES), bf)
    wwt = jnp.asarray(_bicubic_matrix(w, CLIP_RES).T, bf)
    xf = x.reshape(b * 3, h, w).astype(bf)
    tmp = jnp.einsum("oh,nhw->now", wh, xf, preferred_element_type=jnp.float32)
    res = jnp.einsum("now,wp->nop", tmp.astype(bf), wwt, preferred_element_type=jnp.float32)
    sc = jnp.asarray([0.5 / CLIP_STD[j % 3] for j in range(b * 3)], jnp.float32)[:, None, None]
    bi = jnp.asarray([(0.5 - CLIP_MEAN[j % 3]) / CLIP_STD[j % 3] for j in range(b * 3)],
                     jnp.float32)[:, None, None]
    x224 = (res * sc + bi).astype(bf).reshape(b, 3, CLIP_RES, CLIP_RES)

    def layernorm(xx, g, be):
        mean = jnp.mean(xx, -1, keepdims=True)
        xc = xx - mean
        var = jnp.mean(xc * xc, -1, keepdims=True)
        return xc * jax.lax.rsqrt(var + 1e-5) * g.reshape(1, -1) + be.reshape(1, -1)

    def dense(xx, ww, bb, ln=None, act="none", residual=None):
        xx = xx.astype(jnp.float32)
        if ln is not None:
            xx = layernorm(xx, *ln)
        y = jnp.dot(xx.astype(bf), ww.astype(bf), preferred_element_type=jnp.float32)
        y = y + bb.reshape(1, -1)
        if act == "quick_gelu":
            y = y * (1.0 / (1.0 + jnp.exp(-1.702 * y)))
        if residual is not None:
            y = y + residual
        return y

    xp = x224.reshape(b, 3, gp, patch, gp, patch).transpose(0, 2, 4, 1, 3, 5)
    xp = xp.reshape(b * gp * gp, 3 * patch * patch)
    tok = dense(xp, params["conv1_w"], params["conv1_b"]).reshape(b, gp * gp, width)
    cls = jnp.broadcast_to(params["class_emb"][None, None, :], (b, 1, width))
    seq = jnp.concatenate([cls, tok], axis=1) + params["pos_emb"][None]
    xr = layernorm(seq.reshape(b * t, width), params["ln_pre_g"], params["ln_pre_b"])

    scale = dh ** -0.5
    for blk in params["blocks"]:
        qkv = dense(xr, blk["qkv_w"], blk["qkv_b"], ln=(blk["ln1_g"], blk["ln1_b"]))
        qkv3 = qkv.reshape(b, t, 3 * width)
        outs = []
        for hd in range(heads):
            q = qkv3[:, :, hd * dh:(hd + 1) * dh].astype(bf)
            k = qkv3[:, :, width + hd * dh:width + (hd + 1) * dh].astype(bf)
            v = qkv3[:, :, 2 * width + hd * dh:2 * width + (hd + 1) * dh].astype(bf)
            s = jnp.einsum("bqd,bkd->bqk", q, k, preferred_element_type=jnp.float32) * scale
            s = s - jnp.max(s, -1, keepdims=True)
            p = jnp.exp(s)
            p = p / jnp.sum(p, -1, keepdims=True)
            outs.append(jnp.einsum("bqk,bkd->bqd", p.astype(bf), v,
                                   preferred_element_type=jnp.float32))
        attn = jnp.concatenate(outs, axis=-1).reshape(b * t, width)
        xr = dense(attn, blk["out_w"], blk["out_b"], residual=xr)
        h2 = dense(xr, blk["fc_w"], blk["fc_b"], ln=(blk["ln2_g"], blk["ln2_b"]),
                   act="quick_gelu")
        xr = dense(h2, blk["proj_w"], blk["proj_b"], residual=xr)

    cls_out = xr.reshape(b, t, width)[:, 0, :]
    return dense(cls_out, params["head_w"], params["head_b"],
                 ln=(params["ln_post_g"], params["ln_post_b"]))


# ----------------------------------------------------------------------------
# Module
# ----------------------------------------------------------------------------
class FrozenClipImageEmbedder:
    """JAX/Pallas port of FrozenClipImageEmbedder (CLIP image encoder + preprocess)."""

    def __init__(self, model="ViT-tiny-random", jit=True, antialias=False, rng=None,
                 width=64, layers=2, heads=2, patch=32, output_dim=64):
        del model  # TODO(synk): pretrained CLIP weights via clip.load() are not loadable here.
        self.antialias = antialias
        self.cfg = dict(width=width, layers=layers, heads=heads,
                        patch=patch, output_dim=output_dim)
        if rng is None:
            rng = jax.random.PRNGKey(0)
        self.params = _init_clip_vit_params(rng, self.cfg)
        fwd = functools.partial(_pallas_forward, cfg=self.cfg)
        ref = functools.partial(_ref_forward, cfg=self.cfg)
        self._fwd = jax.jit(fwd) if jit else fwd
        self._ref = jax.jit(ref) if jit else ref

    def __call__(self, x):
        return self._fwd(self.params, x)

    forward = __call__

    def reference(self, x):
        return self._ref(self.params, x)


if __name__ == "__main__":
    root = jax.random.PRNGKey(0)
    k_params, k_x = jax.random.split(root)

    batch, channels, height, width_img = 2, 3, 64, 64
    module = FrozenClipImageEmbedder(rng=k_params)

    # Input in [-1, 1], as the module's preprocess (x + 1) / 2 expects.
    x = jax.random.uniform(k_x, (batch, channels, height, width_img),
                           minval=-1.0, maxval=1.0, dtype=jnp.float32)

    out = jax.block_until_ready(module(x))
    ref = jax.block_until_ready(module.reference(x))

    assert out.shape == (batch, module.cfg["output_dim"]), out.shape
    assert out.dtype == jnp.float32
    assert bool(jnp.all(jnp.isfinite(out)))
    assert jnp.allclose(out, ref, rtol=5e-2, atol=5e-2), \
        float(jnp.max(jnp.abs(out - ref)))

    print("KERNEL_OK")
</pallas_src>

<mosaic_0001>
module attributes {stable_mosaic.version = 11 : i64} {
  func.func @_resize_kernel(%arg0: i32, %arg1: memref<1x64x64xf32, #tpu.memory_space<vmem>>, %arg2: memref<224x64xbf16, #tpu.memory_space<vmem>>, %arg3: memref<64x224xbf16, #tpu.memory_space<vmem>>, %arg4: memref<6xf32, #tpu.memory_space<smem>>, %arg5: memref<6xf32, #tpu.memory_space<smem>>, %arg6: memref<1x224x224xbf16, #tpu.memory_space<vmem>>) attributes {dimension_semantics = [#tpu.dimension_semantics<parallel>], iteration_bounds = array<i64: 6>, scalar_prefetch = 0 : i64, scratch_operands = 0 : i64, tpu.core_type = #tpu.core_type<tc>, window_params = [{transform_indices = @transform_0, window_bounds = array<i64: 1, 64, 64>}, {pipeline_mode = #tpu.pipeline_mode<synchronous>, transform_indices = @transform_1, window_bounds = array<i64: 224, 64>}, {pipeline_mode = #tpu.pipeline_mode<synchronous>, transform_indices = @transform_2, window_bounds = array<i64: 64, 224>}, {transform_indices = @transform_3, window_bounds = array<i64: 6>}, {transform_indices = @transform_4, window_bounds = array<i64: 6>}, {transform_indices = @transform_5, window_bounds = array<i64: 1, 224, 224>}]} {
    %c0 = arith.constant 0 : index
    %c0_0 = arith.constant 0 : index
    %c0_1 = arith.constant 0 : index
    %0 = vector.load %arg1[%c0, %c0_0, %c0_1] : memref<1x64x64xf32, #tpu.memory_space<vmem>>, vector<1x64x64xf32>
    %1 = vector.shape_cast %0 : vector<1x64x64xf32> to vector<64x64xf32>
    %2 = arith.truncf %1 : vector<64x64xf32> to vector<64x64xbf16>
    %c0_2 = arith.constant 0 : index
    %c0_3 = arith.constant 0 : index
    %3 = vector.load %arg2[%c0_2, %c0_3] : memref<224x64xbf16, #tpu.memory_space<vmem>>, vector<224x64xbf16>
    %cst = arith.constant dense<0.000000e+00> : vector<224x64xf32>
    %4 = tpu.matmul %3, %2, %cst {dimension_numbers = #tpu.dot_dimension_numbers<[1], [0], [0], [1], [0, 0, 1, 1], [], []>} : vector<224x64xbf16>, vector<64x64xbf16>, vector<224x64xf32> -> vector<224x64xf32>
    %5 = arith.truncf %4 : vector<224x64xf32> to vector<224x64xbf16>
    %c0_4 = arith.constant 0 : index
    %c0_5 = arith.constant 0 : index
    %6 = vector.load %arg3[%c0_4, %c0_5] : memref<64x224xbf16, #tpu.memory_space<vmem>>, vector<64x224xbf16>
    %cst_6 = arith.constant dense<0.000000e+00> : vector<224x224xf32>
    %7 = tpu.matmul %5, %6, %cst_6 {dimension_numbers = #tpu.dot_dimension_numbers<[1], [0], [0], [1], [0, 0, 1, 1], [], []>} : vector<224x64xbf16>, vector<64x224xbf16>, vector<224x224xf32> -> vector<224x224xf32>
    %8 = arith.index_cast %arg0 : i32 to index
    %9 = memref.load %arg4[%8] : memref<6xf32, #tpu.memory_space<smem>>
    %10 = vector.broadcast %9 : f32 to vector<224x224xf32>
    %11 = arith.mulf %7, %10 : vector<224x224xf32>
    %12 = arith.index_cast %arg0 : i32 to index
    %13 = memref.load %arg5[%12] : memref<6xf32, #tpu.memory_space<smem>>
    %14 = vector.broadcast %13 : f32 to vector<224x224xf32>
    %15 = arith.addf %11, %14 : vector<224x224xf32>
    %16 = arith.truncf %15 : vector<224x224xf32> to vector<224x224xbf16>
    %c0_7 = arith.constant 0 : index
    %c0_8 = arith.constant 0 : index
    %c0_9 = arith.constant 0 : index
    %17 = vector.load %arg6[%c0_7, %c0_8, %c0_9] : memref<1x224x224xbf16, #tpu.memory_space<vmem>>, vector<1x224x224xbf16>
    %18 = vector.shape_cast %17 : vector<1x224x224xbf16> to vector<224x224xbf16>
    %19 = vector.shape_cast %16 : vector<224x224xbf16> to vector<1x224x224xbf16>
    tpu.vector_store %arg6[%c0_7, %c0_8, %c0_9], %19 {strides = array<i32>} : memref<1x224x224xbf16, #tpu.memory_space<vmem>>, vector<1x224x224xbf16>,
    return
  }
  func.func @transform_0(%arg0: i32) -> (i32, i32, i32) {
    %c0_i32 = arith.constant 0 : i32
    %c0_i32_0 = arith.constant 0 : i32
    %c0_i32_1 = arith.constant 0 : i32
    return %arg0, %c0_i32, %c0_i32_0 : i32, i32, i32
  }
  func.func @transform_1(%arg0: i32) -> (i32, i32) {
    %c0_i32 = arith.constant 0 : i32
    %c0_i32_0 = arith.constant 0 : i32
    %c0_i32_1 = arith.constant 0 : i32
    return %c0_i32, %c0_i32_0 : i32, i32
  }
  func.func @transform_2(%arg0: i32) -> (i32, i32) {
    %c0_i32 = arith.constant 0 : i32
    %c0_i32_0 = arith.constant 0 : i32
    %c0_i32_1 = arith.constant 0 : i32
    return %c0_i32, %c0_i32_0 : i32, i32
  }
  func.func @transform_3(%arg0: i32) -> i32 {
    %c0_i32 = arith.constant 0 : i32
    %c0_i32_0 = arith.constant 0 : i32
    return %c0_i32 : i32
  }
  func.func @transform_4(%arg0: i32) -> i32 {
    %c0_i32 = arith.constant 0 : i32
    %c0_i32_0 = arith.constant 0 : i32
    return %c0_i32 : i32
  }
  func.func @transform_5(%arg0: i32) -> (i32, i32, i32) {
    %c0_i32 = arith.constant 0 : i32
    %c0_i32_0 = arith.constant 0 : i32
    %c0_i32_1 = arith.constant 0 : i32
    return %arg0, %c0_i32, %c0_i32_0 : i32, i32, i32
  }
}

module attributes {stable_mosaic.version = 11 : i64} {
  func.func @kernel(%arg0: i32, %arg1: memref<98x3072xbf16, #tpu.memory_space<vmem>>, %arg2: memref<3072x64xbf16, #tpu.memory_space<vmem>>, %arg3: memref<1x64xf32, #tpu.memory_space<vmem>>, %arg4: memref<98x64xf32, #tpu.memory_space<vmem>>) attributes {dimension_semantics = [#tpu.dimension_semantics<parallel>], iteration_bounds = array<i64: 1>, scalar_prefetch = 0 : i64, scratch_operands = 0 : i64, tpu.core_type = #tpu.core_type<tc>, window_params = [{transform_indices = @transform_0, window_bounds = array<i64: 98, 3072>}, {pipeline_mode = #tpu.pipeline_mode<synchronous>, transform_indices = @transform_1, window_bounds = array<i64: 3072, 64>}, {pipeline_mode = #tpu.pipeline_mode<synchronous>, transform_indices = @transform_2, window_bounds = array<i64: 1, 64>}, {transform_indices = @transform_3, window_bounds = array<i64: 98, 64>}]} {
    %c0 = arith.constant 0 : index
    %c0_0 = arith.constant 0 : index
    %0 = vector.load %arg1[%c0, %c0_0] : memref<98x3072xbf16, #tpu.memory_space<vmem>>, vector<98x3072xbf16>
    %1 = arith.extf %0 : vector<98x3072xbf16> to vector<98x3072xf32>
    %2 = arith.truncf %1 : vector<98x3072xf32> to vector<98x3072xbf16>
    %c0_1 = arith.constant 0 : index
    %c0_2 = arith.constant 0 : index
    %3 = vector.load %arg2[%c0_1, %c0_2] : memref<3072x64xbf16, #tpu.memory_space<vmem>>, vector<3072x64xbf16>
    %cst = arith.constant dense<0.000000e+00> : vector<98x64xf32>
    %4 = tpu.matmul %2, %3, %cst {dimension_numbers = #tpu.dot_dimension_numbers<[1], [0], [0], [1], [0, 0, 1, 1], [], []>} : vector<98x3072xbf16>, vector<3072x64xbf16>, vector<98x64xf32> -> vector<98x64xf32>
    %c0_3 = arith.constant 0 : index
    %c0_4 = arith.constant 0 : index
    %5 = vector.load %arg3[%c0_3, %c0_4] : memref<1x64xf32, #tpu.memory_space<vmem>>, vector<1x64xf32>
    %6 = vector.broadcast %5 : vector<1x64xf32> to vector<98x64xf32>
    %7 = arith.addf %4, %6 : vector<98x64xf32>
    %c0_5 = arith.constant 0 : index
    %c0_6 = arith.constant 0 : index
    %8 = vector.load %arg4[%c0_5, %c0_6] : memref<98x64xf32, #tpu.memory_space<vmem>>, vector<98x64xf32>
    tpu.vector_store %arg4[%c0_5, %c0_6], %7 {strides = array<i32>} : memref<98x64xf32, #tpu.memory_space<vmem>>, vector<98x64xf32>,
    return
  }
  func.func @transform_0(%arg0: i32) -> (i32, i32) {
    %c0_i32 = arith.constant 0 : i32
    %c0_i32_0 = arith.constant 0 : i32
    return %arg0, %c0_i32 : i32, i32
  }
  func.func @transform_1(%arg0: i32) -> (i32, i32) {
    %c0_i32 = arith.constant 0 : i32
    %c0_i32_0 = arith.constant 0 : i32
    %c0_i32_1 = arith.constant 0 : i32
    return %c0_i32, %c0_i32_0 : i32, i32
  }
  func.func @transform_2(%arg0: i32) -> (i32, i32) {
    %c0_i32 = arith.constant 0 : i32
    %c0_i32_0 = arith.constant 0 : i32
    %c0_i32_1 = arith.constant 0 : i32
    return %c0_i32, %c0_i32_0 : i32, i32
  }
  func.func @transform_3(%arg0: i32) -> (i32, i32) {
    %c0_i32 = arith.constant 0 : i32
    %c0_i32_0 = arith.constant 0 : i32
    return %arg0, %c0_i32 : i32, i32
  }
}

module attributes {stable_mosaic.version = 11 : i64} {
  func.func @_layernorm_kernel(%arg0: i32, %arg1: memref<64x64xf32, #tpu.memory_space<vmem>>, %arg2: memref<1x64xf32, #tpu.memory_space<vmem>>, %arg3: memref<1x64xf32, #tpu.memory_space<vmem>>, %arg4: memref<64x64xf32, #tpu.memory_space<vmem>>) attributes {dimension_semantics = [#tpu.dimension_semantics<parallel>], iteration_bounds = array<i64: 2>, scalar_prefetch = 0 : i64, scratch_operands = 0 : i64, tpu.core_type = #tpu.core_type<tc>, window_params = [{transform_indices = @transform_0, window_bounds = array<i64: 64, 64>}, {pipeline_mode = #tpu.pipeline_mode<synchronous>, transform_indices = @transform_1, window_bounds = array<i64: 1, 64>}, {pipeline_mode = #tpu.pipeline_mode<synchronous>, transform_indices = @transform_2, window_bounds = array<i64: 1, 64>}, {transform_indices = @transform_3, window_bounds = array<i64: 64, 64>}]} {
    %c0 = arith.constant 0 : index
    %c0_0 = arith.constant 0 : index
    %0 = vector.load %arg1[%c0, %c0_0] : memref<64x64xf32, #tpu.memory_space<vmem>>, vector<64x64xf32>
    %cst = arith.constant dense<0.000000e+00> : vector<64xf32>
    %1 = vector.multi_reduction <add>, %0, %cst [1] : vector<64x64xf32> to vector<64xf32>
    %2 = vector.shape_cast %1 : vector<64xf32> to vector<64x1xf32>
    %cst_1 = arith.constant 6.400000e+01 : f32
    %3 = vector.broadcast %cst_1 : f32 to vector<64x1xf32>
    %4 = arith.divf %2, %3 : vector<64x1xf32>
    %5 = vector.broadcast %4 : vector<64x1xf32> to vector<64x64xf32>
    %6 = arith.subf %0, %5 : vector<64x64xf32>
    %7 = arith.mulf %6, %6 : vector<64x64xf32>
    %cst_2 = arith.constant dense<0.000000e+00> : vector<64xf32>
    %8 = vector.multi_reduction <add>, %7, %cst_2 [1] : vector<64x64xf32> to vector<64xf32>
    %9 = vector.shape_cast %8 : vector<64xf32> to vector<64x1xf32>
    %cst_3 = arith.constant 6.400000e+01 : f32
    %10 = vector.broadcast %cst_3 : f32 to vector<64x1xf32>
    %11 = arith.divf %9, %10 : vector<64x1xf32>
    %cst_4 = arith.constant 9.99999974E-6 : f32
    %12 = vector.broadcast %cst_4 : f32 to vector<64x1xf32>
    %13 = arith.addf %11, %12 : vector<64x1xf32>
    %14 = math.rsqrt %13 : vector<64x1xf32>
    %15 = vector.broadcast %14 : vector<64x1xf32> to vector<64x64xf32>
    %16 = arith.mulf %6, %15 : vector<64x64xf32>
    %c0_5 = arith.constant 0 : index
    %c0_6 = arith.constant 0 : index
    %17 = vector.load %arg2[%c0_5, %c0_6] : memref<1x64xf32, #tpu.memory_space<vmem>>, vector<1x64xf32>
    %18 = vector.broadcast %17 : vector<1x64xf32> to vector<64x64xf32>
    %19 = arith.mulf %16, %18 : vector<64x64xf32>
    %c0_7 = arith.constant 0 : index
    %c0_8 = arith.constant 0 : index
    %20 = vector.load %arg3[%c0_7, %c0_8] : memref<1x64xf32, #tpu.memory_space<vmem>>, vector<1x64xf32>
    %21 = vector.broadcast %20 : vector<1x64xf32> to vector<64x64xf32>
    %22 = arith.addf %19, %21 : vector<64x64xf32>
    %c0_9 = arith.constant 0 : index
    %c0_10 = arith.constant 0 : index
    %23 = vector.load %arg4[%c0_9, %c0_10] : memref<64x64xf32, #tpu.memory_space<vmem>>, vector<64x64xf32>
    tpu.vector_store %arg4[%c0_9, %c0_10], %22 {strides = array<i32>} : memref<64x64xf32, #tpu.memory_space<vmem>>, vector<64x64xf32>,
    return
  }
  func.func @transform_0(%arg0: i32) -> (i32, i32) {
    %c0_i32 = arith.constant 0 : i32
    %c0_i32_0 = arith.constant 0 : i32
    return %arg0, %c0_i32 : i32, i32
  }
  func.func @transform_1(%arg0: i32) -> (i32, i32) {
    %c0_i32 = arith.constant 0 : i32
    %c0_i32_0 = arith.constant 0 : i32
    %c0_i32_1 = arith.constant 0 : i32
    return %c0_i32, %c0_i32_0 : i32, i32
  }
  func.func @transform_2(%arg0: i32) -> (i32, i32) {
    %c0_i32 = arith.constant 0 : i32
    %c0_i32_0 = arith.constant 0 : i32
    %c0_i32_1 = arith.constant 0 : i32
    return %c0_i32, %c0_i32_0 : i32, i32
  }
  func.func @transform_3(%arg0: i32) -> (i32, i32) {
    %c0_i32 = arith.constant 0 : i32
    %c0_i32_0 = arith.constant 0 : i32
    return %arg0, %c0_i32 : i32, i32
  }
}

module attributes {stable_mosaic.version = 11 : i64} {
  func.func @kernel(%arg0: i32, %arg1: memref<64x64xf32, #tpu.memory_space<vmem>>, %arg2: memref<1x64xf32, #tpu.memory_space<vmem>>, %arg3: memref<1x64xf32, #tpu.memory_space<vmem>>, %arg4: memref<64x192xbf16, #tpu.memory_space<vmem>>, %arg5: memref<1x192xf32, #tpu.memory_space<vmem>>, %arg6: memref<64x192xf32, #tpu.memory_space<vmem>>) attributes {dimension_semantics = [#tpu.dimension_semantics<parallel>], iteration_bounds = array<i64: 2>, scalar_prefetch = 0 : i64, scratch_operands = 0 : i64, tpu.core_type = #tpu.core_type<tc>, window_params = [{transform_indices = @transform_0, window_bounds = array<i64: 64, 64>}, {pipeline_mode = #tpu.pipeline_mode<synchronous>, transform_indices = @transform_1, window_bounds = array<i64: 1, 64>}, {pipeline_mode = #tpu.pipeline_mode<synchronous>, transform_indices = @transform_2, window_bounds = array<i64: 1, 64>}, {pipeline_mode = #tpu.pipeline_mode<synchronous>, transform_indices = @transform_3, window_bounds = array<i64: 64, 192>}, {pipeline_mode = #tpu.pipeline_mode<synchronous>, transform_indices = @transform_4, window_bounds = array<i64: 1, 192>}, {transform_indices = @transform_5, window_bounds = array<i64: 64, 192>}]} {
    %c0 = arith.constant 0 : index
    %c0_0 = arith.constant 0 : index
    %0 = vector.load %arg1[%c0, %c0_0] : memref<64x64xf32, #tpu.memory_space<vmem>>, vector<64x64xf32>
    %cst = arith.constant dense<0.000000e+00> : vector<64xf32>
    %1 = vector.multi_reduction <add>, %0, %cst [1] : vector<64x64xf32> to vector<64xf32>
    %2 = vector.shape_cast %1 : vector<64xf32> to vector<64x1xf32>
    %cst_1 = arith.constant 6.400000e+01 : f32
    %3 = vector.broadcast %cst_1 : f32 to vector<64x1xf32>
    %4 = arith.divf %2, %3 : vector<64x1xf32>
    %5 = vector.broadcast %4 : vector<64x1xf32> to vector<64x64xf32>
    %6 = arith.subf %0, %5 : vector<64x64xf32>
    %7 = arith.mulf %6, %6 : vector<64x64xf32>
    %cst_2 = arith.constant dense<0.000000e+00> : vector<64xf32>
    %8 = vector.multi_reduction <add>, %7, %cst_2 [1] : vector<64x64xf32> to vector<64xf32>
    %9 = vector.shape_cast %8 : vector<64xf32> to vector<64x1xf32>
    %cst_3 = arith.constant 6.400000e+01 : f32
    %10 = vector.broadcast %cst_3 : f32 to vector<64x1xf32>
    %11 = arith.divf %9, %10 : vector<64x1xf32>
    %cst_4 = arith.constant 9.99999974E-6 : f32
    %12 = vector.broadcast %cst_4 : f32 to vector<64x1xf32>
    %13 = arith.addf %11, %12 : vector<64x1xf32>
    %14 = math.rsqrt %13 : vector<64x1xf32>
    %15 = vector.broadcast %14 : vector<64x1xf32> to vector<64x64xf32>
    %16 = arith.mulf %6, %15 : vector<64x64xf32>
    %c0_5 = arith.constant 0 : index
    %c0_6 = arith.constant 0 : index
    %17 = vector.load %arg2[%c0_5, %c0_6] : memref<1x64xf32, #tpu.memory_space<vmem>>, vector<1x64xf32>
    %18 = vector.broadcast %17 : vector<1x64xf32> to vector<64x64xf32>
    %19 = arith.mulf %16, %18 : vector<64x64xf32>
    %c0_7 = arith.constant 0 : index
    %c0_8 = arith.constant 0 : index
    %20 = vector.load %arg3[%c0_7, %c0_8] : memref<1x64xf32, #tpu.memory_space<vmem>>, vector<1x64xf32>
    %21 = vector.broadcast %20 : vector<1x64xf32> to vector<64x64xf32>
    %22 = arith.addf %19, %21 : vector<64x64xf32>
    %23 = arith.truncf %22 : vector<64x64xf32> to vector<64x64xbf16>
    %c0_9 = arith.constant 0 : index
    %c0_10 = arith.constant 0 : index
    %24 = vector.load %arg4[%c0_9, %c0_10] : memref<64x192xbf16, #tpu.memory_space<vmem>>, vector<64x192xbf16>
    %cst_11 = arith.constant dense<0.000000e+00> : vector<64x192xf32>
    %25 = tpu.matmul %23, %24, %cst_11 {dimension_numbers = #tpu.dot_dimension_numbers<[1], [0], [0], [1], [0, 0, 1, 1], [], []>} : vector<64x64xbf16>, vector<64x192xbf16>, vector<64x192xf32> -> vector<64x192xf32>
    %c0_12 = arith.constant 0 : index
    %c0_13 = arith.constant 0 : index
    %26 = vector.load %arg5[%c0_12, %c0_13] : memref<1x192xf32, #tpu.memory_space<vmem>>, vector<1x192xf32>
    %27 = vector.broadcast %26 : vector<1x192xf32> to vector<64x192xf32>
    %28 = arith.addf %25, %27 : vector<64x192xf32>
    %c0_14 = arith.constant 0 : index
    %c0_15 = arith.constant 0 : index
    %29 = vector.load %arg6[%c0_14, %c0_15] : memref<64x192xf32, #tpu.memory_space<vmem>>, vector<64x192xf32>
    tpu.vector_store %arg6[%c0_14, %c0_15], %28 {strides = array<i32>} : memref<64x192xf32, #tpu.memory_space<vmem>>, vector<64x192xf32>,
    return
  }
  func.func @transform_0(%arg0: i32) -> (i32, i32) {
    %c0_i32 = arith.constant 0 : i32
    %c0_i32_0 = arith.constant 0 : i32
    return %arg0, %c0_i32 : i32, i32
  }
  func.func @transform_1(%arg0: i32) -> (i32, i32) {
    %c0_i32 = arith.constant 0 : i32
    %c0_i32_0 = arith.constant 0 : i32
    %c0_i32_1 = arith.constant 0 : i32
    return %c0_i32, %c0_i32_0 : i32, i32
  }
  func.func @transform_2(%arg0: i32) -> (i32, i32) {
    %c0_i32 = arith.constant 0 : i32
    %c0_i32_0 = arith.constant 0 : i32
    %c0_i32_1 = arith.constant 0 : i32
    return %c0_i32, %c0_i32_0 : i32, i32
  }
  func.func @transform_3(%arg0: i32) -> (i32, i32) {
    %c0_i32 = arith.constant 0 : i32
    %c0_i32_0 = arith.constant 0 : i32
    %c0_i32_1 = arith.constant 0 : i32
    return %c0_i32, %c0_i32_0 : i32, i32
  }
  func.func @transform_4(%arg0: i32) -> (i32, i32) {
    %c0_i32 = arith.constant 0 : i32
    %c0_i32_0 = arith.constant 0 : i32
    %c0_i32_1 = arith.constant 0 : i32
    return %c0_i32, %c0_i32_0 : i32, i32
  }
  func.func @transform_5(%arg0: i32) -> (i32, i32) {
    %c0_i32 = arith.constant 0 : i32
    %c0_i32_0 = arith.constant 0 : i32
    return %arg0, %c0_i32 : i32, i32
  }
}

module attributes {stable_mosaic.version = 11 : i64} {
  func.func @kernel(%arg0: i32, %arg1: memref<64x64xf32, #tpu.memory_space<vmem>>, %arg2: memref<64x64xbf16, #tpu.memory_space<vmem>>, %arg3: memref<1x64xf32, #tpu.memory_space<vmem>>, %arg4: memref<64x64xf32, #tpu.memory_space<vmem>>, %arg5: memref<64x64xf32, #tpu.memory_space<vmem>>) attributes {dimension_semantics = [#tpu.dimension_semantics<parallel>], iteration_bounds = array<i64: 2>, scalar_prefetch = 0 : i64, scratch_operands = 0 : i64, tpu.core_type = #tpu.core_type<tc>, window_params = [{transform_indices = @transform_0, window_bounds = array<i64: 64, 64>}, {pipeline_mode = #tpu.pipeline_mode<synchronous>, transform_indices = @transform_1, window_bounds = array<i64: 64, 64>}, {pipeline_mode = #tpu.pipeline_mode<synchronous>, transform_indices = @transform_2, window_bounds = array<i64: 1, 64>}, {transform_indices = @transform_3, window_bounds = array<i64: 64, 64>}, {transform_indices = @transform_4, window_bounds = array<i64: 64, 64>}]} {
    %c0 = arith.constant 0 : index
    %c0_0 = arith.constant 0 : index
    %0 = vector.load %arg1[%c0, %c0_0] : memref<64x64xf32, #tpu.memory_space<vmem>>, vector<64x64xf32>
    %1 = arith.truncf %0 : vector<64x64xf32> to vector<64x64xbf16>
    %c0_1 = arith.constant 0 : index
    %c0_2 = arith.constant 0 : index
    %2 = vector.load %arg2[%c0_1, %c0_2] : memref<64x64xbf16, #tpu.memory_space<vmem>>, vector<64x64xbf16>
    %cst = arith.constant dense<0.000000e+00> : vector<64x64xf32>
    %3 = tpu.matmul %1, %2, %cst {dimension_numbers = #tpu.dot_dimension_numbers<[1], [0], [0], [1], [0, 0, 1, 1], [], []>} : vector<64x64xbf16>, vector<64x64xbf16>, vector<64x64xf32> -> vector<64x64xf32>
    %c0_3 = arith.constant 0 : index
    %c0_4 = arith.constant 0 : index
    %4 = vector.load %arg3[%c0_3, %c0_4] : memref<1x64xf32, #tpu.memory_space<vmem>>, vector<1x64xf32>
    %5 = vector.broadcast %4 : vector<1x64xf32> to vector<64x64xf32>
    %6 = arith.addf %3, %5 : vector<64x64xf32>
    %c0_5 = arith.constant 0 : index
    %c0_6 = arith.constant 0 : index
    %7 = vector.load %arg4[%c0_5, %c0_6] : memref<64x64xf32, #tpu.memory_space<vmem>>, vector<64x64xf32>
    %8 = arith.addf %6, %7 : vector<64x64xf32>
    %c0_7 = arith.constant 0 : index
    %c0_8 = arith.constant 0 : index
    %9 = vector.load %arg5[%c0_7, %c0_8] : memref<64x64xf32, #tpu.memory_space<vmem>>, vector<64x64xf32>
    tpu.vector_store %arg5[%c0_7, %c0_8], %8 {strides = array<i32>} : memref<64x64xf32, #tpu.memory_space<vmem>>, vector<64x64xf32>,
    return
  }
  func.func @transform_0(%arg0: i32) -> (i32, i32) {
    %c0_i32 = arith.constant 0 : i32
    %c0_i32_0 = arith.constant 0 : i32
    return %arg0, %c0_i32 : i32, i32
  }
  func.func @transform_1(%arg0: i32) -> (i32, i32) {
    %c0_i32 = arith.constant 0 : i32
    %c0_i32_0 = arith.constant 0 : i32
    %c0_i32_1 = arith.constant 0 : i32
    return %c0_i32, %c0_i32_0 : i32, i32
  }
  func.func @transform_2(%arg0: i32) -> (i32, i32) {
    %c0_i32 = arith.constant 0 : i32
    %c0_i32_0 = arith.constant 0 : i32
    %c0_i32_1 = arith.constant 0 : i32
    return %c0_i32, %c0_i32_0 : i32, i32
  }
  func.func @transform_3(%arg0: i32) -> (i32, i32) {
    %c0_i32 = arith.constant 0 : i32
    %c0_i32_0 = arith.constant 0 : i32
    return %arg0, %c0_i32 : i32, i32
  }
  func.func @transform_4(%arg0: i32) -> (i32, i32) {
    %c0_i32 = arith.constant 0 : i32
    %c0_i32_0 = arith.constant 0 : i32
    return %arg0, %c0_i32 : i32, i32
  }
}

module attributes {stable_mosaic.version = 11 : i64} {
  func.func @kernel(%arg0: i32, %arg1: memref<1x64x192xf32, #tpu.memory_space<vmem>>, %arg2: memref<1x64x64xf32, #tpu.memory_space<vmem>>) attributes {dimension_semantics = [#tpu.dimension_semantics<parallel>], iteration_bounds = array<i64: 2>, scalar_prefetch = 0 : i64, scratch_operands = 0 : i64, tpu.core_type = #tpu.core_type<tc>, window_params = [{transform_indices = @transform_0, window_bounds = array<i64: 1, 64, 192>}, {transform_indices = @transform_1, window_bounds = array<i64: 1, 64, 64>}]} {
    %0 = tpu.iota {dimensions = array<i32: 1>} : vector<64x64xi32>
    %c50_i32 = arith.constant 50 : i32
    %1 = vector.broadcast %c50_i32 : i32 to vector<64x64xi32>
    %2 = arith.cmpi slt, %0, %1 : vector<64x64xi32>
    %c0 = arith.constant 0 : index
    %c0_0 = arith.constant 0 : index
    %c0_1 = arith.constant 0 : index
    %3 = vector.load %arg1[%c0, %c0_0, %c0_1] : memref<1x64x192xf32, #tpu.memory_space<vmem>>, vector<1x64x32xf32>
    %4 = vector.shape_cast %3 : vector<1x64x32xf32> to vector<64x32xf32>
    %5 = arith.truncf %4 : vector<64x32xf32> to vector<64x32xbf16>
    %c0_2 = arith.constant 0 : index
    %c0_3 = arith.constant 0 : index
    %c64 = arith.constant 64 : index
    %6 = vector.load %arg1[%c0_2, %c0_3, %c64] : memref<1x64x192xf32, #tpu.memory_space<vmem>>, vector<1x64x32xf32>
    %7 = vector.shape_cast %6 : vector<1x64x32xf32> to vector<64x32xf32>
    %8 = arith.truncf %7 : vector<64x32xf32> to vector<64x32xbf16>
    %c0_4 = arith.constant 0 : index
    %c0_5 = arith.constant 0 : index
    %c128 = arith.constant 128 : index
    %9 = vector.load %arg1[%c0_4, %c0_5, %c128] : memref<1x64x192xf32, #tpu.memory_space<vmem>>, vector<1x64x32xf32>
    %10 = vector.shape_cast %9 : vector<1x64x32xf32> to vector<64x32xf32>
    %11 = arith.truncf %10 : vector<64x32xf32> to vector<64x32xbf16>
    %cst = arith.constant dense<0.000000e+00> : vector<64x64xf32>
    %12 = tpu.matmul %5, %8, %cst {dimension_numbers = #tpu.dot_dimension_numbers<[1], [1], [0], [0], [0, 0, 1, 0], [], []>} : vector<64x32xbf16>, vector<64x32xbf16>, vector<64x64xf32> -> vector<64x64xf32>
    %cst_6 = arith.constant 0.176776692 : f32
    %13 = vector.broadcast %cst_6 : f32 to vector<64x64xf32>
    %14 = arith.mulf %12, %13 : vector<64x64xf32>
    %cst_7 = arith.constant -1.000000e+30 : f32
    %15 = vector.broadcast %cst_7 : f32 to vector<64x64xf32>
    %16 = arith.select %2, %14, %15 : vector<64x64xi1>, vector<64x64xf32>
    %cst_8 = arith.constant dense<0xFF800000> : vector<64xf32>
    %17 = vector.multi_reduction <maximumf>, %16, %cst_8 [1] : vector<64x64xf32> to vector<64xf32>
    %18 = vector.shape_cast %17 : vector<64xf32> to vector<64x1xf32>
    %19 = vector.broadcast %18 : vector<64x1xf32> to vector<64x64xf32>
    %20 = arith.subf %16, %19 : vector<64x64xf32>
    %21 = math.exp %20 : vector<64x64xf32>
    %cst_9 = arith.constant dense<0.000000e+00> : vector<64xf32>
    %22 = vector.multi_reduction <add>, %21, %cst_9 [1] : vector<64x64xf32> to vector<64xf32>
    %23 = vector.shape_cast %22 : vector<64xf32> to vector<64x1xf32>
    %24 = tpu.reciprocal %23 {approx = true} : vector<64x1xf32> -> vector<64x1xf32>
    %25 = vector.broadcast %24 : vector<64x1xf32> to vector<64x64xf32>
    %26 = arith.mulf %21, %25 : vector<64x64xf32>
    %27 = arith.truncf %26 : vector<64x64xf32> to vector<64x64xbf16>
    %cst_10 = arith.constant dense<0.000000e+00> : vector<64x32xf32>
    %28 = tpu.matmul %27, %11, %cst_10 {dimension_numbers = #tpu.dot_dimension_numbers<[1], [0], [0], [1], [0, 0, 1, 1], [], []>} : vector<64x64xbf16>, vector<64x32xbf16>, vector<64x32xf32> -> vector<64x32xf32>
    %c0_11 = arith.constant 0 : index
    %c0_12 = arith.constant 0 : index
    %c0_13 = arith.constant 0 : index
    %29 = vector.load %arg2[%c0_11, %c0_12, %c0_13] : memref<1x64x64xf32, #tpu.memory_space<vmem>>, vector<1x64x32xf32>
    %30 = vector.shape_cast %29 : vector<1x64x32xf32> to vector<64x32xf32>
    %31 = vector.shape_cast %28 : vector<64x32xf32> to vector<1x64x32xf32>
    tpu.vector_store %arg2[%c0_11, %c0_12, %c0_13], %31 {strides = array<i32>} : memref<1x64x64xf32, #tpu.memory_space<vmem>>, vector<1x64x32xf32>,
    %c0_14 = arith.constant 0 : index
    %c0_15 = arith.constant 0 : index
    %c32 = arith.constant 32 : index
    %32 = vector.load %arg1[%c0_14, %c0_15, %c32] : memref<1x64x192xf32, #tpu.memory_space<vmem>>, vector<1x64x32xf32>
    %33 = vector.shape_cast %32 : vector<1x64x32xf32> to vector<64x32xf32>
    %34 = arith.truncf %33 : vector<64x32xf32> to vector<64x32xbf16>
    %c0_16 = arith.constant 0 : index
    %c0_17 = arith.constant 0 : index
    %c96 = arith.constant 96 : index
    %35 = vector.load %arg1[%c0_16, %c0_17, %c96] : memref<1x64x192xf32, #tpu.memory_space<vmem>>, vector<1x64x32xf32>
    %36 = vector.shape_cast %35 : vector<1x64x32xf32> to vector<64x32xf32>
    %37 = arith.truncf %36 : vector<64x32xf32> to vector<64x32xbf16>
    %c0_18 = arith.constant 0 : index
    %c0_19 = arith.constant 0 : index
    %c160 = arith.constant 160 : index
    %38 = vector.load %arg1[%c0_18, %c0_19, %c160] : memref<1x64x192xf32, #tpu.memory_space<vmem>>, vector<1x64x32xf32>
    %39 = vector.shape_cast %38 : vector<1x64x32xf32> to vector<64x32xf32>
    %40 = arith.truncf %39 : vector<64x32xf32> to vector<64x32xbf16>
    %cst_20 = arith.constant dense<0.000000e+00> : vector<64x64xf32>
    %41 = tpu.matmul %34, %37, %cst_20 {dimension_numbers = #tpu.dot_dimension_numbers<[1], [1], [0], [0], [0, 0, 1, 0], [], []>} : vector<64x32xbf16>, vector<64x32xbf16>, vector<64x64xf32> -> vector<64x64xf32>
    %cst_21 = arith.constant 0.176776692 : f32
    %42 = vector.broadcast %cst_21 : f32 to vector<64x64xf32>
    %43 = arith.mulf %41, %42 : vector<64x64xf32>
    %cst_22 = arith.constant -1.000000e+30 : f32
    %44 = vector.broadcast %cst_22 : f32 to vector<64x64xf32>
    %45 = arith.select %2, %43, %44 : vector<64x64xi1>, vector<64x64xf32>
    %cst_23 = arith.constant dense<0xFF800000> : vector<64xf32>
    %46 = vector.multi_reduction <maximumf>, %45, %cst_23 [1] : vector<64x64xf32> to vector<64xf32>
    %47 = vector.shape_cast %46 : vector<64xf32> to vector<64x1xf32>
    %48 = vector.broadcast %47 : vector<64x1xf32> to vector<64x64xf32>
    %49 = arith.subf %45, %48 : vector<64x64xf32>
    %50 = math.exp %49 : vector<64x64xf32>
    %cst_24 = arith.constant dense<0.000000e+00> : vector<64xf32>
    %51 = vector.multi_reduction <add>, %50, %cst_24 [1] : vector<64x64xf32> to vector<64xf32>
    %52 = vector.shape_cast %51 : vector<64xf32> to vector<64x1xf32>
    %53 = tpu.reciprocal %52 {approx = true} : vector<64x1xf32> -> vector<64x1xf32>
    %54 = vector.broadcast %53 : vector<64x1xf32> to vector<64x64xf32>
    %55 = arith.mulf %50, %54 : vector<64x64xf32>
    %56 = arith.truncf %55 : vector<64x64xf32> to vector<64x64xbf16>
    %cst_25 = arith.constant dense<0.000000e+00> : vector<64x32xf32>
    %57 = tpu.matmul %56, %40, %cst_25 {dimension_numbers = #tpu.dot_dimension_numbers<[1], [0], [0], [1], [0, 0, 1, 1], [], []>} : vector<64x64xbf16>, vector<64x32xbf16>, vector<64x32xf32> -> vector<64x32xf32>
    %c0_26 = arith.constant 0 : index
    %c0_27 = arith.constant 0 : index
    %c32_28 = arith.constant 32 : index
    %58 = vector.load %arg2[%c0_26, %c0_27, %c32_28] : memref<1x64x64xf32, #tpu.memory_space<vmem>>, vector<1x64x32xf32>
    %59 = vector.shape_cast %58 : vector<1x64x32xf32> to vector<64x32xf32>
    %60 = vector.shape_cast %57 : vector<64x32xf32> to vector<1x64x32xf32>
    tpu.vector_store %arg2[%c0_26, %c0_27, %c32_28], %60 {strides = array<i32>} : memref<1x64x64xf32, #tpu.memory_space<vmem>>, vector<1x64x32xf32>,
    return
  }
  func.func @transform_0(%arg0: i32) -> (i32, i32, i32) {
    %c0_i32 = arith.constant 0 : i32
    %c0_i32_0 = arith.constant 0 : i32
    %c0_i32_1 = arith.constant 0 : i32
    return %arg0, %c0_i32, %c0_i32_0 : i32, i32, i32
  }
  func.func @transform_1(%arg0: i32) -> (i32, i32, i32) {
    %c0_i32 = arith.constant 0 : i32
    %c0_i32_0 = arith.constant 0 : i32
    %c0_i32_1 = arith.constant 0 : i32
    return %arg0, %c0_i32, %c0_i32_0 : i32, i32, i32
  }
}

module attributes {stable_mosaic.version = 11 : i64} {
  func.func @kernel(%arg0: i32, %arg1: memref<64x64xf32, #tpu.memory_space<vmem>>, %arg2: memref<1x64xf32, #tpu.memory_space<vmem>>, %arg3: memref<1x64xf32, #tpu.memory_space<vmem>>, %arg4: memref<64x256xbf16, #tpu.memory_space<vmem>>, %arg5: memref<1x256xf32, #tpu.memory_space<vmem>>, %arg6: memref<64x256xf32, #tpu.memory_space<vmem>>) attributes {dimension_semantics = [#tpu.dimension_semantics<parallel>], iteration_bounds = array<i64: 2>, scalar_prefetch = 0 : i64, scratch_operands = 0 : i64, tpu.core_type = #tpu.core_type<tc>, window_params = [{transform_indices = @transform_0, window_bounds = array<i64: 64, 64>}, {pipeline_mode = #tpu.pipeline_mode<synchronous>, transform_indices = @transform_1, window_bounds = array<i64: 1, 64>}, {pipeline_mode = #tpu.pipeline_mode<synchronous>, transform_indices = @transform_2, window_bounds = array<i64: 1, 64>}, {pipeline_mode = #tpu.pipeline_mode<synchronous>, transform_indices = @transform_3, window_bounds = array<i64: 64, 256>}, {pipeline_mode = #tpu.pipeline_mode<synchronous>, transform_indices = @transform_4, window_bounds = array<i64: 1, 256>}, {transform_indices = @transform_5, window_bounds = array<i64: 64, 256>}]} {
    %c0 = arith.constant 0 : index
    %c0_0 = arith.constant 0 : index
    %0 = vector.load %arg1[%c0, %c0_0] : memref<64x64xf32, #tpu.memory_space<vmem>>, vector<64x64xf32>
    %cst = arith.constant dense<0.000000e+00> : vector<64xf32>
    %1 = vector.multi_reduction <add>, %0, %cst [1] : vector<64x64xf32> to vector<64xf32>
    %2 = vector.shape_cast %1 : vector<64xf32> to vector<64x1xf32>
    %cst_1 = arith.constant 6.400000e+01 : f32
    %3 = vector.broadcast %cst_1 : f32 to vector<64x1xf32>
    %4 = arith.divf %2, %3 : vector<64x1xf32>
    %5 = vector.broadcast %4 : vector<64x1xf32> to vector<64x64xf32>
    %6 = arith.subf %0, %5 : vector<64x64xf32>
    %7 = arith.mulf %6, %6 : vector<64x64xf32>
    %cst_2 = arith.constant dense<0.000000e+00> : vector<64xf32>
    %8 = vector.multi_reduction <add>, %7, %cst_2 [1] : vector<64x64xf32> to vector<64xf32>
    %9 = vector.shape_cast %8 : vector<64xf32> to vector<64x1xf32>
    %cst_3 = arith.constant 6.400000e+01 : f32
    %10 = vector.broadcast %cst_3 : f32 to vector<64x1xf32>
    %11 = arith.divf %9, %10 : vector<64x1xf32>
    %cst_4 = arith.constant 9.99999974E-6 : f32
    %12 = vector.broadcast %cst_4 : f32 to vector<64x1xf32>
    %13 = arith.addf %11, %12 : vector<64x1xf32>
    %14 = math.rsqrt %13 : vector<64x1xf32>
    %15 = vector.broadcast %14 : vector<64x1xf32> to vector<64x64xf32>
    %16 = arith.mulf %6, %15 : vector<64x64xf32>
    %c0_5 = arith.constant 0 : index
    %c0_6 = arith.constant 0 : index
    %17 = vector.load %arg2[%c0_5, %c0_6] : memref<1x64xf32, #tpu.memory_space<vmem>>, vector<1x64xf32>
    %18 = vector.broadcast %17 : vector<1x64xf32> to vector<64x64xf32>
    %19 = arith.mulf %16, %18 : vector<64x64xf32>
    %c0_7 = arith.constant 0 : index
    %c0_8 = arith.constant 0 : index
    %20 = vector.load %arg3[%c0_7, %c0_8] : memref<1x64xf32, #tpu.memory_space<vmem>>, vector<1x64xf32>
    %21 = vector.broadcast %20 : vector<1x64xf32> to vector<64x64xf32>
    %22 = arith.addf %19, %21 : vector<64x64xf32>
    %23 = arith.truncf %22 : vector<64x64xf32> to vector<64x64xbf16>
    %c0_9 = arith.constant 0 : index
    %c0_10 = arith.constant 0 : index
    %24 = vector.load %arg4[%c0_9, %c0_10] : memref<64x256xbf16, #tpu.memory_space<vmem>>, vector<64x256xbf16>
    %cst_11 = arith.constant dense<0.000000e+00> : vector<64x256xf32>
    %25 = tpu.matmul %23, %24, %cst_11 {dimension_numbers = #tpu.dot_dimension_numbers<[1], [0], [0], [1], [0, 0, 1, 1], [], []>} : vector<64x64xbf16>, vector<64x256xbf16>, vector<64x256xf32> -> vector<64x256xf32>
    %c0_12 = arith.constant 0 : index
    %c0_13 = arith.constant 0 : index
    %26 = vector.load %arg5[%c0_12, %c0_13] : memref<1x256xf32, #tpu.memory_space<vmem>>, vector<1x256xf32>
    %27 = vector.broadcast %26 : vector<1x256xf32> to vector<64x256xf32>
    %28 = arith.addf %25, %27 : vector<64x256xf32>
    %cst_14 = arith.constant -1.702000e+00 : f32
    %29 = vector.broadcast %cst_14 : f32 to vector<64x256xf32>
    %30 = arith.mulf %29, %28 : vector<64x256xf32>
    %31 = math.exp %30 : vector<64x256xf32>
    %cst_15 = arith.constant 1.000000e+00 : f32
    %32 = vector.broadcast %cst_15 : f32 to vector<64x256xf32>
    %33 = arith.addf %32, %31 : vector<64x256xf32>
    %34 = tpu.reciprocal %33 {approx = true} : vector<64x256xf32> -> vector<64x256xf32>
    %35 = arith.mulf %28, %34 : vector<64x256xf32>
    %c0_16 = arith.constant 0 : index
    %c0_17 = arith.constant 0 : index
    %36 = vector.load %arg6[%c0_16, %c0_17] : memref<64x256xf32, #tpu.memory_space<vmem>>, vector<64x256xf32>
    tpu.vector_store %arg6[%c0_16, %c0_17], %35 {strides = array<i32>} : memref<64x256xf32, #tpu.memory_space<vmem>>, vector<64x256xf32>,
    return
  }
  func.func @transform_0(%arg0: i32) -> (i32, i32) {
    %c0_i32 = arith.constant 0 : i32
    %c0_i32_0 = arith.constant 0 : i32
    return %arg0, %c0_i32 : i32, i32
  }
  func.func @transform_1(%arg0: i32) -> (i32, i32) {
    %c0_i32 = arith.constant 0 : i32
    %c0_i32_0 = arith.constant 0 : i32
    %c0_i32_1 = arith.constant 0 : i32
    return %c0_i32, %c0_i32_0 : i32, i32
  }
  func.func @transform_2(%arg0: i32) -> (i32, i32) {
    %c0_i32 = arith.constant 0 : i32
    %c0_i32_0 = arith.constant 0 : i32
    %c0_i32_1 = arith.constant 0 : i32
    return %c0_i32, %c0_i32_0 : i32, i32
  }
  func.func @transform_3(%arg0: i32) -> (i32, i32) {
    %c0_i32 = arith.constant 0 : i32
    %c0_i32_0 = arith.constant 0 : i32
    %c0_i32_1 = arith.constant 0 : i32
    return %c0_i32, %c0_i32_0 : i32, i32
  }
  func.func @transform_4(%arg0: i32) -> (i32, i32) {
    %c0_i32 = arith.constant 0 : i32
    %c0_i32_0 = arith.constant 0 : i32
    %c0_i32_1 = arith.constant 0 : i32
    return %c0_i32, %c0_i32_0 : i32, i32
  }
  func.func @transform_5(%arg0: i32) -> (i32, i32) {
    %c0_i32 = arith.constant 0 : i32
    %c0_i32_0 = arith.constant 0 : i32
    return %arg0, %c0_i32 : i32, i32
  }
}

module attributes {stable_mosaic.version = 11 : i64} {
  func.func @kernel(%arg0: i32, %arg1: memref<64x256xf32, #tpu.memory_space<vmem>>, %arg2: memref<256x64xbf16, #tpu.memory_space<vmem>>, %arg3: memref<1x64xf32, #tpu.memory_space<vmem>>, %arg4: memref<64x64xf32, #tpu.memory_space<vmem>>, %arg5: memref<64x64xf32, #tpu.memory_space<vmem>>) attributes {dimension_semantics = [#tpu.dimension_semantics<parallel>], iteration_bounds = array<i64: 2>, scalar_prefetch = 0 : i64, scratch_operands = 0 : i64, tpu.core_type = #tpu.core_type<tc>, window_params = [{transform_indices = @transform_0, window_bounds = array<i64: 64, 256>}, {pipeline_mode = #tpu.pipeline_mode<synchronous>, transform_indices = @transform_1, window_bounds = array<i64: 256, 64>}, {pipeline_mode = #tpu.pipeline_mode<synchronous>, transform_indices = @transform_2, window_bounds = array<i64: 1, 64>}, {transform_indices = @transform_3, window_bounds = array<i64: 64, 64>}, {transform_indices = @transform_4, window_bounds = array<i64: 64, 64>}]} {
    %c0 = arith.constant 0 : index
    %c0_0 = arith.constant 0 : index
    %0 = vector.load %arg1[%c0, %c0_0] : memref<64x256xf32, #tpu.memory_space<vmem>>, vector<64x256xf32>
    %1 = arith.truncf %0 : vector<64x256xf32> to vector<64x256xbf16>
    %c0_1 = arith.constant 0 : index
    %c0_2 = arith.constant 0 : index
    %2 = vector.load %arg2[%c0_1, %c0_2] : memref<256x64xbf16, #tpu.memory_space<vmem>>, vector<256x64xbf16>
    %cst = arith.constant dense<0.000000e+00> : vector<64x64xf32>
    %3 = tpu.matmul %1, %2, %cst {dimension_numbers = #tpu.dot_dimension_numbers<[1], [0], [0], [1], [0, 0, 1, 1], [], []>} : vector<64x256xbf16>, vector<256x64xbf16>, vector<64x64xf32> -> vector<64x64xf32>
    %c0_3 = arith.constant 0 : index
    %c0_4 = arith.constant 0 : index
    %4 = vector.load %arg3[%c0_3, %c0_4] : memref<1x64xf32, #tpu.memory_space<vmem>>, vector<1x64xf32>
    %5 = vector.broadcast %4 : vector<1x64xf32> to vector<64x64xf32>
    %6 = arith.addf %3, %5 : vector<64x64xf32>
    %c0_5 = arith.constant 0 : index
    %c0_6 = arith.constant 0 : index
    %7 = vector.load %arg4[%c0_5, %c0_6] : memref<64x64xf32, #tpu.memory_space<vmem>>, vector<64x64xf32>
    %8 = arith.addf %6, %7 : vector<64x64xf32>
    %c0_7 = arith.constant 0 : index
    %c0_8 = arith.constant 0 : index
    %9 = vector.load %arg5[%c0_7, %c0_8] : memref<64x64xf32, #tpu.memory_space<vmem>>, vector<64x64xf32>
    tpu.vector_store %arg5[%c0_7, %c0_8], %8 {strides = array<i32>} : memref<64x64xf32, #tpu.memory_space<vmem>>, vector<64x64xf32>,
    return
  }
  func.func @transform_0(%arg0: i32) -> (i32, i32) {
    %c0_i32 = arith.constant 0 : i32
    %c0_i32_0 = arith.constant 0 : i32
    return %arg0, %c0_i32 : i32, i32
  }
  func.func @transform_1(%arg0: i32) -> (i32, i32) {
    %c0_i32 = arith.constant 0 : i32
    %c0_i32_0 = arith.constant 0 : i32
    %c0_i32_1 = arith.constant 0 : i32
    return %c0_i32, %c0_i32_0 : i32, i32
  }
  func.func @transform_2(%arg0: i32) -> (i32, i32) {
    %c0_i32 = arith.constant 0 : i32
    %c0_i32_0 = arith.constant 0 : i32
    %c0_i32_1 = arith.constant 0 : i32
    return %c0_i32, %c0_i32_0 : i32, i32
  }
  func.func @transform_3(%arg0: i32) -> (i32, i32) {
    %c0_i32 = arith.constant 0 : i32
    %c0_i32_0 = arith.constant 0 : i32
    return %arg0, %c0_i32 : i32, i32
  }
  func.func @transform_4(%arg0: i32) -> (i32, i32) {
    %c0_i32 = arith.constant 0 : i32
    %c0_i32_0 = arith.constant 0 : i32
    return %arg0, %c0_i32 : i32, i32
  }
}

module attributes {stable_mosaic.version = 11 : i64} {
  func.func @kernel(%arg0: i32, %arg1: memref<2x64xf32, #tpu.memory_space<vmem>>, %arg2: memref<1x64xf32, #tpu.memory_space<vmem>>, %arg3: memref<1x64xf32, #tpu.memory_space<vmem>>, %arg4: memref<64x64xbf16, #tpu.memory_space<vmem>>, %arg5: memref<1x64xf32, #tpu.memory_space<vmem>>, %arg6: memref<2x64xf32, #tpu.memory_space<vmem>>) attributes {dimension_semantics = [#tpu.dimension_semantics<parallel>], iteration_bounds = array<i64: 1>, scalar_prefetch = 0 : i64, scratch_operands = 0 : i64, tpu.core_type = #tpu.core_type<tc>, window_params = [{transform_indices = @transform_0, window_bounds = array<i64: 2, 64>}, {pipeline_mode = #tpu.pipeline_mode<synchronous>, transform_indices = @transform_1, window_bounds = array<i64: 1, 64>}, {pipeline_mode = #tpu.pipeline_mode<synchronous>, transform_indices = @transform_2, window_bounds = array<i64: 1, 64>}, {pipeline_mode = #tpu.pipeline_mode<synchronous>, transform_indices = @transform_3, window_bounds = array<i64: 64, 64>}, {pipeline_mode = #tpu.pipeline_mode<synchronous>, transform_indices = @transform_4, window_bounds = array<i64: 1, 64>}, {transform_indices = @transform_5, window_bounds = array<i64: 2, 64>}]} {
    %c0 = arith.constant 0 : index
    %c0_0 = arith.constant 0 : index
    %0 = vector.load %arg1[%c0, %c0_0] : memref<2x64xf32, #tpu.memory_space<vmem>>, vector<2x64xf32>
    %cst = arith.constant dense<0.000000e+00> : vector<2xf32>
    %1 = vector.multi_reduction <add>, %0, %cst [1] : vector<2x64xf32> to vector<2xf32>
    %2 = vector.shape_cast %1 : vector<2xf32> to vector<2x1xf32>
    %cst_1 = arith.constant 6.400000e+01 : f32
    %3 = vector.broadcast %cst_1 : f32 to vector<2x1xf32>
    %4 = arith.divf %2, %3 : vector<2x1xf32>
    %5 = vector.broadcast %4 : vector<2x1xf32> to vector<2x64xf32>
    %6 = arith.subf %0, %5 : vector<2x64xf32>
    %7 = arith.mulf %6, %6 : vector<2x64xf32>
    %cst_2 = arith.constant dense<0.000000e+00> : vector<2xf32>
    %8 = vector.multi_reduction <add>, %7, %cst_2 [1] : vector<2x64xf32> to vector<2xf32>
    %9 = vector.shape_cast %8 : vector<2xf32> to vector<2x1xf32>
    %cst_3 = arith.constant 6.400000e+01 : f32
    %10 = vector.broadcast %cst_3 : f32 to vector<2x1xf32>
    %11 = arith.divf %9, %10 : vector<2x1xf32>
    %cst_4 = arith.constant 9.99999974E-6 : f32
    %12 = vector.broadcast %cst_4 : f32 to vector<2x1xf32>
    %13 = arith.addf %11, %12 : vector<2x1xf32>
    %14 = math.rsqrt %13 : vector<2x1xf32>
    %15 = vector.broadcast %14 : vector<2x1xf32> to vector<2x64xf32>
    %16 = arith.mulf %6, %15 : vector<2x64xf32>
    %c0_5 = arith.constant 0 : index
    %c0_6 = arith.constant 0 : index
    %17 = vector.load %arg2[%c0_5, %c0_6] : memref<1x64xf32, #tpu.memory_space<vmem>>, vector<1x64xf32>
    %18 = vector.broadcast %17 : vector<1x64xf32> to vector<2x64xf32>
    %19 = arith.mulf %16, %18 : vector<2x64xf32>
    %c0_7 = arith.constant 0 : index
    %c0_8 = arith.constant 0 : index
    %20 = vector.load %arg3[%c0_7, %c0_8] : memref<1x64xf32, #tpu.memory_space<vmem>>, vector<1x64xf32>
    %21 = vector.broadcast %20 : vector<1x64xf32> to vector<2x64xf32>
    %22 = arith.addf %19, %21 : vector<2x64xf32>
    %23 = arith.truncf %22 : vector<2x64xf32> to vector<2x64xbf16>
    %c0_9 = arith.constant 0 : index
    %c0_10 = arith.constant 0 : index
    %24 = vector.load %arg4[%c0_9, %c0_10] : memref<64x64xbf16, #tpu.memory_space<vmem>>, vector<64x64xbf16>
    %cst_11 = arith.constant dense<0.000000e+00> : vector<2x64xf32>
    %25 = tpu.matmul %23, %24, %cst_11 {dimension_numbers = #tpu.dot_dimension_numbers<[1], [0], [0], [1], [0, 0, 1, 1], [], []>} : vector<2x64xbf16>, vector<64x64xbf16>, vector<2x64xf32> -> vector<2x64xf32>
    %c0_12 = arith.constant 0 : index
    %c0_13 = arith.constant 0 : index
    %26 = vector.load %arg5[%c0_12, %c0_13] : memref<1x64xf32, #tpu.memory_space<vmem>>, vector<1x64xf32>
    %27 = vector.broadcast %26 : vector<1x64xf32> to vector<2x64xf32>
    %28 = arith.addf %25, %27 : vector<2x64xf32>
    %c0_14 = arith.constant 0 : index
    %c0_15 = arith.constant 0 : index
    %29 = vector.load %arg6[%c0_14, %c0_15] : memref<2x64xf32, #tpu.memory_space<vmem>>, vector<2x64xf32>
    tpu.vector_store %arg6[%c0_14, %c0_15], %28 {strides = array<i32>} : memref<2x64xf32, #tpu.memory_space<vmem>>, vector<2x64xf32>,
    return
  }
  func.func @transform_0(%arg0: i32) -> (i32, i32) {
    %c0_i32 = arith.constant 0 : i32
    %c0_i32_0 = arith.constant 0 : i32
    return %arg0, %c0_i32 : i32, i32
  }
  func.func @transform_1(%arg0: i32) -> (i32, i32) {
    %c0_i32 = arith.constant 0 : i32
    %c0_i32_0 = arith.constant 0 : i32
    %c0_i32_1 = arith.constant 0 : i32
    return %c0_i32, %c0_i32_0 : i32, i32
  }
  func.func @transform_2(%arg0: i32) -> (i32, i32) {
    %c0_i32 = arith.constant 0 : i32
    %c0_i32_0 = arith.constant 0 : i32
    %c0_i32_1 = arith.constant 0 : i32
    return %c0_i32, %c0_i32_0 : i32, i32
  }
  func.func @transform_3(%arg0: i32) -> (i32, i32) {
    %c0_i32 = arith.constant 0 : i32
    %c0_i32_0 = arith.constant 0 : i32
    %c0_i32_1 = arith.constant 0 : i32
    return %c0_i32, %c0_i32_0 : i32, i32
  }
  func.func @transform_4(%arg0: i32) -> (i32, i32) {
    %c0_i32 = arith.constant 0 : i32
    %c0_i32_0 = arith.constant 0 : i32
    %c0_i32_1 = arith.constant 0 : i32
    return %c0_i32, %c0_i32_0 : i32, i32
  }
  func.func @transform_5(%arg0: i32) -> (i32, i32) {
    %c0_i32 = arith.constant 0 : i32
    %c0_i32_0 = arith.constant 0 : i32
    return %arg0, %c0_i32 : i32, i32
  }
}

</mosaic_0001>

<bundles_post_ra>
// kernel: _pallas_forward.14
= control target key start
LH: loop header
LB: loop body
LE: loop exit
PB: predicated region body
PF: predicated region fallthrough
CT: control target
= control target key end

     0   :  { %10 = vsyncpa [#allocation3], 0  ;;  %s2196_s0 = inlined_call_operand.hbm [shape: f32[6,64,64], index: 0, kind: input, shape index: {}]   ;;  %s2197_s1 = inlined_call_operand.hbm [shape: bf16[224,64], index: 1, kind: input, shape index: {}]   ;;  %s2198_s2 = inlined_call_operand.vmem [shape: bf16[64,224], index: 2, kind: input, shape index: {}]   ;;  %s2199_s3 = inlined_call_operand.hbm [shape: f32[6], index: 3, kind: input, shape index: {}]   ;;  %s2200_s4 = inlined_call_operand.hbm [shape: f32[6], index: 4, kind: input, shape index: {}]   ;;  %s2201_s5 = inlined_call_operand.vmem [shape: bf16[6,224,224], index: 5, kind: output, shape index: {}]  }
   0x1   :  { %12 = vsyncpa [#allocation3 + $0x1], 0 }
   0x2   :  { %13 = vsyncpa [#allocation6], 0 }
   0x3   :  { %14 = vsyncpa [#allocation4], 0 }
   0x4   :  { %15 = vsyncpa [#allocation9], 0  ;;  %s1732_s18 = smov 0   ;;  %s1734_s19 = smov 0  }
   0x5   :  { %s1736_s20 = smov 0   ;;  %s1738_s21 = smov 0  }
   0x6 LB: > { %s1751_s22 = sadd.s32 4294967295, %s1691_s21   ;;  %p41_p0 = scmp.ne.s32.totalorder %s1683_s19, %s1679_s18  ;;  %s1691_s21 = sphi %s1738_s21, %s2222_s21   ;;  %s1687_s20 = sphi %s1736_s20, %s2221_s20   ;;  %s1683_s19 = sphi %s1734_s19, %s2220_s19   ;;  %s1679_s18 = sphi %s1732_s18, %s2219_s18  }
   0x7   : > { %p2202_p1 = scmp.eq.s32.totalorder %s1751_s22, 0  ;;  %p1274_p2 = scmp.ge.s32.totalorder %s1691_s21, 1 }
   0x8   : > { %p162_p3 = scmp.lt.s32.totalorder %s1691_s21, 7  ;;  %s1693_s25 = smov [#allocation5]  }
   0x9   : > { %p1759_p4 = por %p2202_p1, %p41_p0  ;;  %s174_s26 = sshll.u32 %s1693_s25, 4  ;;  %s175_s26 = int_to_ptr.vmem [resolvable:$true] %s174_s26 }
   0xa   : > { %p1763_p5 = pnand %p1274_p2, %p162_p3  ;;  %s1776_s28 = sadd.s32 1, %s1691_s21  }
   0xb   : > { %s2205_s23 = scalar_select %p1759_p4, 1, 0 }
   0xc   : > { %s2206_s24 = scalar_select %p1763_p5, 1, 0 }
   0xd   : > { %p1474_p6 = pneg %p1763_p5  ;;  %s1561_s6 = scalar_lea.hbm %s2197_s1, 1792 }
   0xe   : > { %p1562_p8 = scmp.ne.s32.totalorder %s2197_s1, %s1561_s6  ;;  %p1568_p12 = scmp.lt.u32.totalorder %s1561_s6, %s2197_s1 }
   0xf   : > { %p1771_p7 = pnand %p1474_p6, %p2202_p1 }
  0x11   : > { %p1563_p9 = pneg %p1771_p7 }
  0x13   : > { %p1564_p10 = pnand %p1563_p9, %p1562_p8 }
  0x15   : > { %p1565_p11 = pneg %p1564_p10 }
  0x17   : > { %p1570_p13 = pnand %p1568_p12, %p1565_p11 }
  0x19   : > { %1573 = shalt.err (!%p1570_p13)
}
  0x1a   : > { %s1574_s11 = scalar_lea.vmem %s175_s26, 1792  ;;  %p1582_p6 = scmp.lt.s32.totalorder %s175_s26, %s175_s26 }
  0x1b   : > { %p1575_p0 = scmp.ne.s32.totalorder %s175_s26, %s1574_s11  ;;  %p1583_p1 = scmp.lt.s32.totalorder %s1574_s11, %s1574_s11 }
  0x1d   : > { %p1577_p2 = pnand %p1575_p0, %p1563_p9  ;;  %p1584_p4 = por %p1583_p1, %p1582_p6 }
  0x1f   : > { %p1578_p3 = pneg %p1577_p2 }
  0x21   : > { %p1585_p5 = pnand %p1584_p4, %p1578_p3 }
  0x23   : > { %1588 = shalt.err (!%p1585_p5)
}
  0x24   : > { %s1694_s12 = smov 64   ;;  %s1695_s13 = smov 4  }
  0x25   : > { %1477 = dma.hbm_to_vmem [thread:$0]  (!%p1771_p7), %s2197_s1, 1792, %s175_s26, [#allocation6], %s1694_s12, %s1694_s12, %s1695_s13  }
  0x26   : > { %s1589_s18 = scalar_lea.hbm %s2199_s3, 16 }
  0x27   : > { %p1590_p8 = scmp.ne.s32.totalorder %s2199_s3, %s1589_s18  ;;  %p1596_p5 = scmp.lt.u32.totalorder %s1589_s18, %s2199_s3 }
  0x29   : > { %p1592_p1 = pnand %p1590_p8, %p1563_p9 }
  0x2b   : > { %p1593_p4 = pneg %p1592_p1 }
  0x2d   : > { %p1598_p10 = pnand %p1596_p5, %p1593_p4 }
  0x2f   : > { %1601 = shalt.err (!%p1598_p10)
}
  0x30   : > { %s1696_s7 = smov [#allocation7]   ;;  %s1602_s11 = scalar_lea.hbm %s2200_s4, 16 }
  0x31   : > { %1480 = dma.hbm_to_smem (!%p1771_p7), %s2199_s3, 16, %s1696_s7, [#allocation4]  }
  0x32   : > { %p1603_p11 = scmp.ne.s32.totalorder %s2200_s4, %s1602_s11  ;;  %p1609_p0 = scmp.lt.u32.totalorder %s1602_s11, %s2200_s4 }
  0x34   : > { %p1605_p12 = pnand %p1603_p11, %p1563_p9 }
  0x36   : > { %p1606_p13 = pneg %p1605_p12 }
  0x38   : > { %p1611_p2 = pnand %p1609_p0, %p1606_p13 }
  0x3a   : > { %1614 = shalt.err (!%p1611_p2)
}
  0x3b   : > { %s1697_s16 = smov [#allocation8]   ;;  %s25_s25 = ssub.s32 %s1691_s21, %s1776_s28 }
  0x3c   : > { %1483 = dma.hbm_to_smem (!%p1771_p7), %s2200_s4, 16, %s1697_s16, [#allocation9]  }
  0x3d   : > { %s28_s29 = sadd.s32 1, %s1687_s20  ;;  %p26_p9 = scmp.eq.s32.totalorder %s25_s25, 0 }
  0x3e   : > { %p35_p3 = scmp.ne.s32.totalorder %s1687_s20, %s1683_s19  ;;  %p36_p6 = scmp.eq.s32.totalorder %s1691_s21, 0 }
  0x3f   : > { %p1491_p8 = scmp.lt.s32.totalorder %s1691_s21, 6  ;;  %s209_s30 = sand.u32 1, %s1687_s20  }
  0x40   : > { %s1842_s27 = scalar_select %p26_p9, %s1687_s20, %s28_s29  }
  0x41   : > { %p37_p1 = por %p36_p6, %p35_p3  ;;  %s1279_s6 = sshll.u32 %s209_s30, 6 }
  0x42   : > { %s1368_s7 = sshll.u32 %s1691_s21, 10  ;;  %s213_s10 = scalar_lea.vmem [#allocation2], %s1279_s6 }
  0x43   : > { %s1849_s9 = scalar_lea.hbm %s2196_s0, %s1368_s7  ;;  %s220_s11 = sshll.u32 %s213_s10, 4  ;;  %s1851_s11 = int_to_ptr.vmem [resolvable:$true] %s220_s11 }
  0x44   : > { %p1853_p7 = pnand %p1491_p8, %p37_p1  ;;  %s1857_s21 = scalar_lea.sflag [#allocation3], %s209_s30 }
  0x45   : > { %s1615_s13 = scalar_lea.hbm %s1849_s9, 1024  ;;  %s1620_s16 = scalar_lea.hbm %s2196_s0, 6144 }
  0x46   : > { %p1616_p4 = scmp.ne.s32.totalorder %s1849_s9, %s1615_s13  ;;  %p1617_p5 = pneg %p1853_p7 }
  0x47   : > { %p1621_p12 = scmp.lt.u32.totalorder %s1849_s9, %s2196_s0  ;;  %p1622_p13 = scmp.lt.u32.totalorder %s1620_s16, %s1615_s13 }
  0x48   : > { %p1618_p10 = pnand %p1617_p5, %p1616_p4  ;;  %p1624_p2 = scmp.lt.u32.totalorder %s1615_s13, %s1849_s9 }
  0x49   : > { %p1623_p0 = por %p1622_p13, %p1621_p12 }
  0x4a   : > { %p1619_p11 = pneg %p1618_p10 }
  0x4b   : > { %p1625_p9 = por %p1624_p2, %p1623_p0 }
  0x4d   : > { %p1626_p3 = pnand %p1625_p9, %p1619_p11 }
  0x4f   : > { %1629 = shalt.err (!%p1626_p3)
}
  0x50   : > { %s1630_s25 = scalar_lea.vmem %s1851_s11, 1024  ;;  %s1698_s29 = smov [#allocation2]  }
  0x51   : > { %p1631_p6 = scmp.ne.s32.totalorder %s1851_s11, %s1630_s25  ;;  %s1635_s30 = sshll.u32 %s1698_s29, 4  ;;  %s1636_s30 = int_to_ptr.vmem [resolvable:$false] %s1635_s30 }
  0x52   : > { %s1637_s6 = scalar_lea.vmem %s1636_s30, 2048  ;;  %p1638_p4 = scmp.lt.s32.totalorder %s1851_s11, %s1636_s30 }
  0x53   : > { %p1633_p8 = pnand %p1631_p6, %p1617_p5  ;;  %p1639_p10 = scmp.lt.s32.totalorder %s1637_s6, %s1630_s25 }
  0x55   : > { %p1634_p1 = pneg %p1633_p8  ;;  %p1640_p12 = por %p1639_p10, %p1638_p4 }
  0x57   : > { %p1641_p13 = pnand %p1640_p12, %p1634_p1 }
  0x59   : > { %1644 = shalt.err (!%p1641_p13)
}
  0x5a   : > { %s1699_s7 = smov 128   ;;  %s1700_s26 = smov 8  }
  0x5b   : > { %1487 = dma.hbm_to_vmem [thread:$0]  (!%p1853_p7), %s1849_s9, 1024, %s1851_s11, %s1857_s21, %s1699_s7, %s1699_s7, %s1700_s26  }
  0x5c   : > { %p2209_p5 = scmp.ne.s32.totalorder %s2206_s24, 0 }
  0x5d   : > { %s234_s8 = sand.u32 (!%p2209_p5), 1, %s1683_s19   ;;  %p2210_p11 = scmp.ne.s32.totalorder (!%p2209_p5), %s2205_s23, 0 }
  0x5e   : > { %232 = sbr.rel (%p2209_p5) target bundleno = 660 (0x294), region = 40  ;;  %s1283_s10 = sshll.u32 (!%p2209_p5), %s234_s8, 6 }
  0x5f   : > { %s235_s13 = scalar_lea.sflag (!%p2209_p5), [#allocation3], %s234_s8  ;;  %s238_s14 = scalar_lea.vmem (!%p2209_p5), [#allocation2], %s1283_s10 }
  0x65   : > { %1662 = dma.done.wait (%p2210_p11), %s235_s13, 1024  }
  0x66   : > { %1664 = vsyncadd (%p2210_p11), %s235_s13, 4294966272  ;;  %p2211_p0 = scmp.eq.s32.totalorder %s1751_s22, 0 }
  0x68   : > { %1666 = dma.done.wait (%p2211_p0), [#allocation6], 1792   ;;  %p2212_p2 = pmov %p2211_p0 }
  0x69   : > { %p2213_p7 = pmov %p2211_p0 }
  0x6a   : > { %1668 = vsyncadd (%p2212_p2), [#allocation6], 4294965504 }
  0x6b   : > { %1670 = dma.done.wait (%p2213_p7), [#allocation4], 16   ;;  %p2214_p9 = pmov %p2211_p0 }
  0x6c   : > { %p2215_p3 = pmov %p2211_p0 }
  0x6d   : > { %1672 = vsyncadd (%p2214_p9), [#allocation4], 4294967280 }
  0x6e   : > { %1674 = dma.done.wait (%p2215_p3), [#allocation9], 16   ;;  %p2216_p6 = pmov %p2211_p0 }
  0x70   : > { %1676 = vsyncadd (%p2216_p6), [#allocation9], 4294967280 }
  0x71   : > { %255 = sfence }
  0x72   : > { %v284_v0 = vld [vmem:[%s238_s14] sm:$0xff]  ;;  %v285_v1 = vld [vmem:[%s238_s14 + $0x8] sm:$0xff]  ;;  %v286_v2 = vld [vmem:[%s238_s14 + $0x10] sm:$0xff]  ;;  %vm394_vm0 = vcmask 523264   ;;  %v1701_v34 = vmov 0   ;;  %s859_s8 = sld [smem:[#allocation7 + %s1751_s22]] }
  0x73   : > { %v292_v3 = vpack.c.bf16 %v285_v1, %v284_v0  ;;  %v287_v4 = vld [vmem:[%s238_s14 + $0x18] sm:$0xff]  ;;  %v288_v6 = vld [vmem:[%s238_s14 + $0x20] sm:$0xff]  ;;  %v289_v7 = vld [vmem:[%s238_s14 + $0x28] sm:$0xff]  ;;  %748 = vmatprep.mubr.bf16.mxu1 %v1701_v34  ;;  %s917_s10 = sld [smem:[#allocation8 + %s1751_s22]]  ;;  %p278_p8 = scmp.lt.s32.totalorder %s1751_s22, 5  ;;  %vm1143_vm1 = vcmask 1043456  }
  0x74   : > { %v293_v5 = vpack.c.bf16 %v287_v4, %v286_v2  ;;  %v1535_v8 = vld [vmem:[#allocation5] sm:$0xff]   ;;  %v294_v9 = vpack.c.bf16 %v289_v7, %v288_v6  ;;  %v290_v10 = vld [vmem:[%s238_s14 + $0x30] sm:$0xff]  ;;  %v291_v11 = vld [vmem:[%s238_s14 + $0x38] sm:$0xff]  ;;  %vm1144_vm2 = vcmask 785412  }
  0x75   : > { %1415 = vmatprep.subr.bf16.mxu0 %v292_v3  ;;  %1423 = vmatprep.mubr.msk.bf16.mxu0 %vm394_vm0, %v1535_v8  ;;  %v295_v12 = vpack.c.bf16 %v291_v11, %v290_v10  ;;  %v1536_v13 = vld [vmem:[#allocation5 + $0x8] sm:$0xff]   ;;  %v1537_v14 = vld [vmem:[#allocation5 + $0x10] sm:$0xff]   ;;  %v1538_v20 = vld [vmem:[#allocation5 + $0x18] sm:$0xff]   ;;  %s2224_s22 = smov (!%p278_p8, %s1751_s22), 5 }
  0x76   : > { %1416 = vmatpush3.bf16.msra.mxu0 %v292_v3  ;;  %v1549_v15 = vld [vmem:[%s2198_s2] ss:$8 sps:$4 sm:$0xff]   ;;  %v1551_v16 = vld [vmem:[%s2198_s2 + $0x4] ss:$8 sps:$4 sm:$0xff]   ;;  %v1554_v17 = vld [vmem:[%s2198_s2 + $0x14] ss:$8 sps:$4 sm:$0xff]  }
  0x77   : > { %1417 = vmatprep.subr.bf16.mxu0 %v293_v5  ;;  %v1552_v18 = vld [vmem:[%s2198_s2 + $0x10] ss:$8 sps:$4 sm:$0xff]   ;;  %1451 = vmatprep.subr.bf16.mxu1 %v1551_v16  ;;  %v1557_v19 = vld [vmem:[%s2198_s2 + $0x24] ss:$8 sps:$4 sm:$0xff]   ;;  %v1555_v22 = vld [vmem:[%s2198_s2 + $0x20] ss:$8 sps:$4 sm:$0xff]  }
  0x78   : > { %1455 = vmatpush1.bf16.msra.mxu1 %v1549_v15  ;;  %v1539_v21 = vld [vmem:[#allocation5 + $0x20] sm:$0xff]   ;;  %v1540_v23 = vld [vmem:[#allocation5 + $0x28] sm:$0xff]   ;;  %v1541_v24 = vld [vmem:[#allocation5 + $0x30] sm:$0xff]   ;;  %s1459_s13 = smul.u32 224, %s2224_s22 }
  0x79   : > { %1452 = vmatprep.subr.bf16.mxu1 %v1554_v17  ;;  %v1542_v25 = vld [vmem:[#allocation5 + $0x38] sm:$0xff]   ;;  %v1543_v26 = vld [vmem:[#allocation5 + $0x40] sm:$0xff]   ;;  %v1544_v27 = vld [vmem:[#allocation5 + $0x48] sm:$0xff]  }
  0x7a   : > { %1418 = vmatpush3.bf16.msra.mxu0 %v293_v5  ;;  %v1545_v28 = vld [vmem:[#allocation5 + $0x50] sm:$0xff]   ;;  %v1546_v29 = vld [vmem:[#allocation5 + $0x58] sm:$0xff]   ;;  %v1547_v30 = vld [vmem:[#allocation5 + $0x60] sm:$0xff]   ;;  %s1987_s24 = scalar_lea.vmem %s2201_s5, %s1459_s13 }
  0x7b   : > { %1419 = vmatprep.subr.bf16.mxu0 %v294_v9  ;;  %v1548_v31 = vld [vmem:[#allocation5 + $0x68] sm:$0xff]   ;;  %v1560_v32 = vld [vmem:[%s2198_s2 + $0x34] ss:$8 sps:$4 sm:$0xff]   ;;  %v1558_v33 = vld [vmem:[%s2198_s2 + $0x30] ss:$8 sps:$4 sm:$0xff]  }
  0x7c   : > { %1456 = vmatpush1.bf16.msra.mxu1 %v1552_v18  ;;  %vm1989_vm3 = vmor %vm1144_vm2, %vm1143_vm1 }
  0x7d   : > { %1453 = vmatprep.subr.bf16.mxu1 %v1557_v19 }
  0x7e   : > { %1420 = vmatpush3.bf16.msra.mxu0 %v294_v9 }
  0x7f   : > { %1421 = vmatprep.subr.bf16.mxu0 %v295_v12 }
  0x80   : > { %1457 = vmatpush1.bf16.msra.mxu1 %v1555_v22 }
  0x81   : > { %1454 = vmatprep.subr.bf16.mxu1 %v1560_v32 }
  0x82   : > { %1422 = vmatpush3.bf16.msra.mxu0 %v295_v12 }
  0x83   : > { %686 = vmatprep.subr.bf16.mxu0 %v1551_v16 }
  0x84   : > { %1458 = vmatpush1.bf16.msra.mxu1 %v1558_v33 }
  0x85   : > { %1424 = vmatmul.mubr.msk.bf16.vlgmr.msra.gmra.mrb[0].mxu0 %vm394_vm0, %v1536_v13  ;;  %v1974_v13 = vstv %s859_s8 }
  0x86   : > { %1427 = vmatprep.mubr.msk.bf16.mxu0 %vm394_vm0, %v1537_v14  ;;  %687 = vmatpush1.bf16.msra.mxu0 %v1549_v15  ;;  %v1976_v15 = vstv %s917_s10 }
  0x87   : > { %688 = vmatprep.subr.bf16.mxu0 %v1554_v17 }
  0x8a   : > { %689 = vmatpush1.bf16.msra.mxu0 %v1552_v18 }
  0x8b   : > { %690 = vmatprep.subr.bf16.mxu0 %v1557_v19 }
  0x8d   : > { %1428 = vmatmul.mubr.msk.bf16.gmra.mrb[4].mxu0 %vm394_vm0, %v1538_v20 }
  0x8e   : > { %1431 = vmatprep.mubr.msk.bf16.mxu0 %vm394_vm0, %v1539_v21  ;;  %691 = vmatpush1.bf16.msra.mxu0 %v1555_v22 }
  0x8f   : > { %692 = vmatprep.subr.bf16.mxu0 %v1560_v32 }
  0x92   : > { %693 = vmatpush1.bf16.msra.mxu0 %v1558_v33 }
  0x95   : > { %1432 = vmatmul.mubr.msk.bf16.gmra.mrb[8].mxu0 %vm394_vm0, %v1540_v23 }
  0x96   : > { %1435 = vmatprep.mubr.msk.bf16.mxu0 %vm394_vm0, %v1541_v24 }
  0x9d   : > { %1436 = vmatmul.mubr.msk.bf16.gmra.mrb[12].mxu0 %vm394_vm0, %v1542_v25 }
  0x9e   : > { %1439 = vmatprep.mubr.msk.bf16.mxu0 %vm394_vm0, %v1543_v26 }
  0xa5   : > { %1440 = vmatmul.mubr.msk.bf16.gmra.mrb[16].mxu0 %vm394_vm0, %v1544_v27 }
  0xa6   : > { %1443 = vmatprep.mubr.msk.bf16.mxu0 %vm394_vm0, %v1545_v28 }
  0xad   : > { %1444 = vmatmul.mubr.msk.bf16.gmra.mrb[20].mxu0 %vm394_vm0, %v1546_v29 }
  0xae   : > { %1447 = vmatprep.mubr.msk.bf16.mxu0 %vm394_vm0, %v1547_v30 }
  0xb5   : > { %1448 = vmatmul.mubr.msk.bf16.gmra.mrb[24].mxu0 %vm394_vm0, %v1548_v31 }
  0xb6   : > { %718 = vmatprep.mubr.bf16.mxu0 %v1701_v34 }
 0x158   : > { %v1425_v35 = vpop.f32.mrb[0].mxu0 }
 0x159   : > { %v471_v36 = vpop.f32.mrb[1].mxu0 }
 0x15a   : > { %v1426_v37 = vpop.f32.mrb[2].mxu0 }
 0x15b   : > { %v583_v38 = vpack.c.bf16 %v1426_v37, %v1425_v35  ;;  %v474_v39 = vpop.f32.mrb[3].mxu0 }
 0x15c   : > { %v582_v40 = vpack.c.bf16 %v474_v39, %v471_v36 }
 0x15e   : > { %1324 = vmatmul.mubr.msk.bf16.vlgmr.msra.gmra.mrb[28].mxu0 %vm394_vm0, %v582_v40 }
 0x15f   : > { %728 = vmatprep.mubr.bf16.mxu0 %v1701_v34 }
 0x160   : > { %v1429_v41 = vpop.f32.mrb[4].mxu0 }
 0x161   : > { %v487_v42 = vpop.f32.mrb[5].mxu0 }
 0x162   : > { %v1430_v43 = vpop.f32.mrb[6].mxu0 }
 0x163   : > { %v585_v44 = vpack.c.bf16 %v1430_v43, %v1429_v41  ;;  %v490_v45 = vpop.f32.mrb[7].mxu0 }
 0x164   : > { %v584_v46 = vpack.c.bf16 %v490_v45, %v487_v42 }
 0x165   : > { %1327 = vmatmul.mubr.msk.bf16.vlgmr.msra.gmra.mrb[0].mxu1 %vm394_vm0, %v585_v44 }
 0x166   : > { %1325 = vmatmul.mubr.msk.bf16.gmra.mrb[32].mxu0 %vm394_vm0, %v583_v38  ;;  %758 = vmatprep.mubr.bf16.mxu1 %v1701_v34 }
 0x167   : > { %738 = vmatprep.mubr.bf16.mxu0 %v1701_v34 }
 0x168   : > { %v1433_v47 = vpop.f32.mrb[8].mxu0 }
 0x169   : > { %v503_v48 = vpop.f32.mrb[9].mxu0 }
 0x16a   : > { %v1434_v49 = vpop.f32.mrb[10].mxu0 }
 0x16b   : > { %v587_v50 = vpack.c.bf16 %v1434_v49, %v1433_v47  ;;  %v506_v51 = vpop.f32.mrb[11].mxu0 }
 0x16c   : > { %v586_v52 = vpack.c.bf16 %v506_v51, %v503_v48 }
 0x16e   : > { %1326 = vmatmul.mubr.msk.bf16.gmra.mrb[36].mxu0 %vm394_vm0, %v584_v46  ;;  %1328 = vmatmul.mubr.msk.bf16.gmra.mrb[4].mxu1 %vm394_vm0, %v586_v52 }
 0x16f   : > { %768 = vmatprep.mubr.bf16.mxu1 %v1701_v34 }
 0x170   : > { %v1437_v53 = vpop.f32.mrb[12].mxu0 }
 0x171   : > { %v519_v54 = vpop.f32.mrb[13].mxu0 }
 0x172   : > { %v1438_v55 = vpop.f32.mrb[14].mxu0 }
 0x173   : > { %v589_v56 = vpack.c.bf16 %v1438_v55, %v1437_v53  ;;  %v522_v57 = vpop.f32.mrb[15].mxu0 }
 0x174   : > { %v588_v58 = vpack.c.bf16 %v522_v57, %v519_v54 }
 0x176   : > { %1329 = vmatmul.mubr.msk.bf16.gmra.mrb[8].mxu1 %vm394_vm0, %v587_v50 }
 0x177   : > { %778 = vmatprep.mubr.bf16.mxu1 %v1701_v34 }
 0x178   : > { %v1441_v59 = vpop.f32.mrb[16].mxu0 }
 0x179   : > { %v535_v60 = vpop.f32.mrb[17].mxu0 }
 0x17a   : > { %v1442_v61 = vpop.f32.mrb[18].mxu0 }
 0x17b   : > { %v591_v62 = vpack.c.bf16 %v1442_v61, %v1441_v59  ;;  %v538_v63 = vpop.f32.mrb[19].mxu0 }
 0x17c   : > { %v590_v0 = vpack.c.bf16 %v538_v63, %v535_v60 }
 0x17e   : > { %1330 = vmatmul.mubr.msk.bf16.gmra.mrb[12].mxu1 %vm394_vm0, %v588_v58 }
 0x17f   : > { %788 = vmatprep.mubr.bf16.mxu1 %v1701_v34 }
 0x180   : > { %v1445_v1 = vpop.f32.mrb[20].mxu0 }
 0x181   : > { %v551_v2 = vpop.f32.mrb[21].mxu0 }
 0x182   : > { %v1446_v3 = vpop.f32.mrb[22].mxu0 }
 0x183   : > { %v593_v4 = vpack.c.bf16 %v1446_v3, %v1445_v1  ;;  %v554_v5 = vpop.f32.mrb[23].mxu0 }
 0x184   : > { %v592_v6 = vpack.c.bf16 %v554_v5, %v551_v2 }
 0x186   : > { %1331 = vmatmul.mubr.msk.bf16.gmra.mrb[16].mxu1 %vm394_vm0, %v589_v56 }
 0x187   : > { %798 = vmatprep.mubr.bf16.mxu1 %v1701_v34 }
 0x188   : > { %v1449_v7 = vpop.f32.mrb[24].mxu0 }
 0x189   : > { %v567_v8 = vpop.f32.mrb[25].mxu0 }
 0x18a   : > { %v1450_v9 = vpop.f32.mrb[26].mxu0 }
 0x18b   : > { %v595_v10 = vpack.c.bf16 %v1450_v9, %v1449_v7  ;;  %v570_v11 = vpop.f32.mrb[27].mxu0 }
 0x18c   : > { %v594_v12 = vpack.c.bf16 %v570_v11, %v567_v8 }
 0x18e   : > { %1332 = vmatmul.mubr.msk.bf16.gmra.mrb[20].mxu1 %vm394_vm0, %v590_v0 }
 0x18f   : > { %808 = vmatprep.mubr.bf16.mxu1 %v1701_v34 }
 0x196   : > { %1333 = vmatmul.mubr.msk.bf16.gmra.mrb[24].mxu1 %vm394_vm0, %v591_v62 }
 0x197   : > { %818 = vmatprep.mubr.bf16.mxu1 %v1701_v34 }
 0x19e   : > { %1334 = vmatmul.mubr.msk.bf16.gmra.mrb[28].mxu1 %vm394_vm0, %v592_v6 }
 0x19f   : > { %828 = vmatprep.mubr.bf16.mxu1 %v1701_v34 }
 0x1a6   : > { %1335 = vmatmul.mubr.msk.bf16.gmra.mrb[32].mxu1 %vm394_vm0, %v593_v4 }
 0x1a7   : > { %838 = vmatprep.mubr.bf16.mxu1 %v1701_v34 }
 0x1ae   : > { %1336 = vmatmul.mubr.msk.bf16.gmra.mrb[36].mxu1 %vm394_vm0, %v594_v12 }
 0x1af   : > { %848 = vmatprep.mubr.bf16.mxu1 %v1701_v34 }
 0x1b6   : > { %1337 = vmatmul.mubr.msk.bf16.gmra.mrb[40].mxu1 %vm394_vm0, %v595_v10 }
 0x231   : > { %v720_v14 = vpop.f32.mrb[28].mxu0 }
 0x232   : > { %v861_v16 = vmul.f32 %v1974_v13, %v720_v14  ;;  %v722_v17 = vpop.f32.mrb[29].mxu0 }
 0x233   : > { %v862_v18 = vmul.f32 %v1974_v13, %v722_v17  ;;  %v724_v19 = vpop.f32.mrb[30].mxu0 }
 0x234   : > { %v919_v20 = vadd.f32 %v1976_v15, %v861_v16  ;;  %v863_v21 = vmul.f32 %v1974_v13, %v724_v19  ;;  %v726_v22 = vpop.f32.mrb[31].mxu0 }
 0x235   : > { %v920_v23 = vadd.f32 %v1976_v15, %v862_v18  ;;  %v864_v24 = vmul.f32 %v1974_v13, %v726_v22 }
 0x236   : > { %v921_v26 = vadd.f32 %v1976_v15, %v863_v21 }
 0x237   : > { %v1369_v27 = vpack.c.bf16 %v920_v23, %v919_v20  ;;  %v922_v28 = vadd.f32 %v1976_v15, %v864_v24 }
 0x238   : > { %v750_v29 = vpop.f32.mrb[0].mxu1 }
 0x239   : > { %1146 = vst.msk [vmem:[%s1987_s24] sm:$0xff] %vm1989_vm3, %v1369_v27  ;;  %v1370_v30 = vpack.c.bf16 %v922_v28, %v921_v26  ;;  %v873_v31 = vmul.f32 %v1974_v13, %v750_v29  ;;  %v730_v32 = vpop.f32.mrb[32].mxu0  ;;  %v752_v33 = vpop.f32.mrb[1].mxu1 }
 0x23a   : > { %v865_v34 = vmul.f32 %v1974_v13, %v730_v32  ;;  %v874_v35 = vmul.f32 %v1974_v13, %v752_v33  ;;  %v732_v36 = vpop.f32.mrb[33].mxu0  ;;  %v754_v37 = vpop.f32.mrb[2].mxu1 }
 0x23b   : > { %1147 = vst.msk [vmem:[%s1987_s24 + $0x8] sm:$0xff] %vm1989_vm3, %v1370_v30  ;;  %v931_v38 = vadd.f32 %v1976_v15, %v873_v31  ;;  %v866_v39 = vmul.f32 %v1974_v13, %v732_v36  ;;  %v875_v40 = vmul.f32 %v1974_v13, %v754_v37  ;;  %v734_v41 = vpop.f32.mrb[34].mxu0  ;;  %v756_v42 = vpop.f32.mrb[3].mxu1 }
 0x23c   : > { %v923_v43 = vadd.f32 %v1976_v15, %v865_v34  ;;  %v932_v44 = vadd.f32 %v1976_v15, %v874_v35  ;;  %v867_v45 = vmul.f32 %v1974_v13, %v734_v41  ;;  %v876_v46 = vmul.f32 %v1974_v13, %v756_v42  ;;  %v736_v47 = vpop.f32.mrb[35].mxu0 }
 0x23d   : > { %v924_v48 = vadd.f32 %v1976_v15, %v866_v39  ;;  %v933_v49 = vadd.f32 %v1976_v15, %v875_v40  ;;  %v868_v50 = vmul.f32 %v1974_v13, %v736_v47 }
 0x23e   : > { %v1375_v51 = vpack.c.bf16 %v932_v44, %v931_v38  ;;  %v925_v52 = vadd.f32 %v1976_v15, %v867_v45  ;;  %v934_v53 = vadd.f32 %v1976_v15, %v876_v46 }
 0x23f   : > { %v1371_v54 = vpack.c.bf16 %v924_v48, %v923_v43  ;;  %v926_v55 = vadd.f32 %v1976_v15, %v868_v50 }
 0x240   : > { %1152 = vst.msk [vmem:[%s1987_s24 + $0x30] sm:$0xff] %vm1989_vm3, %v1375_v51  ;;  %v1376_v56 = vpack.c.bf16 %v934_v53, %v933_v49 }
 0x241   : > { %1148 = vst.msk [vmem:[%s1987_s24 + $0x10] sm:$0xff] %vm1989_vm3, %v1371_v54  ;;  %v1372_v57 = vpack.c.bf16 %v926_v55, %v925_v52  ;;  %v740_v58 = vpop.f32.mrb[36].mxu0  ;;  %v760_v59 = vpop.f32.mrb[4].mxu1 }
 0x242   : > { %1153 = vst.msk [vmem:[%s1987_s24 + $0x38] sm:$0xff] %vm1989_vm3, %v1376_v56  ;;  %v869_v60 = vmul.f32 %v1974_v13, %v740_v58  ;;  %v877_v61 = vmul.f32 %v1974_v13, %v760_v59  ;;  %v742_v62 = vpop.f32.mrb[37].mxu0  ;;  %v762_v63 = vpop.f32.mrb[5].mxu1 }
 0x243   : > { %1149 = vst.msk [vmem:[%s1987_s24 + $0x18] sm:$0xff] %vm1989_vm3, %v1372_v57  ;;  %v870_v0 = vmul.f32 %v1974_v13, %v742_v62  ;;  %v878_v1 = vmul.f32 %v1974_v13, %v762_v63  ;;  %v744_v2 = vpop.f32.mrb[38].mxu0  ;;  %v764_v3 = vpop.f32.mrb[6].mxu1 }
 0x244   : > { %v927_v4 = vadd.f32 %v1976_v15, %v869_v60  ;;  %v935_v5 = vadd.f32 %v1976_v15, %v877_v61  ;;  %v871_v6 = vmul.f32 %v1974_v13, %v744_v2  ;;  %v879_v7 = vmul.f32 %v1974_v13, %v764_v3  ;;  %v746_v8 = vpop.f32.mrb[39].mxu0  ;;  %v766_v9 = vpop.f32.mrb[7].mxu1 }
 0x245   : > { %v928_v10 = vadd.f32 %v1976_v15, %v870_v0  ;;  %v936_v11 = vadd.f32 %v1976_v15, %v878_v1  ;;  %v872_v12 = vmul.f32 %v1974_v13, %v746_v8  ;;  %v880_v14 = vmul.f32 %v1974_v13, %v766_v9 }
 0x246   : > { %v929_v16 = vadd.f32 %v1976_v15, %v871_v6  ;;  %v937_v17 = vadd.f32 %v1976_v15, %v879_v7 }
 0x247   : > { %v1373_v18 = vpack.c.bf16 %v928_v10, %v927_v4  ;;  %v1377_v19 = vpack.c.bf16 %v936_v11, %v935_v5  ;;  %v930_v20 = vadd.f32 %v1976_v15, %v872_v12  ;;  %v938_v21 = vadd.f32 %v1976_v15, %v880_v14 }
 0x249   : > { %1150 = vst.msk [vmem:[%s1987_s24 + $0x20] sm:$0xff] %vm1989_vm3, %v1373_v18  ;;  %1154 = vst.msk [vmem:[%s1987_s24 + $0x40] sm:$0xff] %vm1989_vm3, %v1377_v19  ;;  %v1374_v22 = vpack.c.bf16 %v930_v20, %v929_v16  ;;  %v1378_v23 = vpack.c.bf16 %v938_v21, %v937_v17  ;;  %v770_v24 = vpop.f32.mrb[8].mxu1 }
 0x24a   : > { %v881_v26 = vmul.f32 %v1974_v13, %v770_v24  ;;  %v772_v27 = vpop.f32.mrb[9].mxu1 }
 0x24b   : > { %1151 = vst.msk [vmem:[%s1987_s24 + $0x28] sm:$0xff] %vm1989_vm3, %v1374_v22  ;;  %1155 = vst.msk [vmem:[%s1987_s24 + $0x48] sm:$0xff] %vm1989_vm3, %v1378_v23  ;;  %v882_v28 = vmul.f32 %v1974_v13, %v772_v27  ;;  %v774_v29 = vpop.f32.mrb[10].mxu1 }
 0x24c   : > { %v939_v30 = vadd.f32 %v1976_v15, %v881_v26  ;;  %v883_v31 = vmul.f32 %v1974_v13, %v774_v29  ;;  %v776_v32 = vpop.f32.mrb[11].mxu1 }
 0x24d   : > { %v940_v33 = vadd.f32 %v1976_v15, %v882_v28  ;;  %v884_v34 = vmul.f32 %v1974_v13, %v776_v32 }
 0x24e   : > { %v941_v35 = vadd.f32 %v1976_v15, %v883_v31 }
 0x24f   : > { %v1379_v36 = vpack.c.bf16 %v940_v33, %v939_v30  ;;  %v942_v37 = vadd.f32 %v1976_v15, %v884_v34 }
 0x251   : > { %1156 = vst.msk [vmem:[%s1987_s24 + $0x50] sm:$0xff] %vm1989_vm3, %v1379_v36  ;;  %v1380_v38 = vpack.c.bf16 %v942_v37, %v941_v35  ;;  %v780_v39 = vpop.f32.mrb[12].mxu1 }
 0x252   : > { %v885_v40 = vmul.f32 %v1974_v13, %v780_v39  ;;  %v782_v41 = vpop.f32.mrb[13].mxu1 }
 0x253   : > { %1157 = vst.msk [vmem:[%s1987_s24 + $0x58] sm:$0xff] %vm1989_vm3, %v1380_v38  ;;  %v886_v42 = vmul.f32 %v1974_v13, %v782_v41  ;;  %v784_v43 = vpop.f32.mrb[14].mxu1 }
 0x254   : > { %v943_v44 = vadd.f32 %v1976_v15, %v885_v40  ;;  %v887_v45 = vmul.f32 %v1974_v13, %v784_v43  ;;  %v786_v46 = vpop.f32.mrb[15].mxu1 }
 0x255   : > { %v944_v47 = vadd.f32 %v1976_v15, %v886_v42  ;;  %v888_v48 = vmul.f32 %v1974_v13, %v786_v46 }
 0x256   : > { %v945_v49 = vadd.f32 %v1976_v15, %v887_v45 }
 0x257   : > { %v1381_v50 = vpack.c.bf16 %v944_v47, %v943_v44  ;;  %v946_v51 = vadd.f32 %v1976_v15, %v888_v48 }
 0x259   : > { %1158 = vst.msk [vmem:[%s1987_s24 + $0x60] sm:$0xff] %vm1989_vm3, %v1381_v50  ;;  %v1382_v52 = vpack.c.bf16 %v946_v51, %v945_v49  ;;  %v790_v53 = vpop.f32.mrb[16].mxu1 }
 0x25a   : > { %v889_v54 = vmul.f32 %v1974_v13, %v790_v53  ;;  %v792_v55 = vpop.f32.mrb[17].mxu1 }
 0x25b   : > { %1159 = vst.msk [vmem:[%s1987_s24 + $0x68] sm:$0xff] %vm1989_vm3, %v1382_v52  ;;  %v890_v56 = vmul.f32 %v1974_v13, %v792_v55  ;;  %v794_v57 = vpop.f32.mrb[18].mxu1 }
 0x25c   : > { %v947_v58 = vadd.f32 %v1976_v15, %v889_v54  ;;  %v891_v59 = vmul.f32 %v1974_v13, %v794_v57  ;;  %v796_v60 = vpop.f32.mrb[19].mxu1 }
 0x25d   : > { %v948_v61 = vadd.f32 %v1976_v15, %v890_v56  ;;  %v892_v62 = vmul.f32 %v1974_v13, %v796_v60 }
 0x25e   : > { %v949_v63 = vadd.f32 %v1976_v15, %v891_v59 }
 0x25f   : > { %v1383_v0 = vpack.c.bf16 %v948_v61, %v947_v58  ;;  %v950_v1 = vadd.f32 %v1976_v15, %v892_v62 }
 0x261   : > { %1160 = vst.msk [vmem:[%s1987_s24 + $0x70] sm:$0xff] %vm1989_vm3, %v1383_v0  ;;  %v1384_v2 = vpack.c.bf16 %v950_v1, %v949_v63  ;;  %v800_v3 = vpop.f32.mrb[20].mxu1 }
 0x262   : > { %v893_v4 = vmul.f32 %v1974_v13, %v800_v3  ;;  %v802_v5 = vpop.f32.mrb[21].mxu1 }
 0x263   : > { %1161 = vst.msk [vmem:[%s1987_s24 + $0x78] sm:$0xff] %vm1989_vm3, %v1384_v2  ;;  %v894_v6 = vmul.f32 %v1974_v13, %v802_v5  ;;  %v804_v7 = vpop.f32.mrb[22].mxu1 }
 0x264   : > { %v951_v8 = vadd.f32 %v1976_v15, %v893_v4  ;;  %v895_v9 = vmul.f32 %v1974_v13, %v804_v7  ;;  %v806_v10 = vpop.f32.mrb[23].mxu1 }
 0x265   : > { %v952_v11 = vadd.f32 %v1976_v15, %v894_v6  ;;  %v896_v12 = vmul.f32 %v1974_v13, %v806_v10 }
 0x266   : > { %v953_v14 = vadd.f32 %v1976_v15, %v895_v9 }
 0x267   : > { %v1385_v16 = vpack.c.bf16 %v952_v11, %v951_v8  ;;  %v954_v17 = vadd.f32 %v1976_v15, %v896_v12 }
 0x269   : > { %1162 = vst.msk [vmem:[%s1987_s24 + $0x80] sm:$0xff] %vm1989_vm3, %v1385_v16  ;;  %v1386_v18 = vpack.c.bf16 %v954_v17, %v953_v14  ;;  %v810_v19 = vpop.f32.mrb[24].mxu1 }
 0x26a   : > { %v897_v20 = vmul.f32 %v1974_v13, %v810_v19  ;;  %v812_v21 = vpop.f32.mrb[25].mxu1 }
 0x26b   : > { %1163 = vst.msk [vmem:[%s1987_s24 + $0x88] sm:$0xff] %vm1989_vm3, %v1386_v18  ;;  %v898_v22 = vmul.f32 %v1974_v13, %v812_v21  ;;  %v814_v23 = vpop.f32.mrb[26].mxu1 }
 0x26c   : > { %v955_v24 = vadd.f32 %v1976_v15, %v897_v20  ;;  %v899_v26 = vmul.f32 %v1974_v13, %v814_v23  ;;  %v816_v27 = vpop.f32.mrb[27].mxu1 }
 0x26d   : > { %v956_v28 = vadd.f32 %v1976_v15, %v898_v22  ;;  %v900_v29 = vmul.f32 %v1974_v13, %v816_v27 }
 0x26e   : > { %v957_v30 = vadd.f32 %v1976_v15, %v899_v26 }
 0x26f   : > { %v1387_v31 = vpack.c.bf16 %v956_v28, %v955_v24  ;;  %v958_v32 = vadd.f32 %v1976_v15, %v900_v29 }
 0x271   : > { %1164 = vst.msk [vmem:[%s1987_s24 + $0x90] sm:$0xff] %vm1989_vm3, %v1387_v31  ;;  %v1388_v33 = vpack.c.bf16 %v958_v32, %v957_v30  ;;  %v820_v34 = vpop.f32.mrb[28].mxu1 }
 0x272   : > { %v901_v35 = vmul.f32 %v1974_v13, %v820_v34  ;;  %v822_v36 = vpop.f32.mrb[29].mxu1 }
 0x273   : > { %1165 = vst.msk [vmem:[%s1987_s24 + $0x98] sm:$0xff] %vm1989_vm3, %v1388_v33  ;;  %v902_v37 = vmul.f32 %v1974_v13, %v822_v36  ;;  %v824_v38 = vpop.f32.mrb[30].mxu1 }
 0x274   : > { %v959_v39 = vadd.f32 %v1976_v15, %v901_v35  ;;  %v903_v40 = vmul.f32 %v1974_v13, %v824_v38  ;;  %v826_v41 = vpop.f32.mrb[31].mxu1 }
 0x275   : > { %v960_v42 = vadd.f32 %v1976_v15, %v902_v37  ;;  %v904_v43 = vmul.f32 %v1974_v13, %v826_v41 }
 0x276   : > { %v961_v44 = vadd.f32 %v1976_v15, %v903_v40 }
 0x277   : > { %v1389_v45 = vpack.c.bf16 %v960_v42, %v959_v39  ;;  %v962_v46 = vadd.f32 %v1976_v15, %v904_v43 }
 0x279   : > { %1166 = vst.msk [vmem:[%s1987_s24 + $0xa0] sm:$0xff] %vm1989_vm3, %v1389_v45  ;;  %v1390_v47 = vpack.c.bf16 %v962_v46, %v961_v44  ;;  %v830_v48 = vpop.f32.mrb[32].mxu1 }
 0x27a   : > { %v905_v49 = vmul.f32 %v1974_v13, %v830_v48  ;;  %v832_v50 = vpop.f32.mrb[33].mxu1 }
 0x27b   : > { %1167 = vst.msk [vmem:[%s1987_s24 + $0xa8] sm:$0xff] %vm1989_vm3, %v1390_v47  ;;  %v906_v51 = vmul.f32 %v1974_v13, %v832_v50  ;;  %v834_v52 = vpop.f32.mrb[34].mxu1 }
 0x27c   : > { %v963_v53 = vadd.f32 %v1976_v15, %v905_v49  ;;  %v907_v54 = vmul.f32 %v1974_v13, %v834_v52  ;;  %v836_v55 = vpop.f32.mrb[35].mxu1 }
 0x27d   : > { %v964_v56 = vadd.f32 %v1976_v15, %v906_v51  ;;  %v908_v57 = vmul.f32 %v1974_v13, %v836_v55 }
 0x27e   : > { %v965_v58 = vadd.f32 %v1976_v15, %v907_v54 }
 0x27f   : > { %v1391_v59 = vpack.c.bf16 %v964_v56, %v963_v53  ;;  %v966_v60 = vadd.f32 %v1976_v15, %v908_v57 }
 0x281   : > { %1168 = vst.msk [vmem:[%s1987_s24 + $0xb0] sm:$0xff] %vm1989_vm3, %v1391_v59  ;;  %v1392_v61 = vpack.c.bf16 %v966_v60, %v965_v58  ;;  %v840_v62 = vpop.f32.mrb[36].mxu1 }
 0x282   : > { %v909_v63 = vmul.f32 %v1974_v13, %v840_v62  ;;  %v842_v0 = vpop.f32.mrb[37].mxu1 }
 0x283   : > { %1169 = vst.msk [vmem:[%s1987_s24 + $0xb8] sm:$0xff] %vm1989_vm3, %v1392_v61  ;;  %v910_v1 = vmul.f32 %v1974_v13, %v842_v0  ;;  %v844_v2 = vpop.f32.mrb[38].mxu1 }
 0x284   : > { %v967_v3 = vadd.f32 %v1976_v15, %v909_v63  ;;  %v911_v4 = vmul.f32 %v1974_v13, %v844_v2  ;;  %v846_v5 = vpop.f32.mrb[39].mxu1 }
 0x285   : > { %v968_v6 = vadd.f32 %v1976_v15, %v910_v1  ;;  %v912_v7 = vmul.f32 %v1974_v13, %v846_v5 }
 0x286   : > { %v969_v8 = vadd.f32 %v1976_v15, %v911_v4 }
 0x287   : > { %v1393_v9 = vpack.c.bf16 %v968_v6, %v967_v3  ;;  %v970_v10 = vadd.f32 %v1976_v15, %v912_v7 }
 0x289   : > { %1170 = vst.msk [vmem:[%s1987_s24 + $0xc0] sm:$0xff] %vm1989_vm3, %v1393_v9  ;;  %v1394_v11 = vpack.c.bf16 %v970_v10, %v969_v8  ;;  %v850_v12 = vpop.f32.mrb[40].mxu1 }
 0x28a   : > { %v913_v14 = vmul.f32 %v1974_v13, %v850_v12  ;;  %v852_v16 = vpop.f32.mrb[41].mxu1 }
 0x28b   : > { %1171 = vst.msk [vmem:[%s1987_s24 + $0xc8] sm:$0xff] %vm1989_vm3, %v1394_v11  ;;  %v914_v17 = vmul.f32 %v1974_v13, %v852_v16  ;;  %v854_v18 = vpop.f32.mrb[42].mxu1 }
 0x28c   : > { %v971_v19 = vadd.f32 %v1976_v15, %v913_v14  ;;  %v915_v20 = vmul.f32 %v1974_v13, %v854_v18  ;;  %v856_v21 = vpop.f32.mrb[43].mxu1 }
 0x28d   : > { %v972_v22 = vadd.f32 %v1976_v15, %v914_v17  ;;  %v916_v23 = vmul.f32 %v1974_v13, %v856_v21 }
 0x28e   : > { %v973_v24 = vadd.f32 %v1976_v15, %v915_v20 }
 0x28f   : > { %v1395_v26 = vpack.c.bf16 %v972_v22, %v971_v19  ;;  %v974_v27 = vadd.f32 %v1976_v15, %v916_v23 }
 0x291   : > { %1172 = vst.msk [vmem:[%s1987_s24 + $0xd0] sm:$0xff] %vm1989_vm3, %v1395_v26  ;;  %v1396_v28 = vpack.c.bf16 %v974_v27, %v973_v24 }
 0x293   : > { %1173 = vst.msk [vmem:[%s1987_s24 + $0xd8] sm:$0xff] %vm1989_vm3, %v1396_v28 }
 0x294 PF: > { %p18_p1 = scmp.ge.s32.totalorder %s1776_s28, 8   ;;  %s2219_s18 = smov %s1683_s19 }
 0x295   : > { %s2220_s19 = smov %s1687_s20  ;;  %s2221_s20 = smov %s1842_s27 }
 0x296   : > { %s2222_s21 = smov %s1776_s28  ;;  %20 = sbr.rel (!%p18_p1) target bundleno = 6 (0x6), region = 93 }
 0x29d   :  { %1195 = vsyncpa [#allocation3], 1 }
 0x29e   :  { %1197 = vsyncpa [#allocation3 + $0x1], 1 }
 0x29f   :  { %1198 = vsyncpa [#allocation6], 1 }
 0x2a0   :  { %1199 = vsyncpa [#allocation4], 1 }
 0x2a1   :  { %1201 = vsyncpa [#allocation4 + $0x1], 1 }
 0x2a2   :  { %1202 = vsyncpa [#allocation9], 1 }

// kernel: _pallas_forward.16
= control target key start
LH: loop header
LB: loop body
LE: loop exit
PB: predicated region body
PF: predicated region fallthrough
CT: control target
= control target key end

     0   :  { %s447_s12 = smov 0   ;;  %s551_s0 = inlined_call_operand.vmem [shape: f32[128,64], index: 0, kind: input, shape index: {}]   ;;  %s552_s1 = inlined_call_operand.vmem [shape: f32[1,64], index: 1, kind: input, shape index: {}]   ;;  %s553_s2 = inlined_call_operand.vmem [shape: f32[1,64], index: 2, kind: input, shape index: {}]   ;;  %s554_s3 = inlined_call_operand.vmem [shape: f32[128,64], index: 3, kind: output, shape index: {}]  }
   0x1 LB: > { %s382_s13 = sadd.s32 4294967295, %s425_s12   ;;  %p386_p0 = scmp.ge.s32.totalorder %s425_s12, 1  ;;  %s425_s12 = sphi %s447_s12, %s13_s12  }
   0x2   : > { %p138_p1 = scmp.lt.s32.totalorder %s425_s12, 3 }
   0x4   : > { %p139_p2 = pnand %p386_p0, %p138_p1 }
   0x5   : > { %s387_s14 = sshll.u32 (!%p139_p2), %s382_s13, 3  ;;  %vm182_vm0 = vcmask (!%p139_p2), 523264  }
   0x6   : > { %142 = sbr.rel (%p139_p2) target bundleno = 347 (0x15b), region = 32  ;;  %p163_p3 = scmp.lt.s32.totalorder (!%p139_p2), %s387_s14, 15 }
   0xd   : > { %s556_s14 = smov (!%p163_p3, %s387_s14), 15 }
   0xe   : > { %s388_s15 = sshll.u32 %s556_s14, 3 }
   0xf   : > { %s166_s18 = scalar_lea.vmem %s551_s0, %s388_s15  ;;  %s523_s25 = scalar_lea.vmem %s554_s3, %s388_s15 }
  0x10   : > { %v174_v0 = vld [vmem:[%s166_s18] sm:$0xff]  ;;  %v176_v1 = vld [vmem:[%s166_s18 + $0x10] sm:$0xff]  ;;  %v175_v2 = vld [vmem:[%s166_s18 + $0x8] sm:$0xff] }
  0x11   : > { %v183_v3 = vsel %vm182_vm0, %v174_v0, 0.0  ;;  %v189_v4 = vsel %vm182_vm0, %v176_v1, 0.0  ;;  %v177_v5 = vld [vmem:[%s166_s18 + $0x18] sm:$0xff]  ;;  %v186_v6 = vsel %vm182_vm0, %v175_v2, 0.0  ;;  %v178_v8 = vld [vmem:[%s166_s18 + $0x20] sm:$0xff]  ;;  %v179_v9 = vld [vmem:[%s166_s18 + $0x28] sm:$0xff] }
  0x12   : > { %184 = vadd.xlane.f32.xlu0 %v183_v3  ;;  %190 = vadd.xlane.f32.xlu1 %v189_v4  ;;  %v192_v7 = vsel %vm182_vm0, %v177_v5, 0.0  ;;  %v195_v10 = vsel %vm182_vm0, %v178_v8, 0.0  ;;  %v198_v11 = vsel %vm182_vm0, %v179_v9, 0.0  ;;  %v180_v12 = vld [vmem:[%s166_s18 + $0x30] sm:$0xff]  ;;  %v181_v13 = vld [vmem:[%s166_s18 + $0x38] sm:$0xff] }
  0x13   : > { %v201_v14 = vsel %vm182_vm0, %v180_v12, 0.0  ;;  %v204_v15 = vsel %vm182_vm0, %v181_v13, 0.0 }
  0x16   : > { %187 = vadd.xlane.f32.xlu0 %v186_v6  ;;  %193 = vadd.xlane.f32.xlu1 %v192_v7 }
  0x1a   : > { %196 = vadd.xlane.f32.xlu0 %v195_v10  ;;  %199 = vadd.xlane.f32.xlu1 %v198_v11 }
  0x1e   : > { %202 = vadd.xlane.f32.xlu0 %v201_v14  ;;  %205 = vadd.xlane.f32.xlu1 %v204_v15 }
  0x9f   : > { %v185_v16 = vpop.xlane.xlu0 %184  ;;  %v191_v17 = vpop.xlane.xlu1 %190 }
  0xa0   : > { %v208_v18 = vmul.f32 0.015625, %v185_v16  ;;  %v210_v19 = vmul.f32 0.015625, %v191_v17  ;;  %v392_v17 = vld [vmem:[%s553_s2] ss:$0 sm:$0xff] }
  0xa2   : > { %v471_v20 = vsub.f32 %v174_v0, %v208_v18  ;;  %v473_v21 = vsub.f32 %v176_v1, %v210_v19 }
  0xa3   : > { %v188_v22 = vpop.xlane.xlu0 %187  ;;  %v194_v23 = vpop.xlane.xlu1 %193 }
  0xa4   : > { %v209_v24 = vmul.f32 0.015625, %v188_v22  ;;  %v211_v25 = vmul.f32 0.015625, %v194_v23  ;;  %v224_v26 = vmul.f32 %v471_v20, %v471_v20  ;;  %v226_v27 = vmul.f32 %v473_v21, %v473_v21 }
  0xa6   : > { %v479_v28 = vsub.f32 %v175_v2, %v209_v24  ;;  %v481_v29 = vsub.f32 %v177_v5, %v211_v25  ;;  %v232_v30 = vsel %vm182_vm0, %v224_v26, 0.0  ;;  %v238_v33 = vsel %vm182_vm0, %v226_v27, 0.0 }
  0xa7   : > { %233 = vadd.xlane.f32.xlu0 %v232_v30  ;;  %v197_v31 = vpop.xlane.xlu0 %196  ;;  %v200_v32 = vpop.xlane.xlu1 %199 }
  0xa8   : > { %v212_v34 = vmul.f32 0.015625, %v197_v31  ;;  %v213_v35 = vmul.f32 0.015625, %v200_v32  ;;  %v225_v36 = vmul.f32 %v479_v28, %v479_v28  ;;  %v227_v37 = vmul.f32 %v481_v29, %v481_v29 }
  0xaa   : > { %v489_v38 = vsub.f32 %v178_v8, %v212_v34  ;;  %v491_v39 = vsub.f32 %v179_v9, %v213_v35  ;;  %v235_v40 = vsel %vm182_vm0, %v225_v36, 0.0  ;;  %v241_v43 = vsel %vm182_vm0, %v227_v37, 0.0 }
  0xab   : > { %239 = vadd.xlane.f32.xlu0 %v238_v33  ;;  %236 = vadd.xlane.f32.xlu1 %v235_v40  ;;  %v203_v41 = vpop.xlane.xlu0 %202  ;;  %v206_v42 = vpop.xlane.xlu1 %205 }
  0xac   : > { %v214_v44 = vmul.f32 0.015625, %v203_v41  ;;  %v215_v45 = vmul.f32 0.015625, %v206_v42  ;;  %v228_v46 = vmul.f32 %v489_v38, %v489_v38  ;;  %v229_v47 = vmul.f32 %v491_v39, %v491_v39 }
  0xae   : > { %v499_v48 = vsub.f32 %v180_v12, %v214_v44  ;;  %v501_v49 = vsub.f32 %v181_v13, %v215_v45  ;;  %v244_v50 = vsel %vm182_vm0, %v228_v46, 0.0  ;;  %v247_v51 = vsel %vm182_vm0, %v229_v47, 0.0  ;;  %v391_v12 = vld [vmem:[%s552_s1] ss:$0 sm:$0xff] }
  0xaf   : > { %242 = vadd.xlane.f32.xlu1 %v241_v43  ;;  %245 = vadd.xlane.f32.xlu0 %v244_v50 }
  0xb0   : > { %v230_v52 = vmul.f32 %v499_v48, %v499_v48  ;;  %v231_v53 = vmul.f32 %v501_v49, %v501_v49 }
  0xb2   : > { %v250_v54 = vsel %vm182_vm0, %v230_v52, 0.0  ;;  %v253_v55 = vsel %vm182_vm0, %v231_v53, 0.0 }
  0xb3   : > { %248 = vadd.xlane.f32.xlu1 %v247_v51  ;;  %251 = vadd.xlane.f32.xlu0 %v250_v54 }
  0xb7   : > { %254 = vadd.xlane.f32.xlu1 %v253_v55 }
 0x134   : > { %v234_v56 = vpop.xlane.xlu0 %233 }
 0x135   : > { %v256_v57 = vmul.f32 0.015625, %v234_v56 }
 0x137   : > { %v264_v58 = vadd.f32 1e-05, %v256_v57 }
 0x138   : > { %v237_v59 = vpop.xlane.xlu1 %236  ;;  %v240_v60 = vpop.xlane.xlu0 %239 }
 0x139   : > { %403 = vrsqrt.f32 %v264_v58  ;;  %v257_v61 = vmul.f32 0.015625, %v237_v59  ;;  %v258_v62 = vmul.f32 0.015625, %v240_v60 }
 0x13b   : > { %v265_v63 = vadd.f32 1e-05, %v257_v61  ;;  %v266_v0 = vadd.f32 1e-05, %v258_v62 }
 0x13c   : > { %v243_v1 = vpop.xlane.xlu1 %242  ;;  %v246_v2 = vpop.xlane.xlu0 %245 }
 0x13d   : > { %405 = vrsqrt.f32 %v265_v63  ;;  %v259_v3 = vmul.f32 0.015625, %v243_v1  ;;  %v260_v4 = vmul.f32 0.015625, %v246_v2 }
 0x13e   : > { %407 = vrsqrt.f32 %v266_v0 }
 0x13f   : > { %v267_v5 = vadd.f32 1e-05, %v259_v3  ;;  %v268_v6 = vadd.f32 1e-05, %v260_v4 }
 0x140   : > { %v249_v7 = vpop.xlane.xlu1 %248  ;;  %v252_v8 = vpop.xlane.xlu0 %251 }
 0x141   : > { %409 = vrsqrt.f32 %v267_v5  ;;  %v261_v9 = vmul.f32 0.015625, %v249_v7  ;;  %v262_v10 = vmul.f32 0.015625, %v252_v8 }
 0x142   : > { %411 = vrsqrt.f32 %v268_v6 }
 0x143   : > { %v404_v11 = vpop.eup %403  ;;  %v269_v13 = vadd.f32 1e-05, %v261_v9  ;;  %v270_v14 = vadd.f32 1e-05, %v262_v10 }
 0x144   : > { %v280_v15 = vmul.f32 %v404_v11, %v471_v20  ;;  %v255_v16 = vpop.xlane.xlu1 %254 }
 0x145   : > { %413 = vrsqrt.f32 %v269_v13  ;;  %v263_v18 = vmul.f32 0.015625, %v255_v16 }
 0x146   : > { %v295_v19 = vmul.f32 %v391_v12, %v280_v15  ;;  %415 = vrsqrt.f32 %v270_v14 }
 0x147   : > { %v406_v22 = vpop.eup %405  ;;  %v271_v23 = vadd.f32 1e-05, %v263_v18 }
 0x148   : > { %v408_v20 = vpop.eup %407  ;;  %v310_v24 = vadd.f32 %v392_v17, %v295_v19  ;;  %v281_v25 = vmul.f32 %v406_v22, %v479_v28 }
 0x149   : > { %v282_v26 = vmul.f32 %v408_v20, %v473_v21  ;;  %417 = vrsqrt.f32 %v271_v23 }
 0x14a   : > { %318 = vst.msk [vmem:[%s523_s25] sm:$0xff] %vm182_vm0, %v310_v24  ;;  %v296_v27 = vmul.f32 %v391_v12, %v281_v25 }
 0x14b   : > { %v410_v30 = vpop.eup %409  ;;  %v297_v31 = vmul.f32 %v391_v12, %v282_v26 }
 0x14c   : > { %v412_v32 = vpop.eup %411  ;;  %v311_v33 = vadd.f32 %v392_v17, %v296_v27  ;;  %v283_v34 = vmul.f32 %v410_v30, %v481_v29 }
 0x14d   : > { %v312_v35 = vadd.f32 %v392_v17, %v297_v31  ;;  %v284_v36 = vmul.f32 %v412_v32, %v489_v38 }
 0x14e   : > { %319 = vst.msk [vmem:[%s523_s25 + $0x8] sm:$0xff] %vm182_vm0, %v311_v33  ;;  %v298_v28 = vmul.f32 %v391_v12, %v283_v34 }
 0x14f   : > { %v414_v37 = vpop.eup %413  ;;  %320 = vst.msk [vmem:[%s523_s25 + $0x10] sm:$0xff] %vm182_vm0, %v312_v35  ;;  %v299_v21 = vmul.f32 %v391_v12, %v284_v36 }
 0x150   : > { %v416_v40 = vpop.eup %415  ;;  %v313_v41 = vadd.f32 %v392_v17, %v298_v28  ;;  %v285_v42 = vmul.f32 %v414_v37, %v491_v39 }
 0x151   : > { %v314_v43 = vadd.f32 %v392_v17, %v299_v21  ;;  %v286_v29 = vmul.f32 %v416_v40, %v499_v48 }
 0x152   : > { %321 = vst.msk [vmem:[%s523_s25 + $0x18] sm:$0xff] %vm182_vm0, %v313_v41  ;;  %v300_v38 = vmul.f32 %v391_v12, %v285_v42 }
 0x153   : > { %v418_v44 = vpop.eup %417  ;;  %322 = vst.msk [vmem:[%s523_s25 + $0x20] sm:$0xff] %vm182_vm0, %v314_v43  ;;  %v301_v45 = vmul.f32 %v391_v12, %v286_v29 }
 0x154   : > { %v315_v46 = vadd.f32 %v392_v17, %v300_v38  ;;  %v287_v47 = vmul.f32 %v418_v44, %v501_v49 }
 0x155   : > { %v316_v50 = vadd.f32 %v392_v17, %v301_v45 }
 0x156   : > { %323 = vst.msk [vmem:[%s523_s25 + $0x28] sm:$0xff] %vm182_vm0, %v315_v46  ;;  %v302_v51 = vmul.f32 %v391_v12, %v287_v47 }
 0x157   : > { %324 = vst.msk [vmem:[%s523_s25 + $0x30] sm:$0xff] %vm182_vm0, %v316_v50 }
 0x158   : > { %v317_v39 = vadd.f32 %v392_v17, %v302_v51 }
 0x15a   : > { %325 = vst.msk [vmem:[%s523_s25 + $0x38] sm:$0xff] %vm182_vm0, %v317_v39 }
 0x15b PF: > { %s13_s12 = sadd.s32 1, %s425_s12  }
 0x15c   : > { %p10_p4 = scmp.ge.s32.totalorder %s13_s12, 4  }
 0x15e   :  { %12 = sbr.rel (!%p10_p4) target bundleno = 1 (0x1), region = 62 }

// kernel: _pallas_forward.15
= control target key start
LH: loop header
LB: loop body
LE: loop exit
PB: predicated region body
PF: predicated region fallthrough
CT: control target
= control target key end

     0   :  { %vm3574_vm0 = vcmask 523264   ;;  %vm3587_vm1 = vcmask 517120   ;;  %s6258_s1 = inlined_call_operand.vmem [shape: bf16[3072,64], index: 1, kind: input, shape index: {}]   ;;  %s6259_s0 = inlined_call_operand.vmem [shape: bf16[98,3072], index: 0, kind: input, shape index: {}]   ;;  %s6260_s2 = inlined_call_operand.vmem [shape: f32[1,64], index: 2, kind: input, shape index: {}]   ;;  %s6261_s3 = inlined_call_operand.vmem [shape: f32[98,64], index: 3, kind: output, shape index: {}]  }
   0x1   :  { %v4650_v0 = vld [vmem:[%s6258_s1 + $0x40] sm:$0xff]   ;;  %v4654_v4 = vld [vmem:[%s6258_s1 + $0x48] sm:$0xff]   ;;  %v4658_v8 = vld [vmem:[%s6258_s1 + $0x50] sm:$0xff]  }
   0x2   :  { %v4651_v1 = vld [vmem:[%s6258_s1 + $0xc0] sm:$0xff]   ;;  %3954 = vmatprep.subr.bf16.mxu0 %v4650_v0  ;;  %v4655_v5 = vld [vmem:[%s6258_s1 + $0xc8] sm:$0xff]   ;;  %v4659_v9 = vld [vmem:[%s6258_s1 + $0xd0] sm:$0xff]  }
   0x3   :  { %v4652_v2 = vld [vmem:[%s6258_s1] sm:$0xff]   ;;  %4012 = vmatprep.subr.bf16.mxu1 %v4651_v1  ;;  %v4656_v6 = vld [vmem:[%s6258_s1 + $0x8] sm:$0xff]   ;;  %v4660_v10 = vld [vmem:[%s6258_s1 + $0x10] sm:$0xff]  }
   0x4   :  { %v4653_v3 = vld [vmem:[%s6258_s1 + $0x80] sm:$0xff]   ;;  %3955 = vmatpush3.bf16.msra.mxu0 %v4652_v2  ;;  %v4657_v7 = vld [vmem:[%s6258_s1 + $0x88] sm:$0xff]   ;;  %v4661_v11 = vld [vmem:[%s6258_s1 + $0x90] sm:$0xff]  }
   0x5   :  { %4013 = vmatpush3.bf16.msra.mxu1 %v4653_v3  ;;  %3956 = vmatprep.subr.bf16.mxu0 %v4654_v4  ;;  %v4662_v12 = vld [vmem:[%s6258_s1 + $0x58] sm:$0xff]   ;;  %v4666_v16 = vld [vmem:[%s6258_s1 + $0x60] sm:$0xff]   ;;  %v4670_v20 = vld [vmem:[%s6258_s1 + $0x68] sm:$0xff]  }
   0x6   :  { %4014 = vmatprep.subr.bf16.mxu1 %v4655_v5  ;;  %v4663_v13 = vld [vmem:[%s6258_s1 + $0xd8] sm:$0xff]   ;;  %v4667_v17 = vld [vmem:[%s6258_s1 + $0xe0] sm:$0xff]   ;;  %v4671_v21 = vld [vmem:[%s6258_s1 + $0xe8] sm:$0xff]  }
   0x7   :  { %v4664_v14 = vld [vmem:[%s6258_s1 + $0x18] sm:$0xff]   ;;  %v4668_v18 = vld [vmem:[%s6258_s1 + $0x20] sm:$0xff]   ;;  %v4672_v22 = vld [vmem:[%s6258_s1 + $0x28] sm:$0xff]  }
   0x8   :  { %3957 = vmatpush3.bf16.msra.mxu0 %v4656_v6  ;;  %v4665_v15 = vld [vmem:[%s6258_s1 + $0x98] sm:$0xff]   ;;  %v4669_v19 = vld [vmem:[%s6258_s1 + $0xa0] sm:$0xff]   ;;  %v4673_v23 = vld [vmem:[%s6258_s1 + $0xa8] sm:$0xff]  }
   0x9   :  { %4015 = vmatpush3.bf16.msra.mxu1 %v4657_v7  ;;  %3958 = vmatprep.subr.bf16.mxu0 %v4658_v8  ;;  %v4674_v24 = vld [vmem:[%s6258_s1 + $0x70] sm:$0xff]   ;;  %v4678_v28 = vld [vmem:[%s6258_s1 + $0x78] sm:$0xff]   ;;  %v15_v32 = vld [vmem:[%s6259_s0] sm:$0xff] }
   0xa   :  { %4016 = vmatprep.subr.bf16.mxu1 %v4659_v9  ;;  %v4675_v25 = vld [vmem:[%s6258_s1 + $0xf0] sm:$0xff]   ;;  %v4679_v29 = vld [vmem:[%s6258_s1 + $0xf8] sm:$0xff]   ;;  %v27_v33 = vld [vmem:[%s6259_s0 + $0x60] sm:$0xff] }
   0xb   :  { %v4676_v26 = vld [vmem:[%s6258_s1 + $0x30] sm:$0xff]   ;;  %v4680_v30 = vld [vmem:[%s6258_s1 + $0x38] sm:$0xff]   ;;  %v16_v34 = vld [vmem:[%s6259_s0 + $0x8] sm:$0xff]  ;;  %v3594_v35 = vcombine.low %v15_v32, %v27_v33  ;;  %v3595_v36 = vcombine.high %v15_v32, %v27_v33 }
   0xc   :  { %3959 = vmatpush3.bf16.msra.mxu0 %v4660_v10  ;;  %v4677_v27 = vld [vmem:[%s6258_s1 + $0xb0] sm:$0xff]   ;;  %v4681_v31 = vld [vmem:[%s6258_s1 + $0xb8] sm:$0xff]   ;;  %v28_v37 = vld [vmem:[%s6259_s0 + $0x68] sm:$0xff] }
   0xd   :  { %4017 = vmatpush3.bf16.msra.mxu1 %v4661_v11  ;;  %3960 = vmatprep.subr.bf16.mxu0 %v4662_v12  ;;  %v3596_v38 = vcombine.low %v16_v34, %v28_v37  ;;  %v3597_v39 = vcombine.high %v16_v34, %v28_v37  ;;  %v4682_v40 = vld [vmem:[%s6258_s1 + $0x140] sm:$0xff]   ;;  %v40_v47 = vld [vmem:[%s6259_s0 + $0xc8] sm:$0xff]  ;;  %v4690_v56 = vld [vmem:[%s6258_s1 + $0x150] sm:$0xff]  }
   0xe   :  { %4018 = vmatprep.subr.bf16.mxu1 %v4663_v13  ;;  %2550 = vmatprep.mubr.bf16.mxu0 %v3595_v36  ;;  %v4683_v41 = vld [vmem:[%s6258_s1 + $0x100] sm:$0xff]   ;;  %v52_v48 = vld [vmem:[%s6259_s0 + $0x128] sm:$0xff]  ;;  %v4691_v63 = vld [vmem:[%s6258_s1 + $0x110] sm:$0xff]  }
   0xf   :  { %2638 = vmatprep.mubr.bf16.mxu1 %v3597_v39  ;;  %v4684_v42 = vld [vmem:[%s6258_s1 + $0x1c0] sm:$0xff]   ;;  %v3621_v49 = vcombine.high %v40_v47, %v52_v48  ;;  %v4686_v50 = vld [vmem:[%s6258_s1 + $0x148] sm:$0xff]   ;;  %v3620_v53 = vcombine.low %v40_v47, %v52_v48  ;;  %v4692_v0 = vld [vmem:[%s6258_s1 + $0x1d0] sm:$0xff]  }
  0x10   :  { %3961 = vmatpush3.bf16.msra.mxu0 %v4664_v14  ;;  %v4685_v43 = vld [vmem:[%s6258_s1 + $0x180] sm:$0xff]   ;;  %v4687_v52 = vld [vmem:[%s6258_s1 + $0x108] sm:$0xff]   ;;  %v4693_v1 = vld [vmem:[%s6258_s1 + $0x190] sm:$0xff]  }
  0x11   :  { %4019 = vmatpush3.bf16.msra.mxu1 %v4665_v15  ;;  %3962 = vmatprep.subr.bf16.mxu0 %v4666_v16  ;;  %v39_v44 = vld [vmem:[%s6259_s0 + $0xc0] sm:$0xff]  ;;  %v4688_v54 = vld [vmem:[%s6258_s1 + $0x1c8] sm:$0xff]   ;;  %v4694_v3 = vld [vmem:[%s6258_s1 + $0x158] sm:$0xff]  }
  0x12   :  { %4020 = vmatprep.subr.bf16.mxu1 %v4667_v17  ;;  %v51_v45 = vld [vmem:[%s6259_s0 + $0x120] sm:$0xff]  ;;  %v4689_v55 = vld [vmem:[%s6258_s1 + $0x188] sm:$0xff]   ;;  %v4695_v5 = vld [vmem:[%s6258_s1 + $0x118] sm:$0xff]  }
  0x13   :  { %v3619_v46 = vcombine.high %v39_v44, %v51_v45  ;;  %v3618_v51 = vcombine.low %v39_v44, %v51_v45  ;;  %v63_v57 = vld [vmem:[%s6259_s0 + $0x180] sm:$0xff]  ;;  %v64_v59 = vld [vmem:[%s6259_s0 + $0x188] sm:$0xff]  ;;  %v4696_v12 = vld [vmem:[%s6258_s1 + $0x1d8] sm:$0xff]  }
  0x14   :  { %3963 = vmatpush3.bf16.msra.mxu0 %v4668_v18  ;;  %v75_v58 = vld [vmem:[%s6259_s0 + $0x1e0] sm:$0xff]  ;;  %v76_v60 = vld [vmem:[%s6259_s0 + $0x1e8] sm:$0xff]  ;;  %v4697_v13 = vld [vmem:[%s6258_s1 + $0x198] sm:$0xff]  }
  0x15   :  { %4021 = vmatpush3.bf16.msra.mxu1 %v4669_v19  ;;  %3964 = vmatprep.subr.bf16.mxu0 %v4670_v20  ;;  %v3643_v61 = vcombine.high %v63_v57, %v75_v58  ;;  %v3645_v62 = vcombine.high %v64_v59, %v76_v60  ;;  %v3642_v2 = vcombine.low %v63_v57, %v75_v58  ;;  %v87_v6 = vld [vmem:[%s6259_s0 + $0x240] sm:$0xff]  ;;  %v88_v8 = vld [vmem:[%s6259_s0 + $0x248] sm:$0xff]  ;;  %v4714_v44 = vld [vmem:[%s6258_s1 + $0x178] sm:$0xff]  }
  0x16   :  { %4022 = vmatprep.subr.bf16.mxu1 %v4671_v21  ;;  %v3644_v4 = vcombine.low %v64_v59, %v76_v60  ;;  %v99_v7 = vld [vmem:[%s6259_s0 + $0x2a0] sm:$0xff]  ;;  %v100_v10 = vld [vmem:[%s6259_s0 + $0x2a8] sm:$0xff]  ;;  %v4715_v45 = vld [vmem:[%s6258_s1 + $0x138] sm:$0xff]  }
  0x17   :  { %v3667_v9 = vcombine.high %v87_v6, %v99_v7  ;;  %v3669_v11 = vcombine.high %v88_v8, %v100_v10  ;;  %v4698_v14 = vld [vmem:[%s6258_s1 + $0x160] sm:$0xff]   ;;  %v3666_v16 = vcombine.low %v87_v6, %v99_v7  ;;  %v3668_v20 = vcombine.low %v88_v8, %v100_v10  ;;  %v136_v32 = vld [vmem:[%s6259_s0 + $0x3c8] sm:$0xff]  ;;  %v4717_v48 = vld [vmem:[%s6258_s1 + $0x1b8] sm:$0xff]  }
  0x18   :  { %3965 = vmatpush3.bf16.msra.mxu0 %v4672_v22  ;;  %v4699_v15 = vld [vmem:[%s6258_s1 + $0x120] sm:$0xff]   ;;  %v112_v22 = vld [vmem:[%s6259_s0 + $0x308] sm:$0xff]  ;;  %v30_v57 = vld [vmem:[%s6259_s0 + $0x78] sm:$0xff] }
  0x19   :  { %4023 = vmatpush3.bf16.msra.mxu1 %v4673_v23  ;;  %3966 = vmatprep.subr.bf16.mxu0 %v4674_v24  ;;  %v4700_v17 = vld [vmem:[%s6258_s1 + $0x1e0] sm:$0xff]   ;;  %v124_v23 = vld [vmem:[%s6259_s0 + $0x368] sm:$0xff] }
  0x1a   :  { %4024 = vmatprep.subr.bf16.mxu1 %v4675_v25  ;;  %v111_v18 = vld [vmem:[%s6259_s0 + $0x300] sm:$0xff]  ;;  %v3693_v24 = vcombine.high %v112_v22, %v124_v23  ;;  %v148_v33 = vld [vmem:[%s6259_s0 + $0x428] sm:$0xff]  ;;  %v3692_v36 = vcombine.low %v112_v22, %v124_v23  ;;  %v4729_v23 = vld [vmem:[%s6258_s1 + $0x290] sm:$0xff]  }
  0x1b   :  { %v123_v19 = vld [vmem:[%s6259_s0 + $0x360] sm:$0xff]  ;;  %v3717_v39 = vcombine.high %v136_v32, %v148_v33  ;;  %v4722_v8 = vld [vmem:[%s6258_s1 + $0x248] sm:$0xff]  }
  0x1c   :  { %3967 = vmatpush3.bf16.msra.mxu0 %v4676_v26  ;;  %v3691_v21 = vcombine.high %v111_v18, %v123_v19  ;;  %v4701_v25 = vld [vmem:[%s6258_s1 + $0x1a0] sm:$0xff]   ;;  %v4702_v26 = vld [vmem:[%s6258_s1 + $0x168] sm:$0xff]   ;;  %v3690_v34 = vcombine.low %v111_v18, %v123_v19 }
  0x1d   :  { %4025 = vmatpush3.bf16.msra.mxu1 %v4677_v27  ;;  %3968 = vmatprep.subr.bf16.mxu0 %v4678_v28  ;;  %v4703_v27 = vld [vmem:[%s6258_s1 + $0x128] sm:$0xff]  }
  0x1e   :  { %4026 = vmatprep.subr.bf16.mxu1 %v4679_v29  ;;  %v4704_v28 = vld [vmem:[%s6258_s1 + $0x1e8] sm:$0xff]  }
  0x1f   :  { %v4705_v29 = vld [vmem:[%s6258_s1 + $0x1a8] sm:$0xff]  }
  0x20   :  { %3969 = vmatpush3.bf16.msra.mxu0 %v4680_v30  ;;  %v135_v30 = vld [vmem:[%s6259_s0 + $0x3c0] sm:$0xff]  ;;  %v4724_v10 = vld [vmem:[%s6258_s1 + $0x2c8] sm:$0xff]  }
  0x21   :  { %4027 = vmatpush3.bf16.msra.mxu1 %v4681_v31  ;;  %4070 = vmatprep.subr.bf16.mxu0 %v4682_v40  ;;  %v147_v31 = vld [vmem:[%s6259_s0 + $0x420] sm:$0xff]  ;;  %v4708_v40 = vld [vmem:[%s6258_s1 + $0x1f0] sm:$0xff]  }
  0x22   :  { %4128 = vmatprep.subr.bf16.mxu1 %v4684_v42  ;;  %v3715_v37 = vcombine.high %v135_v30, %v147_v31  ;;  %v159_v42 = vld [vmem:[%s6259_s0 + $0x480] sm:$0x11]  ;;  %v3714_v47 = vcombine.low %v135_v30, %v147_v31  ;;  %v102_v30 = vld [vmem:[%s6259_s0 + $0x2b8] sm:$0xff] }
  0x23   :  { %2551 = vmatmul.mubr.bf16.vlgmr.msra.gmra.mrb[0].mxu0 %v3594_v35  ;;  %v4706_v35 = vld [vmem:[%s6258_s1 + $0x170] sm:$0xff]   ;;  %v3738_v58 = vcombine.low %v159_v42, %v159_v42  ;;  %v4733_v31 = vld [vmem:[%s6258_s1 + $0x298] sm:$0xff]  }
  0x24   :  { %2639 = vmatmul.mubr.bf16.vlgmr.msra.gmra.mrb[0].mxu1 %v3596_v38  ;;  %4071 = vmatpush3.bf16.msra.mxu0 %v4683_v41  ;;  %v4707_v38 = vld [vmem:[%s6258_s1 + $0x130] sm:$0xff]  }
  0x25   :  { %4129 = vmatpush3.bf16.msra.mxu1 %v4685_v43  ;;  %2558 = vmatprep.mubr.bf16.mxu0 %v3619_v46  ;;  %v4709_v41 = vld [vmem:[%s6258_s1 + $0x1b0] sm:$0xff]   ;;  %v160_v43 = vld [vmem:[%s6259_s0 + $0x488] sm:$0x11]  ;;  %v4716_v46 = vld [vmem:[%s6258_s1 + $0x1f8] sm:$0xff]  }
  0x26   :  { %2646 = vmatprep.mubr.bf16.mxu1 %v3621_v49  ;;  %4072 = vmatprep.subr.bf16.mxu0 %v4686_v50  ;;  %v3716_v49 = vcombine.low %v136_v32, %v148_v33  ;;  %v3739_v50 = vcombine.high %v159_v42, %v159_v42  ;;  %v3740_v59 = vcombine.low %v160_v43, %v160_v43  ;;  %v4734_v32 = vld [vmem:[%s6258_s1 + $0x260] sm:$0xff]   ;;  %v125_v42 = vld [vmem:[%s6259_s0 + $0x370] sm:$0xff] }
  0x27   :  { %4130 = vmatprep.subr.bf16.mxu1 %v4688_v54  ;;  %v17_v54 = vld [vmem:[%s6259_s0 + $0x10] sm:$0xff] }
  0x28   :  { %4073 = vmatpush3.bf16.msra.mxu0 %v4687_v52  ;;  %v4718_v52 = vld [vmem:[%s6258_s1 + $0x240] sm:$0xff]  }
  0x29   :  { %4131 = vmatpush3.bf16.msra.mxu1 %v4689_v55  ;;  %4074 = vmatprep.subr.bf16.mxu0 %v4690_v56  ;;  %v29_v55 = vld [vmem:[%s6259_s0 + $0x70] sm:$0xff]  ;;  %v18_v56 = vld [vmem:[%s6259_s0 + $0x18] sm:$0xff] }
  0x2a   :  { %4132 = vmatprep.subr.bf16.mxu1 %v4692_v0  ;;  %v3599_v60 = vcombine.high %v17_v54, %v29_v55  ;;  %v42_v0 = vld [vmem:[%s6259_s0 + $0xd8] sm:$0xff] }
  0x2b   :  { %2559 = vmatmul.mubr.bf16.gmra.mrb[4].mxu0 %v3618_v51  ;;  %v3741_v51 = vcombine.high %v160_v43, %v160_v43  ;;  %v4740_v43 = vld [vmem:[%s6258_s1 + $0x2e8] sm:$0xff]  }
  0x2c   :  { %2647 = vmatmul.mubr.bf16.gmra.mrb[4].mxu1 %v3620_v53  ;;  %2566 = vmatprep.mubr.bf16.mxu0 %v3643_v61  ;;  %v4720_v53 = vld [vmem:[%s6258_s1 + $0x2c0] sm:$0xff]   ;;  %v3601_v61 = vcombine.high %v18_v56, %v30_v57 }
  0x2d   :  { %2654 = vmatprep.mubr.bf16.mxu1 %v3645_v62  ;;  %4075 = vmatpush3.bf16.msra.mxu0 %v4691_v63  ;;  %v41_v62 = vld [vmem:[%s6259_s0 + $0xd0] sm:$0xff] }
  0x2e   :  { %4133 = vmatpush3.bf16.msra.mxu1 %v4693_v1  ;;  %4076 = vmatprep.subr.bf16.mxu0 %v4694_v3  ;;  %v53_v63 = vld [vmem:[%s6259_s0 + $0x130] sm:$0xff]  ;;  %v3598_v1 = vcombine.low %v17_v54, %v29_v55  ;;  %v3600_v3 = vcombine.low %v18_v56, %v30_v57  ;;  %v4750_v56 = vld [vmem:[%s6258_s1 + $0x278] sm:$0xff]  }
  0x2f   :  { %4134 = vmatprep.subr.bf16.mxu1 %v4696_v12  ;;  %v3623_v6 = vcombine.high %v41_v62, %v53_v63  ;;  %v4726_v12 = vld [vmem:[%s6258_s1 + $0x250] sm:$0xff]   ;;  %v3622_v18 = vcombine.low %v41_v62, %v53_v63  ;;  %v150_v62 = vld [vmem:[%s6259_s0 + $0x438] sm:$0xff] }
  0x30   :  { %v4743_v54 = vld [vmem:[%s6258_s1 + $0x230] sm:$0xff]   ;;  %v4753_v63 = vld [vmem:[%s6258_s1 + $0x2b8] sm:$0xff]  }
  0x31   :  { %4077 = vmatpush3.bf16.msra.mxu0 %v4695_v5  ;;  %v4721_v5 = vld [vmem:[%s6258_s1 + $0x280] sm:$0xff]   ;;  %v4745_v55 = vld [vmem:[%s6258_s1 + $0x2b0] sm:$0xff]  }
  0x32   :  { %4135 = vmatpush3.bf16.msra.mxu1 %v4697_v13  ;;  %4078 = vmatprep.subr.bf16.mxu0 %v4698_v14  ;;  %v65_v13 = vld [vmem:[%s6259_s0 + $0x190] sm:$0xff] }
  0x33   :  { %2567 = vmatmul.mubr.bf16.gmra.mrb[8].mxu0 %v3642_v2  ;;  %4136 = vmatprep.subr.bf16.mxu1 %v4700_v17  ;;  %v54_v2 = vld [vmem:[%s6259_s0 + $0x138] sm:$0xff]  ;;  %v77_v14 = vld [vmem:[%s6259_s0 + $0x1f0] sm:$0xff] }
  0x34   :  { %2655 = vmatmul.mubr.bf16.gmra.mrb[8].mxu1 %v3644_v4  ;;  %2574 = vmatprep.mubr.bf16.mxu0 %v3667_v9  ;;  %v4719_v4 = vld [vmem:[%s6258_s1 + $0x200] sm:$0xff]   ;;  %v3625_v7 = vcombine.high %v42_v0, %v54_v2  ;;  %v4723_v9 = vld [vmem:[%s6258_s1 + $0x208] sm:$0xff]   ;;  %v4728_v17 = vld [vmem:[%s6258_s1 + $0x2d0] sm:$0xff]   ;;  %v3624_v19 = vcombine.low %v42_v0, %v54_v2  ;;  %v3646_v33 = vcombine.low %v65_v13, %v77_v14 }
  0x35   :  { %2662 = vmatprep.mubr.bf16.mxu1 %v3669_v11  ;;  %4079 = vmatpush3.bf16.msra.mxu0 %v4699_v15  ;;  %v4725_v11 = vld [vmem:[%s6258_s1 + $0x288] sm:$0xff]   ;;  %v66_v15 = vld [vmem:[%s6259_s0 + $0x198] sm:$0xff]  ;;  %v137_v57 = vld [vmem:[%s6259_s0 + $0x3d0] sm:$0xff] }
  0x36   :  { %4137 = vmatpush3.bf16.msra.mxu1 %v4701_v25  ;;  %4080 = vmatprep.subr.bf16.mxu0 %v4702_v26  ;;  %v4731_v25 = vld [vmem:[%s6258_s1 + $0x218] sm:$0xff]   ;;  %v89_v26 = vld [vmem:[%s6259_s0 + $0x250] sm:$0xff]  ;;  %v4754_v0 = vld [vmem:[%s6258_s1 + $0x340] sm:$0xff]  }
  0x37   :  { %4138 = vmatprep.subr.bf16.mxu1 %v4704_v28  ;;  %v101_v28 = vld [vmem:[%s6259_s0 + $0x2b0] sm:$0xff]  ;;  %v4756_v2 = vld [vmem:[%s6258_s1 + $0x3c0] sm:$0xff]  }
  0x39   :  { %4081 = vmatpush3.bf16.msra.mxu0 %v4703_v27  ;;  %v4732_v27 = vld [vmem:[%s6258_s1 + $0x2d8] sm:$0xff]  }
  0x3a   :  { %4139 = vmatpush3.bf16.msra.mxu1 %v4705_v29  ;;  %4082 = vmatprep.subr.bf16.mxu0 %v4706_v35  ;;  %v90_v29 = vld [vmem:[%s6259_s0 + $0x258] sm:$0xff] }
  0x3b   :  { %2575 = vmatmul.mubr.bf16.gmra.mrb[12].mxu0 %v3666_v16  ;;  %4140 = vmatprep.subr.bf16.mxu1 %v4708_v40  ;;  %v78_v16 = vld [vmem:[%s6259_s0 + $0x1f8] sm:$0xff]  ;;  %v4738_v40 = vld [vmem:[%s6258_s1 + $0x268] sm:$0xff]  }
  0x3c   :  { %2663 = vmatmul.mubr.bf16.gmra.mrb[12].mxu1 %v3668_v20  ;;  %2582 = vmatprep.mubr.bf16.mxu0 %v3691_v21  ;;  %v3647_v20 = vcombine.high %v65_v13, %v77_v14  ;;  %v4727_v21 = vld [vmem:[%s6258_s1 + $0x210] sm:$0xff]   ;;  %v3649_v22 = vcombine.high %v66_v15, %v78_v16  ;;  %v3648_v35 = vcombine.low %v66_v15, %v78_v16  ;;  %v31_v13 = vld [vmem:[%s6259_s0 + $0x80] sm:$0xff]  ;;  %v20_v14 = vld [vmem:[%s6259_s0 + $0x28] sm:$0xff] }
  0x3d   :  { %2670 = vmatprep.mubr.bf16.mxu1 %v3693_v24  ;;  %4083 = vmatpush3.bf16.msra.mxu0 %v4707_v38  ;;  %v4730_v24 = vld [vmem:[%s6258_s1 + $0x258] sm:$0xff]   ;;  %v3673_v38 = vcombine.high %v90_v29, %v102_v30  ;;  %v32_v15 = vld [vmem:[%s6259_s0 + $0x88] sm:$0xff] }
  0x3e   :  { %4141 = vmatpush3.bf16.msra.mxu1 %v4709_v41  ;;  %4084 = vmatprep.subr.bf16.mxu0 %v4714_v44  ;;  %v113_v41 = vld [vmem:[%s6259_s0 + $0x310] sm:$0xff]  ;;  %v114_v44 = vld [vmem:[%s6259_s0 + $0x318] sm:$0xff] }
  0x3f   :  { %4142 = vmatprep.subr.bf16.mxu1 %v4716_v46  ;;  %v4739_v46 = vld [vmem:[%s6258_s1 + $0x228] sm:$0xff]  }
  0x41   :  { %4085 = vmatpush3.bf16.msra.mxu0 %v4715_v45  ;;  %v126_v45 = vld [vmem:[%s6259_s0 + $0x378] sm:$0xff] }
  0x42   :  { %4143 = vmatpush3.bf16.msra.mxu1 %v4717_v48  ;;  %4186 = vmatprep.subr.bf16.mxu0 %v4718_v52  ;;  %v4742_v48 = vld [vmem:[%s6258_s1 + $0x270] sm:$0xff]   ;;  %v3695_v52 = vcombine.high %v113_v41, %v125_v42 }
  0x43   :  { %2583 = vmatmul.mubr.bf16.gmra.mrb[16].mxu0 %v3690_v34  ;;  %4244 = vmatprep.subr.bf16.mxu1 %v4720_v53  ;;  %v4736_v34 = vld [vmem:[%s6258_s1 + $0x2e0] sm:$0xff]   ;;  %v3697_v53 = vcombine.high %v114_v44, %v126_v45 }
  0x44   :  { %2671 = vmatmul.mubr.bf16.gmra.mrb[16].mxu1 %v3692_v36  ;;  %2590 = vmatprep.mubr.bf16.mxu0 %v3715_v37  ;;  %v3671_v36 = vcombine.high %v89_v26, %v101_v28  ;;  %v4735_v37 = vld [vmem:[%s6258_s1 + $0x220] sm:$0xff]  }
  0x45   :  { %2678 = vmatprep.mubr.bf16.mxu1 %v3717_v39  ;;  %v4737_v39 = vld [vmem:[%s6258_s1 + $0x2a0] sm:$0xff]  }
  0x4b   :  { %2591 = vmatmul.mubr.bf16.gmra.mrb[20].mxu0 %v3714_v47  ;;  %v4741_v47 = vld [vmem:[%s6258_s1 + $0x2a8] sm:$0xff]  }
  0x4c   :  { %2679 = vmatmul.mubr.bf16.gmra.mrb[20].mxu1 %v3716_v49  ;;  %2598 = vmatprep.mubr.bf16.mxu0 %v3739_v50  ;;  %v3670_v49 = vcombine.low %v89_v26, %v101_v28  ;;  %v4744_v50 = vld [vmem:[%s6258_s1 + $0x2f0] sm:$0xff]   ;;  %v3604_v26 = vcombine.low %v20_v14, %v32_v15 }
  0x4d   :  { %2686 = vmatprep.mubr.bf16.mxu1 %v3741_v51  ;;  %v3672_v51 = vcombine.low %v90_v29, %v102_v30  ;;  %v4758_v29 = vld [vmem:[%s6258_s1 + $0x348] sm:$0xff]  }
  0x53   :  { %2599 = vmatmul.mubr.bf16.gmra.mrb[24].mxu0 %v3738_v58  ;;  %v4752_v58 = vld [vmem:[%s6258_s1 + $0x2f8] sm:$0xff]  }
  0x54   :  { %2687 = vmatmul.mubr.bf16.gmra.mrb[24].mxu1 %v3740_v59  ;;  %2726 = vmatprep.mubr.bf16.mxu0 %v3599_v60  ;;  %v149_v59 = vld [vmem:[%s6259_s0 + $0x430] sm:$0xff]  ;;  %v138_v60 = vld [vmem:[%s6259_s0 + $0x3d8] sm:$0xff] }
  0x55   :  { %2814 = vmatprep.mubr.bf16.mxu1 %v3601_v61  ;;  %v4751_v61 = vld [vmem:[%s6258_s1 + $0x238] sm:$0xff]  }
  0x5b   :  { %2727 = vmatmul.mubr.bf16.vlgmr.msra.gmra.mrb[28].mxu0 %v3598_v1  ;;  %v3694_v1 = vcombine.low %v113_v41, %v125_v42 }
  0x5c   :  { %2815 = vmatmul.mubr.bf16.vlgmr.msra.gmra.mrb[28].mxu1 %v3600_v3  ;;  %4187 = vmatpush3.bf16.msra.mxu0 %v4719_v4  ;;  %v3696_v3 = vcombine.low %v114_v44, %v126_v45  ;;  %v3719_v4 = vcombine.high %v137_v57, %v149_v59  ;;  %v4763_v44 = vld [vmem:[%s6258_s1 + $0x310] sm:$0xff]  }
  0x5d   :  { %4245 = vmatpush3.bf16.msra.mxu1 %v4721_v5  ;;  %2734 = vmatprep.mubr.bf16.mxu0 %v3623_v6  ;;  %v3721_v5 = vcombine.high %v138_v60, %v150_v62  ;;  %v161_v6 = vld [vmem:[%s6259_s0 + $0x490] sm:$0x11] }
  0x5e   :  { %2822 = vmatprep.mubr.bf16.mxu1 %v3625_v7  ;;  %4188 = vmatprep.subr.bf16.mxu0 %v4722_v8  ;;  %v162_v7 = vld [vmem:[%s6259_s0 + $0x498] sm:$0x11]  ;;  %v3718_v8 = vcombine.low %v137_v57, %v149_v59  ;;  %v3742_v16 = vcombine.low %v161_v6, %v161_v6  ;;  %v4765_v45 = vld [vmem:[%s6258_s1 + $0x390] sm:$0xff]   ;;  %v4771_v59 = vld [vmem:[%s6258_s1 + $0x320] sm:$0xff]  }
  0x5f   :  { %4246 = vmatprep.subr.bf16.mxu1 %v4724_v10  ;;  %v3743_v10 = vcombine.high %v161_v6, %v161_v6  ;;  %v4778_v6 = vld [vmem:[%s6258_s1 + $0x370] sm:$0xff]  }
  0x60   :  { %4189 = vmatpush3.bf16.msra.mxu0 %v4723_v9  ;;  %v3720_v9 = vcombine.low %v138_v60, %v150_v62  ;;  %v4774_v62 = vld [vmem:[%s6258_s1 + $0x368] sm:$0xff]  }
  0x61   :  { %4247 = vmatpush3.bf16.msra.mxu1 %v4725_v11  ;;  %4190 = vmatprep.subr.bf16.mxu0 %v4726_v12  ;;  %v3745_v11 = vcombine.high %v162_v7, %v162_v7  ;;  %v19_v12 = vld [vmem:[%s6259_s0 + $0x20] sm:$0xff] }
  0x62   :  { %4248 = vmatprep.subr.bf16.mxu1 %v4728_v17  ;;  %v3744_v17 = vcombine.low %v162_v7, %v162_v7 }
  0x63   :  { %2735 = vmatmul.mubr.bf16.gmra.mrb[32].mxu0 %v3622_v18  ;;  %v3603_v18 = vcombine.high %v19_v12, %v31_v13 }
  0x64   :  { %2823 = vmatmul.mubr.bf16.gmra.mrb[32].mxu1 %v3624_v19  ;;  %2742 = vmatprep.mubr.bf16.mxu0 %v3647_v20  ;;  %v3605_v19 = vcombine.high %v20_v14, %v32_v15  ;;  %v43_v20 = vld [vmem:[%s6259_s0 + $0xe0] sm:$0xff]  ;;  %v4786_v14 = vld [vmem:[%s6258_s1 + $0x378] sm:$0xff]  }
  0x65   :  { %2830 = vmatprep.mubr.bf16.mxu1 %v3649_v22  ;;  %4191 = vmatpush3.bf16.msra.mxu0 %v4727_v21  ;;  %v55_v21 = vld [vmem:[%s6259_s0 + $0x140] sm:$0xff]  ;;  %v3602_v22 = vcombine.low %v19_v12, %v31_v13  ;;  %v4781_v13 = vld [vmem:[%s6258_s1 + $0x3b0] sm:$0xff]  }
  0x66   :  { %4249 = vmatpush3.bf16.msra.mxu1 %v4729_v23  ;;  %4192 = vmatprep.subr.bf16.mxu0 %v4730_v24  ;;  %v4755_v23 = vld [vmem:[%s6258_s1 + $0x300] sm:$0xff]   ;;  %v44_v24 = vld [vmem:[%s6259_s0 + $0xe8] sm:$0xff]  ;;  %v3627_v28 = vcombine.high %v43_v20, %v55_v21 }
  0x67   :  { %4250 = vmatprep.subr.bf16.mxu1 %v4732_v27  ;;  %v4757_v27 = vld [vmem:[%s6258_s1 + $0x380] sm:$0xff]  }
  0x68   :  { %v139_v15 = vld [vmem:[%s6259_s0 + $0x3e0] sm:$0xff] }
  0x69   :  { %4193 = vmatpush3.bf16.msra.mxu0 %v4731_v25  ;;  %v56_v25 = vld [vmem:[%s6259_s0 + $0x148] sm:$0xff] }
  0x6a   :  { %4251 = vmatpush3.bf16.msra.mxu1 %v4733_v31  ;;  %4194 = vmatprep.subr.bf16.mxu0 %v4734_v32  ;;  %v3629_v30 = vcombine.high %v44_v24, %v56_v25  ;;  %v4759_v31 = vld [vmem:[%s6258_s1 + $0x308] sm:$0xff]   ;;  %v3628_v41 = vcombine.low %v44_v24, %v56_v25  ;;  %v4792_v24 = vld [vmem:[%s6258_s1 + $0x4c0] sm:$0xff]  }
  0x6b   :  { %2743 = vmatmul.mubr.bf16.gmra.mrb[36].mxu0 %v3646_v33  ;;  %4252 = vmatprep.subr.bf16.mxu1 %v4736_v34  ;;  %v4760_v32 = vld [vmem:[%s6258_s1 + $0x3c8] sm:$0xff]   ;;  %v4762_v34 = vld [vmem:[%s6258_s1 + $0x350] sm:$0xff]  }
  0x6c   :  { %2831 = vmatmul.mubr.bf16.gmra.mrb[36].mxu1 %v3648_v35  ;;  %2750 = vmatprep.mubr.bf16.mxu0 %v3671_v36  ;;  %v4761_v33 = vld [vmem:[%s6258_s1 + $0x388] sm:$0xff]   ;;  %v67_v35 = vld [vmem:[%s6259_s0 + $0x1a0] sm:$0xff] }
  0x6d   :  { %2838 = vmatprep.mubr.bf16.mxu1 %v3673_v38  ;;  %4195 = vmatpush3.bf16.msra.mxu0 %v4735_v37  ;;  %v79_v36 = vld [vmem:[%s6259_s0 + $0x200] sm:$0xff]  ;;  %v68_v37 = vld [vmem:[%s6259_s0 + $0x1a8] sm:$0xff] }
  0x6e   :  { %4253 = vmatpush3.bf16.msra.mxu1 %v4737_v39  ;;  %4196 = vmatprep.subr.bf16.mxu0 %v4738_v40  ;;  %v80_v38 = vld [vmem:[%s6259_s0 + $0x208] sm:$0xff]  ;;  %v4764_v39 = vld [vmem:[%s6258_s1 + $0x3d0] sm:$0xff]   ;;  %v3626_v40 = vcombine.low %v43_v20, %v55_v21  ;;  %v3651_v42 = vcombine.high %v67_v35, %v79_v36  ;;  %v4787_v20 = vld [vmem:[%s6258_s1 + $0x338] sm:$0xff]  }
  0x6f   :  { %4254 = vmatprep.subr.bf16.mxu1 %v4740_v43  ;;  %v3653_v43 = vcombine.high %v68_v37, %v80_v38  ;;  %v3652_v57 = vcombine.low %v68_v37, %v80_v38  ;;  %v4789_v21 = vld [vmem:[%s6258_s1 + $0x3b8] sm:$0xff]  }
  0x70   :  { %v34_v37 = vld [vmem:[%s6259_s0 + $0x98] sm:$0xff] }
  0x71   :  { %4197 = vmatpush3.bf16.msra.mxu0 %v4739_v46  ;;  %v4766_v46 = vld [vmem:[%s6258_s1 + $0x358] sm:$0xff]  }
  0x72   :  { %4255 = vmatpush3.bf16.msra.mxu1 %v4741_v47  ;;  %4198 = vmatprep.subr.bf16.mxu0 %v4742_v48  ;;  %v4767_v47 = vld [vmem:[%s6258_s1 + $0x318] sm:$0xff]   ;;  %v91_v48 = vld [vmem:[%s6259_s0 + $0x260] sm:$0xff] }
  0x73   :  { %2751 = vmatmul.mubr.bf16.gmra.mrb[40].mxu0 %v3670_v49  ;;  %4256 = vmatprep.subr.bf16.mxu1 %v4744_v50  ;;  %v4768_v49 = vld [vmem:[%s6258_s1 + $0x3d8] sm:$0xff]   ;;  %v103_v50 = vld [vmem:[%s6259_s0 + $0x2c0] sm:$0xff] }
  0x74   :  { %2839 = vmatmul.mubr.bf16.gmra.mrb[40].mxu1 %v3672_v51  ;;  %2758 = vmatprep.mubr.bf16.mxu0 %v3695_v52  ;;  %v92_v51 = vld [vmem:[%s6259_s0 + $0x268] sm:$0xff]  ;;  %v3674_v7 = vcombine.low %v91_v48, %v103_v50 }
  0x75   :  { %2846 = vmatprep.mubr.bf16.mxu1 %v3697_v53  ;;  %4199 = vmatpush3.bf16.msra.mxu0 %v4743_v54  ;;  %v104_v52 = vld [vmem:[%s6259_s0 + $0x2c8] sm:$0xff]  ;;  %v4769_v53 = vld [vmem:[%s6258_s1 + $0x398] sm:$0xff]   ;;  %v4770_v54 = vld [vmem:[%s6258_s1 + $0x360] sm:$0xff]  }
  0x76   :  { %4257 = vmatpush3.bf16.msra.mxu1 %v4745_v55  ;;  %4200 = vmatprep.subr.bf16.mxu0 %v4750_v56  ;;  %v3650_v55 = vcombine.low %v67_v35, %v79_v36  ;;  %v4772_v56 = vld [vmem:[%s6258_s1 + $0x3e0] sm:$0xff]   ;;  %v3677_v60 = vcombine.high %v92_v51, %v104_v52  ;;  %v33_v35 = vld [vmem:[%s6259_s0 + $0x90] sm:$0xff]  ;;  %v22_v36 = vld [vmem:[%s6259_s0 + $0x38] sm:$0xff] }
  0x77   :  { %4258 = vmatprep.subr.bf16.mxu1 %v4752_v58  ;;  %v3675_v58 = vcombine.high %v91_v48, %v103_v50  ;;  %v4791_v48 = vld [vmem:[%s6258_s1 + $0x400] sm:$0xff]  }
  0x79   :  { %4201 = vmatpush3.bf16.msra.mxu0 %v4751_v61  ;;  %v4773_v61 = vld [vmem:[%s6258_s1 + $0x3a0] sm:$0xff]  }
  0x7a   :  { %4259 = vmatpush3.bf16.msra.mxu1 %v4753_v63  ;;  %4302 = vmatprep.subr.bf16.mxu0 %v4754_v0  ;;  %v115_v63 = vld [vmem:[%s6259_s0 + $0x320] sm:$0xff]  ;;  %v4776_v0 = vld [vmem:[%s6258_s1 + $0x3e8] sm:$0xff]  }
  0x7b   :  { %2759 = vmatmul.mubr.bf16.gmra.mrb[44].mxu0 %v3694_v1  ;;  %4360 = vmatprep.subr.bf16.mxu1 %v4756_v2  ;;  %v127_v1 = vld [vmem:[%s6259_s0 + $0x380] sm:$0xff]  ;;  %v116_v2 = vld [vmem:[%s6259_s0 + $0x328] sm:$0xff] }
  0x7c   :  { %2847 = vmatmul.mubr.bf16.gmra.mrb[44].mxu1 %v3696_v3  ;;  %2766 = vmatprep.mubr.bf16.mxu0 %v3719_v4  ;;  %v128_v3 = vld [vmem:[%s6259_s0 + $0x388] sm:$0xff] }
  0x7d   :  { %2854 = vmatprep.mubr.bf16.mxu1 %v3721_v5  ;;  %v4775_v4 = vld [vmem:[%s6258_s1 + $0x328] sm:$0xff]   ;;  %v3701_v12 = vcombine.high %v116_v2, %v128_v3  ;;  %v3700_v25 = vcombine.low %v116_v2, %v128_v3  ;;  %v4801_v3 = vld [vmem:[%s6258_s1 + $0x490] sm:$0xff]  }
  0x7e   :  { %v4777_v5 = vld [vmem:[%s6258_s1 + $0x3a8] sm:$0xff]  }
  0x83   :  { %2767 = vmatmul.mubr.bf16.gmra.mrb[48].mxu0 %v3718_v8  ;;  %v4780_v8 = vld [vmem:[%s6258_s1 + $0x3f0] sm:$0xff]  }
  0x84   :  { %2855 = vmatmul.mubr.bf16.gmra.mrb[48].mxu1 %v3720_v9  ;;  %2774 = vmatprep.mubr.bf16.mxu0 %v3743_v10  ;;  %v3676_v9 = vcombine.low %v92_v51, %v104_v52  ;;  %v3699_v10 = vcombine.high %v115_v63, %v127_v1  ;;  %v4794_v51 = vld [vmem:[%s6258_s1 + $0x448] sm:$0xff]  }
  0x85   :  { %2862 = vmatprep.mubr.bf16.mxu1 %v3745_v11  ;;  %v4779_v11 = vld [vmem:[%s6258_s1 + $0x330] sm:$0xff]  }
  0x8b   :  { %2775 = vmatmul.mubr.bf16.gmra.mrb[52].mxu0 %v3742_v16  ;;  %v151_v16 = vld [vmem:[%s6259_s0 + $0x440] sm:$0xff] }
  0x8c   :  { %2863 = vmatmul.mubr.bf16.gmra.mrb[52].mxu1 %v3744_v17  ;;  %2902 = vmatprep.mubr.bf16.mxu0 %v3603_v18  ;;  %v4788_v17 = vld [vmem:[%s6258_s1 + $0x3f8] sm:$0xff]   ;;  %v140_v18 = vld [vmem:[%s6259_s0 + $0x3e8] sm:$0xff] }
  0x8d   :  { %2990 = vmatprep.mubr.bf16.mxu1 %v3605_v19  ;;  %v152_v19 = vld [vmem:[%s6259_s0 + $0x448] sm:$0xff] }
  0x93   :  { %2903 = vmatmul.mubr.bf16.vlgmr.msra.gmra.mrb[56].mxu0 %v3602_v22  ;;  %v4790_v22 = vld [vmem:[%s6258_s1 + $0x440] sm:$0xff]  }
  0x94   :  { %2991 = vmatmul.mubr.bf16.vlgmr.msra.gmra.mrb[56].mxu1 %v3604_v26  ;;  %4303 = vmatpush3.bf16.msra.mxu0 %v4755_v23  ;;  %v3698_v23 = vcombine.low %v115_v63, %v127_v1  ;;  %v3723_v26 = vcombine.high %v139_v15, %v151_v16  ;;  %v4799_v1 = vld [vmem:[%s6258_s1 + $0x410] sm:$0xff]  }
  0x95   :  { %4361 = vmatpush3.bf16.msra.mxu1 %v4757_v27  ;;  %2910 = vmatprep.mubr.bf16.mxu0 %v3627_v28  ;;  %v3725_v27 = vcombine.high %v140_v18, %v152_v19  ;;  %v163_v28 = vld [vmem:[%s6259_s0 + $0x4a0] sm:$0x11] }
  0x96   :  { %2998 = vmatprep.mubr.bf16.mxu1 %v3629_v30  ;;  %4304 = vmatprep.subr.bf16.mxu0 %v4758_v29  ;;  %v164_v29 = vld [vmem:[%s6259_s0 + $0x4a8] sm:$0x11]  ;;  %v3722_v30 = vcombine.low %v139_v15, %v151_v16  ;;  %v3746_v38 = vcombine.low %v163_v28, %v163_v28 }
  0x97   :  { %4362 = vmatprep.subr.bf16.mxu1 %v4760_v32  ;;  %v3747_v32 = vcombine.high %v163_v28, %v163_v28  ;;  %v4814_v28 = vld [vmem:[%s6258_s1 + $0x470] sm:$0xff]  }
  0x98   :  { %4305 = vmatpush3.bf16.msra.mxu0 %v4759_v31  ;;  %v3724_v31 = vcombine.low %v140_v18, %v152_v19  ;;  %v4807_v18 = vld [vmem:[%s6258_s1 + $0x420] sm:$0xff]  }
  0x99   :  { %4363 = vmatpush3.bf16.msra.mxu1 %v4761_v33  ;;  %4306 = vmatprep.subr.bf16.mxu0 %v4762_v34  ;;  %v3749_v33 = vcombine.high %v164_v29, %v164_v29  ;;  %v21_v34 = vld [vmem:[%s6259_s0 + $0x30] sm:$0xff]  ;;  %v4809_v19 = vld [vmem:[%s6258_s1 + $0x4a0] sm:$0xff]  }
  0x9a   :  { %4364 = vmatprep.subr.bf16.mxu1 %v4764_v39  ;;  %v3748_v39 = vcombine.low %v164_v29, %v164_v29 }
  0x9b   :  { %2911 = vmatmul.mubr.bf16.gmra.mrb[60].mxu0 %v3626_v40  ;;  %v3607_v40 = vcombine.high %v21_v34, %v33_v35 }
  0x9c   :  { %2999 = vmatmul.mubr.bf16.gmra.mrb[60].mxu1 %v3628_v41  ;;  %2918 = vmatprep.mubr.bf16.mxu0 %v3651_v42  ;;  %v3609_v41 = vcombine.high %v22_v36, %v34_v37  ;;  %v45_v42 = vld [vmem:[%s6259_s0 + $0xf0] sm:$0xff] }
  0x9d   :  { %3006 = vmatprep.mubr.bf16.mxu1 %v3653_v43  ;;  %4307 = vmatpush3.bf16.msra.mxu0 %v4763_v44  ;;  %v57_v43 = vld [vmem:[%s6259_s0 + $0x150] sm:$0xff]  ;;  %v3606_v44 = vcombine.low %v21_v34, %v33_v35 }
  0x9e   :  { %4365 = vmatpush3.bf16.msra.mxu1 %v4765_v45  ;;  %4308 = vmatprep.subr.bf16.mxu0 %v4766_v46  ;;  %v46_v45 = vld [vmem:[%s6259_s0 + $0xf8] sm:$0xff]  ;;  %v3631_v50 = vcombine.high %v45_v42, %v57_v43  ;;  %v4815_v34 = vld [vmem:[%s6258_s1 + $0x430] sm:$0xff]  }
  0x9f   :  { %4366 = vmatprep.subr.bf16.mxu1 %v4768_v49  ;;  %v58_v46 = vld [vmem:[%s6259_s0 + $0x158] sm:$0xff]  ;;  %v4793_v49 = vld [vmem:[%s6258_s1 + $0x480] sm:$0xff]   ;;  %v4817_v35 = vld [vmem:[%s6258_s1 + $0x4b0] sm:$0xff]  }
  0xa0   :  { %v3633_v52 = vcombine.high %v46_v45, %v58_v46  ;;  %v3632_v63 = vcombine.low %v46_v45, %v58_v46  ;;  %v4828_v46 = vld [vmem:[%s6258_s1 + $0x5c0] sm:$0xff]  }
  0xa1   :  { %4309 = vmatpush3.bf16.msra.mxu0 %v4767_v47  ;;  %v3608_v47 = vcombine.low %v22_v36, %v34_v37  ;;  %v4822_v36 = vld [vmem:[%s6258_s1 + $0x478] sm:$0xff]   ;;  %v141_v37 = vld [vmem:[%s6259_s0 + $0x3f0] sm:$0xff] }
  0xa2   :  { %4367 = vmatpush3.bf16.msra.mxu1 %v4769_v53  ;;  %4310 = vmatprep.subr.bf16.mxu0 %v4770_v54  ;;  %v4795_v53 = vld [vmem:[%s6258_s1 + $0x408] sm:$0xff]  }
  0xa3   :  { %2919 = vmatmul.mubr.bf16.gmra.mrb[64].mxu0 %v3650_v55  ;;  %4368 = vmatprep.subr.bf16.mxu1 %v4772_v56  ;;  %v4796_v54 = vld [vmem:[%s6258_s1 + $0x4c8] sm:$0xff]   ;;  %v4798_v56 = vld [vmem:[%s6258_s1 + $0x450] sm:$0xff]  }
  0xa4   :  { %3007 = vmatmul.mubr.bf16.gmra.mrb[64].mxu1 %v3652_v57  ;;  %2926 = vmatprep.mubr.bf16.mxu0 %v3675_v58  ;;  %v4797_v55 = vld [vmem:[%s6258_s1 + $0x488] sm:$0xff]   ;;  %v69_v57 = vld [vmem:[%s6259_s0 + $0x1b0] sm:$0xff] }
  0xa5   :  { %3014 = vmatprep.mubr.bf16.mxu1 %v3677_v60  ;;  %4311 = vmatpush3.bf16.msra.mxu0 %v4771_v59  ;;  %v81_v58 = vld [vmem:[%s6259_s0 + $0x210] sm:$0xff]  ;;  %v70_v59 = vld [vmem:[%s6259_s0 + $0x1b8] sm:$0xff] }
  0xa6   :  { %4369 = vmatpush3.bf16.msra.mxu1 %v4773_v61  ;;  %4312 = vmatprep.subr.bf16.mxu0 %v4774_v62  ;;  %v82_v60 = vld [vmem:[%s6259_s0 + $0x218] sm:$0xff]  ;;  %v4800_v61 = vld [vmem:[%s6258_s1 + $0x4d0] sm:$0xff]   ;;  %v3630_v62 = vcombine.low %v45_v42, %v57_v43 }
  0xa7   :  { %4370 = vmatprep.subr.bf16.mxu1 %v4776_v0  ;;  %v3655_v0 = vcombine.high %v69_v57, %v81_v58  ;;  %v3657_v2 = vcombine.high %v70_v59, %v82_v60  ;;  %v3656_v15 = vcombine.low %v70_v59, %v82_v60  ;;  %v4823_v42 = vld [vmem:[%s6258_s1 + $0x438] sm:$0xff]   ;;  %v24_v59 = vld [vmem:[%s6259_s0 + $0x48] sm:$0xff] }
  0xa8   :  { %v4825_v43 = vld [vmem:[%s6258_s1 + $0x4b8] sm:$0xff]   ;;  %v36_v60 = vld [vmem:[%s6259_s0 + $0xa8] sm:$0xff] }
  0xa9   :  { %4313 = vmatpush3.bf16.msra.mxu0 %v4775_v4  ;;  %v4802_v4 = vld [vmem:[%s6258_s1 + $0x458] sm:$0xff]  }
  0xaa   :  { %4371 = vmatpush3.bf16.msra.mxu1 %v4777_v5  ;;  %4314 = vmatprep.subr.bf16.mxu0 %v4778_v6  ;;  %v4803_v5 = vld [vmem:[%s6258_s1 + $0x418] sm:$0xff]   ;;  %v93_v6 = vld [vmem:[%s6259_s0 + $0x270] sm:$0xff] }
  0xab   :  { %2927 = vmatmul.mubr.bf16.gmra.mrb[68].mxu0 %v3674_v7  ;;  %4372 = vmatprep.subr.bf16.mxu1 %v4780_v8  ;;  %v4804_v7 = vld [vmem:[%s6258_s1 + $0x4d8] sm:$0xff]   ;;  %v105_v8 = vld [vmem:[%s6259_s0 + $0x2d0] sm:$0xff] }
  0xac   :  { %3015 = vmatmul.mubr.bf16.gmra.mrb[68].mxu1 %v3676_v9  ;;  %2934 = vmatprep.mubr.bf16.mxu0 %v3699_v10  ;;  %v94_v9 = vld [vmem:[%s6259_s0 + $0x278] sm:$0xff]  ;;  %v3679_v16 = vcombine.high %v93_v6, %v105_v8  ;;  %v3678_v29 = vcombine.low %v93_v6, %v105_v8 }
  0xad   :  { %3022 = vmatprep.mubr.bf16.mxu1 %v3701_v12  ;;  %4315 = vmatpush3.bf16.msra.mxu0 %v4779_v11  ;;  %v106_v10 = vld [vmem:[%s6259_s0 + $0x2d8] sm:$0xff]  ;;  %v4806_v12 = vld [vmem:[%s6258_s1 + $0x460] sm:$0xff]  }
  0xae   :  { %4373 = vmatpush3.bf16.msra.mxu1 %v4781_v13  ;;  %4316 = vmatprep.subr.bf16.mxu0 %v4786_v14  ;;  %v4805_v11 = vld [vmem:[%s6258_s1 + $0x498] sm:$0xff]   ;;  %v3654_v13 = vcombine.low %v69_v57, %v81_v58  ;;  %v4808_v14 = vld [vmem:[%s6258_s1 + $0x4e0] sm:$0xff]  }
  0xaf   :  { %4374 = vmatprep.subr.bf16.mxu1 %v4788_v17  ;;  %v3681_v17 = vcombine.high %v94_v9, %v106_v10  ;;  %v35_v57 = vld [vmem:[%s6259_s0 + $0xa0] sm:$0xff] }
  0xb1   :  { %4317 = vmatpush3.bf16.msra.mxu0 %v4787_v20  ;;  %v4810_v20 = vld [vmem:[%s6258_s1 + $0x468] sm:$0xff]  }
  0xb2   :  { %4375 = vmatpush3.bf16.msra.mxu1 %v4789_v21  ;;  %4418 = vmatprep.subr.bf16.mxu0 %v4790_v22  ;;  %v117_v21 = vld [vmem:[%s6259_s0 + $0x330] sm:$0xff] }
  0xb3   :  { %2935 = vmatmul.mubr.bf16.gmra.mrb[72].mxu0 %v3698_v23  ;;  %4476 = vmatprep.subr.bf16.mxu1 %v4792_v24  ;;  %v129_v22 = vld [vmem:[%s6259_s0 + $0x390] sm:$0xff]  ;;  %v4812_v23 = vld [vmem:[%s6258_s1 + $0x4e8] sm:$0xff]   ;;  %v118_v24 = vld [vmem:[%s6259_s0 + $0x338] sm:$0xff] }
  0xb4   :  { %3023 = vmatmul.mubr.bf16.gmra.mrb[72].mxu1 %v3700_v25  ;;  %2942 = vmatprep.mubr.bf16.mxu0 %v3723_v26  ;;  %v130_v25 = vld [vmem:[%s6259_s0 + $0x398] sm:$0xff]  ;;  %v4811_v26 = vld [vmem:[%s6258_s1 + $0x428] sm:$0xff]   ;;  %v3702_v45 = vcombine.low %v117_v21, %v129_v22 }
  0xb5   :  { %3030 = vmatprep.mubr.bf16.mxu1 %v3725_v27  ;;  %v4813_v27 = vld [vmem:[%s6258_s1 + $0x4a8] sm:$0xff]  }
  0xbb   :  { %2943 = vmatmul.mubr.bf16.gmra.mrb[76].mxu0 %v3722_v30  ;;  %v4816_v30 = vld [vmem:[%s6258_s1 + $0x4f0] sm:$0xff]  }
  0xbc   :  { %3031 = vmatmul.mubr.bf16.gmra.mrb[76].mxu1 %v3724_v31  ;;  %2950 = vmatprep.mubr.bf16.mxu0 %v3747_v32  ;;  %v3680_v31 = vcombine.low %v94_v9, %v106_v10  ;;  %v3703_v32 = vcombine.high %v117_v21, %v129_v22  ;;  %v3613_v9 = vcombine.high %v24_v59, %v36_v60 }
  0xbd   :  { %3038 = vmatprep.mubr.bf16.mxu1 %v3749_v33  ;;  %v3705_v33 = vcombine.high %v118_v24, %v130_v25 }
  0xc3   :  { %2951 = vmatmul.mubr.bf16.gmra.mrb[80].mxu0 %v3746_v38  ;;  %v153_v38 = vld [vmem:[%s6259_s0 + $0x450] sm:$0xff] }
  0xc4   :  { %3039 = vmatmul.mubr.bf16.gmra.mrb[80].mxu1 %v3748_v39  ;;  %3078 = vmatprep.mubr.bf16.mxu0 %v3607_v40  ;;  %v4824_v39 = vld [vmem:[%s6258_s1 + $0x4f8] sm:$0xff]  }
  0xc5   :  { %3166 = vmatprep.mubr.bf16.mxu1 %v3609_v41  ;;  %v142_v40 = vld [vmem:[%s6259_s0 + $0x3f8] sm:$0xff] }
  0xc6   :  { %v154_v41 = vld [vmem:[%s6259_s0 + $0x458] sm:$0xff] }
  0xcb   :  { %3079 = vmatmul.mubr.bf16.vlgmr.msra.gmra.mrb[84].mxu0 %v3606_v44  ;;  %v4826_v44 = vld [vmem:[%s6258_s1 + $0x540] sm:$0xff]  }
  0xcc   :  { %3167 = vmatmul.mubr.bf16.vlgmr.msra.gmra.mrb[84].mxu1 %v3608_v47  ;;  %4419 = vmatpush3.bf16.msra.mxu0 %v4791_v48  ;;  %v3704_v47 = vcombine.low %v118_v24, %v130_v25  ;;  %v3727_v48 = vcombine.high %v141_v37, %v153_v38  ;;  %v5725_v24 = vld [vmem:[%s6259_s0 + $0x168] sm:$0xff] }
  0xcd   :  { %4477 = vmatpush3.bf16.msra.mxu1 %v4793_v49  ;;  %3086 = vmatprep.mubr.bf16.mxu0 %v3631_v50  ;;  %v3729_v49 = vcombine.high %v142_v40, %v154_v41  ;;  %v165_v50 = vld [vmem:[%s6259_s0 + $0x4b0] sm:$0x11] }
  0xce   :  { %3174 = vmatprep.mubr.bf16.mxu1 %v3633_v52  ;;  %4420 = vmatprep.subr.bf16.mxu0 %v4794_v51  ;;  %v166_v51 = vld [vmem:[%s6259_s0 + $0x4b8] sm:$0x11]  ;;  %v3726_v52 = vcombine.low %v141_v37, %v153_v38 }
  0xcf   :  { %4478 = vmatprep.subr.bf16.mxu1 %v4796_v54  ;;  %v3751_v54 = vcombine.high %v165_v50, %v165_v50 }
  0xd0   :  { %4421 = vmatpush3.bf16.msra.mxu0 %v4795_v53  ;;  %v3728_v53 = vcombine.low %v142_v40, %v154_v41  ;;  %v4832_v41 = vld [vmem:[%s6258_s1 + $0x5c8] sm:$0xff]  }
  0xd1   :  { %4479 = vmatpush3.bf16.msra.mxu1 %v4797_v55  ;;  %4422 = vmatprep.subr.bf16.mxu0 %v4798_v56  ;;  %v3753_v55 = vcombine.high %v166_v51, %v166_v51  ;;  %v23_v56 = vld [vmem:[%s6259_s0 + $0x40] sm:$0xff] }
  0xd2   :  { %4480 = vmatprep.subr.bf16.mxu1 %v4800_v61  ;;  %v3610_v22 = vcombine.low %v23_v56, %v35_v57 }
  0xd3   :  { %3087 = vmatmul.mubr.bf16.gmra.mrb[88].mxu0 %v3630_v62  ;;  %v5699_v62 = vld [vmem:[%s6260_s2] ss:$0 sm:$0xff] }
  0xd4   :  { %3175 = vmatmul.mubr.bf16.gmra.mrb[88].mxu1 %v3632_v63  ;;  %3094 = vmatprep.mubr.bf16.mxu0 %v3655_v0  ;;  %v3750_v0 = vcombine.low %v165_v50, %v165_v50 }
  0xd5   :  { %3182 = vmatprep.mubr.bf16.mxu1 %v3657_v2  ;;  %4423 = vmatpush3.bf16.msra.mxu0 %v4799_v1 }
  0xd6   :  { %4481 = vmatpush3.bf16.msra.mxu1 %v4801_v3  ;;  %4424 = vmatprep.subr.bf16.mxu0 %v4802_v4  ;;  %v3752_v4 = vcombine.low %v166_v51, %v166_v51  ;;  %v5771_v51 = vld [vmem:[%s6259_s0 + $0x1c8] sm:$0xff] }
  0xd7   :  { %4482 = vmatprep.subr.bf16.mxu1 %v4804_v7 }
  0xd9   :  { %4425 = vmatpush3.bf16.msra.mxu0 %v4803_v5  ;;  %v3611_v5 = vcombine.high %v23_v56, %v35_v57 }
  0xda   :  { %4483 = vmatpush3.bf16.msra.mxu1 %v4805_v11  ;;  %4426 = vmatprep.subr.bf16.mxu0 %v4806_v12 }
  0xdb   :  { %3095 = vmatmul.mubr.bf16.gmra.mrb[92].mxu0 %v3654_v13  ;;  %4484 = vmatprep.subr.bf16.mxu1 %v4808_v14 }
  0xdc   :  { %3183 = vmatmul.mubr.bf16.gmra.mrb[92].mxu1 %v3656_v15  ;;  %3102 = vmatprep.mubr.bf16.mxu0 %v3679_v16 }
  0xdd   :  { %3190 = vmatprep.mubr.bf16.mxu1 %v3681_v17  ;;  %4427 = vmatpush3.bf16.msra.mxu0 %v4807_v18  ;;  %v5710_v18 = vld [vmem:[%s6259_s0 + $0x100] sm:$0xff] }
  0xde   :  { %4485 = vmatpush3.bf16.msra.mxu1 %v4809_v19  ;;  %4428 = vmatprep.subr.bf16.mxu0 %v4810_v20  ;;  %v5715_v19 = vld [vmem:[%s6259_s0 + $0x160] sm:$0xff] }
  0xdf   :  { %4486 = vmatprep.subr.bf16.mxu1 %v4812_v23  ;;  %v5720_v23 = vld [vmem:[%s6259_s0 + $0x108] sm:$0xff]  ;;  %v3634_v56 = vcombine.low %v5710_v18, %v5715_v19 }
  0xe0   :  { %v3637_v38 = vcombine.high %v5720_v23, %v5725_v24 }
  0xe1   :  { %4429 = vmatpush3.bf16.msra.mxu0 %v4811_v26 }
  0xe2   :  { %4487 = vmatpush3.bf16.msra.mxu1 %v4813_v27  ;;  %4430 = vmatprep.subr.bf16.mxu0 %v4814_v28  ;;  %v3612_v28 = vcombine.low %v24_v59, %v36_v60  ;;  %v3636_v60 = vcombine.low %v5720_v23, %v5725_v24  ;;  %v4842_v23 = vld [vmem:[%s6258_s1 + $0x560] sm:$0xff]  }
  0xe3   :  { %3103 = vmatmul.mubr.bf16.gmra.mrb[96].mxu0 %v3678_v29  ;;  %4488 = vmatprep.subr.bf16.mxu1 %v4816_v30  ;;  %v4827_v29 = vld [vmem:[%s6258_s1 + $0x500] sm:$0xff]  }
  0xe4   :  { %3191 = vmatmul.mubr.bf16.gmra.mrb[96].mxu1 %v3680_v31  ;;  %3110 = vmatprep.mubr.bf16.mxu0 %v3703_v32 }
  0xe5   :  { %3198 = vmatprep.mubr.bf16.mxu1 %v3705_v33  ;;  %4431 = vmatpush3.bf16.msra.mxu0 %v4815_v34  ;;  %v4829_v33 = vld [vmem:[%s6258_s1 + $0x580] sm:$0xff]   ;;  %v3635_v34 = vcombine.high %v5710_v18, %v5715_v19  ;;  %v5821_v18 = vld [vmem:[%s6259_s0 + $0x288] sm:$0xff] }
  0xe6   :  { %4489 = vmatpush3.bf16.msra.mxu1 %v4817_v35  ;;  %4432 = vmatprep.subr.bf16.mxu0 %v4822_v36 }
  0xe7   :  { %4490 = vmatprep.subr.bf16.mxu1 %v4824_v39  ;;  %v4830_v39 = vld [vmem:[%s6258_s1 + $0x548] sm:$0xff]  }
  0xe9   :  { %4433 = vmatpush3.bf16.msra.mxu0 %v4823_v42 }
  0xea   :  { %4491 = vmatpush3.bf16.msra.mxu1 %v4825_v43  ;;  %4534 = vmatprep.subr.bf16.mxu0 %v4826_v44  ;;  %v4831_v44 = vld [vmem:[%s6258_s1 + $0x508] sm:$0xff]  }
  0xeb   :  { %3111 = vmatmul.mubr.bf16.gmra.mrb[100].mxu0 %v3702_v45  ;;  %4592 = vmatprep.subr.bf16.mxu1 %v4828_v46  ;;  %v4833_v45 = vld [vmem:[%s6258_s1 + $0x588] sm:$0xff]   ;;  %v4834_v46 = vld [vmem:[%s6258_s1 + $0x550] sm:$0xff]  }
  0xec   :  { %3199 = vmatmul.mubr.bf16.gmra.mrb[100].mxu1 %v3704_v47  ;;  %3118 = vmatprep.mubr.bf16.mxu0 %v3727_v48  ;;  %v5759_v47 = vld [vmem:[%s6259_s0 + $0x1c0] sm:$0xff] }
  0xed   :  { %3206 = vmatprep.mubr.bf16.mxu1 %v3729_v49  ;;  %v5764_v48 = vld [vmem:[%s6259_s0 + $0x220] sm:$0xff] }
  0xf3   :  { %3119 = vmatmul.mubr.bf16.gmra.mrb[104].mxu0 %v3726_v52  ;;  %v5776_v52 = vld [vmem:[%s6259_s0 + $0x228] sm:$0xff] }
  0xf4   :  { %3207 = vmatmul.mubr.bf16.gmra.mrb[104].mxu1 %v3728_v53  ;;  %3126 = vmatprep.mubr.bf16.mxu0 %v3751_v54  ;;  %v4836_v53 = vld [vmem:[%s6258_s1 + $0x5d0] sm:$0xff]  }
  0xf5   :  { %3214 = vmatprep.mubr.bf16.mxu1 %v3753_v55 }
  0xf6   :  { %v3970_v58 = vpop.f32.mrb[0].mxu0 }
  0xf7   :  { %v4028_v61 = vpop.f32.mrb[0].mxu1  ;;  %v3971_v63 = vpop.f32.mrb[1].mxu0 }
  0xf8   :  { %v3972_v1 = vadd.f32 %v3971_v63, %v3970_v58  ;;  %v4029_v2 = vpop.f32.mrb[1].mxu1  ;;  %v3973_v3 = vpop.f32.mrb[2].mxu0 }
  0xf9   :  { %v4030_v6 = vadd.f32 %v4029_v2, %v4028_v61  ;;  %v4031_v7 = vpop.f32.mrb[2].mxu1  ;;  %v3974_v8 = vpop.f32.mrb[3].mxu0  ;;  %v3659_v61 = vcombine.high %v5759_v47, %v5764_v48  ;;  %v3661_v2 = vcombine.high %v5771_v51, %v5776_v52 }
  0xfa   :  { %v2553_v10 = vadd.f32 %v3972_v1, %v5699_v62  ;;  %v3975_v11 = vadd.f32 %v3974_v8, %v3973_v3  ;;  %v4032_v12 = vpop.f32.mrb[3].mxu1  ;;  %v4835_v3 = vld [vmem:[%s6258_s1 + $0x510] sm:$0xff]   ;;  %v4838_v8 = vld [vmem:[%s6258_s1 + $0x558] sm:$0xff]  }
  0xfb   :  { %v4033_v13 = vadd.f32 %v4032_v12, %v4031_v7  ;;  %3127 = vmatmul.mubr.bf16.gmra.mrb[108].mxu0 %v3750_v0  ;;  %v4837_v7 = vld [vmem:[%s6258_s1 + $0x590] sm:$0xff]  }
  0xfc   :  { %v5702_v14 = vadd.f32 %v4030_v6, %v2553_v10  ;;  %v2556_v15 = vadd.f32 %v3975_v11, %v5699_v62  ;;  %3215 = vmatmul.mubr.bf16.gmra.mrb[108].mxu1 %v3752_v4  ;;  %3254 = vmatprep.mubr.bf16.mxu0 %v3611_v5  ;;  %v4840_v10 = vld [vmem:[%s6258_s1 + $0x5d8] sm:$0xff]  }
  0xfd   :  { %3342 = vmatprep.mubr.bf16.mxu1 %v3613_v9 }
  0xfe   :  { %v5705_v16 = vadd.f32 %v4033_v13, %v2556_v15  ;;  %v3976_v17 = vpop.f32.mrb[4].mxu0  ;;  %v4839_v13 = vld [vmem:[%s6258_s1 + $0x518] sm:$0xff]   ;;  %v5811_v15 = vld [vmem:[%s6259_s0 + $0x280] sm:$0xff] }
  0xff   :  { %v4034_v20 = vpop.f32.mrb[4].mxu1  ;;  %v3977_v21 = vpop.f32.mrb[5].mxu0 }
 0x100   :  { %v3978_v25 = vadd.f32 %v3977_v21, %v3976_v17  ;;  %v4035_v26 = vpop.f32.mrb[5].mxu1  ;;  %v3979_v27 = vpop.f32.mrb[6].mxu0  ;;  %v5816_v17 = vld [vmem:[%s6259_s0 + $0x2e0] sm:$0xff]  ;;  %v5828_v21 = vld [vmem:[%s6259_s0 + $0x2e8] sm:$0xff] }
 0x101   :  { %v4036_v30 = vadd.f32 %v4035_v26, %v4034_v20  ;;  %v4037_v31 = vpop.f32.mrb[6].mxu1  ;;  %v3980_v32 = vpop.f32.mrb[7].mxu0  ;;  %v3658_v26 = vcombine.low %v5759_v47, %v5764_v48  ;;  %v5866_v48 = vld [vmem:[%s6259_s0 + $0x340] sm:$0xff] }
 0x102   :  { %v2561_v35 = vadd.f32 %v3978_v25, %v5699_v62  ;;  %v3981_v36 = vadd.f32 %v3980_v32, %v3979_v27  ;;  %v4038_v37 = vpop.f32.mrb[7].mxu1  ;;  %v4844_v27 = vld [vmem:[%s6258_s1 + $0x5e0] sm:$0xff]   ;;  %v3683_v32 = vcombine.high %v5811_v15, %v5816_v17 }
 0x103   :  { %v4039_v40 = vadd.f32 %v4038_v37, %v4037_v31  ;;  %3255 = vmatmul.mubr.bf16.vlgmr.msra.gmra.mrb[112].mxu0 %v3610_v22  ;;  %v4841_v22 = vld [vmem:[%s6258_s1 + $0x598] sm:$0xff]   ;;  %v3660_v31 = vcombine.low %v5771_v51, %v5776_v52  ;;  %v4843_v37 = vld [vmem:[%s6258_s1 + $0x520] sm:$0xff]   ;;  %v5876_v51 = vld [vmem:[%s6259_s0 + $0x348] sm:$0xff] }
 0x104   :  { %v5744_v42 = vadd.f32 %v4036_v30, %v2561_v35  ;;  %v2564_v43 = vadd.f32 %v3981_v36, %v5699_v62  ;;  %3343 = vmatmul.mubr.bf16.vlgmr.msra.gmra.mrb[112].mxu1 %v3612_v28  ;;  %4535 = vmatpush3.bf16.msra.mxu0 %v4827_v29  ;;  %v3685_v36 = vcombine.high %v5821_v18, %v5828_v21  ;;  %v4847_v52 = vld [vmem:[%s6258_s1 + $0x528] sm:$0xff]  }
 0x105   :  { %4593 = vmatpush3.bf16.msra.mxu1 %v4829_v33  ;;  %3262 = vmatprep.mubr.bf16.mxu0 %v3635_v34 }
 0x106   :  { %v5766_v49 = vadd.f32 %v4039_v40, %v2564_v43  ;;  %v3982_v50 = vpop.f32.mrb[8].mxu0  ;;  %3350 = vmatprep.mubr.bf16.mxu1 %v3637_v38  ;;  %4536 = vmatprep.subr.bf16.mxu0 %v4830_v39  ;;  %v4846_v43 = vld [vmem:[%s6258_s1 + $0x568] sm:$0xff]  }
 0x107   :  { %v4040_v54 = vpop.f32.mrb[8].mxu1  ;;  %v3983_v55 = vpop.f32.mrb[9].mxu0  ;;  %4594 = vmatprep.subr.bf16.mxu1 %v4832_v41  ;;  %v4845_v41 = vld [vmem:[%s6258_s1 + $0x5a0] sm:$0xff]  }
 0x108   :  { %v3984_v57 = vadd.f32 %v3983_v55, %v3982_v50  ;;  %v4041_v58 = vpop.f32.mrb[9].mxu1  ;;  %v3985_v59 = vpop.f32.mrb[10].mxu0  ;;  %4537 = vmatpush3.bf16.msra.mxu0 %v4831_v44  ;;  %v5871_v50 = vld [vmem:[%s6259_s0 + $0x3a0] sm:$0xff]  ;;  %v5886_v55 = vld [vmem:[%s6259_s0 + $0x3a8] sm:$0xff] }
 0x109   :  { %v4042_v63 = vadd.f32 %v4041_v58, %v4040_v54  ;;  %v4043_v0 = vpop.f32.mrb[10].mxu1  ;;  %v3986_v1 = vpop.f32.mrb[11].mxu0  ;;  %4595 = vmatpush3.bf16.msra.mxu1 %v4833_v45  ;;  %4538 = vmatprep.subr.bf16.mxu0 %v4834_v46  ;;  %v4848_v45 = vld [vmem:[%s6258_s1 + $0x5e8] sm:$0xff]  }
 0x10a   :  { %v2569_v4 = vadd.f32 %v3984_v57, %v5699_v62  ;;  %v3987_v5 = vadd.f32 %v3986_v1, %v3985_v59  ;;  %v4044_v6 = vpop.f32.mrb[11].mxu1  ;;  %4596 = vmatprep.subr.bf16.mxu1 %v4836_v53  ;;  %v4850_v57 = vld [vmem:[%s6258_s1 + $0x570] sm:$0xff]  }
 0x10b   :  { %v4045_v9 = vadd.f32 %v4044_v6, %v4043_v0  ;;  %3263 = vmatmul.mubr.bf16.gmra.mrb[116].mxu0 %v3634_v56  ;;  %v4849_v56 = vld [vmem:[%s6258_s1 + $0x5a8] sm:$0xff]  }
 0x10c   :  { %v5802_v11 = vadd.f32 %v4042_v63, %v2569_v4  ;;  %v2572_v12 = vadd.f32 %v3987_v5, %v5699_v62  ;;  %3351 = vmatmul.mubr.bf16.gmra.mrb[116].mxu1 %v3636_v60  ;;  %3270 = vmatprep.mubr.bf16.mxu0 %v3659_v61  ;;  %v3682_v60 = vcombine.low %v5811_v15, %v5816_v17  ;;  %v4852_v61 = vld [vmem:[%s6258_s1 + $0x5f0] sm:$0xff]   ;;  %v4858_v15 = vld [vmem:[%s6258_s1 + $0x578] sm:$0xff]  }
 0x10d   :  { %3358 = vmatprep.mubr.bf16.mxu1 %v3661_v2  ;;  %4539 = vmatpush3.bf16.msra.mxu0 %v4835_v3  ;;  %v3684_v2 = vcombine.low %v5821_v18, %v5828_v21  ;;  %v3707_v3 = vcombine.high %v5866_v48, %v5871_v50  ;;  %v4860_v18 = vld [vmem:[%s6258_s1 + $0x5f8] sm:$0xff]  }
 0x10e   :  { %v5823_v19 = vadd.f32 %v4045_v9, %v2572_v12  ;;  %v3988_v20 = vpop.f32.mrb[12].mxu0  ;;  %4597 = vmatpush3.bf16.msra.mxu1 %v4837_v7  ;;  %4540 = vmatprep.subr.bf16.mxu0 %v4838_v8  ;;  %v3709_v7 = vcombine.high %v5876_v51, %v5886_v55  ;;  %v4851_v8 = vld [vmem:[%s6258_s1 + $0x530] sm:$0xff]  }
 0x10f   :  { %v4046_v24 = vpop.f32.mrb[12].mxu1  ;;  %v3989_v25 = vpop.f32.mrb[13].mxu0  ;;  %4598 = vmatprep.subr.bf16.mxu1 %v4840_v10 }
 0x110   :  { %v3990_v28 = vadd.f32 %v3989_v25, %v3988_v20  ;;  %v4047_v29 = vpop.f32.mrb[13].mxu1  ;;  %v3991_v30 = vpop.f32.mrb[14].mxu0 }
 0x111   :  { %v4048_v33 = vadd.f32 %v4047_v29, %v4046_v24  ;;  %v4049_v34 = vpop.f32.mrb[14].mxu1  ;;  %v3992_v35 = vpop.f32.mrb[15].mxu0  ;;  %4541 = vmatpush3.bf16.msra.mxu0 %v4839_v13  ;;  %v4853_v13 = vld [vmem:[%s6258_s1 + $0x5b0] sm:$0xff]   ;;  %v4859_v24 = vld [vmem:[%s6258_s1 + $0x538] sm:$0xff]  }
 0x112   :  { %v2577_v38 = vadd.f32 %v3990_v28, %v5699_v62  ;;  %v3993_v39 = vadd.f32 %v3992_v35, %v3991_v30  ;;  %v4050_v40 = vpop.f32.mrb[15].mxu1  ;;  %4599 = vmatpush3.bf16.msra.mxu1 %v4841_v22  ;;  %4542 = vmatprep.subr.bf16.mxu0 %v4842_v23  ;;  %v143_v22 = vld [vmem:[%s6259_s0 + $0x400] sm:$0xff]  ;;  %v156_v28 = vld [vmem:[%s6259_s0 + $0x468] sm:$0xff]  ;;  %v4861_v29 = vld [vmem:[%s6258_s1 + $0x5b8] sm:$0xff]  }
 0x113   :  { %v4051_v44 = vadd.f32 %v4050_v40, %v4049_v34  ;;  %3271 = vmatmul.mubr.bf16.gmra.mrb[120].mxu0 %v3658_v26  ;;  %4600 = vmatprep.subr.bf16.mxu1 %v4844_v27  ;;  %v155_v23 = vld [vmem:[%s6259_s0 + $0x460] sm:$0xff]  ;;  %v144_v27 = vld [vmem:[%s6259_s0 + $0x408] sm:$0xff] }
 0x114   :  { %v5860_v46 = vadd.f32 %v4048_v33, %v2577_v38  ;;  %v2580_v47 = vadd.f32 %v3993_v39, %v5699_v62  ;;  %3359 = vmatmul.mubr.bf16.gmra.mrb[120].mxu1 %v3660_v31  ;;  %3278 = vmatprep.mubr.bf16.mxu0 %v3683_v32  ;;  %v3706_v32 = vcombine.low %v5866_v48, %v5871_v50 }
 0x115   :  { %3366 = vmatprep.mubr.bf16.mxu1 %v3685_v36  ;;  %4543 = vmatpush3.bf16.msra.mxu0 %v4843_v37  ;;  %v3708_v36 = vcombine.low %v5876_v51, %v5886_v55  ;;  %v3731_v37 = vcombine.high %v143_v22, %v155_v23  ;;  %v167_v51 = vld [vmem:[%s6259_s0 + $0x4c0] sm:$0x11]  ;;  %v168_v55 = vld [vmem:[%s6259_s0 + $0x4c8] sm:$0x11] }
 0x116   :  { %v5881_v53 = vadd.f32 %v4051_v44, %v2580_v47  ;;  %v3994_v54 = vpop.f32.mrb[16].mxu0  ;;  %4601 = vmatpush3.bf16.msra.mxu1 %v4845_v41  ;;  %4544 = vmatprep.subr.bf16.mxu0 %v4846_v43  ;;  %v3733_v41 = vcombine.high %v144_v27, %v156_v28 }
 0x117   :  { %v4052_v58 = vpop.f32.mrb[16].mxu1  ;;  %v3995_v59 = vpop.f32.mrb[17].mxu0  ;;  %4602 = vmatprep.subr.bf16.mxu1 %v4848_v45 }
 0x118   :  { %v3996_v63 = vadd.f32 %v3995_v59, %v3994_v54  ;;  %v4053_v0 = vpop.f32.mrb[17].mxu1  ;;  %v3997_v1 = vpop.f32.mrb[18].mxu0 }
 0x119   :  { %v4054_v4 = vadd.f32 %v4053_v0, %v4052_v58  ;;  %v4055_v5 = vpop.f32.mrb[18].mxu1  ;;  %v3998_v6 = vpop.f32.mrb[19].mxu0  ;;  %4545 = vmatpush3.bf16.msra.mxu0 %v4847_v52  ;;  %v3730_v58 = vcombine.low %v143_v22, %v155_v23  ;;  %v3755_v0 = vcombine.high %v167_v51, %v167_v51  ;;  %v3756_v23 = vcombine.low %v168_v55, %v168_v55 }
 0x11a   :  { %v2585_v9 = vadd.f32 %v3996_v63, %v5699_v62  ;;  %v3999_v10 = vadd.f32 %v3998_v6, %v3997_v1  ;;  %v4056_v12 = vpop.f32.mrb[19].mxu1  ;;  %4603 = vmatpush3.bf16.msra.mxu1 %v4849_v56  ;;  %4546 = vmatprep.subr.bf16.mxu0 %v4850_v57  ;;  %v3732_v63 = vcombine.low %v144_v27, %v156_v28 }
 0x11b   :  { %v4057_v17 = vadd.f32 %v4056_v12, %v4055_v5  ;;  %3279 = vmatmul.mubr.bf16.gmra.mrb[124].mxu0 %v3682_v60  ;;  %4604 = vmatprep.subr.bf16.mxu1 %v4852_v61  ;;  %v38_v12 = vld [vmem:[%s6259_s0 + $0xb8] sm:$0xff] }
 0x11c   :  { %v5918_v20 = vadd.f32 %v4054_v4, %v2585_v9  ;;  %v2588_v21 = vadd.f32 %v3999_v10, %v5699_v62  ;;  %3367 = vmatmul.mubr.bf16.gmra.mrb[124].mxu1 %v3684_v2  ;;  %3286 = vmatprep.mubr.bf16.mxu0 %v3707_v3  ;;  %v3757_v4 = vcombine.high %v168_v55, %v168_v55  ;;  %v37_v9 = vld [vmem:[%s6259_s0 + $0xb0] sm:$0xff] }
 0x11d   :  { %3374 = vmatprep.mubr.bf16.mxu1 %v3709_v7  ;;  %4547 = vmatpush3.bf16.msra.mxu0 %v4851_v8  ;;  %v25_v8 = vld [vmem:[%s6259_s0 + $0x50] sm:$0xff] }
 0x11e   :  { %v5930_v25 = vadd.f32 %v4057_v17, %v2588_v21  ;;  %v4000_v26 = vpop.f32.mrb[20].mxu0  ;;  %4605 = vmatpush3.bf16.msra.mxu1 %v4853_v13  ;;  %4548 = vmatprep.subr.bf16.mxu0 %v4858_v15  ;;  %v3754_v17 = vcombine.low %v167_v51, %v167_v51 }
 0x11f   :  { %v4058_v30 = vpop.f32.mrb[20].mxu1  ;;  %v4001_v31 = vpop.f32.mrb[21].mxu0  ;;  %4606 = vmatprep.subr.bf16.mxu1 %v4860_v18 }
 0x120   :  { %v4002_v33 = vadd.f32 %v4001_v31, %v4000_v26  ;;  %v4059_v34 = vpop.f32.mrb[21].mxu1  ;;  %v4003_v35 = vpop.f32.mrb[22].mxu0 }
 0x121   :  { %v4060_v38 = vadd.f32 %v4059_v34, %v4058_v30  ;;  %v4061_v39 = vpop.f32.mrb[22].mxu1  ;;  %v4004_v40 = vpop.f32.mrb[23].mxu0  ;;  %4549 = vmatpush3.bf16.msra.mxu0 %v4859_v24  ;;  %v3615_v24 = vcombine.high %v25_v8, %v37_v9 }
 0x122   :  { %v2593_v43 = vadd.f32 %v4002_v33, %v5699_v62  ;;  %v4005_v44 = vadd.f32 %v4004_v40, %v4003_v35  ;;  %v4062_v45 = vpop.f32.mrb[23].mxu1  ;;  %4607 = vmatpush3.bf16.msra.mxu1 %v4861_v29 }
 0x123   :  { %v4063_v47 = vadd.f32 %v4062_v45, %v4061_v39  ;;  %3287 = vmatmul.mubr.bf16.gmra.mrb[128].mxu0 %v3706_v32  ;;  %v50_v39 = vld [vmem:[%s6259_s0 + $0x118] sm:$0xff] }
 0x124   :  { %v5946_v48 = vadd.f32 %v4060_v38, %v2593_v43  ;;  %v2596_v50 = vadd.f32 %v4005_v44, %v5699_v62  ;;  %3375 = vmatmul.mubr.bf16.gmra.mrb[128].mxu1 %v3708_v36  ;;  %3294 = vmatprep.mubr.bf16.mxu0 %v3731_v37  ;;  %v49_v36 = vld [vmem:[%s6259_s0 + $0x110] sm:$0xff]  ;;  %v3614_v43 = vcombine.low %v25_v8, %v37_v9 }
 0x125   :  { %3382 = vmatprep.mubr.bf16.mxu1 %v3733_v41  ;;  %v61_v37 = vld [vmem:[%s6259_s0 + $0x170] sm:$0xff] }
 0x126   :  { %v5952_v52 = vadd.f32 %v4063_v47, %v2596_v50  ;;  %v4006_v54 = vpop.f32.mrb[24].mxu0  ;;  %v3639_v51 = vcombine.high %v49_v36, %v61_v37  ;;  %v3638_v8 = vcombine.low %v49_v36, %v61_v37 }
 0x127   :  { %v4064_v56 = vpop.f32.mrb[24].mxu1  ;;  %v4007_v57 = vpop.f32.mrb[25].mxu0 }
 0x128   :  { %v4008_v59 = vadd.f32 %v4007_v57, %v4006_v54  ;;  %v4065_v60 = vpop.f32.mrb[25].mxu1  ;;  %v4009_v61 = vpop.f32.mrb[26].mxu0 }
 0x129   :  { %v4066_v1 = vadd.f32 %v4065_v60, %v4064_v56  ;;  %v4067_v2 = vpop.f32.mrb[26].mxu1  ;;  %v4010_v3 = vpop.f32.mrb[27].mxu0 }
 0x12a   :  { %v2601_v5 = vadd.f32 %v4008_v59, %v5699_v62  ;;  %v4068_v6 = vpop.f32.mrb[27].mxu1  ;;  %v26_v62 = vld [vmem:[%s6259_s0 + $0x58] sm:$0xff]  ;;  %v85_v2 = vld [vmem:[%s6259_s0 + $0x230] sm:$0xff] }
 0x12b   :  { %3295 = vmatmul.mubr.bf16.gmra.mrb[132].mxu0 %v3730_v58  ;;  %v3617_v29 = vcombine.high %v26_v62, %v38_v12  ;;  %v3616_v50 = vcombine.low %v26_v62, %v38_v12 }
 0x12c   :  { %v5958_v7 = vadd.f32 %v4066_v1, %v2601_v5  ;;  %3383 = vmatmul.mubr.bf16.gmra.mrb[132].mxu1 %v3732_v63  ;;  %3302 = vmatprep.mubr.bf16.mxu0 %v3755_v0  ;;  %v73_v1 = vld [vmem:[%s6259_s0 + $0x1d0] sm:$0xff] }
 0x12d   :  { %3390 = vmatprep.mubr.bf16.mxu1 %v3757_v4  ;;  %v74_v4 = vld [vmem:[%s6259_s0 + $0x1d8] sm:$0xff]  ;;  %v3662_v36 = vcombine.low %v73_v1, %v85_v2 }
 0x12e   :  { %v4086_v10 = vpop.f32.mrb[28].mxu0 }
 0x12f   :  { %v4144_v13 = vpop.f32.mrb[28].mxu1  ;;  %v4087_v15 = vpop.f32.mrb[29].mxu0 }
 0x130   :  { %v4088_v18 = vadd.f32 %v4087_v15, %v4086_v10  ;;  %v4145_v21 = vpop.f32.mrb[29].mxu1  ;;  %v4089_v22 = vpop.f32.mrb[30].mxu0 }
 0x131   :  { %v4146_v26 = vadd.f32 %v4145_v21, %v4144_v13  ;;  %v4147_v27 = vpop.f32.mrb[30].mxu1  ;;  %v4090_v28 = vpop.f32.mrb[31].mxu0  ;;  %v3663_v13 = vcombine.high %v73_v1, %v85_v2 }
 0x132   :  { %v2729_v30 = vadd.f32 %v4088_v18, %v5702_v14  ;;  %v4091_v31 = vadd.f32 %v4090_v28, %v4089_v22  ;;  %v4148_v32 = vpop.f32.mrb[31].mxu1 }
 0x133   :  { %v4149_v33 = vadd.f32 %v4148_v32, %v4147_v27  ;;  %3303 = vmatmul.mubr.bf16.gmra.mrb[136].mxu0 %v3754_v17  ;;  %v98_v32 = vld [vmem:[%s6259_s0 + $0x298] sm:$0xff] }
 0x134   :  { %v5973_v34 = vadd.f32 %v4146_v26, %v2729_v30  ;;  %v2732_v35 = vadd.f32 %v4091_v31, %v5705_v16  ;;  %3391 = vmatmul.mubr.bf16.gmra.mrb[136].mxu1 %v3756_v23  ;;  %3430 = vmatprep.mubr.bf16.mxu0 %v3615_v24  ;;  %v62_v16 = vld [vmem:[%s6259_s0 + $0x178] sm:$0xff]  ;;  %v109_v30 = vld [vmem:[%s6259_s0 + $0x2f0] sm:$0xff] }
 0x135   :  { %3518 = vmatprep.mubr.bf16.mxu1 %v3617_v29  ;;  %v3641_v57 = vcombine.high %v50_v39, %v62_v16  ;;  %v3640_v12 = vcombine.low %v50_v39, %v62_v16  ;;  %v97_v29 = vld [vmem:[%s6259_s0 + $0x290] sm:$0xff] }
 0x136   :  { %v5982_v14 = vadd.f32 %v4149_v33, %v2732_v35  ;;  %v4092_v38 = vpop.f32.mrb[32].mxu0  ;;  %v3686_v1 = vcombine.low %v97_v29, %v109_v30 }
 0x137   :  { %v4150_v40 = vpop.f32.mrb[32].mxu1  ;;  %v4093_v41 = vpop.f32.mrb[33].mxu0 }
 0x138   :  { %v4094_v44 = vadd.f32 %v4093_v41, %v4092_v38  ;;  %v4151_v45 = vpop.f32.mrb[33].mxu1  ;;  %v4095_v47 = vpop.f32.mrb[34].mxu0 }
 0x139   :  { %v4152_v54 = vadd.f32 %v4151_v45, %v4150_v40  ;;  %v4153_v55 = vpop.f32.mrb[34].mxu1  ;;  %v4096_v56 = vpop.f32.mrb[35].mxu0  ;;  %v3687_v40 = vcombine.high %v97_v29, %v109_v30 }
 0x13a   :  { %v2737_v58 = vadd.f32 %v4094_v44, %v5744_v42  ;;  %v4097_v59 = vadd.f32 %v4096_v56, %v4095_v47  ;;  %v4154_v60 = vpop.f32.mrb[35].mxu1 }
 0x13b   :  { %v4155_v61 = vadd.f32 %v4154_v60, %v4153_v55  ;;  %3431 = vmatmul.mubr.bf16.vlgmr.msra.gmra.mrb[140].mxu0 %v3614_v43  ;;  %v122_v60 = vld [vmem:[%s6259_s0 + $0x358] sm:$0xff] }
 0x13c   :  { %v5991_v63 = vadd.f32 %v4152_v54, %v2737_v58  ;;  %v2740_v0 = vadd.f32 %v4097_v59, %v5766_v49  ;;  %3519 = vmatmul.mubr.bf16.vlgmr.msra.gmra.mrb[140].mxu1 %v3616_v50  ;;  %3438 = vmatprep.mubr.bf16.mxu0 %v3639_v51  ;;  %v86_v49 = vld [vmem:[%s6259_s0 + $0x238] sm:$0xff]  ;;  %v133_v58 = vld [vmem:[%s6259_s0 + $0x3b0] sm:$0xff] }
 0x13d   :  { %3526 = vmatprep.mubr.bf16.mxu1 %v3641_v57  ;;  %v3665_v21 = vcombine.high %v74_v4, %v86_v49  ;;  %v3664_v16 = vcombine.low %v74_v4, %v86_v49  ;;  %v121_v57 = vld [vmem:[%s6259_s0 + $0x350] sm:$0xff] }
 0x13e   :  { %v6000_v42 = vadd.f32 %v4155_v61, %v2740_v0  ;;  %v4098_v3 = vpop.f32.mrb[36].mxu0  ;;  %v3710_v29 = vcombine.low %v121_v57, %v133_v58 }
 0x13f   :  { %v4156_v5 = vpop.f32.mrb[36].mxu1  ;;  %v4099_v6 = vpop.f32.mrb[37].mxu0 }
 0x140   :  { %v4100_v9 = vadd.f32 %v4099_v6, %v4098_v3  ;;  %v4157_v10 = vpop.f32.mrb[37].mxu1  ;;  %v4101_v62 = vpop.f32.mrb[38].mxu0 }
 0x141   :  { %v4158_v15 = vadd.f32 %v4157_v10, %v4156_v5  ;;  %v4159_v17 = vpop.f32.mrb[38].mxu1  ;;  %v4102_v18 = vpop.f32.mrb[39].mxu0  ;;  %v3711_v5 = vcombine.high %v121_v57, %v133_v58 }
 0x142   :  { %v2745_v22 = vadd.f32 %v4100_v9, %v5802_v11  ;;  %v4103_v23 = vadd.f32 %v4102_v18, %v4101_v62  ;;  %v4160_v24 = vpop.f32.mrb[39].mxu1 }
 0x143   :  { %v4161_v26 = vadd.f32 %v4160_v24, %v4159_v17  ;;  %3439 = vmatmul.mubr.bf16.gmra.mrb[144].mxu0 %v3638_v8  ;;  %v146_v24 = vld [vmem:[%s6259_s0 + $0x418] sm:$0xff] }
 0x144   :  { %v6009_v27 = vadd.f32 %v4158_v15, %v2745_v22  ;;  %v2748_v28 = vadd.f32 %v4103_v23, %v5823_v19  ;;  %3527 = vmatmul.mubr.bf16.gmra.mrb[144].mxu1 %v3640_v12  ;;  %3446 = vmatprep.mubr.bf16.mxu0 %v3663_v13  ;;  %v110_v19 = vld [vmem:[%s6259_s0 + $0x2f8] sm:$0xff]  ;;  %v157_v22 = vld [vmem:[%s6259_s0 + $0x470] sm:$0xff] }
 0x145   :  { %3534 = vmatprep.mubr.bf16.mxu1 %v3665_v21  ;;  %v3689_v45 = vcombine.high %v98_v32, %v110_v19  ;;  %v3688_v49 = vcombine.low %v98_v32, %v110_v19  ;;  %v145_v21 = vld [vmem:[%s6259_s0 + $0x410] sm:$0xff] }
 0x146   :  { %v6018_v11 = vadd.f32 %v4161_v26, %v2748_v28  ;;  %v4104_v31 = vpop.f32.mrb[40].mxu0 }
 0x147   :  { %v4162_v33 = vpop.f32.mrb[40].mxu1  ;;  %v4105_v35 = vpop.f32.mrb[41].mxu0 }
 0x148   :  { %v4106_v37 = vadd.f32 %v4105_v35, %v4104_v31  ;;  %v4163_v38 = vpop.f32.mrb[41].mxu1  ;;  %v4107_v39 = vpop.f32.mrb[42].mxu0 }
 0x149   :  { %v4164_v41 = vadd.f32 %v4163_v38, %v4162_v33  ;;  %v4165_v43 = vpop.f32.mrb[42].mxu1  ;;  %v4108_v44 = vpop.f32.mrb[43].mxu0  ;;  %v3735_v33 = vcombine.high %v145_v21, %v157_v22 }
 0x14a   :  { %v2753_v47 = vadd.f32 %v4106_v37, %v5860_v46  ;;  %v4109_v50 = vadd.f32 %v4108_v44, %v4107_v39  ;;  %v4166_v51 = vpop.f32.mrb[43].mxu1 }
 0x14b   :  { %v4167_v54 = vadd.f32 %v4166_v51, %v4165_v43  ;;  %3447 = vmatmul.mubr.bf16.gmra.mrb[148].mxu0 %v3662_v36 }
 0x14c   :  { %v6027_v55 = vadd.f32 %v4164_v41, %v2753_v47  ;;  %v2756_v56 = vadd.f32 %v4109_v50, %v5881_v53  ;;  %3535 = vmatmul.mubr.bf16.gmra.mrb[148].mxu1 %v3664_v16  ;;  %3454 = vmatprep.mubr.bf16.mxu0 %v3687_v40  ;;  %v134_v53 = vld [vmem:[%s6259_s0 + $0x3b8] sm:$0xff] }
 0x14d   :  { %3542 = vmatprep.mubr.bf16.mxu1 %v3689_v45  ;;  %v3713_v10 = vcombine.high %v122_v60, %v134_v53  ;;  %v3712_v19 = vcombine.low %v122_v60, %v134_v53  ;;  %v169_v45 = vld [vmem:[%s6259_s0 + $0x4d0] sm:$0x11] }
 0x14e   :  { %v6036_v46 = vadd.f32 %v4167_v54, %v2756_v56  ;;  %v4110_v59 = vpop.f32.mrb[44].mxu0  ;;  %v3734_v56 = vcombine.low %v145_v21, %v157_v22  ;;  %v3759_v60 = vcombine.high %v169_v45, %v169_v45 }
 0x14f   :  { %v4168_v61 = vpop.f32.mrb[44].mxu1  ;;  %v4111_v0 = vpop.f32.mrb[45].mxu0 }
 0x150   :  { %v4112_v2 = vadd.f32 %v4111_v0, %v4110_v59  ;;  %v4169_v3 = vpop.f32.mrb[45].mxu1  ;;  %v4113_v4 = vpop.f32.mrb[46].mxu0 }
 0x151   :  { %v4170_v6 = vadd.f32 %v4169_v3, %v4168_v61  ;;  %v4171_v8 = vpop.f32.mrb[46].mxu1  ;;  %v4114_v9 = vpop.f32.mrb[47].mxu0 }
 0x152   :  { %v2761_v62 = vadd.f32 %v4112_v2, %v5918_v20  ;;  %v4115_v12 = vadd.f32 %v4114_v9, %v4113_v4  ;;  %v4172_v13 = vpop.f32.mrb[47].mxu1 }
 0x153   :  { %v4173_v15 = vadd.f32 %v4172_v13, %v4171_v8  ;;  %3455 = vmatmul.mubr.bf16.gmra.mrb[152].mxu0 %v3686_v1  ;;  %v3758_v8 = vcombine.low %v169_v45, %v169_v45 }
 0x154   :  { %v6045_v17 = vadd.f32 %v4170_v6, %v2761_v62  ;;  %v2764_v18 = vadd.f32 %v4115_v12, %v5930_v25  ;;  %3543 = vmatmul.mubr.bf16.gmra.mrb[152].mxu1 %v3688_v49  ;;  %3462 = vmatprep.mubr.bf16.mxu0 %v3711_v5  ;;  %v158_v25 = vld [vmem:[%s6259_s0 + $0x478] sm:$0xff] }
 0x155   :  { %3550 = vmatprep.mubr.bf16.mxu1 %v3713_v10  ;;  %v3737_v38 = vcombine.high %v146_v24, %v158_v25  ;;  %v3736_v59 = vcombine.low %v146_v24, %v158_v25 }
 0x156   :  { %v6054_v20 = vadd.f32 %v4173_v15, %v2764_v18  ;;  %v4116_v23 = vpop.f32.mrb[48].mxu0 }
 0x157   :  { %v4174_v26 = vpop.f32.mrb[48].mxu1  ;;  %v4117_v28 = vpop.f32.mrb[49].mxu0 }
 0x158   :  { %v4118_v30 = vadd.f32 %v4117_v28, %v4116_v23  ;;  %v4175_v31 = vpop.f32.mrb[49].mxu1  ;;  %v4119_v32 = vpop.f32.mrb[50].mxu0 }
 0x159   :  { %v4176_v35 = vadd.f32 %v4175_v31, %v4174_v26  ;;  %v4177_v36 = vpop.f32.mrb[50].mxu1  ;;  %v4120_v37 = vpop.f32.mrb[51].mxu0 }
 0x15a   :  { %v2769_v39 = vadd.f32 %v4118_v30, %v5946_v48  ;;  %v4121_v16 = vadd.f32 %v4120_v37, %v4119_v32  ;;  %v4178_v40 = vpop.f32.mrb[51].mxu1  ;;  %v170_v48 = vld [vmem:[%s6259_s0 + $0x4d8] sm:$0x11] }
 0x15b   :  { %v4179_v41 = vadd.f32 %v4178_v40, %v4177_v36  ;;  %3463 = vmatmul.mubr.bf16.gmra.mrb[156].mxu0 %v3710_v29  ;;  %v3761_v1 = vcombine.high %v170_v48, %v170_v48  ;;  %v3760_v12 = vcombine.low %v170_v48, %v170_v48 }
 0x15c   :  { %v6063_v43 = vadd.f32 %v4176_v35, %v2769_v39  ;;  %v2772_v44 = vadd.f32 %v4121_v16, %v5952_v52  ;;  %3551 = vmatmul.mubr.bf16.gmra.mrb[156].mxu1 %v3712_v19  ;;  %3470 = vmatprep.mubr.bf16.mxu0 %v3735_v33 }
 0x15d   :  { %3558 = vmatprep.mubr.bf16.mxu1 %v3737_v38 }
 0x15e   :  { %v6069_v47 = vadd.f32 %v4179_v41, %v2772_v44  ;;  %v4122_v50 = vpop.f32.mrb[52].mxu0 }
 0x15f   :  { %v4180_v51 = vpop.f32.mrb[52].mxu1  ;;  %v4123_v54 = vpop.f32.mrb[53].mxu0 }
 0x160   :  { %v4124_v57 = vadd.f32 %v4123_v54, %v4122_v50  ;;  %v4181_v58 = vpop.f32.mrb[53].mxu1  ;;  %v4125_v52 = vpop.f32.mrb[54].mxu0 }
 0x161   :  { %v4182_v53 = vadd.f32 %v4181_v58, %v4180_v51  ;;  %v4183_v61 = vpop.f32.mrb[54].mxu1  ;;  %v4126_v0 = vpop.f32.mrb[55].mxu0 }
 0x162   :  { %v2777_v2 = vadd.f32 %v4124_v57, %v5958_v7  ;;  %v4184_v3 = vpop.f32.mrb[55].mxu1 }
 0x163   :  { %3471 = vmatmul.mubr.bf16.gmra.mrb[160].mxu0 %v3734_v56 }
 0x164   :  { %v6075_v4 = vadd.f32 %v4182_v53, %v2777_v2  ;;  %3559 = vmatmul.mubr.bf16.gmra.mrb[160].mxu1 %v3736_v59  ;;  %3478 = vmatprep.mubr.bf16.mxu0 %v3759_v60 }
 0x165   :  { %3566 = vmatprep.mubr.bf16.mxu1 %v3761_v1 }
 0x166   :  { %v4202_v49 = vpop.f32.mrb[56].mxu0 }
 0x167   :  { %v4260_v5 = vpop.f32.mrb[56].mxu1  ;;  %v4203_v6 = vpop.f32.mrb[57].mxu0 }
 0x168   :  { %v4204_v9 = vadd.f32 %v4203_v6, %v4202_v49  ;;  %v4261_v10 = vpop.f32.mrb[57].mxu1  ;;  %v4205_v62 = vpop.f32.mrb[58].mxu0 }
 0x169   :  { %v4262_v13 = vadd.f32 %v4261_v10, %v4260_v5  ;;  %v4263_v15 = vpop.f32.mrb[58].mxu1  ;;  %v4206_v18 = vpop.f32.mrb[59].mxu0 }
 0x16a   :  { %v2905_v7 = vadd.f32 %v4204_v9, %v5973_v34  ;;  %v4207_v21 = vadd.f32 %v4206_v18, %v4205_v62  ;;  %v4264_v22 = vpop.f32.mrb[59].mxu1 }
 0x16b   :  { %v4265_v23 = vadd.f32 %v4264_v22, %v4263_v15  ;;  %3479 = vmatmul.mubr.bf16.gmra.mrb[164].mxu0 %v3758_v8 }
 0x16c   :  { %v6078_v24 = vadd.f32 %v4262_v13, %v2905_v7  ;;  %v2908_v25 = vadd.f32 %v4207_v21, %v5982_v14  ;;  %3567 = vmatmul.mubr.bf16.gmra.mrb[164].mxu1 %v3760_v12 }
 0x16e   :  { %v6081_v26 = vadd.f32 %v4265_v23, %v2908_v25  ;;  %v4208_v28 = vpop.f32.mrb[60].mxu0 }
 0x16f   :  { %v4266_v29 = vpop.f32.mrb[60].mxu1  ;;  %v4209_v30 = vpop.f32.mrb[61].mxu0 }
 0x170   :  { %v4210_v31 = vadd.f32 %v4209_v30, %v4208_v28  ;;  %v4267_v32 = vpop.f32.mrb[61].mxu1  ;;  %v4211_v19 = vpop.f32.mrb[62].mxu0 }
 0x171   :  { %v4268_v33 = vadd.f32 %v4267_v32, %v4266_v29  ;;  %v4269_v35 = vpop.f32.mrb[62].mxu1  ;;  %v4212_v34 = vpop.f32.mrb[63].mxu0 }
 0x172   :  { %v2913_v36 = vadd.f32 %v4210_v31, %v5991_v63  ;;  %v4213_v37 = vadd.f32 %v4212_v34, %v4211_v19  ;;  %v4270_v38 = vpop.f32.mrb[63].mxu1 }
 0x173   :  { %v4271_v39 = vadd.f32 %v4270_v38, %v4269_v35 }
 0x174   :  { %v6084_v16 = vadd.f32 %v4268_v33, %v2913_v36  ;;  %v2916_v14 = vadd.f32 %v4213_v37, %v6000_v42 }
 0x176   :  { %v6087_v40 = vadd.f32 %v4271_v39, %v2916_v14  ;;  %v4214_v41 = vpop.f32.mrb[64].mxu0 }
 0x177   :  { %v4272_v44 = vpop.f32.mrb[64].mxu1  ;;  %v4215_v45 = vpop.f32.mrb[65].mxu0 }
 0x178   :  { %v4216_v50 = vadd.f32 %v4215_v45, %v4214_v41  ;;  %v4273_v48 = vpop.f32.mrb[65].mxu1  ;;  %v4217_v51 = vpop.f32.mrb[66].mxu0 }
 0x179   :  { %v4274_v54 = vadd.f32 %v4273_v48, %v4272_v44  ;;  %v4275_v56 = vpop.f32.mrb[66].mxu1  ;;  %v4218_v57 = vpop.f32.mrb[67].mxu0 }
 0x17a   :  { %v2921_v63 = vadd.f32 %v4216_v50, %v6009_v27  ;;  %v4219_v58 = vadd.f32 %v4218_v57, %v4217_v51  ;;  %v4276_v52 = vpop.f32.mrb[67].mxu1 }
 0x17b   :  { %v4277_v59 = vadd.f32 %v4276_v52, %v4275_v56 }
 0x17c   :  { %v6090_v60 = vadd.f32 %v4274_v54, %v2921_v63  ;;  %v2924_v42 = vadd.f32 %v4219_v58, %v6018_v11 }
 0x17e   :  { %v6093_v53 = vadd.f32 %v4277_v59, %v2924_v42  ;;  %v4220_v61 = vpop.f32.mrb[68].mxu0 }
 0x17f   :  { %v4278_v0 = vpop.f32.mrb[68].mxu1  ;;  %v4221_v1 = vpop.f32.mrb[69].mxu0 }
 0x180   :  { %v4222_v2 = vadd.f32 %v4221_v1, %v4220_v61  ;;  %v4279_v3 = vpop.f32.mrb[69].mxu1  ;;  %v4223_v49 = vpop.f32.mrb[70].mxu0 }
 0x181   :  { %v4280_v5 = vadd.f32 %v4279_v3, %v4278_v0  ;;  %v4281_v6 = vpop.f32.mrb[70].mxu1  ;;  %v4224_v8 = vpop.f32.mrb[71].mxu0 }
 0x182   :  { %v2929_v27 = vadd.f32 %v4222_v2, %v6027_v55  ;;  %v4225_v9 = vadd.f32 %v4224_v8, %v4223_v49  ;;  %v4282_v10 = vpop.f32.mrb[71].mxu1 }
 0x183   :  { %v4283_v62 = vadd.f32 %v4282_v10, %v4281_v6 }
 0x184   :  { %v6096_v12 = vadd.f32 %v4280_v5, %v2929_v27  ;;  %v2932_v11 = vadd.f32 %v4225_v9, %v6036_v46 }
 0x186   :  { %v6099_v13 = vadd.f32 %v4283_v62, %v2932_v11  ;;  %v4226_v15 = vpop.f32.mrb[72].mxu0 }
 0x187   :  { %v4284_v18 = vpop.f32.mrb[72].mxu1  ;;  %v4227_v7 = vpop.f32.mrb[73].mxu0 }
 0x188   :  { %v4228_v21 = vadd.f32 %v4227_v7, %v4226_v15  ;;  %v4285_v22 = vpop.f32.mrb[73].mxu1  ;;  %v4229_v23 = vpop.f32.mrb[74].mxu0 }
 0x189   :  { %v4286_v25 = vadd.f32 %v4285_v22, %v4284_v18  ;;  %v4287_v28 = vpop.f32.mrb[74].mxu1  ;;  %v4230_v29 = vpop.f32.mrb[75].mxu0 }
 0x18a   :  { %v2937_v55 = vadd.f32 %v4228_v21, %v6045_v17  ;;  %v4231_v30 = vadd.f32 %v4230_v29, %v4229_v23  ;;  %v4288_v31 = vpop.f32.mrb[75].mxu1 }
 0x18b   :  { %v4289_v32 = vadd.f32 %v4288_v31, %v4287_v28 }
 0x18c   :  { %v6102_v19 = vadd.f32 %v4286_v25, %v2937_v55  ;;  %v2940_v46 = vadd.f32 %v4231_v30, %v6054_v20 }
 0x18e   :  { %v6105_v33 = vadd.f32 %v4289_v32, %v2940_v46  ;;  %v4232_v35 = vpop.f32.mrb[76].mxu0 }
 0x18f   :  { %v4290_v34 = vpop.f32.mrb[76].mxu1  ;;  %v4233_v36 = vpop.f32.mrb[77].mxu0 }
 0x190   :  { %v4234_v37 = vadd.f32 %v4233_v36, %v4232_v35  ;;  %v4291_v38 = vpop.f32.mrb[77].mxu1  ;;  %v4235_v39 = vpop.f32.mrb[78].mxu0 }
 0x191   :  { %v4292_v14 = vadd.f32 %v4291_v38, %v4290_v34  ;;  %v4293_v41 = vpop.f32.mrb[78].mxu1  ;;  %v4236_v44 = vpop.f32.mrb[79].mxu0 }
 0x192   :  { %v2945_v17 = vadd.f32 %v4234_v37, %v6063_v43  ;;  %v4237_v45 = vadd.f32 %v4236_v44, %v4235_v39  ;;  %v4294_v50 = vpop.f32.mrb[79].mxu1 }
 0x193   :  { %v4295_v48 = vadd.f32 %v4294_v50, %v4293_v41 }
 0x194   :  { %v6108_v51 = vadd.f32 %v4292_v14, %v2945_v17  ;;  %v2948_v20 = vadd.f32 %v4237_v45, %v6069_v47 }
 0x196   :  { %v6111_v54 = vadd.f32 %v4295_v48, %v2948_v20  ;;  %v4238_v56 = vpop.f32.mrb[80].mxu0 }
 0x197   :  { %v4296_v57 = vpop.f32.mrb[80].mxu1  ;;  %v4239_v63 = vpop.f32.mrb[81].mxu0 }
 0x198   :  { %v4240_v58 = vadd.f32 %v4239_v63, %v4238_v56  ;;  %v4297_v52 = vpop.f32.mrb[81].mxu1  ;;  %v4241_v59 = vpop.f32.mrb[82].mxu0 }
 0x199   :  { %v4298_v42 = vadd.f32 %v4297_v52, %v4296_v57  ;;  %v4299_v61 = vpop.f32.mrb[82].mxu1  ;;  %v4242_v0 = vpop.f32.mrb[83].mxu0 }
 0x19a   :  { %v2953_v43 = vadd.f32 %v4240_v58, %v6075_v4  ;;  %v4300_v1 = vpop.f32.mrb[83].mxu1 }
 0x19c   :  { %v6114_v2 = vadd.f32 %v4298_v42, %v2953_v43 }
 0x19e   :  { %v4318_v3 = vpop.f32.mrb[84].mxu0 }
 0x19f   :  { %v4376_v49 = vpop.f32.mrb[84].mxu1  ;;  %v4319_v5 = vpop.f32.mrb[85].mxu0 }
 0x1a0   :  { %v4320_v47 = vadd.f32 %v4319_v5, %v4318_v3  ;;  %v4377_v6 = vpop.f32.mrb[85].mxu1  ;;  %v4321_v8 = vpop.f32.mrb[86].mxu0 }
 0x1a1   :  { %v4378_v27 = vadd.f32 %v4377_v6, %v4376_v49  ;;  %v4379_v9 = vpop.f32.mrb[86].mxu1  ;;  %v4322_v10 = vpop.f32.mrb[87].mxu0 }
 0x1a2   :  { %v3081_v62 = vadd.f32 %v4320_v47, %v6078_v24  ;;  %v4323_v11 = vadd.f32 %v4322_v10, %v4321_v8  ;;  %v4380_v15 = vpop.f32.mrb[87].mxu1 }
 0x1a3   :  { %v4381_v18 = vadd.f32 %v4380_v15, %v4379_v9 }
 0x1a4   :  { %v6117_v7 = vadd.f32 %v4378_v27, %v3081_v62  ;;  %v3084_v4 = vadd.f32 %v4323_v11, %v6081_v26 }
 0x1a6   :  { %v6120_v21 = vadd.f32 %v4381_v18, %v3084_v4  ;;  %v4324_v22 = vpop.f32.mrb[88].mxu0 }
 0x1a7   :  { %v4382_v23 = vpop.f32.mrb[88].mxu1  ;;  %v4325_v25 = vpop.f32.mrb[89].mxu0 }
 0x1a8   :  { %v4326_v28 = vadd.f32 %v4325_v25, %v4324_v22  ;;  %v4383_v29 = vpop.f32.mrb[89].mxu1  ;;  %v4327_v55 = vpop.f32.mrb[90].mxu0 }
 0x1a9   :  { %v4384_v30 = vadd.f32 %v4383_v29, %v4382_v23  ;;  %v4385_v31 = vpop.f32.mrb[90].mxu1  ;;  %v4328_v32 = vpop.f32.mrb[91].mxu0 }
 0x1aa   :  { %v3089_v24 = vadd.f32 %v4326_v28, %v6084_v16  ;;  %v4329_v46 = vadd.f32 %v4328_v32, %v4327_v55  ;;  %v4386_v35 = vpop.f32.mrb[91].mxu1 }
 0x1ab   :  { %v4387_v34 = vadd.f32 %v4386_v35, %v4385_v31 }
 0x1ac   :  { %v6123_v36 = vadd.f32 %v4384_v30, %v3089_v24  ;;  %v3092_v26 = vadd.f32 %v4329_v46, %v6087_v40 }
 0x1ae   :  { %v6126_v37 = vadd.f32 %v4387_v34, %v3092_v26  ;;  %v4330_v38 = vpop.f32.mrb[92].mxu0 }
 0x1af   :  { %v4388_v39 = vpop.f32.mrb[92].mxu1  ;;  %v4331_v14 = vpop.f32.mrb[93].mxu0 }
 0x1b0   :  { %v4332_v41 = vadd.f32 %v4331_v14, %v4330_v38  ;;  %v4389_v44 = vpop.f32.mrb[93].mxu1  ;;  %v4333_v17 = vpop.f32.mrb[94].mxu0 }
 0x1b1   :  { %v4390_v45 = vadd.f32 %v4389_v44, %v4388_v39  ;;  %v4391_v50 = vpop.f32.mrb[94].mxu1  ;;  %v4334_v48 = vpop.f32.mrb[95].mxu0 }
 0x1b2   :  { %v3097_v16 = vadd.f32 %v4332_v41, %v6090_v60  ;;  %v4335_v20 = vadd.f32 %v4334_v48, %v4333_v17  ;;  %v4392_v56 = vpop.f32.mrb[95].mxu1 }
 0x1b3   :  { %v4393_v57 = vadd.f32 %v4392_v56, %v4391_v50 }
 0x1b4   :  { %v6129_v63 = vadd.f32 %v4390_v45, %v3097_v16  ;;  %v3100_v40 = vadd.f32 %v4335_v20, %v6093_v53 }
 0x1b6   :  { %v6132_v58 = vadd.f32 %v4393_v57, %v3100_v40  ;;  %v4336_v52 = vpop.f32.mrb[96].mxu0 }
 0x1b7   :  { %v4394_v59 = vpop.f32.mrb[96].mxu1  ;;  %v4337_v42 = vpop.f32.mrb[97].mxu0 }
 0x1b8   :  { %v4338_v61 = vadd.f32 %v4337_v42, %v4336_v52  ;;  %v4395_v0 = vpop.f32.mrb[97].mxu1  ;;  %v4339_v43 = vpop.f32.mrb[98].mxu0 }
 0x1b9   :  { %v4396_v1 = vadd.f32 %v4395_v0, %v4394_v59  ;;  %v4397_v3 = vpop.f32.mrb[98].mxu1  ;;  %v4340_v49 = vpop.f32.mrb[99].mxu0 }
 0x1ba   :  { %v3105_v60 = vadd.f32 %v4338_v61, %v6096_v12  ;;  %v4341_v5 = vadd.f32 %v4340_v49, %v4339_v43  ;;  %v4398_v47 = vpop.f32.mrb[99].mxu1 }
 0x1bb   :  { %v4399_v6 = vadd.f32 %v4398_v47, %v4397_v3 }
 0x1bc   :  { %v6135_v8 = vadd.f32 %v4396_v1, %v3105_v60  ;;  %v3108_v53 = vadd.f32 %v4341_v5, %v6099_v13 }
 0x1be   :  { %v6138_v27 = vadd.f32 %v4399_v6, %v3108_v53  ;;  %v4342_v9 = vpop.f32.mrb[100].mxu0 }
 0x1bf   :  { %v4400_v10 = vpop.f32.mrb[100].mxu1  ;;  %v4343_v62 = vpop.f32.mrb[101].mxu0 }
 0x1c0   :  { %v4344_v11 = vadd.f32 %v4343_v62, %v4342_v9  ;;  %v4401_v15 = vpop.f32.mrb[101].mxu1  ;;  %v4345_v18 = vpop.f32.mrb[102].mxu0 }
 0x1c1   :  { %v4402_v4 = vadd.f32 %v4401_v15, %v4400_v10  ;;  %v4403_v22 = vpop.f32.mrb[102].mxu1  ;;  %v4346_v23 = vpop.f32.mrb[103].mxu0 }
 0x1c2   :  { %v3113_v12 = vadd.f32 %v4344_v11, %v6102_v19  ;;  %v4347_v25 = vadd.f32 %v4346_v23, %v4345_v18  ;;  %v4404_v28 = vpop.f32.mrb[103].mxu1 }
 0x1c3   :  { %v4405_v29 = vadd.f32 %v4404_v28, %v4403_v22 }
 0x1c4   :  { %v6141_v55 = vadd.f32 %v4402_v4, %v3113_v12  ;;  %v3116_v13 = vadd.f32 %v4347_v25, %v6105_v33 }
 0x1c6   :  { %v6144_v30 = vadd.f32 %v4405_v29, %v3116_v13  ;;  %v4348_v31 = vpop.f32.mrb[104].mxu0 }
 0x1c7   :  { %v4406_v32 = vpop.f32.mrb[104].mxu1  ;;  %v4349_v24 = vpop.f32.mrb[105].mxu0 }
 0x1c8   :  { %v4350_v46 = vadd.f32 %v4349_v24, %v4348_v31  ;;  %v4407_v35 = vpop.f32.mrb[105].mxu1  ;;  %v4351_v34 = vpop.f32.mrb[106].mxu0 }
 0x1c9   :  { %v4408_v26 = vadd.f32 %v4407_v35, %v4406_v32  ;;  %v4409_v38 = vpop.f32.mrb[106].mxu1  ;;  %v4352_v39 = vpop.f32.mrb[107].mxu0 }
 0x1ca   :  { %v3121_v19 = vadd.f32 %v4350_v46, %v6108_v51  ;;  %v4353_v14 = vadd.f32 %v4352_v39, %v4351_v34  ;;  %v4410_v41 = vpop.f32.mrb[107].mxu1 }
 0x1cb   :  { %v4411_v44 = vadd.f32 %v4410_v41, %v4409_v38 }
 0x1cc   :  { %v6147_v17 = vadd.f32 %v4408_v26, %v3121_v19  ;;  %v3124_v33 = vadd.f32 %v4353_v14, %v6111_v54 }
 0x1ce   :  { %v6150_v45 = vadd.f32 %v4411_v44, %v3124_v33  ;;  %v4354_v50 = vpop.f32.mrb[108].mxu0 }
 0x1cf   :  { %v4412_v48 = vpop.f32.mrb[108].mxu1  ;;  %v4355_v16 = vpop.f32.mrb[109].mxu0 }
 0x1d0   :  { %v4356_v20 = vadd.f32 %v4355_v16, %v4354_v50  ;;  %v4413_v56 = vpop.f32.mrb[109].mxu1  ;;  %v4357_v57 = vpop.f32.mrb[110].mxu0 }
 0x1d1   :  { %v4414_v40 = vadd.f32 %v4413_v56, %v4412_v48  ;;  %v4415_v52 = vpop.f32.mrb[110].mxu1  ;;  %v4358_v59 = vpop.f32.mrb[111].mxu0 }
 0x1d2   :  { %v3129_v51 = vadd.f32 %v4356_v20, %v6114_v2  ;;  %v4416_v42 = vpop.f32.mrb[111].mxu1 }
 0x1d4   :  { %v6153_v61 = vadd.f32 %v4414_v40, %v3129_v51 }
 0x1d6   :  { %v4434_v0 = vpop.f32.mrb[112].mxu0 }
 0x1d7   :  { %v4492_v43 = vpop.f32.mrb[112].mxu1  ;;  %v4435_v1 = vpop.f32.mrb[113].mxu0 }
 0x1d8   :  { %v4436_v54 = vadd.f32 %v4435_v1, %v4434_v0  ;;  %v4493_v3 = vpop.f32.mrb[113].mxu1  ;;  %v4437_v49 = vpop.f32.mrb[114].mxu0 }
 0x1d9   :  { %v4494_v60 = vadd.f32 %v4493_v3, %v4492_v43  ;;  %v4495_v5 = vpop.f32.mrb[114].mxu1  ;;  %v4438_v47 = vpop.f32.mrb[115].mxu0 }
 0x1da   :  { %v3257_v6 = vadd.f32 %v4436_v54, %v6117_v7  ;;  %v4439_v53 = vadd.f32 %v4438_v47, %v4437_v49  ;;  %v4496_v9 = vpop.f32.mrb[115].mxu1 }
 0x1db   :  { %v4497_v10 = vadd.f32 %v4496_v9, %v4495_v5 }
 0x1dc   :  { %v6156_v62 = vadd.f32 %v4494_v60, %v3257_v6  ;;  %v3260_v2 = vadd.f32 %v4439_v53, %v6120_v21 }
 0x1de   :  { %v6159_v11 = vadd.f32 %v4497_v10, %v3260_v2  ;;  %v4440_v15 = vpop.f32.mrb[116].mxu0 }
 0x1df   :  { %v4498_v18 = vpop.f32.mrb[116].mxu1  ;;  %v4441_v4 = vpop.f32.mrb[117].mxu0 }
 0x1e0   :  { %v4442_v22 = vadd.f32 %v4441_v4, %v4440_v15  ;;  %v4499_v23 = vpop.f32.mrb[117].mxu1  ;;  %v4443_v12 = vpop.f32.mrb[118].mxu0 }
 0x1e1   :  { %v4500_v25 = vadd.f32 %v4499_v23, %v4498_v18  ;;  %v4501_v28 = vpop.f32.mrb[118].mxu1  ;;  %v4444_v29 = vpop.f32.mrb[119].mxu0 }
 0x1e2   :  { %v3265_v7 = vadd.f32 %v4442_v22, %v6123_v36  ;;  %v4445_v13 = vadd.f32 %v4444_v29, %v4443_v12  ;;  %v4502_v31 = vpop.f32.mrb[119].mxu1 }
 0x1e3   :  { %v4503_v32 = vadd.f32 %v4502_v31, %v4501_v28 }
 0x1e4   :  { %v6162_v24 = vadd.f32 %v4500_v25, %v3265_v7  ;;  %v3268_v21 = vadd.f32 %v4445_v13, %v6126_v37 }
 0x1e6   :  { %v6165_v46 = vadd.f32 %v4503_v32, %v3268_v21  ;;  %v4446_v35 = vpop.f32.mrb[120].mxu0 }
 0x1e7   :  { %v4504_v34 = vpop.f32.mrb[120].mxu1  ;;  %v4447_v26 = vpop.f32.mrb[121].mxu0 }
 0x1e8   :  { %v4448_v38 = vadd.f32 %v4447_v26, %v4446_v35  ;;  %v4505_v39 = vpop.f32.mrb[121].mxu1  ;;  %v4449_v19 = vpop.f32.mrb[122].mxu0 }
 0x1e9   :  { %v4506_v14 = vadd.f32 %v4505_v39, %v4504_v34  ;;  %v4507_v41 = vpop.f32.mrb[122].mxu1  ;;  %v4450_v44 = vpop.f32.mrb[123].mxu0 }
 0x1ea   :  { %v3273_v36 = vadd.f32 %v4448_v38, %v6129_v63  ;;  %v4451_v33 = vadd.f32 %v4450_v44, %v4449_v19  ;;  %v4508_v50 = vpop.f32.mrb[123].mxu1 }
 0x1eb   :  { %v4509_v48 = vadd.f32 %v4508_v50, %v4507_v41 }
 0x1ec   :  { %v6168_v16 = vadd.f32 %v4506_v14, %v3273_v36  ;;  %v3276_v37 = vadd.f32 %v4451_v33, %v6132_v58 }
 0x1ee   :  { %v6171_v20 = vadd.f32 %v4509_v48, %v3276_v37  ;;  %v4452_v56 = vpop.f32.mrb[124].mxu0 }
 0x1ef   :  { %v4510_v57 = vpop.f32.mrb[124].mxu1  ;;  %v4453_v40 = vpop.f32.mrb[125].mxu0 }
 0x1f0   :  { %v4454_v52 = vadd.f32 %v4453_v40, %v4452_v56  ;;  %v4511_v59 = vpop.f32.mrb[125].mxu1  ;;  %v4455_v51 = vpop.f32.mrb[126].mxu0 }
 0x1f1   :  { %v4512_v42 = vadd.f32 %v4511_v59, %v4510_v57  ;;  %v4513_v0 = vpop.f32.mrb[126].mxu1  ;;  %v4456_v43 = vpop.f32.mrb[127].mxu0 }
 0x1f2   :  { %v3281_v63 = vadd.f32 %v4454_v52, %v6135_v8  ;;  %v4457_v1 = vadd.f32 %v4456_v43, %v4455_v51  ;;  %v4514_v54 = vpop.f32.mrb[127].mxu1 }
 0x1f3   :  { %v4515_v3 = vadd.f32 %v4514_v54, %v4513_v0 }
 0x1f4   :  { %v6174_v49 = vadd.f32 %v4512_v42, %v3281_v63  ;;  %v3284_v58 = vadd.f32 %v4457_v1, %v6138_v27 }
 0x1f6   :  { %v6177_v60 = vadd.f32 %v4515_v3, %v3284_v58  ;;  %v4458_v5 = vpop.f32.mrb[128].mxu0 }
 0x1f7   :  { %v4516_v47 = vpop.f32.mrb[128].mxu1  ;;  %v4459_v6 = vpop.f32.mrb[129].mxu0 }
 0x1f8   :  { %v4460_v53 = vadd.f32 %v4459_v6, %v4458_v5  ;;  %v4517_v9 = vpop.f32.mrb[129].mxu1  ;;  %v4461_v10 = vpop.f32.mrb[130].mxu0 }
 0x1f9   :  { %v4518_v2 = vadd.f32 %v4517_v9, %v4516_v47  ;;  %v4519_v15 = vpop.f32.mrb[130].mxu1  ;;  %v4462_v18 = vpop.f32.mrb[131].mxu0 }
 0x1fa   :  { %v3289_v8 = vadd.f32 %v4460_v53, %v6141_v55  ;;  %v4463_v4 = vadd.f32 %v4462_v18, %v4461_v10  ;;  %v4520_v22 = vpop.f32.mrb[131].mxu1 }
 0x1fb   :  { %v4521_v23 = vadd.f32 %v4520_v22, %v4519_v15 }
 0x1fc   :  { %v6180_v12 = vadd.f32 %v4518_v2, %v3289_v8  ;;  %v3292_v27 = vadd.f32 %v4463_v4, %v6144_v30 }
 0x1fe   :  { %v6183_v25 = vadd.f32 %v4521_v23, %v3292_v27  ;;  %v4464_v28 = vpop.f32.mrb[132].mxu0 }
 0x1ff   :  { %v4522_v29 = vpop.f32.mrb[132].mxu1  ;;  %v4465_v7 = vpop.f32.mrb[133].mxu0 }
 0x200   :  { %v4466_v13 = vadd.f32 %v4465_v7, %v4464_v28  ;;  %v4523_v31 = vpop.f32.mrb[133].mxu1  ;;  %v4467_v32 = vpop.f32.mrb[134].mxu0 }
 0x201   :  { %v4524_v21 = vadd.f32 %v4523_v31, %v4522_v29  ;;  %v4525_v35 = vpop.f32.mrb[134].mxu1  ;;  %v4468_v34 = vpop.f32.mrb[135].mxu0 }
 0x202   :  { %v3297_v55 = vadd.f32 %v4466_v13, %v6147_v17  ;;  %v4469_v26 = vadd.f32 %v4468_v34, %v4467_v32  ;;  %v4526_v38 = vpop.f32.mrb[135].mxu1 }
 0x203   :  { %v4527_v39 = vadd.f32 %v4526_v38, %v4525_v35 }
 0x204   :  { %v6186_v19 = vadd.f32 %v4524_v21, %v3297_v55  ;;  %v3300_v30 = vadd.f32 %v4469_v26, %v6150_v45 }
 0x206   :  { %v6189_v14 = vadd.f32 %v4527_v39, %v3300_v30  ;;  %v4470_v41 = vpop.f32.mrb[136].mxu0 }
 0x207   :  { %v4528_v44 = vpop.f32.mrb[136].mxu1  ;;  %v4471_v36 = vpop.f32.mrb[137].mxu0 }
 0x208   :  { %v4472_v33 = vadd.f32 %v4471_v36, %v4470_v41  ;;  %v4529_v50 = vpop.f32.mrb[137].mxu1  ;;  %v4473_v48 = vpop.f32.mrb[138].mxu0 }
 0x209   :  { %v4530_v37 = vadd.f32 %v4529_v50, %v4528_v44  ;;  %v4531_v56 = vpop.f32.mrb[138].mxu1  ;;  %v4474_v57 = vpop.f32.mrb[139].mxu0 }
 0x20a   :  { %v3305_v17 = vadd.f32 %v4472_v33, %v6153_v61  ;;  %v4532_v40 = vpop.f32.mrb[139].mxu1 }
 0x20c   :  { %v6192_v52 = vadd.f32 %v4530_v37, %v3305_v17 }
 0x20e   :  { %v4550_v59 = vpop.f32.mrb[140].mxu0 }
 0x20f   :  { %v4608_v51 = vpop.f32.mrb[140].mxu1  ;;  %v4551_v42 = vpop.f32.mrb[141].mxu0 }
 0x210   :  { %v4552_v45 = vadd.f32 %v4551_v42, %v4550_v59  ;;  %v4609_v0 = vpop.f32.mrb[141].mxu1  ;;  %v4553_v43 = vpop.f32.mrb[142].mxu0 }
 0x211   :  { %v4610_v63 = vadd.f32 %v4609_v0, %v4608_v51  ;;  %v4611_v1 = vpop.f32.mrb[142].mxu1  ;;  %v4554_v54 = vpop.f32.mrb[143].mxu0 }
 0x212   :  { %v3433_v3 = vadd.f32 %v4552_v45, %v6156_v62  ;;  %v4555_v58 = vadd.f32 %v4554_v54, %v4553_v43  ;;  %v4612_v5 = vpop.f32.mrb[143].mxu1 }
 0x213   :  { %v4613_v47 = vadd.f32 %v4612_v5, %v4611_v1 }
 0x214   :  { %v3521_v6 = vadd.f32 %v4610_v63, %v3433_v3  ;;  %v3436_v61 = vadd.f32 %v4555_v58, %v6159_v11 }
 0x216   :  { %3575 = vst.msk [vmem:[%s6261_s3] sm:$0xff] %vm3574_vm0, %v3521_v6  ;;  %v3524_v53 = vadd.f32 %v4613_v47, %v3436_v61  ;;  %v4556_v9 = vpop.f32.mrb[144].mxu0 }
 0x217   :  { %v4614_v10 = vpop.f32.mrb[144].mxu1  ;;  %v4557_v2 = vpop.f32.mrb[145].mxu0 }
 0x218   :  { %3576 = vst.msk [vmem:[%s6261_s3 + $0x8] sm:$0xff] %vm3574_vm0, %v3524_v53  ;;  %v4558_v62 = vadd.f32 %v4557_v2, %v4556_v9  ;;  %v4615_v15 = vpop.f32.mrb[145].mxu1  ;;  %v4559_v18 = vpop.f32.mrb[146].mxu0 }
 0x219   :  { %v4616_v8 = vadd.f32 %v4615_v15, %v4614_v10  ;;  %v4617_v4 = vpop.f32.mrb[146].mxu1  ;;  %v4560_v11 = vpop.f32.mrb[147].mxu0 }
 0x21a   :  { %v3441_v22 = vadd.f32 %v4558_v62, %v6162_v24  ;;  %v4561_v23 = vadd.f32 %v4560_v11, %v4559_v18  ;;  %v4618_v27 = vpop.f32.mrb[147].mxu1 }
 0x21b   :  { %v4619_v28 = vadd.f32 %v4618_v27, %v4617_v4 }
 0x21c   :  { %v3529_v29 = vadd.f32 %v4616_v8, %v3441_v22  ;;  %v3444_v7 = vadd.f32 %v4561_v23, %v6165_v46 }
 0x21e   :  { %3577 = vst.msk [vmem:[%s6261_s3 + $0x10] sm:$0xff] %vm3574_vm0, %v3529_v29  ;;  %v3532_v13 = vadd.f32 %v4619_v28, %v3444_v7  ;;  %v4562_v31 = vpop.f32.mrb[148].mxu0 }
 0x21f   :  { %v4620_v32 = vpop.f32.mrb[148].mxu1  ;;  %v4563_v21 = vpop.f32.mrb[149].mxu0 }
 0x220   :  { %3578 = vst.msk [vmem:[%s6261_s3 + $0x18] sm:$0xff] %vm3574_vm0, %v3532_v13  ;;  %v4564_v24 = vadd.f32 %v4563_v21, %v4562_v31  ;;  %v4621_v35 = vpop.f32.mrb[149].mxu1  ;;  %v4565_v34 = vpop.f32.mrb[150].mxu0 }
 0x221   :  { %v4622_v55 = vadd.f32 %v4621_v35, %v4620_v32  ;;  %v4623_v26 = vpop.f32.mrb[150].mxu1  ;;  %v4566_v46 = vpop.f32.mrb[151].mxu0 }
 0x222   :  { %v3449_v38 = vadd.f32 %v4564_v24, %v6168_v16  ;;  %v4567_v39 = vadd.f32 %v4566_v46, %v4565_v34  ;;  %v4624_v30 = vpop.f32.mrb[151].mxu1 }
 0x223   :  { %v4625_v41 = vadd.f32 %v4624_v30, %v4623_v26 }
 0x224   :  { %v3537_v44 = vadd.f32 %v4622_v55, %v3449_v38  ;;  %v3452_v36 = vadd.f32 %v4567_v39, %v6171_v20 }
 0x226   :  { %3579 = vst.msk [vmem:[%s6261_s3 + $0x20] sm:$0xff] %vm3574_vm0, %v3537_v44  ;;  %v3540_v33 = vadd.f32 %v4625_v41, %v3452_v36  ;;  %v4568_v50 = vpop.f32.mrb[152].mxu0 }
 0x227   :  { %v4626_v48 = vpop.f32.mrb[152].mxu1  ;;  %v4569_v37 = vpop.f32.mrb[153].mxu0 }
 0x228   :  { %3580 = vst.msk [vmem:[%s6261_s3 + $0x28] sm:$0xff] %vm3574_vm0, %v3540_v33  ;;  %v4570_v16 = vadd.f32 %v4569_v37, %v4568_v50  ;;  %v4627_v56 = vpop.f32.mrb[153].mxu1  ;;  %v4571_v57 = vpop.f32.mrb[154].mxu0 }
 0x229   :  { %v4628_v17 = vadd.f32 %v4627_v56, %v4626_v48  ;;  %v4629_v40 = vpop.f32.mrb[154].mxu1  ;;  %v4572_v20 = vpop.f32.mrb[155].mxu0 }
 0x22a   :  { %v3457_v59 = vadd.f32 %v4570_v16, %v6174_v49  ;;  %v4573_v51 = vadd.f32 %v4572_v20, %v4571_v57  ;;  %v4630_v42 = vpop.f32.mrb[155].mxu1 }
 0x22b   :  { %v4631_v45 = vadd.f32 %v4630_v42, %v4629_v40 }
 0x22c   :  { %v3545_v0 = vadd.f32 %v4628_v17, %v3457_v59  ;;  %v3460_v43 = vadd.f32 %v4573_v51, %v6177_v60 }
 0x22e   :  { %3581 = vst.msk [vmem:[%s6261_s3 + $0x30] sm:$0xff] %vm3574_vm0, %v3545_v0  ;;  %v3548_v63 = vadd.f32 %v4631_v45, %v3460_v43  ;;  %v4574_v1 = vpop.f32.mrb[156].mxu0 }
 0x22f   :  { %v4632_v54 = vpop.f32.mrb[156].mxu1  ;;  %v4575_v3 = vpop.f32.mrb[157].mxu0 }
 0x230   :  { %3582 = vst.msk [vmem:[%s6261_s3 + $0x38] sm:$0xff] %vm3574_vm0, %v3548_v63  ;;  %v4576_v49 = vadd.f32 %v4575_v3, %v4574_v1  ;;  %v4633_v58 = vpop.f32.mrb[157].mxu1  ;;  %v4577_v5 = vpop.f32.mrb[158].mxu0 }
 0x231   :  { %v4634_v47 = vadd.f32 %v4633_v58, %v4632_v54  ;;  %v4635_v6 = vpop.f32.mrb[158].mxu1  ;;  %v4578_v60 = vpop.f32.mrb[159].mxu0 }
 0x232   :  { %v3465_v61 = vadd.f32 %v4576_v49, %v6180_v12  ;;  %v4579_v53 = vadd.f32 %v4578_v60, %v4577_v5  ;;  %v4636_v9 = vpop.f32.mrb[159].mxu1 }
 0x233   :  { %v4637_v10 = vadd.f32 %v4636_v9, %v4635_v6 }
 0x234   :  { %v3553_v2 = vadd.f32 %v4634_v47, %v3465_v61  ;;  %v3468_v62 = vadd.f32 %v4579_v53, %v6183_v25 }
 0x236   :  { %3583 = vst.msk [vmem:[%s6261_s3 + $0x40] sm:$0xff] %vm3574_vm0, %v3553_v2  ;;  %v3556_v15 = vadd.f32 %v4637_v10, %v3468_v62  ;;  %v4580_v18 = vpop.f32.mrb[160].mxu0 }
 0x237   :  { %v4638_v8 = vpop.f32.mrb[160].mxu1  ;;  %v4581_v4 = vpop.f32.mrb[161].mxu0 }
 0x238   :  { %3584 = vst.msk [vmem:[%s6261_s3 + $0x48] sm:$0xff] %vm3574_vm0, %v3556_v15  ;;  %v4582_v12 = vadd.f32 %v4581_v4, %v4580_v18  ;;  %v4639_v11 = vpop.f32.mrb[161].mxu1  ;;  %v4583_v22 = vpop.f32.mrb[162].mxu0 }
 0x239   :  { %v4640_v23 = vadd.f32 %v4639_v11, %v4638_v8  ;;  %v4641_v27 = vpop.f32.mrb[162].mxu1  ;;  %v4584_v25 = vpop.f32.mrb[163].mxu0 }
 0x23a   :  { %v3473_v28 = vadd.f32 %v4582_v12, %v6186_v19  ;;  %v4585_v29 = vadd.f32 %v4584_v25, %v4583_v22  ;;  %v4642_v7 = vpop.f32.mrb[163].mxu1 }
 0x23b   :  { %v4643_v13 = vadd.f32 %v4642_v7, %v4641_v27 }
 0x23c   :  { %v3561_v31 = vadd.f32 %v4640_v23, %v3473_v28  ;;  %v3476_v32 = vadd.f32 %v4585_v29, %v6189_v14 }
 0x23e   :  { %3585 = vst.msk [vmem:[%s6261_s3 + $0x50] sm:$0xff] %vm3574_vm0, %v3561_v31  ;;  %v3564_v21 = vadd.f32 %v4643_v13, %v3476_v32  ;;  %v4586_v24 = vpop.f32.mrb[164].mxu0 }
 0x23f   :  { %v4644_v35 = vpop.f32.mrb[164].mxu1  ;;  %v4587_v34 = vpop.f32.mrb[165].mxu0 }
 0x240   :  { %3586 = vst.msk [vmem:[%s6261_s3 + $0x58] sm:$0xff] %vm3574_vm0, %v3564_v21  ;;  %v4588_v19 = vadd.f32 %v4587_v34, %v4586_v24  ;;  %v4645_v55 = vpop.f32.mrb[165].mxu1  ;;  %v4589_v26 = vpop.f32.mrb[166].mxu0 }
 0x241   :  { %v4646_v46 = vadd.f32 %v4645_v55, %v4644_v35  ;;  %v4647_v38 = vpop.f32.mrb[166].mxu1  ;;  %v4590_v14 = vpop.f32.mrb[167].mxu0 }
 0x242   :  { %v3481_v39 = vadd.f32 %v4588_v19, %v6192_v52  ;;  %v4648_v30 = vpop.f32.mrb[167].mxu1 }
 0x244   :  { %v3569_v41 = vadd.f32 %v4646_v46, %v3481_v39 }
 0x246   :  { %3588 = vst.msk [vmem:[%s6261_s3 + $0x60] sm:$0x3] %vm3587_vm1, %v3569_v41 }

// kernel: _pallas_forward.17
= control target key start
LH: loop header
LB: loop body
LE: loop exit
PB: predicated region body
PF: predicated region fallthrough
CT: control target
= control target key end

     0   :  { %s709_s18 = smov 0   ;;  %s853_s0 = inlined_call_operand.vmem [shape: f32[128,64], index: 0, kind: input, shape index: {}]   ;;  %s854_s1 = inlined_call_operand.vmem [shape: f32[1,64], index: 1, kind: input, shape index: {}]   ;;  %s855_s2 = inlined_call_operand.vmem [shape: f32[1,64], index: 2, kind: input, shape index: {}]   ;;  %s856_s3 = inlined_call_operand.vmem [shape: bf16[64,192], index: 3, kind: input, shape index: {}]   ;;  %s857_s4 = inlined_call_operand.vmem [shape: f32[1,192], index: 4, kind: input, shape index: {}]   ;;  %s858_s5 = inlined_call_operand.vmem [shape: f32[128,192], index: 5, kind: output, shape index: {}]  }
   0x1 LB: > { %s598_s19 = sadd.s32 4294967295, %s676_s18   ;;  %p602_p0 = scmp.ge.s32.totalorder %s676_s18, 1  ;;  %s676_s18 = sphi %s709_s18, %s15_s18  }
   0x2   : > { %p188_p1 = scmp.lt.s32.totalorder %s676_s18, 3 }
   0x4   : > { %p189_p2 = pnand %p602_p0, %p188_p1 }
   0x5   : > { %s603_s20 = sshll.u32 (!%p189_p2), %s598_s19, 3  ;;  %vm239_vm0 = vcmask (!%p189_p2), 523264   ;;  %v642_v56 = vld [vmem:[%s856_s3 + $0x4] ss:$8 sps:$4 sm:$0xff] (!%p189_p2)   ;;  %v644_v57 = vld [vmem:[%s856_s3] ss:$8 sps:$4 sm:$0xff] (!%p189_p2)  }
   0x6   : > { %192 = sbr.rel (%p189_p2) target bundleno = 566 (0x236), region = 40  ;;  %p218_p3 = scmp.lt.s32.totalorder (!%p189_p2), %s603_s20, 15  ;;  %451 = vmatprep.subr.bf16.mxu0 (!%p189_p2), %v642_v56  ;;  %625 = vmatprep.subr.bf16.mxu1 (!%p189_p2), %v642_v56  ;;  %v645_v58 = vld [vmem:[%s856_s3 + $0x14] ss:$8 sps:$4 sm:$0xff] (!%p189_p2)   ;;  %v647_v59 = vld [vmem:[%s856_s3 + $0x10] ss:$8 sps:$4 sm:$0xff] (!%p189_p2)  }
   0x7   : > { %452 = vmatpush1.bf16.msra.mxu0 (!%p189_p2), %v644_v57  ;;  %629 = vmatpush1.bf16.msra.mxu1 (!%p189_p2), %v644_v57  ;;  %v648_v60 = vld [vmem:[%s856_s3 + $0x24] ss:$8 sps:$4 sm:$0xff] (!%p189_p2)   ;;  %v650_v61 = vld [vmem:[%s856_s3 + $0x20] ss:$8 sps:$4 sm:$0xff] (!%p189_p2)   ;;  %v651_v62 = vld [vmem:[%s856_s3 + $0x34] ss:$8 sps:$4 sm:$0xff] (!%p189_p2)  }
   0x8   : > { %453 = vmatprep.subr.bf16.mxu0 (!%p189_p2), %v645_v58  ;;  %626 = vmatprep.subr.bf16.mxu1 (!%p189_p2), %v645_v58  ;;  %v653_v63 = vld [vmem:[%s856_s3 + $0x30] ss:$8 sps:$4 sm:$0xff] (!%p189_p2)  }
   0xb   : > { %454 = vmatpush1.bf16.msra.mxu0 (!%p189_p2), %v647_v59  ;;  %630 = vmatpush1.bf16.msra.mxu1 (!%p189_p2), %v647_v59 }
   0xc   : > { %455 = vmatprep.subr.bf16.mxu0 (!%p189_p2), %v648_v60  ;;  %627 = vmatprep.subr.bf16.mxu1 (!%p189_p2), %v648_v60 }
   0xd   : > { %s860_s20 = smov (!%p218_p3, %s603_s20), 15 }
   0xe   : > { %s604_s21 = sshll.u32 %s860_s20, 3 }
   0xf   : > { %s221_s24 = scalar_lea.vmem %s853_s0, %s604_s21  ;;  %456 = vmatpush1.bf16.msra.mxu0 %v650_v61  ;;  %631 = vmatpush1.bf16.msra.mxu1 %v650_v61 }
  0x10   : > { %v231_v0 = vld [vmem:[%s221_s24] sm:$0xff]  ;;  %v232_v2 = vld [vmem:[%s221_s24 + $0x8] sm:$0xff]  ;;  %v233_v8 = vld [vmem:[%s221_s24 + $0x10] sm:$0xff]  ;;  %457 = vmatprep.subr.bf16.mxu0 %v651_v62  ;;  %628 = vmatprep.subr.bf16.mxu1 %v651_v62 }
  0x11   : > { %v235_v1 = vld [vmem:[%s221_s24 + $0x20] sm:$0xff]  ;;  %v240_v3 = vsel %vm239_vm0, %v231_v0, 0.0  ;;  %v236_v5 = vld [vmem:[%s221_s24 + $0x28] sm:$0xff]  ;;  %v243_v6 = vsel %vm239_vm0, %v232_v2, 0.0  ;;  %v234_v9 = vld [vmem:[%s221_s24 + $0x18] sm:$0xff]  ;;  %v246_v10 = vsel %vm239_vm0, %v233_v8, 0.0 }
  0x12   : > { %v252_v4 = vsel %vm239_vm0, %v235_v1, 0.0  ;;  %241 = vadd.xlane.f32.xlu0 %v240_v3  ;;  %v255_v7 = vsel %vm239_vm0, %v236_v5, 0.0  ;;  %v249_v11 = vsel %vm239_vm0, %v234_v9, 0.0  ;;  %v237_v12 = vld [vmem:[%s221_s24 + $0x30] sm:$0xff]  ;;  %v238_v13 = vld [vmem:[%s221_s24 + $0x38] sm:$0xff]  ;;  %s624_s24 = sshll.u32 %s860_s20, 4 }
  0x13   : > { %253 = vadd.xlane.f32.xlu1 %v252_v4  ;;  %v258_v14 = vsel %vm239_vm0, %v237_v12, 0.0  ;;  %v261_v15 = vsel %vm239_vm0, %v238_v13, 0.0  ;;  %458 = vmatpush1.bf16.msra.mxu0 %v653_v63  ;;  %s824_s27 = scalar_lea.vmem %s858_s5, %s624_s24 }
  0x14   : > { %632 = vmatpush1.bf16.msra.mxu1 %v653_v63 }
  0x16   : > { %244 = vadd.xlane.f32.xlu0 %v243_v6 }
  0x17   : > { %256 = vadd.xlane.f32.xlu1 %v255_v7 }
  0x1a   : > { %247 = vadd.xlane.f32.xlu0 %v246_v10 }
  0x1b   : > { %250 = vadd.xlane.f32.xlu1 %v249_v11 }
  0x1e   : > { %259 = vadd.xlane.f32.xlu0 %v258_v14 }
  0x1f   : > { %262 = vadd.xlane.f32.xlu1 %v261_v15 }
  0x9f   : > { %v242_v16 = vpop.xlane.xlu0 %241 }
  0xa0   : > { %v254_v17 = vpop.xlane.xlu1 %253  ;;  %v265_v18 = vmul.f32 0.015625, %v242_v16 }
  0xa1   : > { %v269_v19 = vmul.f32 0.015625, %v254_v17 }
  0xa2   : > { %v731_v20 = vsub.f32 %v231_v0, %v265_v18  ;;  %v678_v0 = vmov 0  }
  0xa3   : > { %v733_v21 = vsub.f32 %v235_v1, %v269_v19  ;;  %v245_v22 = vpop.xlane.xlu0 %244  ;;  %483 = vmatprep.mubr.bf16.mxu0 %v678_v0  ;;  %503 = vmatprep.mubr.bf16.mxu1 %v678_v0 }
  0xa4   : > { %v257_v23 = vpop.xlane.xlu1 %256  ;;  %v266_v24 = vmul.f32 0.015625, %v245_v22  ;;  %v281_v26 = vmul.f32 %v731_v20, %v731_v20 }
  0xa5   : > { %v270_v25 = vmul.f32 0.015625, %v257_v23  ;;  %v285_v27 = vmul.f32 %v733_v21, %v733_v21 }
  0xa6   : > { %v739_v28 = vsub.f32 %v232_v2, %v266_v24  ;;  %v289_v30 = vsel %vm239_vm0, %v281_v26, 0.0 }
  0xa7   : > { %v741_v29 = vsub.f32 %v236_v5, %v270_v25  ;;  %290 = vadd.xlane.f32.xlu0 %v289_v30  ;;  %v248_v31 = vpop.xlane.xlu0 %247  ;;  %v301_v33 = vsel %vm239_vm0, %v285_v27, 0.0  ;;  %v608_v30 = vld [vmem:[%s854_s1] ss:$0 sm:$0xff] }
  0xa8   : > { %v251_v32 = vpop.xlane.xlu1 %250  ;;  %v267_v34 = vmul.f32 0.015625, %v248_v31  ;;  %v282_v36 = vmul.f32 %v739_v28, %v739_v28 }
  0xa9   : > { %v268_v35 = vmul.f32 0.015625, %v251_v32  ;;  %v286_v37 = vmul.f32 %v741_v29, %v741_v29 }
  0xaa   : > { %v749_v38 = vsub.f32 %v233_v8, %v267_v34  ;;  %v292_v40 = vsel %vm239_vm0, %v282_v36, 0.0 }
  0xab   : > { %v751_v39 = vsub.f32 %v234_v9, %v268_v35  ;;  %302 = vadd.xlane.f32.xlu0 %v301_v33  ;;  %293 = vadd.xlane.f32.xlu1 %v292_v40  ;;  %v260_v41 = vpop.xlane.xlu0 %259  ;;  %v304_v43 = vsel %vm239_vm0, %v286_v37, 0.0 }
  0xac   : > { %v263_v42 = vpop.xlane.xlu1 %262  ;;  %v271_v44 = vmul.f32 0.015625, %v260_v41  ;;  %v283_v46 = vmul.f32 %v749_v38, %v749_v38 }
  0xad   : > { %v272_v45 = vmul.f32 0.015625, %v263_v42  ;;  %v284_v47 = vmul.f32 %v751_v39, %v751_v39 }
  0xae   : > { %v759_v48 = vsub.f32 %v237_v12, %v271_v44  ;;  %v295_v50 = vsel %vm239_vm0, %v283_v46, 0.0 }
  0xaf   : > { %v761_v49 = vsub.f32 %v238_v13, %v272_v45  ;;  %305 = vadd.xlane.f32.xlu1 %v304_v43  ;;  %296 = vadd.xlane.f32.xlu0 %v295_v50  ;;  %v298_v51 = vsel %vm239_vm0, %v284_v47, 0.0 }
  0xb0   : > { %v287_v52 = vmul.f32 %v759_v48, %v759_v48 }
  0xb1   : > { %v288_v53 = vmul.f32 %v761_v49, %v761_v49 }
  0xb2   : > { %v307_v54 = vsel %vm239_vm0, %v287_v52, 0.0 }
  0xb3   : > { %299 = vadd.xlane.f32.xlu1 %v298_v51  ;;  %308 = vadd.xlane.f32.xlu0 %v307_v54  ;;  %v310_v55 = vsel %vm239_vm0, %v288_v53, 0.0 }
  0xb7   : > { %311 = vadd.xlane.f32.xlu1 %v310_v55 }
 0x134   : > { %v291_v1 = vpop.xlane.xlu0 %290 }
 0x135   : > { %v313_v2 = vmul.f32 0.015625, %v291_v1  ;;  %v389_v1 = vlaneseq }
 0x137   : > { %v321_v3 = vadd.f32 1e-05, %v313_v2  ;;  %v390_v2 = vshrl.u32 %v389_v1, 7 }
 0x138   : > { %v294_v4 = vpop.xlane.xlu1 %293  ;;  %v303_v5 = vpop.xlane.xlu0 %302 }
 0x139   : > { %654 = vrsqrt.f32 %v321_v3  ;;  %v314_v6 = vmul.f32 0.015625, %v294_v4  ;;  %v317_v7 = vmul.f32 0.015625, %v303_v5  ;;  %v387_v3 = vld [vmem:[%s857_s4] sm:$0x3]  ;;  %v395_v4 = vsub.s32 1, %v390_v2 }
 0x13b   : > { %v322_v8 = vadd.f32 1e-05, %v314_v6  ;;  %v325_v9 = vadd.f32 1e-05, %v317_v7 }
 0x13c   : > { %v306_v10 = vpop.xlane.xlu1 %305  ;;  %v297_v11 = vpop.xlane.xlu0 %296 }
 0x13d   : > { %656 = vrsqrt.f32 %v322_v8  ;;  %v318_v12 = vmul.f32 0.015625, %v306_v10  ;;  %v315_v13 = vmul.f32 0.015625, %v297_v11 }
 0x13e   : > { %658 = vrsqrt.f32 %v325_v9 }
 0x13f   : > { %v326_v14 = vadd.f32 1e-05, %v318_v12  ;;  %v323_v15 = vadd.f32 1e-05, %v315_v13 }
 0x140   : > { %v300_v16 = vpop.xlane.xlu1 %299  ;;  %v309_v17 = vpop.xlane.xlu0 %308 }
 0x141   : > { %660 = vrsqrt.f32 %v326_v14  ;;  %v316_v18 = vmul.f32 0.015625, %v300_v16  ;;  %v319_v19 = vmul.f32 0.015625, %v309_v17 }
 0x142   : > { %662 = vrsqrt.f32 %v323_v15 }
 0x143   : > { %v655_v22 = vpop.eup %654  ;;  %v324_v23 = vadd.f32 1e-05, %v316_v18  ;;  %v327_v24 = vadd.f32 1e-05, %v319_v19 }
 0x144   : > { %v337_v25 = vmul.f32 %v655_v22, %v731_v20  ;;  %v312_v26 = vpop.xlane.xlu1 %311  ;;  %v609_v20 = vld [vmem:[%s855_s2] ss:$0 sm:$0xff] }
 0x145   : > { %664 = vrsqrt.f32 %v324_v23  ;;  %v320_v27 = vmul.f32 0.015625, %v312_v26 }
 0x146   : > { %666 = vrsqrt.f32 %v327_v24  ;;  %v352_v35 = vmul.f32 %v608_v30, %v337_v25 }
 0x147   : > { %v657_v31 = vpop.eup %656  ;;  %v328_v32 = vadd.f32 1e-05, %v320_v27 }
 0x148   : > { %v659_v33 = vpop.eup %658  ;;  %v338_v34 = vmul.f32 %v657_v31, %v739_v28  ;;  %v367_v43 = vadd.f32 %v609_v20, %v352_v35 }
 0x149   : > { %v341_v36 = vmul.f32 %v659_v33, %v733_v21  ;;  %668 = vrsqrt.f32 %v328_v32 }
 0x14a   : > { %v353_v37 = vmul.f32 %v608_v30, %v338_v34 }
 0x14b   : > { %v661_v40 = vpop.eup %660  ;;  %v356_v45 = vmul.f32 %v608_v30, %v341_v36 }
 0x14c   : > { %v663_v41 = vpop.eup %662  ;;  %v342_v42 = vmul.f32 %v661_v40, %v741_v29  ;;  %v368_v44 = vadd.f32 %v609_v20, %v353_v37 }
 0x14d   : > { %v339_v46 = vmul.f32 %v663_v41, %v749_v38  ;;  %v371_v52 = vadd.f32 %v609_v20, %v356_v45 }
 0x14e   : > { %v375_v47 = vpack.c.bf16 %v368_v44, %v367_v43  ;;  %v357_v28 = vmul.f32 %v608_v30, %v342_v42 }
 0x14f   : > { %v665_v50 = vpop.eup %664  ;;  %v354_v54 = vmul.f32 %v608_v30, %v339_v46 }
 0x150   : > { %v667_v51 = vpop.eup %666  ;;  %v340_v21 = vmul.f32 %v665_v50, %v751_v39  ;;  %618 = vmatmul.mubr.msk.bf16.vlgmr.msra.gmra.mrb[0].mxu0 %vm239_vm0, %v375_v47  ;;  %v372_v53 = vadd.f32 %v609_v20, %v357_v28 }
 0x151   : > { %v343_v55 = vmul.f32 %v667_v51, %v759_v48  ;;  %493 = vmatprep.mubr.bf16.mxu0 %v678_v0  ;;  %v369_v58 = vadd.f32 %v609_v20, %v354_v54 }
 0x152   : > { %v377_v29 = vpack.c.bf16 %v372_v53, %v371_v52  ;;  %v355_v56 = vmul.f32 %v608_v30, %v340_v21 }
 0x153   : > { %v669_v57 = vpop.eup %668  ;;  %v358_v39 = vmul.f32 %v608_v30, %v343_v55 }
 0x154   : > { %v344_v38 = vmul.f32 %v669_v57, %v761_v49  ;;  %620 = vmatmul.mubr.msk.bf16.vlgmr.msra.gmra.mrb[0].mxu1 %vm239_vm0, %v377_v29  ;;  %v370_v59 = vadd.f32 %v609_v20, %v355_v56  ;;  %v391_v49 = vsub.s32 0, %v390_v2 }
 0x155   : > { %513 = vmatprep.mubr.bf16.mxu1 %v678_v0  ;;  %v373_v48 = vadd.f32 %v609_v20, %v358_v39  ;;  %v396_v0 = vrot.slane %v387_v3, %v395_v4 }
 0x156   : > { %v376_v60 = vpack.c.bf16 %v370_v59, %v369_v58  ;;  %v359_v61 = vmul.f32 %v608_v30, %v344_v38  ;;  %v392_v5 = vrot.slane %v387_v3, %v391_v49 }
 0x158   : > { %619 = vmatmul.mubr.msk.bf16.gmra.mrb[4].mxu0 %vm239_vm0, %v376_v60  ;;  %v374_v62 = vadd.f32 %v609_v20, %v359_v61 }
 0x15a   : > { %v378_v63 = vpack.c.bf16 %v374_v62, %v373_v48 }
 0x15c   : > { %621 = vmatmul.mubr.msk.bf16.gmra.mrb[4].mxu1 %vm239_vm0, %v378_v63 }
 0x223   : > { %v485_v6 = vpop.f32.mrb[0].mxu0 }
 0x224   : > { %v486_v7 = vadd.f32 %v485_v6, %v392_v5  ;;  %v487_v8 = vpop.f32.mrb[1].mxu0 }
 0x225   : > { %v488_v9 = vadd.f32 %v487_v8, %v396_v0  ;;  %v489_v10 = vpop.f32.mrb[2].mxu0 }
 0x226   : > { %524 = vst [vmem:[%s824_s27] sm:$0xff] %v486_v7  ;;  %v490_v11 = vadd.f32 %v489_v10, %v392_v5  ;;  %v491_v12 = vpop.f32.mrb[3].mxu0 }
 0x227   : > { %525 = vst.msk [vmem:[%s824_s27 + $0x8] sm:$0xff] %vm239_vm0, %v488_v9  ;;  %v492_v13 = vadd.f32 %v491_v12, %v396_v0  ;;  %v505_v14 = vpop.f32.mrb[0].mxu1 }
 0x228   : > { %526 = vst [vmem:[%s824_s27 + $0x10] sm:$0xff] %v490_v11  ;;  %v506_v15 = vadd.f32 %v505_v14, %v392_v5  ;;  %v507_v16 = vpop.f32.mrb[1].mxu1 }
 0x229   : > { %527 = vst.msk [vmem:[%s824_s27 + $0x18] sm:$0xff] %vm239_vm0, %v492_v13  ;;  %v508_v17 = vadd.f32 %v507_v16, %v396_v0  ;;  %v509_v18 = vpop.f32.mrb[2].mxu1 }
 0x22a   : > { %532 = vst [vmem:[%s824_s27 + $0x40] sm:$0xff] %v506_v15  ;;  %v510_v19 = vadd.f32 %v509_v18, %v392_v5  ;;  %v511_v22 = vpop.f32.mrb[3].mxu1 }
 0x22b   : > { %533 = vst.msk [vmem:[%s824_s27 + $0x48] sm:$0xff] %vm239_vm0, %v508_v17  ;;  %v512_v23 = vadd.f32 %v511_v22, %v396_v0  ;;  %v495_v24 = vpop.f32.mrb[4].mxu0 }
 0x22c   : > { %534 = vst [vmem:[%s824_s27 + $0x50] sm:$0xff] %v510_v19  ;;  %v496_v25 = vadd.f32 %v495_v24, %v392_v5  ;;  %v497_v26 = vpop.f32.mrb[5].mxu0 }
 0x22d   : > { %535 = vst.msk [vmem:[%s824_s27 + $0x58] sm:$0xff] %vm239_vm0, %v512_v23  ;;  %v498_v27 = vadd.f32 %v497_v26, %v396_v0  ;;  %v499_v30 = vpop.f32.mrb[6].mxu0 }
 0x22e   : > { %528 = vst [vmem:[%s824_s27 + $0x20] sm:$0xff] %v496_v25  ;;  %v500_v31 = vadd.f32 %v499_v30, %v392_v5  ;;  %v501_v32 = vpop.f32.mrb[7].mxu0 }
 0x22f   : > { %529 = vst.msk [vmem:[%s824_s27 + $0x28] sm:$0xff] %vm239_vm0, %v498_v27  ;;  %v502_v33 = vadd.f32 %v501_v32, %v396_v0  ;;  %v515_v34 = vpop.f32.mrb[4].mxu1 }
 0x230   : > { %530 = vst [vmem:[%s824_s27 + $0x30] sm:$0xff] %v500_v31  ;;  %v516_v35 = vadd.f32 %v515_v34, %v392_v5  ;;  %v517_v36 = vpop.f32.mrb[5].mxu1 }
 0x231   : > { %531 = vst.msk [vmem:[%s824_s27 + $0x38] sm:$0xff] %vm239_vm0, %v502_v33  ;;  %v518_v20 = vadd.f32 %v517_v36, %v396_v0  ;;  %v519_v37 = vpop.f32.mrb[6].mxu1 }
 0x232   : > { %536 = vst [vmem:[%s824_s27 + $0x60] sm:$0xff] %v516_v35  ;;  %v520_v40 = vadd.f32 %v519_v37, %v392_v5  ;;  %v521_v41 = vpop.f32.mrb[7].mxu1 }
 0x233   : > { %537 = vst.msk [vmem:[%s824_s27 + $0x68] sm:$0xff] %vm239_vm0, %v518_v20  ;;  %v522_v42 = vadd.f32 %v521_v41, %v396_v0 }
 0x234   : > { %538 = vst [vmem:[%s824_s27 + $0x70] sm:$0xff] %v520_v40 }
 0x235   : > { %539 = vst.msk [vmem:[%s824_s27 + $0x78] sm:$0xff] %vm239_vm0, %v522_v42 }
 0x236 PF: > { %s15_s18 = sadd.s32 1, %s676_s18  }
 0x237   : > { %p12_p4 = scmp.ge.s32.totalorder %s15_s18, 4  }
 0x239   :  { %14 = sbr.rel (!%p12_p4) target bundleno = 1 (0x1), region = 70 }

// kernel: _pallas_forward.19
= control target key start
LH: loop header
LB: loop body
LE: loop exit
PB: predicated region body
PF: predicated region fallthrough
CT: control target
= control target key end

     0   :  { %s544_s15 = smov 0   ;;  %s596_s0 = inlined_call_operand.vmem [shape: f32[128,64], index: 0, kind: input, shape index: {}]   ;;  %s597_s1 = inlined_call_operand.vmem [shape: bf16[64,64], index: 1, kind: input, shape index: {}]   ;;  %s598_s2 = inlined_call_operand.vmem [shape: f32[1,64], index: 2, kind: input, shape index: {}]   ;;  %s599_s3 = inlined_call_operand.vmem [shape: f32[128,64], index: 3, kind: input, shape index: {}]   ;;  %s600_s4 = inlined_call_operand.vmem [shape: f32[128,64], index: 4, kind: output, shape index: {}]  }
   0x1 LB: > { %s445_s16 = sadd.s32 4294967295, %s517_s15   ;;  %p449_p0 = scmp.ge.s32.totalorder %s517_s15, 1  ;;  %s517_s15 = sphi %s544_s15, %s14_s15  }
   0x2   : > { %p174_p1 = scmp.lt.s32.totalorder %s517_s15, 3 }
   0x4   : > { %p175_p2 = pnand %p449_p0, %p174_p1 }
   0x5   : > { %v507_v0 = vld [vmem:[%s597_s1] sm:$0xff] (!%p175_p2)   ;;  %s450_s19 = sshll.u32 (!%p175_p2), %s445_s16, 3  ;;  %v508_v1 = vld [vmem:[%s597_s1 + $0x8] sm:$0xff] (!%p175_p2)   ;;  %v509_v2 = vld [vmem:[%s597_s1 + $0x10] sm:$0xff] (!%p175_p2)   ;;  %vm275_vm0 = vcmask (!%p175_p2), 523264  }
   0x6   : > { %178 = sbr.rel (%p175_p2) target bundleno = 243 (0xf3), region = 36  ;;  %p206_p3 = scmp.lt.s32.totalorder (!%p175_p2), %s450_s19, 15  ;;  %475 = vmatprep.subr.bf16.mxu0 (!%p175_p2), %v507_v0  ;;  %491 = vmatprep.subr.bf16.mxu1 (!%p175_p2), %v507_v0  ;;  %v510_v6 = vld [vmem:[%s597_s1 + $0x18] sm:$0xff] (!%p175_p2)   ;;  %v456_v16 = vld [vmem:[%s598_s2] ss:$0 sm:$0xff] (!%p175_p2) }
   0x7   : > { %476 = vmatpush3.bf16.msra.mxu0 (!%p175_p2), %v507_v0  ;;  %495 = vmatpush3.bf16.msra.mxu1 (!%p175_p2), %v507_v0 }
   0x8   : > { %477 = vmatprep.subr.bf16.mxu0 (!%p175_p2), %v508_v1  ;;  %492 = vmatprep.subr.bf16.mxu1 (!%p175_p2), %v508_v1 }
   0xb   : > { %478 = vmatpush3.bf16.msra.mxu0 (!%p175_p2), %v508_v1  ;;  %496 = vmatpush3.bf16.msra.mxu1 (!%p175_p2), %v508_v1 }
   0xc   : > { %479 = vmatprep.subr.bf16.mxu0 (!%p175_p2), %v509_v2  ;;  %493 = vmatprep.subr.bf16.mxu1 (!%p175_p2), %v509_v2 }
   0xd   : > { %s602_s19 = smov (!%p206_p3, %s450_s19), 15 }
   0xe   : > { %s561_s24 = sshll.u32 %s602_s19, 3 }
   0xf   : > { %s209_s27 = scalar_lea.vmem %s596_s0, %s561_s24  ;;  %480 = vmatpush3.bf16.msra.mxu0 %v509_v2  ;;  %497 = vmatpush3.bf16.msra.mxu1 %v509_v2  ;;  %s215_s6 = scalar_lea.vmem %s599_s3, %s561_s24 }
  0x10   : > { %v224_v3 = vld [vmem:[%s209_s27] sm:$0xff]  ;;  %v225_v4 = vld [vmem:[%s209_s27 + $0x8] sm:$0xff]  ;;  %v226_v10 = vld [vmem:[%s209_s27 + $0x10] sm:$0xff]  ;;  %481 = vmatprep.subr.bf16.mxu0 %v510_v6  ;;  %494 = vmatprep.subr.bf16.mxu1 %v510_v6  ;;  %s221_s11 = scalar_lea.vmem %s600_s4, %s561_s24 }
  0x11   : > { %v228_v5 = vld [vmem:[%s209_s27 + $0x20] sm:$0xff]  ;;  %v232_v7 = vpack.c.bf16 %v225_v4, %v224_v3  ;;  %v229_v8 = vld [vmem:[%s209_s27 + $0x28] sm:$0xff]  ;;  %v227_v11 = vld [vmem:[%s209_s27 + $0x18] sm:$0xff] }
  0x12   : > { %v234_v9 = vpack.c.bf16 %v229_v8, %v228_v5  ;;  %v230_v12 = vld [vmem:[%s209_s27 + $0x30] sm:$0xff]  ;;  %v231_v13 = vld [vmem:[%s209_s27 + $0x38] sm:$0xff]  ;;  %v233_v14 = vpack.c.bf16 %v227_v11, %v226_v10  ;;  %v353_v24 = vld [vmem:[%s215_s6] sm:$0xff] }
  0x13   : > { %483 = vmatprep.mubr.msk.bf16.mxu0 %vm275_vm0, %v232_v7  ;;  %v235_v15 = vpack.c.bf16 %v231_v13, %v230_v12  ;;  %482 = vmatpush3.bf16.msra.mxu0 %v510_v6  ;;  %v355_v18 = vld [vmem:[%s215_s6 + $0x10] sm:$0xff]  ;;  %v357_v26 = vld [vmem:[%s215_s6 + $0x20] sm:$0xff]  ;;  %v356_v30 = vld [vmem:[%s215_s6 + $0x18] sm:$0xff] }
  0x14   : > { %487 = vmatprep.mubr.msk.bf16.mxu1 %vm275_vm0, %v234_v9  ;;  %498 = vmatpush3.bf16.msra.mxu1 %v510_v6  ;;  %v359_v20 = vld [vmem:[%s215_s6 + $0x30] sm:$0xff]  ;;  %v360_v32 = vld [vmem:[%s215_s6 + $0x38] sm:$0xff]  ;;  %v354_v38 = vld [vmem:[%s215_s6 + $0x8] sm:$0xff] }
  0x15   : > { %v358_v40 = vld [vmem:[%s215_s6 + $0x28] sm:$0xff] }
  0x16   : > { %484 = vmatmul.mubr.msk.bf16.vlgmr.msra.gmra.mrb[0].mxu0 %vm275_vm0, %v233_v14 }
  0x17   : > { %488 = vmatmul.mubr.msk.bf16.vlgmr.msra.gmra.mrb[0].mxu1 %vm275_vm0, %v235_v15 }
  0xe9   : > { %v485_v17 = vpop.f32.mrb[0].mxu0 }
  0xea   : > { %v489_v19 = vpop.f32.mrb[0].mxu1  ;;  %v331_v21 = vadd.f32 %v485_v17, %v456_v16  ;;  %v322_v23 = vpop.f32.mrb[1].mxu0 }
  0xeb   : > { %v347_v22 = vadd.f32 %v489_v19, %v456_v16  ;;  %v338_v25 = vpop.f32.mrb[1].mxu1  ;;  %v323_v27 = vadd.f32 %v456_v16, %v322_v23  ;;  %v486_v29 = vpop.f32.mrb[2].mxu0 }
  0xec   : > { %v339_v28 = vadd.f32 %v456_v16, %v338_v25  ;;  %v490_v31 = vpop.f32.mrb[2].mxu1  ;;  %v363_v33 = vadd.f32 %v355_v18, %v331_v21  ;;  %v334_v35 = vadd.f32 %v486_v29, %v456_v16  ;;  %v325_v37 = vpop.f32.mrb[3].mxu0 }
  0xed   : > { %v367_v34 = vadd.f32 %v359_v20, %v347_v22  ;;  %v350_v36 = vadd.f32 %v490_v31, %v456_v16  ;;  %v341_v39 = vpop.f32.mrb[3].mxu1  ;;  %v361_v41 = vadd.f32 %v353_v24, %v323_v27  ;;  %v326_v43 = vadd.f32 %v456_v16, %v325_v37 }
  0xee   : > { %v365_v42 = vadd.f32 %v357_v26, %v339_v28  ;;  %v342_v44 = vadd.f32 %v456_v16, %v341_v39  ;;  %371 = vst.msk [vmem:[%s221_s11 + $0x10] sm:$0xff] %vm275_vm0, %v363_v33  ;;  %v364_v45 = vadd.f32 %v356_v30, %v334_v35 }
  0xef   : > { %375 = vst.msk [vmem:[%s221_s11 + $0x30] sm:$0xff] %vm275_vm0, %v367_v34  ;;  %v368_v46 = vadd.f32 %v360_v32, %v350_v36  ;;  %369 = vst.msk [vmem:[%s221_s11] sm:$0xff] %vm275_vm0, %v361_v41  ;;  %v362_v47 = vadd.f32 %v354_v38, %v326_v43 }
  0xf0   : > { %373 = vst.msk [vmem:[%s221_s11 + $0x20] sm:$0xff] %vm275_vm0, %v365_v42  ;;  %v366_v48 = vadd.f32 %v358_v40, %v342_v44  ;;  %372 = vst.msk [vmem:[%s221_s11 + $0x18] sm:$0xff] %vm275_vm0, %v364_v45 }
  0xf1   : > { %376 = vst.msk [vmem:[%s221_s11 + $0x38] sm:$0xff] %vm275_vm0, %v368_v46  ;;  %370 = vst.msk [vmem:[%s221_s11 + $0x8] sm:$0xff] %vm275_vm0, %v362_v47 }
  0xf2   : > { %374 = vst.msk [vmem:[%s221_s11 + $0x28] sm:$0xff] %vm275_vm0, %v366_v48 }
  0xf3 PF: > { %s14_s15 = sadd.s32 1, %s517_s15  }
  0xf4   : > { %p11_p4 = scmp.ge.s32.totalorder %s14_s15, 4  }
  0xf6   :  { %13 = sbr.rel (!%p11_p4) target bundleno = 1 (0x1), region = 69 }

// kernel: _pallas_forward.18
= control target key start
LH: loop header
LB: loop body
LE: loop exit
PB: predicated region body
PF: predicated region fallthrough
CT: control target
= control target key end

     0   :  { %s1100_s6 = smov 0   ;;  %s1376_s0 = inlined_call_operand.vmem [shape: f32[2,64,192], index: 0, kind: input, shape index: {}]   ;;  %s1377_s1 = inlined_call_operand.vmem [shape: f32[2,64,64], index: 1, kind: output, shape index: {}]  }
   0x1 LB: > { %s871_s7 = sadd.s32 4294967295, %s1085_s6   ;;  %p875_p0 = scmp.ge.s32.totalorder %s1085_s6, 1  ;;  %s1085_s6 = sphi %s1100_s6, %s11_s6  }
   0x2   : > { %p87_p1 = scmp.lt.s32.totalorder %s1085_s6, 3 }
   0x4   : > { %p88_p2 = pnand %p875_p0, %p87_p1 }
   0x5   : > { %p107_p3 = scmp.lt.s32.totalorder (!%p88_p2), %s871_s7, 1  ;;  %vm157_vm0 = vcmask (!%p88_p2), 261120   ;;  %s1087_s12 = smov (!%p88_p2), 64   ;;  %v118_v20 = vlaneseq (!%p88_p2)  ;;  %vm263_vm2 = vcmask (!%p88_p2), 523264   ;;  %vm807_vm3 = vcmask (!%p88_p2), 523520  }
   0x6   : > { %91 = sbr.rel (%p88_p2) target bundleno = 1668 (0x684), region = 24  ;;  %s1088_s13 = smov (!%p88_p2), 32  }
   0x7   : > { %v1152_v21 = vand.u32 (!%p88_p2), 127, %v118_v20  ;;  %s1089_s14 = smov (!%p88_p2), 96  }
   0x9   : > { %vm120_vm1 = vcmp.lt.s32.totalorder (!%p88_p2), %v1152_v21, 50 }
   0xd   : > { %s1379_s7 = smov (!%p107_p3, %s871_s7), 1 }
   0xe   : > { %s898_s8 = sshll.u32 %s1379_s7, 7  ;;  %s899_s15 = sshll.u32 %s1379_s7, 6 }
   0xf   : > { %s1114_s11 = scalar_lea.vmem %s1376_s0, %s898_s8  ;;  %s1279_s18 = scalar_lea.vmem %s1377_s1, %s899_s15 }
  0x10   : > { %v121_v0 = vld [vmem:[%s1114_s11] sm:$0xff]  ;;  %v122_v1 = vld [vmem:[%s1114_s11 + $0x10] sm:$0xff]  ;;  %v133_v54 = vld [vmem:[%s1114_s11 + $0x8] sm:$0xff] }
  0x11   : > { %v123_v2 = vld [vmem:[%s1114_s11 + $0x20] sm:$0xff]  ;;  %v1119_v3 = vpack.c.bf16 %v122_v1, %v121_v0  ;;  %v124_v4 = vld [vmem:[%s1114_s11 + $0x30] sm:$0xff]  ;;  %v134_v55 = vld [vmem:[%s1114_s11 + $0x18] sm:$0xff] }
  0x12   : > { %v125_v5 = vld [vmem:[%s1114_s11 + $0x40] sm:$0xff]  ;;  %v126_v6 = vld [vmem:[%s1114_s11 + $0x50] sm:$0xff]  ;;  %v1129_v10 = vpack.c.bf16 %v124_v4, %v123_v2  ;;  %v135_v56 = vld [vmem:[%s1114_s11 + $0x28] sm:$0xff]  ;;  %v1188_v57 = vpack.c.bf16 %v134_v55, %v133_v54 }
  0x13   : > { %v1124_v7 = vpack.c.bf16 %v126_v6, %v125_v5  ;;  %v127_v8 = vld [vmem:[%s1114_s11 + $0x60] sm:$0xff]  ;;  %v128_v9 = vld [vmem:[%s1114_s11 + $0x70] sm:$0xff]  ;;  %149 = vrot.lane.b32.xlu0 %v1119_v3, %s1087_s12  ;;  %940 = vmatprep.mubr.msk.bf16.mxu0 %vm157_vm0, %v1119_v3  ;;  %v136_v58 = vld [vmem:[%s1114_s11 + $0x38] sm:$0xff] }
  0x14   : > { %v1134_v11 = vpack.c.bf16 %v128_v9, %v127_v8  ;;  %v1191_v59 = vpack.c.bf16 %v136_v58, %v135_v56  ;;  %948 = vmatprep.subr.bf16.mxu1 %v1188_v57 }
  0x15   : > { %153 = vrot.lane.b32.xlu1 %v1124_v7, %s1087_s12  ;;  %949 = vmatpush3.bf16.msra.mxu1 %v1188_v57 }
  0x16   : > { %950 = vmatprep.subr.bf16.mxu1 %v1191_v59 }
  0x17   : > { %151 = vrot.lane.b32.xlu0 %v1129_v10, %s1087_s12 }
  0x19   : > { %155 = vrot.lane.b32.xlu1 %v1134_v11, %s1087_s12  ;;  %951 = vmatpush3.bf16.msra.mxu1 %v1191_v59 }
  0x85   : > { %v150_v12 = vpop.permute.xlu0 %149 }
  0x86   : > { %996 = vmatprep.subr.msk.bf16.mxu0 %vm157_vm0, %v150_v12  ;;  %v171_v13 = vsel %vm157_vm0, %v150_v12, 0 }
  0x87   : > { %933 = vmatpush3.bf16.xpose.msra.mxu0 %v171_v13  ;;  %v154_v16 = vpop.permute.xlu1 %153 }
  0x88   : > { %v177_v17 = vsel %vm157_vm0, %v154_v16, 0 }
  0x89   : > { %v152_v14 = vpop.permute.xlu0 %151 }
  0x8a   : > { %997 = vmatprep.subr.msk.bf16.mxu0 %vm157_vm0, %v152_v14  ;;  %v174_v15 = vsel %vm157_vm0, %v152_v14, 0 }
  0x8b   : > { %v156_v18 = vpop.permute.xlu1 %155 }
  0x8c   : > { %v180_v19 = vsel %vm157_vm0, %v156_v18, 0 }
  0x8f   : > { %935 = vmatpush3.bf16.xpose.msra.mxu0 %v174_v15 }
  0x90   : > { %998 = vmatprep.subr.msk.bf16.mxu0 %vm157_vm0, %v154_v16 }
  0x97   : > { %937 = vmatpush3.bf16.xpose.msra.mxu0 %v177_v17 }
  0x98   : > { %999 = vmatprep.subr.msk.bf16.mxu0 %vm157_vm0, %v156_v18 }
  0x9f   : > { %939 = vmatpush3.bf16.xpose.msra.mxu0 %v180_v19 }
  0xa6   : > { %941 = vmatmul.mubr.msk.bf16.vlgmr.msra.gmra.mrb[0].mxu0 %vm157_vm0, %v1129_v10 }
  0xa7   : > { %944 = vmatprep.mubr.msk.bf16.mxu0 %vm157_vm0, %v1124_v7 }
  0xae   : > { %945 = vmatmul.mubr.msk.bf16.gmra.mrb[4].mxu0 %vm157_vm0, %v1134_v11 }
 0x179   : > { %v942_v22 = vpop.f32.mrb[0].mxu0 }
 0x17a   : > { %v216_v23 = vpop.f32.mrb[1].mxu0  ;;  %v249_v24 = vmul.f32 0.17677669, %v942_v22 }
 0x17b   : > { %v247_v25 = vmul.f32 0.17677669, %v216_v23  ;;  %v943_v26 = vpop.f32.mrb[2].mxu0 }
 0x17c   : > { %v219_v27 = vpop.f32.mrb[3].mxu0  ;;  %v250_v31 = vmul.f32 0.17677669, %v943_v26  ;;  %v257_v33 = vsel %vm120_vm1, %v249_v24, -1e+30 }
 0x17d   : > { %v248_v28 = vmul.f32 0.17677669, %v219_v27  ;;  %v255_v29 = vsel %vm120_vm1, %v247_v25, -1e+30  ;;  %v270_v38 = vsel %vm263_vm2, %v257_v33, -inf }
 0x17e   : > { %v264_v30 = vsel %vm263_vm2, %v255_v29, -inf  ;;  %v258_v41 = vsel %vm120_vm1, %v250_v31, -1e+30  ;;  %v138_v31 = vld [vmem:[%s1114_s11 + $0x58] sm:$0xff] }
 0x17f   : > { %265 = vmax.xlane.f32.xlu0 %v264_v30  ;;  %v256_v32 = vsel %vm120_vm1, %v248_v28, -1e+30  ;;  %v273_v47 = vsel %vm263_vm2, %v258_v41, -inf  ;;  %v137_v30 = vld [vmem:[%s1114_s11 + $0x48] sm:$0xff] }
 0x180   : > { %v267_v34 = vsel %vm263_vm2, %v256_v32, -inf }
 0x181   : > { %268 = vmax.xlane.f32.xlu1 %v267_v34  ;;  %v946_v35 = vpop.f32.mrb[4].mxu0  ;;  %v139_v34 = vld [vmem:[%s1114_s11 + $0x68] sm:$0xff] }
 0x182   : > { %v253_v36 = vmul.f32 0.17677669, %v946_v35  ;;  %v232_v37 = vpop.f32.mrb[5].mxu0  ;;  %v140_v35 = vld [vmem:[%s1114_s11 + $0x78] sm:$0xff] }
 0x183   : > { %v251_v39 = vmul.f32 0.17677669, %v232_v37  ;;  %271 = vmax.xlane.f32.xlu0 %v270_v38  ;;  %v947_v40 = vpop.f32.mrb[6].mxu0 }
 0x184   : > { %v254_v42 = vmul.f32 0.17677669, %v947_v40  ;;  %v235_v43 = vpop.f32.mrb[7].mxu0  ;;  %v1172_v46 = vsel %vm120_vm1, %v253_v36, -1e+30  ;;  %v1229_v36 = vpack.c.bf16 %v140_v35, %v139_v34 }
 0x185   : > { %v252_v44 = vmul.f32 0.17677669, %v235_v43  ;;  %v1168_v45 = vsel %vm120_vm1, %v251_v39, -1e+30  ;;  %v282_v50 = vsel %vm263_vm2, %v1172_v46, -inf }
 0x186   : > { %v276_v48 = vsel %vm263_vm2, %v1168_v45, -inf  ;;  %v262_v52 = vsel %vm120_vm1, %v254_v42, -1e+30 }
 0x187   : > { %274 = vmax.xlane.f32.xlu0 %v273_v47  ;;  %277 = vmax.xlane.f32.xlu1 %v276_v48  ;;  %v260_v49 = vsel %vm120_vm1, %v252_v44, -1e+30  ;;  %v285_v53 = vsel %vm263_vm2, %v262_v52, -inf }
 0x188   : > { %v279_v51 = vsel %vm263_vm2, %v260_v49, -inf }
 0x18b   : > { %283 = vmax.xlane.f32.xlu1 %v282_v50  ;;  %280 = vmax.xlane.f32.xlu0 %v279_v51 }
 0x18f   : > { %286 = vmax.xlane.f32.xlu0 %v285_v53 }
 0x20c   : > { %v266_v60 = vpop.xlane.xlu0 %265 }
 0x20d   : > { %v288_v61 = vsub.f32 %v255_v29, %v266_v60 }
 0x20e   : > { %v269_v62 = vpop.xlane.xlu1 %268 }
 0x20f   : > { %v296_v1 = vmul.f32 1.442695, %v288_v61  ;;  %v289_v2 = vsub.f32 %v256_v32, %v269_v62 }
 0x210   : > { %v272_v63 = vpop.xlane.xlu0 %271 }
 0x211   : > { %v290_v0 = vsub.f32 %v257_v33, %v272_v63  ;;  %v298_v8 = vmul.f32 1.442695, %v289_v2  ;;  %v1223_v33 = vpack.c.bf16 %v138_v31, %v137_v30 }
 0x213   : > { %v300_v4 = vmul.f32 1.442695, %v290_v0  ;;  %952 = vmatprep.subr.bf16.mxu1 %v1223_v33 }
 0x214   : > { %v275_v5 = vpop.xlane.xlu0 %274  ;;  %953 = vmatpush3.bf16.msra.mxu1 %v1223_v33  ;;  %v278_v37 = vpop.xlane.xlu1 %277 }
 0x215   : > { %1015 = vpow2.f32 %v300_v4  ;;  %v291_v6 = vsub.f32 %v258_v41, %v275_v5  ;;  %954 = vmatprep.subr.bf16.mxu1 %v1229_v36  ;;  %v292_v40 = vsub.f32 %v1168_v45, %v278_v37 }
 0x216   : > { %1017 = vpow2.f32 %v296_v1 }
 0x217   : > { %v302_v9 = vmul.f32 1.442695, %v291_v6  ;;  %v304_v42 = vmul.f32 1.442695, %v292_v40 }
 0x218   : > { %v281_v12 = vpop.xlane.xlu0 %280  ;;  %955 = vmatpush3.bf16.msra.mxu1 %v1229_v36  ;;  %v284_v38 = vpop.xlane.xlu1 %283 }
 0x219   : > { %1019 = vpow2.f32 %v302_v9  ;;  %v293_v13 = vsub.f32 %v260_v49, %v281_v12  ;;  %v294_v39 = vsub.f32 %v1172_v46, %v284_v38 }
 0x21a   : > { %1021 = vpow2.f32 %v298_v8 }
 0x21b   : > { %v306_v17 = vmul.f32 1.442695, %v293_v13  ;;  %v308_v41 = vmul.f32 1.442695, %v294_v39 }
 0x21c   : > { %v287_v14 = vpop.xlane.xlu0 %286 }
 0x21d   : > { %v295_v15 = vsub.f32 %v262_v52, %v287_v14 }
 0x21f   : > { %v1197_v16 = vpop.eup %1015  ;;  %v310_v18 = vmul.f32 1.442695, %v295_v15 }
 0x220   : > { %v318_v19 = vsel %vm263_vm2, %v1197_v16, 0.0  ;;  %v1201_v20 = vpop.eup %1017 }
 0x221   : > { %1023 = vpow2.f32 %v310_v18  ;;  %319 = vadd.xlane.f32.xlu1 %v318_v19  ;;  %v312_v23 = vsel %vm263_vm2, %v1201_v20, 0.0 }
 0x222   : > { %1025 = vpow2.f32 %v306_v17 }
 0x223   : > { %v1203_v22 = vpop.eup %1019  ;;  %1027 = vpow2.f32 %v308_v41 }
 0x224   : > { %v321_v24 = vsel %vm263_vm2, %v1203_v22, 0.0  ;;  %v1209_v25 = vpop.eup %1021  ;;  %1029 = vpow2.f32 %v304_v42 }
 0x225   : > { %313 = vadd.xlane.f32.xlu1 %v312_v23  ;;  %322 = vadd.xlane.f32.xlu0 %v321_v24  ;;  %v315_v26 = vsel %vm263_vm2, %v1209_v25, 0.0 }
 0x229   : > { %316 = vadd.xlane.f32.xlu0 %v315_v26 }
 0x22b   : > { %v1213_v27 = vpop.eup %1023 }
 0x22c   : > { %v333_v28 = vsel %vm263_vm2, %v1213_v27, 0.0  ;;  %v1217_v29 = vpop.eup %1025 }
 0x22d   : > { %334 = vadd.xlane.f32.xlu0 %v333_v28  ;;  %v327_v32 = vsel %vm263_vm2, %v1217_v29, 0.0  ;;  %v1028_v43 = vpop.eup %1027 }
 0x22e   : > { %v330_v44 = vsel %vm263_vm2, %v1028_v43, 0.0  ;;  %v1030_v46 = vpop.eup %1029 }
 0x22f   : > { %v324_v47 = vsel %vm263_vm2, %v1030_v46, 0.0 }
 0x231   : > { %328 = vadd.xlane.f32.xlu0 %v327_v32 }
 0x236   : > { %477 = vrot.lane.b32.xlu1 %v1119_v3, %s1088_s13 }
 0x247   : > { %479 = vrot.lane.b32.xlu0 %v1129_v10, %s1088_s13 }
 0x24b   : > { %469 = vrot.lane.b32.xlu0 %v1119_v3, %s1089_s14 }
 0x24f   : > { %473 = vrot.lane.b32.xlu0 %v1124_v7, %s1089_s14 }
 0x25a   : > { %331 = vadd.xlane.f32.xlu1 %v330_v44 }
 0x25e   : > { %325 = vadd.xlane.f32.xlu1 %v324_v47 }
 0x26f   : > { %481 = vrot.lane.b32.xlu1 %v1124_v7, %s1088_s13 }
 0x273   : > { %483 = vrot.lane.b32.xlu1 %v1134_v11, %s1088_s13 }
 0x277   : > { %471 = vrot.lane.b32.xlu1 %v1129_v10, %s1089_s14 }
 0x27b   : > { %475 = vrot.lane.b32.xlu1 %v1134_v11, %s1089_s14 }
 0x2ae   : > { %v320_v3 = vpop.xlane.xlu1 %319 }
 0x2b2   : > { %v314_v45 = vpop.xlane.xlu1 %313  ;;  %v323_v48 = vpop.xlane.xlu0 %322 }
 0x2b3   : > { %1031 = vrcp.f32 %v323_v48 }
 0x2b4   : > { %1033 = vrcp.f32 %v314_v45 }
 0x2b5   : > { %1035 = vrcp.f32 %v320_v3 }
 0x2b6   : > { %v478_v49 = vpop.permute.xlu1 %477  ;;  %v317_v50 = vpop.xlane.xlu0 %316 }
 0x2b7   : > { %1037 = vrcp.f32 %v317_v50  ;;  %1000 = vmatprep.subr.msk.bf16.mxu1 %vm157_vm0, %v478_v49  ;;  %v498_v63 = vsel %vm157_vm0, %v478_v49, 0 }
 0x2ba   : > { %v335_v7 = vpop.xlane.xlu0 %334 }
 0x2bd   : > { %v1032_v51 = vpop.eup %1031 }
 0x2be   : > { %v1034_v52 = vpop.eup %1033  ;;  %v347_v10 = vmul.f32 %v1032_v51, %v1203_v22  ;;  %v329_v55 = vpop.xlane.xlu0 %328 }
 0x2bf   : > { %v1036_v53 = vpop.eup %1035  ;;  %v344_v11 = vmul.f32 %v1034_v52, %v1201_v20 }
 0x2c0   : > { %v346_v58 = vmul.f32 %v1036_v53, %v1197_v16 }
 0x2c1   : > { %v1038_v54 = vpop.eup %1037 }
 0x2c2   : > { %v345_v56 = vmul.f32 %v1038_v54, %v1209_v25  ;;  %v353_v61 = vpack.c.bf16 %v347_v10, %v346_v58  ;;  %v480_v62 = vpop.permute.xlu0 %479 }
 0x2c3   : > { %v501_v0 = vsel %vm157_vm0, %v480_v62, 0 }
 0x2c4   : > { %v352_v60 = vpack.c.bf16 %v345_v56, %v344_v11 }
 0x2c6   : > { %956 = vmatprep.mubr.msk.bf16.mxu1 %vm263_vm2, %v352_v60  ;;  %v470_v22 = vpop.permute.xlu0 %469 }
 0x2c7   : > { %957 = vmatmul.mubr.msk.bf16.vlgmr.msra.gmra.mrb[0].mxu1 %vm263_vm2, %v353_v61 }
 0x2c8   : > { %965 = vmatpush3.bf16.xpose.msra.mxu1 %v498_v63 }
 0x2c9   : > { %1001 = vmatprep.subr.msk.bf16.mxu1 %vm157_vm0, %v480_v62 }
 0x2ca   : > { %v474_v24 = vpop.permute.xlu0 %473 }
 0x2d0   : > { %967 = vmatpush3.bf16.xpose.msra.mxu1 %v501_v0 }
 0x2e7   : > { %v332_v1 = vpop.xlane.xlu1 %331 }
 0x2e8   : > { %1039 = vrcp.f32 %v332_v1 }
 0x2e9   : > { %1041 = vrcp.f32 %v329_v55 }
 0x2ea   : > { %1043 = vrcp.f32 %v335_v7 }
 0x2eb   : > { %v326_v2 = vpop.xlane.xlu1 %325 }
 0x2ec   : > { %1045 = vrcp.f32 %v326_v2 }
 0x2ef   : > { %v482_v4 = vpop.permute.xlu1 %481 }
 0x2f0   : > { %v504_v5 = vsel %vm157_vm0, %v482_v4, 0  ;;  %1002 = vmatprep.subr.msk.bf16.mxu1 %vm157_vm0, %v482_v4 }
 0x2f1   : > { %969 = vmatpush3.bf16.xpose.msra.mxu1 %v504_v5 }
 0x2f2   : > { %v1040_v6 = vpop.eup %1039 }
 0x2f3   : > { %v484_v8 = vpop.permute.xlu1 %483  ;;  %v1042_v9 = vpop.eup %1041  ;;  %v350_v15 = vmul.f32 %v1040_v6, %v1028_v43 }
 0x2f4   : > { %1003 = vmatprep.subr.msk.bf16.mxu1 %vm157_vm0, %v484_v8  ;;  %v1044_v12 = vpop.eup %1043  ;;  %v507_v14 = vsel %vm157_vm0, %v484_v8, 0  ;;  %v349_v17 = vmul.f32 %v1042_v9, %v1217_v29 }
 0x2f5   : > { %v351_v18 = vmul.f32 %v1044_v12, %v1213_v27 }
 0x2f6   : > { %v1046_v13 = vpop.eup %1045 }
 0x2f7   : > { %v348_v16 = vmul.f32 %v1046_v13, %v1030_v46  ;;  %v355_v20 = vpack.c.bf16 %v351_v18, %v350_v15  ;;  %v472_v23 = vpop.permute.xlu1 %471 }
 0x2f9   : > { %v354_v19 = vpack.c.bf16 %v349_v17, %v348_v16  ;;  %971 = vmatpush3.bf16.xpose.msra.mxu1 %v507_v14 }
 0x2fb   : > { %960 = vmatprep.mubr.msk.bf16.mxu1 %vm263_vm2, %v354_v19  ;;  %v476_v25 = vpop.permute.xlu1 %475 }
 0x2fc   : > { %961 = vmatmul.mubr.msk.bf16.gmra.mrb[4].mxu1 %vm263_vm2, %v355_v20 }
 0x2fd   : > { %972 = vmatprep.mubr.msk.bf16.mxu1 %vm157_vm0, %v470_v22 }
 0x304   : > { %973 = vmatmul.mubr.msk.bf16.vlgmr.msra.gmra.mrb[8].mxu1 %vm157_vm0, %v472_v23 }
 0x305   : > { %976 = vmatprep.mubr.msk.bf16.mxu1 %vm157_vm0, %v474_v24 }
 0x30c   : > { %977 = vmatmul.mubr.msk.bf16.gmra.mrb[12].mxu1 %vm157_vm0, %v476_v25 }
 0x39a   : > { %v958_v26 = vpop.f32.mrb[0].mxu1 }
 0x39b   : > { %435 = vst.msk [vmem:[%s1279_s18 + $0x10] sm:$0xff] %vm157_vm0, %v958_v26  ;;  %v402_v27 = vpop.f32.mrb[1].mxu1 }
 0x39c   : > { %433 = vst.msk [vmem:[%s1279_s18] sm:$0xff] %vm157_vm0, %v402_v27  ;;  %v959_v28 = vpop.f32.mrb[2].mxu1 }
 0x39d   : > { %436 = vst.msk [vmem:[%s1279_s18 + $0x18] sm:$0xff] %vm157_vm0, %v959_v28  ;;  %v405_v29 = vpop.f32.mrb[3].mxu1 }
 0x39e   : > { %434 = vst.msk [vmem:[%s1279_s18 + $0x8] sm:$0xff] %vm157_vm0, %v405_v29 }
 0x3cf   : > { %v962_v30 = vpop.f32.mrb[4].mxu1 }
 0x3d0   : > { %439 = vst.msk [vmem:[%s1279_s18 + $0x30] sm:$0xff] %vm157_vm0, %v962_v30  ;;  %v418_v31 = vpop.f32.mrb[5].mxu1 }
 0x3d1   : > { %437 = vst.msk [vmem:[%s1279_s18 + $0x20] sm:$0xff] %vm157_vm0, %v418_v31  ;;  %v963_v32 = vpop.f32.mrb[6].mxu1 }
 0x3d2   : > { %440 = vst.msk [vmem:[%s1279_s18 + $0x38] sm:$0xff] %vm157_vm0, %v963_v32  ;;  %v421_v34 = vpop.f32.mrb[7].mxu1 }
 0x3d3   : > { %438 = vst.msk [vmem:[%s1279_s18 + $0x28] sm:$0xff] %vm157_vm0, %v421_v34 }
 0x3d7   : > { %v974_v35 = vpop.f32.mrb[8].mxu1 }
 0x3d8   : > { %v543_v37 = vpop.f32.mrb[9].mxu1  ;;  %v576_v38 = vmul.f32 0.17677669, %v974_v35 }
 0x3d9   : > { %v574_v39 = vmul.f32 0.17677669, %v543_v37  ;;  %v975_v40 = vpop.f32.mrb[10].mxu1 }
 0x3da   : > { %v546_v41 = vpop.f32.mrb[11].mxu1  ;;  %v577_v44 = vmul.f32 0.17677669, %v975_v40  ;;  %v584_v3 = vsel %vm120_vm1, %v576_v38, -1e+30 }
 0x3db   : > { %v575_v42 = vmul.f32 0.17677669, %v546_v41  ;;  %v582_v43 = vsel %vm120_vm1, %v574_v39, -1e+30  ;;  %v596_v50 = vsel %vm263_vm2, %v584_v3, -inf }
 0x3dc   : > { %v590_v46 = vsel %vm263_vm2, %v582_v43, -inf  ;;  %v585_v7 = vsel %vm120_vm1, %v577_v44, -1e+30 }
 0x3dd   : > { %591 = vmax.xlane.f32.xlu0 %v590_v46  ;;  %v583_v47 = vsel %vm120_vm1, %v575_v42, -1e+30  ;;  %v599_v11 = vsel %vm263_vm2, %v585_v7, -inf }
 0x3de   : > { %v593_v45 = vsel %vm263_vm2, %v583_v47, -inf }
 0x3df   : > { %594 = vmax.xlane.f32.xlu1 %v593_v45  ;;  %v978_v48 = vpop.f32.mrb[12].mxu1 }
 0x3e0   : > { %v559_v49 = vpop.f32.mrb[13].mxu1  ;;  %v580_v51 = vmul.f32 0.17677669, %v978_v48 }
 0x3e1   : > { %v578_v52 = vmul.f32 0.17677669, %v559_v49  ;;  %597 = vmax.xlane.f32.xlu0 %v596_v50  ;;  %v979_v53 = vpop.f32.mrb[14].mxu1 }
 0x3e2   : > { %v562_v54 = vpop.f32.mrb[15].mxu1  ;;  %v581_v58 = vmul.f32 0.17677669, %v979_v53  ;;  %v588_v60 = vsel %vm120_vm1, %v580_v51, -1e+30 }
 0x3e3   : > { %v579_v10 = vmul.f32 0.17677669, %v562_v54  ;;  %v586_v55 = vsel %vm120_vm1, %v578_v52, -1e+30  ;;  %v608_v62 = vsel %vm263_vm2, %v588_v60, -inf }
 0x3e4   : > { %v602_v56 = vsel %vm263_vm2, %v586_v55, -inf  ;;  %v589_v0 = vsel %vm120_vm1, %v581_v58, -1e+30 }
 0x3e5   : > { %600 = vmax.xlane.f32.xlu0 %v599_v11  ;;  %603 = vmax.xlane.f32.xlu1 %v602_v56  ;;  %v587_v61 = vsel %vm120_vm1, %v579_v10, -1e+30  ;;  %v611_v1 = vsel %vm263_vm2, %v589_v0, -inf }
 0x3e6   : > { %v605_v63 = vsel %vm263_vm2, %v587_v61, -inf }
 0x3e9   : > { %609 = vmax.xlane.f32.xlu1 %v608_v62  ;;  %606 = vmax.xlane.f32.xlu0 %v605_v63 }
 0x3ed   : > { %612 = vmax.xlane.f32.xlu0 %v611_v1 }
 0x3fa   : > { %686 = vrot.lane.b32.xlu1 %v1188_v57, %s1089_s14 }
 0x46a   : > { %v592_v2 = vpop.xlane.xlu0 %591 }
 0x46b   : > { %v614_v4 = vsub.f32 %v582_v43, %v592_v2 }
 0x46c   : > { %v595_v5 = vpop.xlane.xlu1 %594 }
 0x46d   : > { %v622_v9 = vmul.f32 1.442695, %v614_v4  ;;  %v615_v13 = vsub.f32 %v583_v47, %v595_v5 }
 0x46e   : > { %v598_v6 = vpop.xlane.xlu0 %597 }
 0x46f   : > { %v616_v8 = vsub.f32 %v584_v3, %v598_v6  ;;  %v624_v18 = vmul.f32 1.442695, %v615_v13 }
 0x471   : > { %v626_v12 = vmul.f32 1.442695, %v616_v8 }
 0x472   : > { %v604_v14 = vpop.xlane.xlu1 %603  ;;  %v601_v15 = vpop.xlane.xlu0 %600 }
 0x473   : > { %1047 = vpow2.f32 %v626_v12  ;;  %v617_v16 = vsub.f32 %v585_v7, %v601_v15  ;;  %v618_v21 = vsub.f32 %v586_v55, %v604_v14 }
 0x474   : > { %1049 = vpow2.f32 %v622_v9 }
 0x475   : > { %v628_v17 = vmul.f32 1.442695, %v617_v16  ;;  %v630_v57 = vmul.f32 1.442695, %v618_v21 }
 0x476   : > { %v610_v19 = vpop.xlane.xlu1 %609  ;;  %v607_v20 = vpop.xlane.xlu0 %606 }
 0x477   : > { %v620_v22 = vsub.f32 %v588_v60, %v610_v19  ;;  %1051 = vpow2.f32 %v628_v17  ;;  %v619_v24 = vsub.f32 %v587_v61, %v607_v20 }
 0x478   : > { %1053 = vpow2.f32 %v624_v18 }
 0x479   : > { %v634_v23 = vmul.f32 1.442695, %v620_v22  ;;  %v632_v30 = vmul.f32 1.442695, %v619_v24 }
 0x47a   : > { %v613_v25 = vpop.xlane.xlu0 %612  ;;  %v687_v26 = vpop.permute.xlu1 %686 }
 0x47b   : > { %1055 = vpow2.f32 %v634_v23  ;;  %v621_v27 = vsub.f32 %v589_v0, %v613_v25  ;;  %980 = vmatprep.subr.bf16.mxu0 %v687_v26 }
 0x47c   : > { %981 = vmatpush3.bf16.msra.mxu0 %v687_v26  ;;  %1057 = vpow2.f32 %v630_v57 }
 0x47d   : > { %v1323_v28 = vpop.eup %1047  ;;  %v636_v29 = vmul.f32 1.442695, %v621_v27 }
 0x47e   : > { %v644_v31 = vsel %vm263_vm2, %v1323_v28, 0.0  ;;  %v1050_v32 = vpop.eup %1049 }
 0x47f   : > { %1059 = vpow2.f32 %v636_v29  ;;  %645 = vadd.xlane.f32.xlu1 %v644_v31  ;;  %v638_v35 = vsel %vm263_vm2, %v1050_v32, 0.0 }
 0x480   : > { %1061 = vpow2.f32 %v632_v30 }
 0x481   : > { %v1052_v34 = vpop.eup %1051 }
 0x482   : > { %v647_v37 = vsel %vm263_vm2, %v1052_v34, 0.0  ;;  %v1054_v38 = vpop.eup %1053 }
 0x483   : > { %639 = vadd.xlane.f32.xlu1 %v638_v35  ;;  %648 = vadd.xlane.f32.xlu0 %v647_v37  ;;  %v641_v42 = vsel %vm263_vm2, %v1054_v38, 0.0 }
 0x485   : > { %v1329_v39 = vpop.eup %1055 }
 0x486   : > { %v656_v40 = vsel %vm263_vm2, %v1329_v39, 0.0  ;;  %v1058_v41 = vpop.eup %1057 }
 0x487   : > { %657 = vadd.xlane.f32.xlu1 %v656_v40  ;;  %642 = vadd.xlane.f32.xlu0 %v641_v42  ;;  %v650_v44 = vsel %vm263_vm2, %v1058_v41, 0.0 }
 0x489   : > { %v1060_v43 = vpop.eup %1059 }
 0x48a   : > { %v659_v46 = vsel %vm263_vm2, %v1060_v43, 0.0  ;;  %v1062_v47 = vpop.eup %1061 }
 0x48b   : > { %651 = vadd.xlane.f32.xlu1 %v650_v44  ;;  %660 = vadd.xlane.f32.xlu0 %v659_v46  ;;  %v653_v3 = vsel %vm263_vm2, %v1062_v47, 0.0 }
 0x48f   : > { %654 = vadd.xlane.f32.xlu0 %v653_v3 }
 0x49c   : > { %690 = vrot.lane.b32.xlu1 %v1223_v33, %s1089_s14 }
 0x4a0   : > { %692 = vrot.lane.b32.xlu1 %v1229_v36, %s1089_s14 }
 0x4a5   : > { %688 = vrot.lane.b32.xlu0 %v1191_v59, %s1089_s14 }
 0x50c   : > { %v646_v45 = vpop.xlane.xlu1 %645 }
 0x510   : > { %v640_v48 = vpop.xlane.xlu1 %639  ;;  %v649_v49 = vpop.xlane.xlu0 %648 }
 0x511   : > { %1063 = vrcp.f32 %v640_v48 }
 0x514   : > { %v658_v50 = vpop.xlane.xlu1 %657  ;;  %v643_v7 = vpop.xlane.xlu0 %642 }
 0x515   : > { %1065 = vrcp.f32 %v643_v7 }
 0x516   : > { %1067 = vrcp.f32 %v649_v49 }
 0x517   : > { %1069 = vrcp.f32 %v646_v45 }
 0x518   : > { %v661_v51 = vpop.xlane.xlu0 %660  ;;  %v652_v52 = vpop.xlane.xlu1 %651 }
 0x519   : > { %1071 = vrcp.f32 %v652_v52 }
 0x51b   : > { %v1064_v33 = vpop.eup %1063 }
 0x51c   : > { %v655_v53 = vpop.xlane.xlu0 %654  ;;  %v691_v54 = vpop.permute.xlu1 %690  ;;  %v670_v55 = vmul.f32 %v1064_v33, %v1050_v32 }
 0x51d   : > { %1073 = vrcp.f32 %v655_v53 }
 0x51e   : > { %1075 = vrcp.f32 %v661_v51 }
 0x51f   : > { %v1066_v36 = vpop.eup %1065  ;;  %1077 = vrcp.f32 %v658_v50 }
 0x520   : > { %v689_v10 = vpop.permute.xlu0 %688  ;;  %v671_v59 = vmul.f32 %v1066_v36, %v1054_v38  ;;  %v1068_v56 = vpop.eup %1067 }
 0x521   : > { %982 = vmatprep.subr.bf16.mxu0 %v689_v10  ;;  %v693_v58 = vpop.permute.xlu1 %692  ;;  %v1070_v60 = vpop.eup %1069  ;;  %v673_v63 = vmul.f32 %v1068_v56, %v1052_v34 }
 0x522   : > { %983 = vmatpush3.bf16.msra.mxu0 %v689_v10  ;;  %v678_v11 = vpack.c.bf16 %v671_v59, %v670_v55  ;;  %v672_v1 = vmul.f32 %v1070_v60, %v1323_v28 }
 0x523   : > { %984 = vmatprep.subr.bf16.mxu0 %v691_v54  ;;  %v1072_v61 = vpop.eup %1071 }
 0x524   : > { %988 = vmatprep.mubr.msk.bf16.mxu0 %vm263_vm2, %v678_v11  ;;  %v674_v2 = vmul.f32 %v1072_v61, %v1058_v41  ;;  %v679_v4 = vpack.c.bf16 %v673_v63, %v672_v1 }
 0x526   : > { %985 = vmatpush3.bf16.msra.mxu0 %v691_v54 }
 0x527   : > { %v1074_v62 = vpop.eup %1073  ;;  %986 = vmatprep.subr.bf16.mxu0 %v693_v58 }
 0x528   : > { %v675_v0 = vmul.f32 %v1074_v62, %v1062_v47  ;;  %v1076_v5 = vpop.eup %1075 }
 0x529   : > { %v1078_v8 = vpop.eup %1077  ;;  %v677_v9 = vmul.f32 %v1076_v5, %v1060_v43 }
 0x52a   : > { %987 = vmatpush3.bf16.msra.mxu0 %v693_v58  ;;  %v680_v6 = vpack.c.bf16 %v675_v0, %v674_v2  ;;  %v676_v12 = vmul.f32 %v1078_v8, %v1329_v39 }
 0x52c   : > { %v681_v13 = vpack.c.bf16 %v677_v9, %v676_v12 }
 0x52d   : > { %989 = vmatmul.mubr.msk.bf16.vlgmr.msra.gmra.mrb[8].mxu0 %vm263_vm2, %v679_v4 }
 0x52e   : > { %992 = vmatprep.mubr.msk.bf16.mxu0 %vm263_vm2, %v680_v6 }
 0x535   : > { %993 = vmatmul.mubr.msk.bf16.gmra.mrb[12].mxu0 %vm263_vm2, %v681_v13 }
 0x600   : > { %v990_v14 = vpop.f32.mrb[8].mxu0 }
 0x601   : > { %787 = vrot.lane.b32.xlu0 %v990_v14, %s1088_s13  ;;  %v744_v15 = vpop.f32.mrb[9].mxu0 }
 0x602   : > { %v991_v16 = vpop.f32.mrb[10].mxu0 }
 0x603   : > { %789 = vrot.lane.b32.xlu1 %v991_v16, %s1088_s13  ;;  %v747_v21 = vpop.f32.mrb[11].mxu0 }
 0x605   : > { %783 = vrot.lane.b32.xlu0 %v744_v15, %s1088_s13 }
 0x607   : > { %785 = vrot.lane.b32.xlu1 %v747_v21, %s1088_s13 }
 0x608   : > { %v994_v17 = vpop.f32.mrb[12].mxu0 }
 0x609   : > { %v760_v18 = vpop.f32.mrb[13].mxu0 }
 0x60a   : > { %791 = vrot.lane.b32.xlu0 %v760_v18, %s1088_s13  ;;  %v995_v19 = vpop.f32.mrb[14].mxu0 }
 0x60b   : > { %v763_v20 = vpop.f32.mrb[15].mxu0 }
 0x60c   : > { %793 = vrot.lane.b32.xlu1 %v763_v20, %s1088_s13 }
 0x60e   : > { %795 = vrot.lane.b32.xlu0 %v994_v17, %s1088_s13 }
 0x610   : > { %797 = vrot.lane.b32.xlu1 %v995_v19, %s1088_s13 }
 0x673   : > { %v788_v22 = vpop.permute.xlu0 %787 }
 0x674   : > { %810 = vst.msk [vmem:[%s1279_s18 + $0x10] sm:$0xff] %vm807_vm3, %v788_v22 }
 0x675   : > { %v790_v57 = vpop.permute.xlu1 %789 }
 0x676   : > { %811 = vst.msk [vmem:[%s1279_s18 + $0x18] sm:$0xff] %vm807_vm3, %v790_v57 }
 0x677   : > { %v784_v23 = vpop.permute.xlu0 %783 }
 0x678   : > { %808 = vst.msk [vmem:[%s1279_s18] sm:$0xff] %vm807_vm3, %v784_v23 }
 0x679   : > { %v786_v24 = vpop.permute.xlu1 %785 }
 0x67a   : > { %809 = vst.msk [vmem:[%s1279_s18 + $0x8] sm:$0xff] %vm807_vm3, %v786_v24 }
 0x67c   : > { %v792_v25 = vpop.permute.xlu0 %791 }
 0x67d   : > { %812 = vst.msk [vmem:[%s1279_s18 + $0x20] sm:$0xff] %vm807_vm3, %v792_v25 }
 0x67e   : > { %v794_v26 = vpop.permute.xlu1 %793 }
 0x67f   : > { %813 = vst.msk [vmem:[%s1279_s18 + $0x28] sm:$0xff] %vm807_vm3, %v794_v26 }
 0x680   : > { %v796_v27 = vpop.permute.xlu0 %795 }
 0x681   : > { %814 = vst.msk [vmem:[%s1279_s18 + $0x30] sm:$0xff] %vm807_vm3, %v796_v27 }
 0x682   : > { %v798_v28 = vpop.permute.xlu1 %797 }
 0x683   : > { %815 = vst.msk [vmem:[%s1279_s18 + $0x38] sm:$0xff] %vm807_vm3, %v798_v28 }
 0x684 PF: > { %s11_s6 = sadd.s32 1, %s1085_s6  }
 0x685   : > { %p8_p4 = scmp.ge.s32.totalorder %s11_s6, 4  }
 0x687   :  { %10 = sbr.rel (!%p8_p4) target bundleno = 1 (0x1), region = 54 }

// kernel: _pallas_forward.20
= control target key start
LH: loop header
LB: loop body
LE: loop exit
PB: predicated region body
PF: predicated region fallthrough
CT: control target
= control target key end

     0   :  { %s869_s18 = smov 0   ;;  %s1089_s0 = inlined_call_operand.vmem [shape: f32[128,64], index: 0, kind: input, shape index: {}]   ;;  %s1090_s1 = inlined_call_operand.vmem [shape: f32[1,64], index: 1, kind: input, shape index: {}]   ;;  %s1091_s2 = inlined_call_operand.vmem [shape: f32[1,64], index: 2, kind: input, shape index: {}]   ;;  %s1092_s3 = inlined_call_operand.vmem [shape: bf16[64,256], index: 3, kind: input, shape index: {}]   ;;  %s1093_s4 = inlined_call_operand.vmem [shape: f32[1,256], index: 4, kind: input, shape index: {}]   ;;  %s1094_s5 = inlined_call_operand.vmem [shape: f32[128,256], index: 5, kind: output, shape index: {}]  }
   0x1 LB: > { %s694_s19 = sadd.s32 4294967295, %s836_s18   ;;  %p698_p0 = scmp.ge.s32.totalorder %s836_s18, 1  ;;  %s836_s18 = sphi %s869_s18, %s15_s18  }
   0x2   : > { %p188_p1 = scmp.lt.s32.totalorder %s836_s18, 3 }
   0x4   : > { %p189_p2 = pnand %p698_p0, %p188_p1 }
   0x5   : > { %s699_s20 = sshll.u32 (!%p189_p2), %s694_s19, 3  ;;  %vm239_vm0 = vcmask (!%p189_p2), 523264   ;;  %v738_v56 = vld [vmem:[%s1092_s3 + $0x4] ss:$8 sps:$4 sm:$0xff] (!%p189_p2)   ;;  %v740_v57 = vld [vmem:[%s1092_s3] ss:$8 sps:$4 sm:$0xff] (!%p189_p2)  }
   0x6   : > { %192 = sbr.rel (%p189_p2) target bundleno = 609 (0x261), region = 40  ;;  %p218_p3 = scmp.lt.s32.totalorder (!%p189_p2), %s699_s20, 15  ;;  %451 = vmatprep.subr.bf16.mxu0 (!%p189_p2), %v738_v56  ;;  %721 = vmatprep.subr.bf16.mxu1 (!%p189_p2), %v738_v56  ;;  %v741_v58 = vld [vmem:[%s1092_s3 + $0x14] ss:$8 sps:$4 sm:$0xff] (!%p189_p2)   ;;  %v743_v59 = vld [vmem:[%s1092_s3 + $0x10] ss:$8 sps:$4 sm:$0xff] (!%p189_p2)  }
   0x7   : > { %452 = vmatpush1.bf16.msra.mxu0 (!%p189_p2), %v740_v57  ;;  %725 = vmatpush1.bf16.msra.mxu1 (!%p189_p2), %v740_v57  ;;  %v744_v60 = vld [vmem:[%s1092_s3 + $0x24] ss:$8 sps:$4 sm:$0xff] (!%p189_p2)   ;;  %v746_v61 = vld [vmem:[%s1092_s3 + $0x20] ss:$8 sps:$4 sm:$0xff] (!%p189_p2)   ;;  %v747_v62 = vld [vmem:[%s1092_s3 + $0x34] ss:$8 sps:$4 sm:$0xff] (!%p189_p2)  }
   0x8   : > { %453 = vmatprep.subr.bf16.mxu0 (!%p189_p2), %v741_v58  ;;  %722 = vmatprep.subr.bf16.mxu1 (!%p189_p2), %v741_v58  ;;  %v749_v63 = vld [vmem:[%s1092_s3 + $0x30] ss:$8 sps:$4 sm:$0xff] (!%p189_p2)  }
   0xb   : > { %454 = vmatpush1.bf16.msra.mxu0 (!%p189_p2), %v743_v59  ;;  %726 = vmatpush1.bf16.msra.mxu1 (!%p189_p2), %v743_v59 }
   0xc   : > { %455 = vmatprep.subr.bf16.mxu0 (!%p189_p2), %v744_v60  ;;  %723 = vmatprep.subr.bf16.mxu1 (!%p189_p2), %v744_v60 }
   0xd   : > { %s1096_s20 = smov (!%p218_p3, %s699_s20), 15 }
   0xe   : > { %s700_s21 = sshll.u32 %s1096_s20, 3 }
   0xf   : > { %s221_s24 = scalar_lea.vmem %s1089_s0, %s700_s21  ;;  %456 = vmatpush1.bf16.msra.mxu0 %v746_v61  ;;  %727 = vmatpush1.bf16.msra.mxu1 %v746_v61 }
  0x10   : > { %v231_v0 = vld [vmem:[%s221_s24] sm:$0xff]  ;;  %v232_v2 = vld [vmem:[%s221_s24 + $0x8] sm:$0xff]  ;;  %v233_v8 = vld [vmem:[%s221_s24 + $0x10] sm:$0xff]  ;;  %457 = vmatprep.subr.bf16.mxu0 %v747_v62  ;;  %724 = vmatprep.subr.bf16.mxu1 %v747_v62 }
  0x11   : > { %v235_v1 = vld [vmem:[%s221_s24 + $0x20] sm:$0xff]  ;;  %v240_v3 = vsel %vm239_vm0, %v231_v0, 0.0  ;;  %v236_v5 = vld [vmem:[%s221_s24 + $0x28] sm:$0xff]  ;;  %v243_v6 = vsel %vm239_vm0, %v232_v2, 0.0  ;;  %v234_v9 = vld [vmem:[%s221_s24 + $0x18] sm:$0xff]  ;;  %v246_v10 = vsel %vm239_vm0, %v233_v8, 0.0 }
  0x12   : > { %v252_v4 = vsel %vm239_vm0, %v235_v1, 0.0  ;;  %241 = vadd.xlane.f32.xlu0 %v240_v3  ;;  %v255_v7 = vsel %vm239_vm0, %v236_v5, 0.0  ;;  %v249_v11 = vsel %vm239_vm0, %v234_v9, 0.0  ;;  %v237_v12 = vld [vmem:[%s221_s24 + $0x30] sm:$0xff]  ;;  %v238_v13 = vld [vmem:[%s221_s24 + $0x38] sm:$0xff]  ;;  %s720_s24 = sshll.u32 %s1096_s20, 4 }
  0x13   : > { %253 = vadd.xlane.f32.xlu1 %v252_v4  ;;  %v258_v14 = vsel %vm239_vm0, %v237_v12, 0.0  ;;  %v261_v15 = vsel %vm239_vm0, %v238_v13, 0.0  ;;  %458 = vmatpush1.bf16.msra.mxu0 %v749_v63  ;;  %s1052_s27 = scalar_lea.vmem %s1094_s5, %s720_s24 }
  0x14   : > { %728 = vmatpush1.bf16.msra.mxu1 %v749_v63 }
  0x16   : > { %244 = vadd.xlane.f32.xlu0 %v243_v6 }
  0x17   : > { %256 = vadd.xlane.f32.xlu1 %v255_v7 }
  0x1a   : > { %247 = vadd.xlane.f32.xlu0 %v246_v10 }
  0x1b   : > { %250 = vadd.xlane.f32.xlu1 %v249_v11 }
  0x1e   : > { %259 = vadd.xlane.f32.xlu0 %v258_v14 }
  0x1f   : > { %262 = vadd.xlane.f32.xlu1 %v261_v15 }
  0x9f   : > { %v242_v16 = vpop.xlane.xlu0 %241 }
  0xa0   : > { %v254_v17 = vpop.xlane.xlu1 %253  ;;  %v265_v18 = vmul.f32 0.015625, %v242_v16 }
  0xa1   : > { %v269_v19 = vmul.f32 0.015625, %v254_v17 }
  0xa2   : > { %v891_v20 = vsub.f32 %v231_v0, %v265_v18  ;;  %v838_v0 = vmov 0  }
  0xa3   : > { %v893_v21 = vsub.f32 %v235_v1, %v269_v19  ;;  %v245_v22 = vpop.xlane.xlu0 %244  ;;  %483 = vmatprep.mubr.bf16.mxu0 %v838_v0  ;;  %503 = vmatprep.mubr.bf16.mxu1 %v838_v0 }
  0xa4   : > { %v257_v23 = vpop.xlane.xlu1 %256  ;;  %v266_v24 = vmul.f32 0.015625, %v245_v22  ;;  %v281_v26 = vmul.f32 %v891_v20, %v891_v20 }
  0xa5   : > { %v270_v25 = vmul.f32 0.015625, %v257_v23  ;;  %v285_v27 = vmul.f32 %v893_v21, %v893_v21 }
  0xa6   : > { %v899_v28 = vsub.f32 %v232_v2, %v266_v24  ;;  %v289_v30 = vsel %vm239_vm0, %v281_v26, 0.0 }
  0xa7   : > { %v901_v29 = vsub.f32 %v236_v5, %v270_v25  ;;  %290 = vadd.xlane.f32.xlu0 %v289_v30  ;;  %v248_v31 = vpop.xlane.xlu0 %247  ;;  %v301_v33 = vsel %vm239_vm0, %v285_v27, 0.0  ;;  %v704_v30 = vld [vmem:[%s1090_s1] ss:$0 sm:$0xff] }
  0xa8   : > { %v251_v32 = vpop.xlane.xlu1 %250  ;;  %v267_v34 = vmul.f32 0.015625, %v248_v31  ;;  %v282_v36 = vmul.f32 %v899_v28, %v899_v28 }
  0xa9   : > { %v268_v35 = vmul.f32 0.015625, %v251_v32  ;;  %v286_v37 = vmul.f32 %v901_v29, %v901_v29 }
  0xaa   : > { %v909_v38 = vsub.f32 %v233_v8, %v267_v34  ;;  %v292_v40 = vsel %vm239_vm0, %v282_v36, 0.0 }
  0xab   : > { %v911_v39 = vsub.f32 %v234_v9, %v268_v35  ;;  %302 = vadd.xlane.f32.xlu0 %v301_v33  ;;  %293 = vadd.xlane.f32.xlu1 %v292_v40  ;;  %v260_v41 = vpop.xlane.xlu0 %259  ;;  %v304_v43 = vsel %vm239_vm0, %v286_v37, 0.0 }
  0xac   : > { %v263_v42 = vpop.xlane.xlu1 %262  ;;  %v271_v44 = vmul.f32 0.015625, %v260_v41  ;;  %v283_v46 = vmul.f32 %v909_v38, %v909_v38 }
  0xad   : > { %v272_v45 = vmul.f32 0.015625, %v263_v42  ;;  %v284_v47 = vmul.f32 %v911_v39, %v911_v39 }
  0xae   : > { %v919_v48 = vsub.f32 %v237_v12, %v271_v44  ;;  %v295_v50 = vsel %vm239_vm0, %v283_v46, 0.0 }
  0xaf   : > { %v921_v49 = vsub.f32 %v238_v13, %v272_v45  ;;  %305 = vadd.xlane.f32.xlu1 %v304_v43  ;;  %296 = vadd.xlane.f32.xlu0 %v295_v50  ;;  %v298_v51 = vsel %vm239_vm0, %v284_v47, 0.0 }
  0xb0   : > { %v287_v52 = vmul.f32 %v919_v48, %v919_v48 }
  0xb1   : > { %v288_v53 = vmul.f32 %v921_v49, %v921_v49 }
  0xb2   : > { %v307_v54 = vsel %vm239_vm0, %v287_v52, 0.0 }
  0xb3   : > { %299 = vadd.xlane.f32.xlu1 %v298_v51  ;;  %308 = vadd.xlane.f32.xlu0 %v307_v54  ;;  %v310_v55 = vsel %vm239_vm0, %v288_v53, 0.0 }
  0xb7   : > { %311 = vadd.xlane.f32.xlu1 %v310_v55 }
 0x134   : > { %v291_v1 = vpop.xlane.xlu0 %290 }
 0x135   : > { %v313_v2 = vmul.f32 0.015625, %v291_v1  ;;  %v389_v1 = vlaneseq }
 0x137   : > { %v321_v3 = vadd.f32 1e-05, %v313_v2  ;;  %v390_v2 = vshrl.u32 %v389_v1, 7 }
 0x138   : > { %v294_v4 = vpop.xlane.xlu1 %293  ;;  %v303_v5 = vpop.xlane.xlu0 %302 }
 0x139   : > { %750 = vrsqrt.f32 %v321_v3  ;;  %v314_v6 = vmul.f32 0.015625, %v294_v4  ;;  %v317_v7 = vmul.f32 0.015625, %v303_v5  ;;  %v391_v3 = vsub.s32 0, %v390_v2 }
 0x13a   : > { %v395_v4 = vsub.s32 1, %v390_v2 }
 0x13b   : > { %v322_v8 = vadd.f32 1e-05, %v314_v6  ;;  %v325_v9 = vadd.f32 1e-05, %v317_v7 }
 0x13c   : > { %v306_v10 = vpop.xlane.xlu1 %305  ;;  %v297_v11 = vpop.xlane.xlu0 %296 }
 0x13d   : > { %752 = vrsqrt.f32 %v322_v8  ;;  %v318_v12 = vmul.f32 0.015625, %v306_v10  ;;  %v315_v13 = vmul.f32 0.015625, %v297_v11 }
 0x13e   : > { %754 = vrsqrt.f32 %v325_v9 }
 0x13f   : > { %v326_v14 = vadd.f32 1e-05, %v318_v12  ;;  %v323_v15 = vadd.f32 1e-05, %v315_v13 }
 0x140   : > { %v300_v16 = vpop.xlane.xlu1 %299  ;;  %v309_v17 = vpop.xlane.xlu0 %308 }
 0x141   : > { %756 = vrsqrt.f32 %v326_v14  ;;  %v316_v18 = vmul.f32 0.015625, %v300_v16  ;;  %v319_v19 = vmul.f32 0.015625, %v309_v17 }
 0x142   : > { %758 = vrsqrt.f32 %v323_v15 }
 0x143   : > { %v751_v22 = vpop.eup %750  ;;  %v324_v23 = vadd.f32 1e-05, %v316_v18  ;;  %v327_v24 = vadd.f32 1e-05, %v319_v19 }
 0x144   : > { %v337_v25 = vmul.f32 %v751_v22, %v891_v20  ;;  %v312_v26 = vpop.xlane.xlu1 %311  ;;  %v705_v20 = vld [vmem:[%s1091_s2] ss:$0 sm:$0xff] }
 0x145   : > { %760 = vrsqrt.f32 %v324_v23  ;;  %v320_v27 = vmul.f32 0.015625, %v312_v26 }
 0x146   : > { %762 = vrsqrt.f32 %v327_v24  ;;  %v352_v35 = vmul.f32 %v704_v30, %v337_v25 }
 0x147   : > { %v753_v31 = vpop.eup %752  ;;  %v328_v32 = vadd.f32 1e-05, %v320_v27 }
 0x148   : > { %v755_v33 = vpop.eup %754  ;;  %v338_v34 = vmul.f32 %v753_v31, %v899_v28  ;;  %v367_v43 = vadd.f32 %v705_v20, %v352_v35 }
 0x149   : > { %v341_v36 = vmul.f32 %v755_v33, %v893_v21  ;;  %764 = vrsqrt.f32 %v328_v32 }
 0x14a   : > { %v353_v37 = vmul.f32 %v704_v30, %v338_v34 }
 0x14b   : > { %v757_v40 = vpop.eup %756  ;;  %v356_v45 = vmul.f32 %v704_v30, %v341_v36 }
 0x14c   : > { %v759_v41 = vpop.eup %758  ;;  %v342_v42 = vmul.f32 %v757_v40, %v901_v29  ;;  %v368_v44 = vadd.f32 %v705_v20, %v353_v37 }
 0x14d   : > { %v339_v46 = vmul.f32 %v759_v41, %v909_v38  ;;  %v371_v52 = vadd.f32 %v705_v20, %v356_v45 }
 0x14e   : > { %v375_v47 = vpack.c.bf16 %v368_v44, %v367_v43  ;;  %v357_v28 = vmul.f32 %v704_v30, %v342_v42 }
 0x14f   : > { %v761_v50 = vpop.eup %760  ;;  %v354_v54 = vmul.f32 %v704_v30, %v339_v46 }
 0x150   : > { %v763_v51 = vpop.eup %762  ;;  %v340_v21 = vmul.f32 %v761_v50, %v911_v39  ;;  %714 = vmatmul.mubr.msk.bf16.vlgmr.msra.gmra.mrb[0].mxu0 %vm239_vm0, %v375_v47  ;;  %v372_v53 = vadd.f32 %v705_v20, %v357_v28 }
 0x151   : > { %v343_v55 = vmul.f32 %v763_v51, %v919_v48  ;;  %493 = vmatprep.mubr.bf16.mxu0 %v838_v0  ;;  %v369_v58 = vadd.f32 %v705_v20, %v354_v54 }
 0x152   : > { %v377_v29 = vpack.c.bf16 %v372_v53, %v371_v52  ;;  %v355_v56 = vmul.f32 %v704_v30, %v340_v21 }
 0x153   : > { %v765_v57 = vpop.eup %764  ;;  %v358_v60 = vmul.f32 %v704_v30, %v343_v55 }
 0x154   : > { %v344_v38 = vmul.f32 %v765_v57, %v921_v49  ;;  %716 = vmatmul.mubr.msk.bf16.vlgmr.msra.gmra.mrb[0].mxu1 %vm239_vm0, %v377_v29  ;;  %v370_v59 = vadd.f32 %v705_v20, %v355_v56  ;;  %v387_v49 = vld [vmem:[%s1093_s4] sm:$0x3] }
 0x155   : > { %513 = vmatprep.mubr.bf16.mxu1 %v838_v0  ;;  %v373_v62 = vadd.f32 %v705_v20, %v358_v60  ;;  %v980_v5 = vrot.slane %v387_v49, %v391_v3  ;;  %v982_v0 = vrot.slane %v387_v49, %v395_v4 }
 0x156   : > { %v376_v39 = vpack.c.bf16 %v370_v59, %v369_v58  ;;  %v359_v61 = vmul.f32 %v704_v30, %v344_v38 }
 0x158   : > { %715 = vmatmul.mubr.msk.bf16.gmra.mrb[4].mxu0 %vm239_vm0, %v376_v39  ;;  %v374_v48 = vadd.f32 %v705_v20, %v359_v61 }
 0x15a   : > { %v378_v63 = vpack.c.bf16 %v374_v48, %v373_v62 }
 0x15c   : > { %717 = vmatmul.mubr.msk.bf16.gmra.mrb[4].mxu1 %vm239_vm0, %v378_v63 }
 0x223   : > { %v485_v6 = vpop.f32.mrb[0].mxu0 }
 0x224   : > { %v985_v7 = vadd.f32 %v485_v6, %v980_v5  ;;  %v487_v8 = vpop.f32.mrb[1].mxu0 }
 0x225   : > { %v988_v9 = vadd.f32 %v487_v8, %v982_v0  ;;  %v489_v10 = vpop.f32.mrb[2].mxu0 }
 0x226   : > { %v524_v11 = vmul.f32 -1.702, %v985_v7  ;;  %v992_v12 = vadd.f32 %v489_v10, %v980_v5  ;;  %v491_v13 = vpop.f32.mrb[3].mxu0 }
 0x227   : > { %v525_v14 = vmul.f32 -1.702, %v988_v9  ;;  %v996_v15 = vadd.f32 %v491_v13, %v982_v0  ;;  %v505_v16 = vpop.f32.mrb[0].mxu1 }
 0x228   : > { %v540_v17 = vmul.f32 1.442695, %v524_v11  ;;  %v526_v18 = vmul.f32 -1.702, %v992_v12  ;;  %v1000_v19 = vadd.f32 %v505_v16, %v980_v5  ;;  %v507_v22 = vpop.f32.mrb[1].mxu1 }
 0x229   : > { %v542_v23 = vmul.f32 1.442695, %v525_v14  ;;  %v527_v24 = vmul.f32 -1.702, %v996_v15  ;;  %v1004_v25 = vadd.f32 %v507_v22, %v982_v0  ;;  %v509_v26 = vpop.f32.mrb[2].mxu1 }
 0x22a   : > { %766 = vpow2.f32 %v540_v17  ;;  %v544_v27 = vmul.f32 1.442695, %v526_v18  ;;  %v532_v30 = vmul.f32 -1.702, %v1000_v19  ;;  %v1008_v31 = vadd.f32 %v509_v26, %v980_v5  ;;  %v511_v32 = vpop.f32.mrb[3].mxu1 }
 0x22b   : > { %768 = vpow2.f32 %v542_v23  ;;  %v546_v33 = vmul.f32 1.442695, %v527_v24  ;;  %v533_v34 = vmul.f32 -1.702, %v1004_v25  ;;  %v1012_v35 = vadd.f32 %v511_v32, %v982_v0  ;;  %v495_v36 = vpop.f32.mrb[4].mxu0 }
 0x22c   : > { %770 = vpow2.f32 %v544_v27  ;;  %v556_v20 = vmul.f32 1.442695, %v532_v30  ;;  %v534_v37 = vmul.f32 -1.702, %v1008_v31  ;;  %v1016_v40 = vadd.f32 %v495_v36, %v980_v5  ;;  %v497_v41 = vpop.f32.mrb[5].mxu0 }
 0x22d   : > { %772 = vpow2.f32 %v546_v33  ;;  %v558_v42 = vmul.f32 1.442695, %v533_v34  ;;  %v535_v43 = vmul.f32 -1.702, %v1012_v35  ;;  %v1020_v44 = vadd.f32 %v497_v41, %v982_v0  ;;  %v499_v45 = vpop.f32.mrb[6].mxu0 }
 0x22e   : > { %774 = vpow2.f32 %v556_v20  ;;  %v560_v46 = vmul.f32 1.442695, %v534_v37  ;;  %v528_v47 = vmul.f32 -1.702, %v1016_v40  ;;  %v1024_v28 = vadd.f32 %v499_v45, %v980_v5  ;;  %v501_v50 = vpop.f32.mrb[7].mxu0 }
 0x22f   : > { %776 = vpow2.f32 %v558_v42  ;;  %v562_v51 = vmul.f32 1.442695, %v535_v43  ;;  %v529_v21 = vmul.f32 -1.702, %v1020_v44  ;;  %v1028_v52 = vadd.f32 %v501_v50, %v982_v0  ;;  %v515_v53 = vpop.f32.mrb[4].mxu1 }
 0x230   : > { %778 = vpow2.f32 %v560_v46  ;;  %v548_v54 = vmul.f32 1.442695, %v528_v47  ;;  %v530_v55 = vmul.f32 -1.702, %v1024_v28  ;;  %v1032_v29 = vadd.f32 %v515_v53, %v980_v5  ;;  %v517_v56 = vpop.f32.mrb[5].mxu1 }
 0x231   : > { %780 = vpow2.f32 %v562_v51  ;;  %v550_v57 = vmul.f32 1.442695, %v529_v21  ;;  %v531_v38 = vmul.f32 -1.702, %v1028_v52  ;;  %v519_v58 = vpop.f32.mrb[6].mxu1  ;;  %v1037_v10 = vadd.f32 %v517_v56, %v982_v0 }
 0x232   : > { %782 = vpow2.f32 %v548_v54  ;;  %v552_v59 = vmul.f32 1.442695, %v530_v55  ;;  %v536_v60 = vmul.f32 -1.702, %v1032_v29  ;;  %v521_v39 = vpop.f32.mrb[7].mxu1  ;;  %v1040_v14 = vadd.f32 %v519_v58, %v980_v5 }
 0x233   : > { %784 = vpow2.f32 %v550_v57  ;;  %v554_v61 = vmul.f32 1.442695, %v531_v38  ;;  %v1043_v18 = vadd.f32 %v521_v39, %v982_v0  ;;  %v537_v27 = vmul.f32 -1.702, %v1037_v10 }
 0x234   : > { %v767_v62 = vpop.eup %766  ;;  %786 = vpow2.f32 %v552_v59  ;;  %v564_v48 = vmul.f32 1.442695, %v536_v60  ;;  %v538_v5 = vmul.f32 -1.702, %v1040_v14 }
 0x235   : > { %v769_v63 = vpop.eup %768  ;;  %v572_v1 = vadd.f32 1.0, %v767_v62  ;;  %788 = vpow2.f32 %v554_v61  ;;  %v539_v0 = vmul.f32 -1.702, %v1043_v18  ;;  %v566_v42 = vmul.f32 1.442695, %v537_v27 }
 0x236   : > { %v771_v2 = vpop.eup %770  ;;  %v573_v3 = vadd.f32 1.0, %v769_v63  ;;  %790 = vpow2.f32 %v564_v48  ;;  %v568_v46 = vmul.f32 1.442695, %v538_v5 }
 0x237   : > { %v773_v49 = vpop.eup %772  ;;  %792 = vrcp.f32 %v572_v1  ;;  %v574_v4 = vadd.f32 1.0, %v771_v2  ;;  %v570_v51 = vmul.f32 1.442695, %v539_v0 }
 0x238   : > { %v775_v6 = vpop.eup %774  ;;  %794 = vrcp.f32 %v573_v3  ;;  %v575_v8 = vadd.f32 1.0, %v773_v49 }
 0x239   : > { %v777_v11 = vpop.eup %776  ;;  %796 = vrcp.f32 %v574_v4  ;;  %v580_v13 = vadd.f32 1.0, %v775_v6 }
 0x23a   : > { %v779_v16 = vpop.eup %778  ;;  %798 = vrcp.f32 %v575_v8  ;;  %v581_v17 = vadd.f32 1.0, %v777_v11 }
 0x23b   : > { %v781_v22 = vpop.eup %780  ;;  %800 = vrcp.f32 %v580_v13  ;;  %v582_v23 = vadd.f32 1.0, %v779_v16 }
 0x23c   : > { %v783_v24 = vpop.eup %782  ;;  %802 = vrcp.f32 %v581_v17  ;;  %v583_v26 = vadd.f32 1.0, %v781_v22 }
 0x23d   : > { %v785_v30 = vpop.eup %784  ;;  %804 = vrcp.f32 %v582_v23  ;;  %v576_v32 = vadd.f32 1.0, %v783_v24 }
 0x23e   : > { %v787_v33 = vpop.eup %786  ;;  %806 = vrcp.f32 %v583_v26  ;;  %v577_v34 = vadd.f32 1.0, %v785_v30 }
 0x23f   : > { %v789_v36 = vpop.eup %788  ;;  %808 = vrcp.f32 %v576_v32  ;;  %v578_v20 = vadd.f32 1.0, %v787_v33 }
 0x240   : > { %v791_v37 = vpop.eup %790  ;;  %810 = vrcp.f32 %v577_v34  ;;  %v579_v41 = vadd.f32 1.0, %v789_v36 }
 0x241   : > { %v793_v43 = vpop.eup %792  ;;  %812 = vrcp.f32 %v578_v20  ;;  %v584_v45 = vadd.f32 1.0, %v791_v37 }
 0x242   : > { %v795_v47 = vpop.eup %794  ;;  %v604_v50 = vmul.f32 %v793_v43, %v985_v7  ;;  %814 = vrcp.f32 %v579_v41 }
 0x243   : > { %v797_v21 = vpop.eup %796  ;;  %v605_v53 = vmul.f32 %v795_v47, %v988_v9  ;;  %816 = vrcp.f32 %v584_v45 }
 0x244   : > { %v799_v54 = vpop.eup %798  ;;  %620 = vst [vmem:[%s1052_s27] sm:$0xff] %v604_v50  ;;  %v606_v55 = vmul.f32 %v797_v21, %v992_v12  ;;  %818 = vpow2.f32 %v566_v42 }
 0x245   : > { %v801_v56 = vpop.eup %800  ;;  %621 = vst [vmem:[%s1052_s27 + $0x8] sm:$0xff] %v605_v53  ;;  %v607_v57 = vmul.f32 %v799_v54, %v996_v15  ;;  %820 = vpow2.f32 %v568_v46 }
 0x246   : > { %v803_v7 = vpop.eup %802  ;;  %622 = vst [vmem:[%s1052_s27 + $0x10] sm:$0xff] %v606_v55  ;;  %v612_v38 = vmul.f32 %v801_v56, %v1000_v19  ;;  %822 = vpow2.f32 %v570_v51 }
 0x247   : > { %v805_v9 = vpop.eup %804  ;;  %623 = vst [vmem:[%s1052_s27 + $0x18] sm:$0xff] %v607_v57  ;;  %v613_v58 = vmul.f32 %v803_v7, %v1004_v25 }
 0x248   : > { %v807_v12 = vpop.eup %806  ;;  %628 = vst [vmem:[%s1052_s27 + $0x40] sm:$0xff] %v612_v38  ;;  %v614_v59 = vmul.f32 %v805_v9, %v1008_v31 }
 0x249   : > { %v809_v60 = vpop.eup %808  ;;  %629 = vst [vmem:[%s1052_s27 + $0x48] sm:$0xff] %v613_v58  ;;  %v615_v15 = vmul.f32 %v807_v12, %v1012_v35 }
 0x24a   : > { %v811_v39 = vpop.eup %810  ;;  %630 = vst [vmem:[%s1052_s27 + $0x50] sm:$0xff] %v614_v59  ;;  %v608_v19 = vmul.f32 %v809_v60, %v1016_v40 }
 0x24b   : > { %v813_v61 = vpop.eup %812  ;;  %631 = vst [vmem:[%s1052_s27 + $0x58] sm:$0xff] %v615_v15  ;;  %v609_v25 = vmul.f32 %v811_v39, %v1020_v44 }
 0x24c   : > { %v815_v62 = vpop.eup %814  ;;  %624 = vst [vmem:[%s1052_s27 + $0x20] sm:$0xff] %v608_v19  ;;  %v610_v48 = vmul.f32 %v813_v61, %v1024_v28 }
 0x24d   : > { %v817_v31 = vpop.eup %816  ;;  %625 = vst [vmem:[%s1052_s27 + $0x28] sm:$0xff] %v609_v25  ;;  %v611_v63 = vmul.f32 %v815_v62, %v1028_v52 }
 0x24e   : > { %v819_v1 = vpop.eup %818  ;;  %626 = vst [vmem:[%s1052_s27 + $0x30] sm:$0xff] %v610_v48  ;;  %v616_v35 = vmul.f32 %v817_v31, %v1032_v29 }
 0x24f   : > { %v821_v2 = vpop.eup %820  ;;  %627 = vst [vmem:[%s1052_s27 + $0x38] sm:$0xff] %v611_v63  ;;  %v585_v40 = vadd.f32 1.0, %v819_v1 }
 0x250   : > { %v823_v3 = vpop.eup %822  ;;  %632 = vst [vmem:[%s1052_s27 + $0x60] sm:$0xff] %v616_v35  ;;  %v586_v44 = vadd.f32 1.0, %v821_v2 }
 0x251   : > { %824 = vrcp.f32 %v585_v40  ;;  %v587_v49 = vadd.f32 1.0, %v823_v3 }
 0x252   : > { %826 = vrcp.f32 %v586_v44 }
 0x253   : > { %828 = vrcp.f32 %v587_v49 }
 0x25b   : > { %v825_v28 = vpop.eup %824 }
 0x25c   : > { %v827_v4 = vpop.eup %826  ;;  %v617_v52 = vmul.f32 %v825_v28, %v1037_v10 }
 0x25d   : > { %v829_v6 = vpop.eup %828  ;;  %v618_v29 = vmul.f32 %v827_v4, %v1040_v14 }
 0x25e   : > { %633 = vst [vmem:[%s1052_s27 + $0x68] sm:$0xff] %v617_v52  ;;  %v619_v8 = vmul.f32 %v829_v6, %v1043_v18 }
 0x25f   : > { %634 = vst [vmem:[%s1052_s27 + $0x70] sm:$0xff] %v618_v29 }
 0x260   : > { %635 = vst [vmem:[%s1052_s27 + $0x78] sm:$0xff] %v619_v8 }
 0x261 PF: > { %s15_s18 = sadd.s32 1, %s836_s18  }
 0x262   : > { %p12_p4 = scmp.ge.s32.totalorder %s15_s18, 4  }
 0x264   :  { %14 = sbr.rel (!%p12_p4) target bundleno = 1 (0x1), region = 70 }

// kernel: _pallas_forward.21
= control target key start
LH: loop header
LB: loop body
LE: loop exit
PB: predicated region body
PF: predicated region fallthrough
CT: control target
= control target key end

     0   :  { %s689_s15 = smov 0   ;;  %s810_s0 = inlined_call_operand.vmem [shape: f32[128,256], index: 0, kind: input, shape index: {}]   ;;  %s811_s1 = inlined_call_operand.vmem [shape: bf16[256,64], index: 1, kind: input, shape index: {}]   ;;  %s812_s2 = inlined_call_operand.vmem [shape: f32[1,64], index: 2, kind: input, shape index: {}]   ;;  %s813_s3 = inlined_call_operand.vmem [shape: f32[128,64], index: 3, kind: input, shape index: {}]   ;;  %s814_s4 = inlined_call_operand.vmem [shape: f32[128,64], index: 4, kind: output, shape index: {}]  }
   0x1 LB: > { %s544_s16 = sadd.s32 4294967295, %s662_s15   ;;  %p548_p0 = scmp.ge.s32.totalorder %s662_s15, 1  ;;  %s662_s15 = sphi %s689_s15, %s14_s15  }
   0x2   : > { %p175_p1 = scmp.lt.s32.totalorder %s662_s15, 3 }
   0x4   : > { %p176_p2 = pnand %p548_p0, %p175_p1 }
   0x5   : > { %v640_v0 = vld [vmem:[%s811_s1 + $0x40] sm:$0xff] (!%p176_p2)   ;;  %s549_s19 = sshll.u32 (!%p176_p2), %s544_s16, 3  ;;  %v642_v2 = vld [vmem:[%s811_s1 + $0x48] sm:$0xff] (!%p176_p2)   ;;  %v644_v4 = vld [vmem:[%s811_s1 + $0x50] sm:$0xff] (!%p176_p2)   ;;  %vm467_vm0 = vcmask (!%p176_p2), 523264  }
   0x6   : > { %179 = sbr.rel (%p176_p2) target bundleno = 268 (0x10c), region = 36  ;;  %v641_v1 = vld [vmem:[%s811_s1] sm:$0xff] (!%p176_p2)   ;;  %576 = vmatprep.subr.bf16.mxu0 (!%p176_p2), %v640_v0  ;;  %616 = vmatprep.subr.bf16.mxu1 (!%p176_p2), %v640_v0  ;;  %p208_p3 = scmp.lt.s32.totalorder (!%p176_p2), %s549_s19, 15  ;;  %v643_v3 = vld [vmem:[%s811_s1 + $0x8] sm:$0xff] (!%p176_p2)   ;;  %v645_v5 = vld [vmem:[%s811_s1 + $0x10] sm:$0xff] (!%p176_p2)  }
   0x7   : > { %577 = vmatpush3.bf16.msra.mxu0 (!%p176_p2), %v641_v1  ;;  %624 = vmatpush3.bf16.msra.mxu1 (!%p176_p2), %v641_v1  ;;  %v646_v6 = vld [vmem:[%s811_s1 + $0x58] sm:$0xff] (!%p176_p2)   ;;  %v648_v8 = vld [vmem:[%s811_s1 + $0x60] sm:$0xff] (!%p176_p2)   ;;  %v650_v10 = vld [vmem:[%s811_s1 + $0x68] sm:$0xff] (!%p176_p2)  }
   0x8   : > { %578 = vmatprep.subr.bf16.mxu0 (!%p176_p2), %v642_v2  ;;  %617 = vmatprep.subr.bf16.mxu1 (!%p176_p2), %v642_v2  ;;  %v647_v7 = vld [vmem:[%s811_s1 + $0x18] sm:$0xff] (!%p176_p2)   ;;  %v649_v9 = vld [vmem:[%s811_s1 + $0x20] sm:$0xff] (!%p176_p2)   ;;  %v651_v17 = vld [vmem:[%s811_s1 + $0x28] sm:$0xff] (!%p176_p2)  }
   0x9   : > { %v652_v18 = vld [vmem:[%s811_s1 + $0x70] sm:$0xff] (!%p176_p2)   ;;  %v654_v20 = vld [vmem:[%s811_s1 + $0x78] sm:$0xff] (!%p176_p2)   ;;  %v556_v42 = vld [vmem:[%s812_s2] ss:$0 sm:$0xff] (!%p176_p2) }
   0xa   : > { %v653_v19 = vld [vmem:[%s811_s1 + $0x30] sm:$0xff] (!%p176_p2)   ;;  %v655_v21 = vld [vmem:[%s811_s1 + $0x38] sm:$0xff] (!%p176_p2)  }
   0xb   : > { %579 = vmatpush3.bf16.msra.mxu0 (!%p176_p2), %v643_v3  ;;  %625 = vmatpush3.bf16.msra.mxu1 (!%p176_p2), %v643_v3 }
   0xc   : > { %580 = vmatprep.subr.bf16.mxu0 (!%p176_p2), %v644_v4  ;;  %618 = vmatprep.subr.bf16.mxu1 (!%p176_p2), %v644_v4 }
   0xd   : > { %s816_s19 = smov (!%p208_p3, %s549_s19), 15 }
   0xe   : > { %s575_s6 = sshll.u32 %s816_s19, 4  ;;  %s553_s30 = sshll.u32 %s816_s19, 3 }
   0xf   : > { %581 = vmatpush3.bf16.msra.mxu0 %v645_v5  ;;  %626 = vmatpush3.bf16.msra.mxu1 %v645_v5  ;;  %s730_s13 = scalar_lea.vmem %s810_s0, %s575_s6  ;;  %s773_s7 = scalar_lea.vmem %s813_s3, %s553_s30 }
  0x10   : > { %582 = vmatprep.subr.bf16.mxu0 %v646_v6  ;;  %619 = vmatprep.subr.bf16.mxu1 %v646_v6  ;;  %v228_v11 = vld [vmem:[%s730_s13 + $0x8] sm:$0xff]  ;;  %v230_v12 = vld [vmem:[%s730_s13 + $0x18] sm:$0xff]  ;;  %v227_v22 = vld [vmem:[%s730_s13] sm:$0xff]  ;;  %s783_s11 = scalar_lea.vmem %s814_s4, %s553_s30 }
  0x11   : > { %v236_v13 = vld [vmem:[%s730_s13 + $0x48] sm:$0xff]  ;;  %v244_v14 = vpack.c.bf16 %v230_v12, %v228_v11  ;;  %v238_v15 = vld [vmem:[%s730_s13 + $0x58] sm:$0xff]  ;;  %v229_v23 = vld [vmem:[%s730_s13 + $0x10] sm:$0xff] }
  0x12   : > { %v248_v16 = vpack.c.bf16 %v238_v15, %v236_v13  ;;  %v235_v24 = vld [vmem:[%s730_s13 + $0x40] sm:$0xff]  ;;  %v237_v25 = vld [vmem:[%s730_s13 + $0x50] sm:$0xff]  ;;  %v232_v26 = vld [vmem:[%s730_s13 + $0x28] sm:$0xff]  ;;  %v243_v30 = vpack.c.bf16 %v229_v23, %v227_v22 }
  0x13   : > { %583 = vmatpush3.bf16.msra.mxu0 %v647_v7  ;;  %627 = vmatpush3.bf16.msra.mxu1 %v647_v7  ;;  %v234_v27 = vld [vmem:[%s730_s13 + $0x38] sm:$0xff]  ;;  %v240_v28 = vld [vmem:[%s730_s13 + $0x68] sm:$0xff]  ;;  %v247_v31 = vpack.c.bf16 %v237_v25, %v235_v24  ;;  %v231_v34 = vld [vmem:[%s730_s13 + $0x20] sm:$0xff] }
  0x14   : > { %584 = vmatprep.subr.bf16.mxu0 %v648_v8  ;;  %620 = vmatprep.subr.bf16.mxu1 %v648_v8  ;;  %v242_v29 = vld [vmem:[%s730_s13 + $0x78] sm:$0xff]  ;;  %v246_v32 = vpack.c.bf16 %v234_v27, %v232_v26  ;;  %v233_v35 = vld [vmem:[%s730_s13 + $0x30] sm:$0xff]  ;;  %v239_v36 = vld [vmem:[%s730_s13 + $0x60] sm:$0xff] }
  0x15   : > { %418 = vmatprep.mubr.bf16.mxu0 %v244_v14  ;;  %434 = vmatprep.mubr.bf16.mxu1 %v248_v16  ;;  %v250_v33 = vpack.c.bf16 %v242_v29, %v240_v28  ;;  %v241_v37 = vld [vmem:[%s730_s13 + $0x70] sm:$0xff]  ;;  %v245_v38 = vpack.c.bf16 %v233_v35, %v231_v34  ;;  %v451_v49 = vld [vmem:[%s773_s7] sm:$0xff]  ;;  %v452_v57 = vld [vmem:[%s773_s7 + $0x8] sm:$0xff] }
  0x16   : > { %v249_v39 = vpack.c.bf16 %v241_v37, %v239_v36  ;;  %v455_v50 = vld [vmem:[%s773_s7 + $0x20] sm:$0xff]  ;;  %v456_v58 = vld [vmem:[%s773_s7 + $0x28] sm:$0xff] }
  0x17   : > { %585 = vmatpush3.bf16.msra.mxu0 %v649_v9  ;;  %628 = vmatpush3.bf16.msra.mxu1 %v649_v9  ;;  %v453_v9 = vld [vmem:[%s773_s7 + $0x10] sm:$0xff] }
  0x18   : > { %586 = vmatprep.subr.bf16.mxu0 %v650_v10  ;;  %621 = vmatprep.subr.bf16.mxu1 %v650_v10  ;;  %v457_v10 = vld [vmem:[%s773_s7 + $0x30] sm:$0xff] }
  0x1b   : > { %587 = vmatpush3.bf16.msra.mxu0 %v651_v17  ;;  %629 = vmatpush3.bf16.msra.mxu1 %v651_v17  ;;  %v454_v17 = vld [vmem:[%s773_s7 + $0x18] sm:$0xff] }
  0x1c   : > { %588 = vmatprep.subr.bf16.mxu0 %v652_v18  ;;  %622 = vmatprep.subr.bf16.mxu1 %v652_v18  ;;  %v458_v18 = vld [vmem:[%s773_s7 + $0x38] sm:$0xff] }
  0x1f   : > { %589 = vmatpush3.bf16.msra.mxu0 %v653_v19  ;;  %630 = vmatpush3.bf16.msra.mxu1 %v653_v19 }
  0x20   : > { %590 = vmatprep.subr.bf16.mxu0 %v654_v20  ;;  %623 = vmatprep.subr.bf16.mxu1 %v654_v20 }
  0x23   : > { %591 = vmatpush3.bf16.msra.mxu0 %v655_v21  ;;  %631 = vmatpush3.bf16.msra.mxu1 %v655_v21 }
  0x26   : > { %419 = vmatmul.mubr.bf16.vlgmr.msra.gmra.mrb[0].mxu0 %v243_v30  ;;  %435 = vmatmul.mubr.bf16.vlgmr.msra.gmra.mrb[0].mxu1 %v247_v31 }
  0x27   : > { %426 = vmatprep.mubr.bf16.mxu0 %v246_v32  ;;  %442 = vmatprep.mubr.bf16.mxu1 %v250_v33 }
  0x2e   : > { %427 = vmatmul.mubr.bf16.gmra.mrb[4].mxu0 %v245_v38  ;;  %443 = vmatmul.mubr.bf16.gmra.mrb[4].mxu1 %v249_v39 }
  0xf9   : > { %v592_v40 = vpop.f32.mrb[0].mxu0  ;;  %v604_v41 = vpop.f32.mrb[0].mxu1 }
  0xfa   : > { %v593_v43 = vpop.f32.mrb[1].mxu0  ;;  %v605_v44 = vpop.f32.mrb[1].mxu1 }
  0xfb   : > { %v594_v45 = vadd.f32 %v593_v43, %v592_v40  ;;  %v606_v46 = vadd.f32 %v605_v44, %v604_v41  ;;  %v595_v47 = vpop.f32.mrb[2].mxu0  ;;  %v607_v48 = vpop.f32.mrb[2].mxu1 }
  0xfc   : > { %v596_v51 = vpop.f32.mrb[3].mxu0  ;;  %v608_v52 = vpop.f32.mrb[3].mxu1 }
  0xfd   : > { %v421_v53 = vadd.f32 %v594_v45, %v556_v42  ;;  %v437_v54 = vadd.f32 %v606_v46, %v556_v42  ;;  %v597_v55 = vadd.f32 %v596_v51, %v595_v47  ;;  %v609_v56 = vadd.f32 %v608_v52, %v607_v48 }
  0xff   : > { %v459_v59 = vadd.f32 %v451_v49, %v421_v53  ;;  %v463_v60 = vadd.f32 %v455_v50, %v437_v54  ;;  %v424_v61 = vadd.f32 %v597_v55, %v556_v42  ;;  %v440_v62 = vadd.f32 %v609_v56, %v556_v42 }
 0x101   : > { %468 = vst.msk [vmem:[%s783_s11] sm:$0xff] %vm467_vm0, %v459_v59  ;;  %472 = vst.msk [vmem:[%s783_s11 + $0x20] sm:$0xff] %vm467_vm0, %v463_v60  ;;  %v460_v63 = vadd.f32 %v452_v57, %v424_v61  ;;  %v464_v0 = vadd.f32 %v456_v58, %v440_v62  ;;  %v598_v1 = vpop.f32.mrb[4].mxu0  ;;  %v610_v2 = vpop.f32.mrb[4].mxu1 }
 0x102   : > { %v599_v3 = vpop.f32.mrb[5].mxu0  ;;  %v611_v4 = vpop.f32.mrb[5].mxu1 }
 0x103   : > { %469 = vst.msk [vmem:[%s783_s11 + $0x8] sm:$0xff] %vm467_vm0, %v460_v63  ;;  %473 = vst.msk [vmem:[%s783_s11 + $0x28] sm:$0xff] %vm467_vm0, %v464_v0  ;;  %v600_v5 = vadd.f32 %v599_v3, %v598_v1  ;;  %v612_v6 = vadd.f32 %v611_v4, %v610_v2  ;;  %v601_v7 = vpop.f32.mrb[6].mxu0  ;;  %v613_v8 = vpop.f32.mrb[6].mxu1 }
 0x104   : > { %v602_v11 = vpop.f32.mrb[7].mxu0  ;;  %v614_v12 = vpop.f32.mrb[7].mxu1 }
 0x105   : > { %v429_v13 = vadd.f32 %v600_v5, %v556_v42  ;;  %v445_v14 = vadd.f32 %v612_v6, %v556_v42  ;;  %v603_v15 = vadd.f32 %v602_v11, %v601_v7  ;;  %v615_v16 = vadd.f32 %v614_v12, %v613_v8 }
 0x107   : > { %v461_v19 = vadd.f32 %v453_v9, %v429_v13  ;;  %v465_v20 = vadd.f32 %v457_v10, %v445_v14  ;;  %v432_v21 = vadd.f32 %v603_v15, %v556_v42  ;;  %v448_v22 = vadd.f32 %v615_v16, %v556_v42 }
 0x109   : > { %470 = vst.msk [vmem:[%s783_s11 + $0x10] sm:$0xff] %vm467_vm0, %v461_v19  ;;  %474 = vst.msk [vmem:[%s783_s11 + $0x30] sm:$0xff] %vm467_vm0, %v465_v20  ;;  %v462_v23 = vadd.f32 %v454_v17, %v432_v21  ;;  %v466_v24 = vadd.f32 %v458_v18, %v448_v22 }
 0x10b   : > { %471 = vst.msk [vmem:[%s783_s11 + $0x18] sm:$0xff] %vm467_vm0, %v462_v23  ;;  %475 = vst.msk [vmem:[%s783_s11 + $0x38] sm:$0xff] %vm467_vm0, %v466_v24 }
 0x10c PF: > { %s14_s15 = sadd.s32 1, %s662_s15  }
 0x10d   : > { %p11_p4 = scmp.ge.s32.totalorder %s14_s15, 4  }
 0x10f   :  { %13 = sbr.rel (!%p11_p4) target bundleno = 1 (0x1), region = 69 }

// kernel: _pallas_forward.27
= control target key start
LH: loop header
LB: loop body
LE: loop exit
PB: predicated region body
PF: predicated region fallthrough
CT: control target
= control target key end

     0   :  { %vm23_vm0 = vcmask 517120   ;;  %s283_s0 = inlined_call_operand.vmem [shape: f32[2,64], index: 0, kind: input, shape index: {}]   ;;  %s284_s1 = inlined_call_operand.vmem [shape: f32[1,64], index: 1, kind: input, shape index: {}]   ;;  %s285_s2 = inlined_call_operand.vmem [shape: f32[1,64], index: 2, kind: input, shape index: {}]   ;;  %s286_s3 = inlined_call_operand.vmem [shape: bf16[64,64], index: 3, kind: input, shape index: {}]   ;;  %s287_s4 = inlined_call_operand.vmem [shape: f32[1,64], index: 4, kind: input, shape index: {}]   ;;  %s288_s5 = inlined_call_operand.hbm [shape: f32[2,64], index: 5, kind: output, shape index: {}]  }
   0x1   :  { %v22_v0 = vld [vmem:[%s283_s0] sm:$0x3] }
   0x2   :  { %v24_v1 = vsel %vm23_vm0, %v22_v0, 0.0 }
   0x3   :  { %25 = vadd.xlane.f32.xlu0 %v24_v1 }
   0x4   :  { %10 = vsyncpa [#allocation3], 0  ;;  %v181_v7 = vld [vmem:[%s286_s3] sm:$0xff]   ;;  %v211_v8 = vmov 0.0   ;;  %v182_v9 = vld [vmem:[%s286_s3 + $0x8] sm:$0xff]   ;;  %vm212_vm1 = vmmov 0  }
   0x5   :  { %166 = vmatprep.subr.bf16.mxu0 %v211_v8  ;;  %v183_v10 = vld [vmem:[%s286_s3 + $0x10] sm:$0xff]   ;;  %v184_v11 = vld [vmem:[%s286_s3 + $0x18] sm:$0xff]   ;;  %174 = vmatprep.mubr.msk.bf16.mxu0 %vm212_vm1, %v211_v8  ;;  %v153_v16 = vld [vmem:[%s284_s1] ss:$0 sm:$0xff]  ;;  %vm94_vm2 = vcmask 523264   ;;  %s213_s7 = smov [#allocation2]  }
   0x6   :  { %167 = vmatpush3.bf16.msra.mxu0 %v181_v7  ;;  %v154_v18 = vld [vmem:[%s285_s2] ss:$0 sm:$0xff]  ;;  %s145_s8 = sshll.u32 %s213_s7, 4  ;;  %s146_s8 = int_to_ptr.vmem [resolvable:$true] %s145_s8 }
   0x7   :  { %168 = vmatprep.subr.bf16.mxu0 %v211_v8  ;;  %v155_v22 = vld [vmem:[%s287_s4] ss:$0 sm:$0xff]  ;;  %s187_s1 = scalar_lea.vmem %s146_s8, 32  ;;  %p192_p1 = scmp.lt.s32.totalorder %s146_s8, %s146_s8 }
   0x8   :  { %p188_p0 = scmp.ne.s32.totalorder %s146_s8, %s187_s1  ;;  %p193_p2 = scmp.lt.s32.totalorder %s187_s1, %s187_s1 }
   0xa   :  { %169 = vmatpush3.bf16.msra.mxu0 %v182_v9  ;;  %p194_p3 = por %p193_p2, %p192_p1 }
   0xb   :  { %170 = vmatprep.subr.bf16.mxu0 %v211_v8 }
   0xc   :  { %p195_p4 = pnand %p194_p3, %p188_p0 }
   0xe   :  { %171 = vmatpush3.bf16.msra.mxu0 %v183_v10 }
   0xf   :  { %172 = vmatprep.subr.bf16.mxu0 %v211_v8 }
  0x12   :  { %173 = vmatpush3.bf16.msra.mxu0 %v184_v11 }
  0x90   :  { %v26_v2 = vpop.xlane.xlu0 %25 }
  0x91   :  { %v28_v3 = vmul.f32 0.015625, %v26_v2 }
  0x93   :  { %v29_v4 = vsub.f32 %v22_v0, %v28_v3 }
  0x95   :  { %v30_v5 = vmul.f32 %v29_v4, %v29_v4 }
  0x97   :  { %v31_v6 = vsel %vm23_vm0, %v30_v5, 0.0 }
  0x98   :  { %32 = vadd.xlane.f32.xlu0 %v31_v6 }
 0x125   :  { %v33_v12 = vpop.xlane.xlu0 %32 }
 0x126   :  { %v34_v13 = vmul.f32 0.015625, %v33_v12 }
 0x128   :  { %v35_v14 = vadd.f32 1e-05, %v34_v13 }
 0x12a   :  { %185 = vrsqrt.f32 %v35_v14 }
 0x134   :  { %v186_v15 = vpop.eup %185 }
 0x135   :  { %v37_v17 = vmul.f32 %v186_v15, %v29_v4 }
 0x137   :  { %v45_v19 = vmul.f32 %v153_v16, %v37_v17 }
 0x139   :  { %v53_v20 = vadd.f32 %v154_v18, %v45_v19 }
 0x13b   :  { %v54_v21 = vpack.c.bf16 %v53_v20, %v53_v20 }
 0x13d   :  { %175 = vmatmul.mubr.msk.bf16.vlgmr.msra.gmra.mrb[0].mxu0 %vm94_vm2, %v54_v21 }
 0x210   :  { %v132_v23 = vpop.f32.mrb[0].mxu0 }
 0x211   :  { %v133_v24 = vadd.f32 %v155_v22, %v132_v23  ;;  %v176_v25 = vpop.f32.mrb[1].mxu0 }
 0x212   :  { %v135_v26 = vpop.f32.mrb[2].mxu0 }
 0x213   :  { %138 = vst.msk [vmem:[#allocation2] sm:$0x3] %vm23_vm0, %v133_v24  ;;  %v177_v27 = vpop.f32.mrb[3].mxu0 }
 0x214   :  { %198 = shalt.err (!%p195_p4)
}
 0x215   :  { %s199_s4 = scalar_lea.hbm %s288_s5, 32 }
 0x216   :  { %p200_p5 = scmp.ne.s32.totalorder %s288_s5, %s199_s4  ;;  %p203_p6 = scmp.lt.u32.totalorder %s199_s4, %s288_s5 }
 0x218   :  { %p205_p7 = pnand %p203_p6, %p200_p5 }
 0x21a   :  { %208 = shalt.err (!%p205_p7)
}
 0x21b   :  { %148 = dma.vmem_to_hbm [thread:$0]  %s146_s8, 32, %s288_s5, [#allocation3]  }
 0x21c   :  { %209 = dma.done.wait [#allocation3], 32  }
 0x21d   :  { %210 = vsyncadd [#allocation3], 4294967264 }
 0x21e   :  { %152 = vsyncpa [#allocation3], 1 }

</bundles_post_ra>
